<compile_context>
chip_gen: v7x
topology: tpu7x:2x2x1
jax: 0.10.0
libtpu: 0.0.40
codegen_flags: <defaults>
</compile_context>

<pallas_src>
import numpy as np

import jax
import jax.numpy as jnp
from jax.experimental import pallas as pl
from jax.experimental.pallas import tpu as pltpu


# ----------------------------- scaled-down config -----------------------------
POOLER_RESOLUTION = 8        # config.MODEL.ROI_BOX_HEAD.POOLER_RESOLUTION (scaled down)
POOLER_SCALE = 0.5           # config.MODEL.ROI_BOX_HEAD.POOLER_SCALES (single scale)
SAMPLING_RATIO = 2           # config.MODEL.ROI_BOX_HEAD.POOLER_SAMPLING_RATIO
IN_CHANNELS = 32             # backbone feature channels fed to the pooler
BOTTLENECK_CHANNELS = 16     # num_groups * width_per_group * 2**(index-1)  (scaled down)
OUT_CHANNELS = 64            # res2_out_channels * 2**(index-1)             (scaled down)
NUM_BLOCKS = 3               # StageSpec(index=4, block_count=3)
BN_EPS = 1e-5                # FrozenBatchNorm2d eps (matches newer maskrcnn_benchmark)
# STRIDE_IN_1X1 = True, RES5_DILATION = 1, NUM_GROUPS = 1 are assumed below.

HEAD_SIDE = POOLER_RESOLUTION // 2   # 4: spatial side inside the head (first block stride 2)
S = HEAD_SIDE * HEAD_SIDE            # 16 spatial positions per ROI inside the head
ROI_BLOCK = 8                        # ROIs per grid step (multiple of 8 for sublane tiling)


# ----------------------------- Pallas kernels -----------------------------
def roi_pool_kernel(w_ref, f_ref, o_ref):
    """One ROI block per grid step: (RB*S, N*H*W) @ (N*H*W, C), bf16 in / f32 accumulate.

    The feature-map block index is constant across the grid, so it is DMA'd once and stays
    resident in VMEM for every ROI block.  Output rows are (ROI-major, spatial-minor) so
    the head-input reshape outside is a contiguous no-op.
    """
    o_ref[...] = jnp.dot(w_ref[...], f_ref[...],
                         preferred_element_type=jnp.float32).astype(o_ref.dtype)


def head_kernel(x_ref,
                w1a, b1a, w2a, b2a, w3a, b3a, wda, bda,     # block 0 (+ downsample)
                w1b, b1b, w2b, b2b, w3b, b3b,               # block 1
                w1c, b1c, w2c, b2c, w3c, b3c,               # block 2
                o_ref):
    """Entire ResNetHead stage-5 (3 bottlenecks) for one block of ROIs, fully in VMEM.

    Activation layout: (RB, S*C) rows, spatial position major / channel minor, so every
    conv is a single 2-D matmul against a pre-expanded, BN-folded, bf16 weight operator.
    """

    def mm(a_bf16, w_ref_):
        return jnp.dot(a_bf16, w_ref_[...], preferred_element_type=jnp.float32)

    def bottleneck(x_f32, x_bf16, w1, b1, w2, b2, w3, b3, wd=None, bd=None):
        # conv1 (1x1, BN folded) + relu
        h = jnp.maximum(mm(x_bf16, w1) + b1[...], 0.0)
        # conv2 (3x3, pad 1, expressed as one (S*Cb, S*Cb) matmul) + relu
        h = jnp.maximum(mm(h.astype(jnp.bfloat16), w2) + b2[...], 0.0)
        # conv3 (1x1)
        y = mm(h.astype(jnp.bfloat16), w3) + b3[...]
        # identity / downsample branch
        if wd is None:
            idn = x_f32
        else:
            idn = mm(x_bf16, wd) + bd[...]
        return jnp.maximum(y + idn, 0.0)

    x0 = x_ref[...]                                                     # (RB, S*Cin) bf16
    o1 = bottleneck(None, x0, w1a, b1a, w2a, b2a, w3a, b3a, wda, bda)   # (RB, S*Cout) f32
    o2 = bottleneck(o1, o1.astype(jnp.bfloat16), w1b, b1b, w2b, b2b, w3b, b3b)
    o3 = bottleneck(o2, o2.astype(jnp.bfloat16), w1c, b1c, w2c, b2c, w3c, b3c)
    o_ref[...] = o3                                                     # lane-dense (1024)


# ----------------------------- Pallas wrappers -----------------------------
def pallas_roi_pool(wmat_flat, feats_flat):
    """wmat_flat: (R_pad*S, N*H*W) bf16; feats_flat: (N*H*W, C) bf16 -> (R_pad*S, C) bf16."""
    m, nhw = wmat_flat.shape
    _, c = feats_flat.shape
    rows = ROI_BLOCK * S
    return pl.pallas_call(
        roi_pool_kernel,
        out_shape=jax.ShapeDtypeStruct((m, c), jnp.bfloat16),
        grid=(m // rows,),
        in_specs=[
            pl.BlockSpec((rows, nhw), lambda i: (i, 0)),
            pl.BlockSpec((nhw, c), lambda i: (0, 0)),       # resident: fetched once
        ],
        out_specs=pl.BlockSpec((rows, c), lambda i: (i, 0)),
        compiler_params=pltpu.CompilerParams(dimension_semantics=("parallel",)),
    )(wmat_flat, feats_flat)


def pallas_head(x_bf16, flat_weights, out_cols):
    """x_bf16: (R_pad, S*Cin) bf16; flat_weights: 20 expanded weight/bias arrays."""
    r_pad, k0 = x_bf16.shape
    in_specs = [pl.BlockSpec((ROI_BLOCK, k0), lambda i: (i, 0))]
    for w in flat_weights:                                  # weights stay VMEM-resident
        in_specs.append(pl.BlockSpec(w.shape, lambda i: (0, 0)))
    return pl.pallas_call(
        head_kernel,
        out_shape=jax.ShapeDtypeStruct((r_pad, out_cols), jnp.float32),
        grid=(r_pad // ROI_BLOCK,),
        in_specs=in_specs,
        out_specs=pl.BlockSpec((ROI_BLOCK, out_cols), lambda i: (i, 0)),
        compiler_params=pltpu.CompilerParams(
            dimension_semantics=("parallel",),
            vmem_limit_bytes=32 * 1024 * 1024,
        ),
    )(x_bf16, *flat_weights)


# ----------------------------- glue: ROIAlign interpolation matrix -----------------------------
def roi_align_interp_matrix(rois, n_images, height, width, pooled, bin_indices,
                            sampling_ratio, spatial_scale):
    """Detectron ROIAlign (aligned=False) as a per-ROI interpolation matrix against the
    batch-concatenated feature map: (R, nb*nb, n_images*height*width).

    Only the bins listed in `bin_indices` (along each axis of the `pooled x pooled` grid)
    are materialised -- for this head only the stride-2 bins are ever read.  The per-ROI
    batch index is absorbed into the column offset, so the pooling kernel needs no
    per-ROI gather and keeps the whole feature map resident.
    TODO(synk): replace with an in-kernel gather-based bilinear ROIAlign for real C4 sizes.
    """
    num_rois = rois.shape[0]
    nb = int(bin_indices.shape[0])
    batch_idx = rois[:, 0].astype(jnp.int32)
    x1 = rois[:, 1] * spatial_scale
    y1 = rois[:, 2] * spatial_scale
    x2 = rois[:, 3] * spatial_scale
    y2 = rois[:, 4] * spatial_scale
    roi_w = jnp.maximum(x2 - x1, 1.0)
    roi_h = jnp.maximum(y2 - y1, 1.0)
    bin_w = roi_w / pooled
    bin_h = roi_h / pooled

    sg = sampling_ratio
    p_idx = bin_indices.astype(jnp.float32)
    s_idx = jnp.arange(sg, dtype=jnp.float32)
    ys = (y1[:, None, None] + p_idx[None, :, None] * bin_h[:, None, None]
          + (s_idx[None, None, :] + 0.5) * bin_h[:, None, None] / sg)
    xs = (x1[:, None, None] + p_idx[None, :, None] * bin_w[:, None, None]
          + (s_idx[None, None, :] + 0.5) * bin_w[:, None, None] / sg)

    shape = (num_rois, nb, nb, sg, sg)
    y = jnp.broadcast_to(ys[:, :, None, :, None], shape)
    x = jnp.broadcast_to(xs[:, None, :, None, :], shape)

    valid = (y >= -1.0) & (y <= height) & (x >= -1.0) & (x <= width)
    yc = jnp.clip(y, 0.0, height - 1.0)
    xc = jnp.clip(x, 0.0, width - 1.0)
    y_low = jnp.floor(yc)
    x_low = jnp.floor(xc)
    y_high = jnp.minimum(y_low + 1.0, height - 1.0)
    x_high = jnp.minimum(x_low + 1.0, width - 1.0)
    ly = yc - y_low
    lx = xc - x_low
    hy = 1.0 - ly
    hx = 1.0 - lx
    yl, yh = y_low.astype(jnp.int32), y_high.astype(jnp.int32)
    xl, xh = x_low.astype(jnp.int32), x_high.astype(jnp.int32)

    inv_count = jnp.where(valid, 1.0 / float(sg * sg), 0.0)
    img_off = (batch_idx * (height * width))[:, None, None, None, None]
    nhw = n_images * height * width

    wmat = jnp.zeros((num_rois, nb, nb, nhw), jnp.float32)
    # one_hot accumulation instead of scatter-add (scatter serializes on TPU)
    for yi, xi, wgt in ((yl, xl, hy * hx), (yl, xh, hy * lx),
                        (yh, xl, ly * hx), (yh, xh, ly * lx)):
        pix = img_off + yi * width + xi
        contrib = (wgt * inv_count)[..., None] * jax.nn.one_hot(pix, nhw, dtype=jnp.float32)
        wmat = wmat + contrib.sum(axis=(3, 4))
    return wmat.reshape(num_rois, nb * nb, nhw)


# ----------------------------- glue: head weight expansion -----------------------------
def frozen_bn_scale_bias(bn):
    """FrozenBatchNorm2d: scale = weight * rsqrt(var + eps); bias = bias - mean * scale."""
    weight, bias, running_mean, running_var = bn
    scale = weight * jax.lax.rsqrt(running_var + BN_EPS)
    shift = bias - running_mean * scale
    return scale, shift


def _conv3x3_adjacency(side):
    """A[k, q, p] = 1 iff spatial position q is tap k's source for output position p
    (3x3, stride 1, padding 1, row-major p = y*side + x, k = dy*3 + dx)."""
    s_ = side * side
    a = np.zeros((9, s_, s_), np.float32)
    for dy in range(3):
        for dx in range(3):
            k = dy * 3 + dx
            for y in range(side):
                for x in range(side):
                    ys, xs = y + dy - 1, x + dx - 1
                    if 0 <= ys < side and 0 <= xs < side:
                        a[k, ys * side + xs, y * side + x] = 1.0
    return a


_CONV3_ADJ = jnp.asarray(_conv3x3_adjacency(HEAD_SIDE))   # (9, S, S)


def expand_head_weights(params):
    """Fold FrozenBN scale into conv weights and expand each conv into one (S*Cin, S*Cout)
    bf16 matmul operator acting on lane-dense (ROI, S*C) activation rows; biases are tiled
    to (1, S*Cout) f32.  Returns the flat list in the order head_kernel expects."""
    eye_s = jnp.eye(S, dtype=jnp.float32)
    flat = []
    for b, p in enumerate(params):
        s1, t1 = frozen_bn_scale_bias(p["bn1"])
        s2, t2 = frozen_bn_scale_bias(p["bn2"])
        s3, t3 = frozen_bn_scale_bias(p["bn3"])
        w1 = p["w1"] * s1[None, :]                 # (Cin, Cb)
        w2 = p["w2"] * s2[None, None, :]           # (9, Cb, Cb)
        w3 = p["w3"] * s3[None, :]                 # (Cb, Cout)
        cb = w2.shape[1]
        w1e = jnp.kron(eye_s, w1).astype(jnp.bfloat16)                       # (S*Cin, S*Cb)
        w2e = jnp.einsum("kqp,kcd->qcpd", _CONV3_ADJ, w2).reshape(
            S * cb, S * cb).astype(jnp.bfloat16)                             # (S*Cb, S*Cb)
        w3e = jnp.kron(eye_s, w3).astype(jnp.bfloat16)                       # (S*Cb, S*Cout)
        b1e = jnp.tile(t1, S)[None, :]
        b2e = jnp.tile(t2, S)[None, :]
        b3e = jnp.tile(t3, S)[None, :]
        flat += [w1e, b1e, w2e, b2e, w3e, b3e]
        if b == 0:  # downsample branch (1x1, stride 2 handled by the strided head input)
            sd, td = frozen_bn_scale_bias(p["bn_d"])
            wde = jnp.kron(eye_s, p["wd"] * sd[None, :]).astype(jnp.bfloat16)
            bde = jnp.tile(td, S)[None, :]
            flat += [wde, bde]
    return flat


# ----------------------------- forward pass -----------------------------
def roi_box_feature_extractor(features_nchw, rois, params):
    """Full forward: Pooler(ROIAlign) + ResNetHead(stage 5).  In/out use PyTorch NCHW."""
    n, c, h, w = features_nchw.shape
    num_rois = rois.shape[0]

    # ---- Pooler (ROIAlign as one matmul per ROI block) ----
    # Only the stride-2 bins {0,2,4,6}^2 are sampled: with stride_in_1x1=True the first
    # bottleneck's conv1 and downsample (both 1x1, stride 2) read exactly those positions,
    # so the remaining 48 pooled positions never influence the module output.
    feats = jnp.transpose(features_nchw, (0, 2, 3, 1)).reshape(n * h * w, c)
    bin_idx = jnp.arange(0, POOLER_RESOLUTION, 2)                     # (HEAD_SIDE,)
    wmat = roi_align_interp_matrix(rois, n, h, w, POOLER_RESOLUTION, bin_idx,
                                   SAMPLING_RATIO, POOLER_SCALE)      # (R, S, NHW)
    r_pad = ((num_rois + ROI_BLOCK - 1) // ROI_BLOCK) * ROI_BLOCK
    wmat = jnp.pad(wmat, ((0, r_pad - num_rois), (0, 0), (0, 0)))
    pooled = pallas_roi_pool(
        wmat.reshape(r_pad * S, n * h * w).astype(jnp.bfloat16),
        feats.astype(jnp.bfloat16))                                   # (r_pad*S, c) bf16

    # ---- head input: rows are already (ROI-major, spatial-major, channel-minor) ----
    x = pooled.reshape(r_pad, S * c)                                  # contiguous reshape

    # ---- ResNetHead stage 5: all 3 bottlenecks fused in one pallas_call ----
    flat_weights = expand_head_weights(params)
    y = pallas_head(x, flat_weights, S * OUT_CHANNELS)                # (r_pad, S*Cout) f32

    y = y[:num_rois].reshape(num_rois, HEAD_SIDE, HEAD_SIDE, OUT_CHANNELS)
    return jnp.transpose(y, (0, 3, 1, 2))                             # NHWC -> NCHW


# ----------------------------- deterministic parameter init -----------------------------
def init_bn(key, c):
    k1, k2, k3, k4 = jax.random.split(key, 4)
    weight = 1.0 + 0.05 * jax.random.normal(k1, (c,), jnp.float32)
    bias = 0.05 * jax.random.normal(k2, (c,), jnp.float32)
    running_mean = 0.05 * jax.random.normal(k3, (c,), jnp.float32)
    running_var = 1.0 + 0.1 * jax.random.uniform(k4, (c,), jnp.float32)
    return weight, bias, running_mean, running_var


def init_params(key):
    params = []
    in_c = IN_CHANNELS
    for b in range(NUM_BLOCKS):
        keys = jax.random.split(key, 9)
        key = keys[-1]
        p = {
            "w1": 0.1 * jax.random.normal(keys[0], (in_c, BOTTLENECK_CHANNELS), jnp.float32),
            "bn1": init_bn(keys[1], BOTTLENECK_CHANNELS),
            "w2": 0.1 * jax.random.normal(
                keys[2], (9, BOTTLENECK_CHANNELS, BOTTLENECK_CHANNELS), jnp.float32),
            "bn2": init_bn(keys[3], BOTTLENECK_CHANNELS),
            "w3": 0.1 * jax.random.normal(keys[4], (BOTTLENECK_CHANNELS, OUT_CHANNELS), jnp.float32),
            "bn3": init_bn(keys[5], OUT_CHANNELS),
        }
        if b == 0:  # downsample (1x1 stride-2 conv + FrozenBN) on the identity path
            p["wd"] = 0.1 * jax.random.normal(keys[6], (in_c, OUT_CHANNELS), jnp.float32)
            p["bn_d"] = init_bn(keys[7], OUT_CHANNELS)
        params.append(p)
        in_c = OUT_CHANNELS
    return params


# ----------------------------- main -----------------------------
if __name__ == "__main__":
    key = jax.random.PRNGKey(0)
    kf, kp, kr = jax.random.split(key, 3)

    N, H, W = 2, 16, 16
    # Backbone feature map, PyTorch NCHW convention.
    features = jax.random.normal(kf, (N, IN_CHANNELS, H, W), jnp.float32)

    # Proposals as ROIs: [batch_idx, x1, y1, x2, y2] in image coords (image ~ 32x32 @ scale 0.5).
    R = 12
    kb, kxy, kwh = jax.random.split(kr, 3)
    bidx = jax.random.randint(kb, (R,), 0, N).astype(jnp.float32)
    xy1 = jax.random.uniform(kxy, (R, 2), minval=0.0, maxval=14.0)
    wh = jax.random.uniform(kwh, (R, 2), minval=4.0, maxval=16.0)
    rois = jnp.concatenate([bidx[:, None], xy1, xy1 + wh], axis=1)

    params = init_params(kp)

    out = jax.jit(roi_box_feature_extractor)(features, rois, params)
    out = jax.block_until_ready(out)

    expected = (R, OUT_CHANNELS, POOLER_RESOLUTION // 2, POOLER_RESOLUTION // 2)
    assert out.shape == expected, (out.shape, expected)
    assert bool(jnp.all(jnp.isfinite(out)))
    print("KERNEL_OK")
</pallas_src>

<mosaic_0001>
module attributes {stable_mosaic.version = 11 : i64} {
  func.func @roi_pool_kernel(%arg0: i32, %arg1: memref<128x512xbf16, #tpu.memory_space<vmem>>, %arg2: memref<512x32xbf16, #tpu.memory_space<vmem>>, %arg3: memref<128x32xbf16, #tpu.memory_space<vmem>>) attributes {dimension_semantics = [#tpu.dimension_semantics<parallel>], iteration_bounds = array<i64: 2>, scalar_prefetch = 0 : i64, scratch_operands = 0 : i64, tpu.core_type = #tpu.core_type<tc>, window_params = [{transform_indices = @transform_0, window_bounds = array<i64: 128, 512>}, {pipeline_mode = #tpu.pipeline_mode<synchronous>, transform_indices = @transform_1, window_bounds = array<i64: 512, 32>}, {transform_indices = @transform_2, window_bounds = array<i64: 128, 32>}]} {
    %c0 = arith.constant 0 : index
    %c0_0 = arith.constant 0 : index
    %0 = vector.load %arg1[%c0, %c0_0] : memref<128x512xbf16, #tpu.memory_space<vmem>>, vector<128x512xbf16>
    %c0_1 = arith.constant 0 : index
    %c0_2 = arith.constant 0 : index
    %1 = vector.load %arg2[%c0_1, %c0_2] : memref<512x32xbf16, #tpu.memory_space<vmem>>, vector<512x32xbf16>
    %cst = arith.constant dense<0.000000e+00> : vector<128x32xf32>
    %2 = tpu.matmul %0, %1, %cst {dimension_numbers = #tpu.dot_dimension_numbers<[1], [0], [0], [1], [0, 0, 1, 1], [], []>} : vector<128x512xbf16>, vector<512x32xbf16>, vector<128x32xf32> -> vector<128x32xf32>
    %3 = arith.truncf %2 : vector<128x32xf32> to vector<128x32xbf16>
    %c0_3 = arith.constant 0 : index
    %c0_4 = arith.constant 0 : index
    %4 = vector.load %arg3[%c0_3, %c0_4] : memref<128x32xbf16, #tpu.memory_space<vmem>>, vector<128x32xbf16>
    tpu.vector_store %arg3[%c0_3, %c0_4], %3 {strides = array<i32>} : memref<128x32xbf16, #tpu.memory_space<vmem>>, vector<128x32xbf16>,
    return
  }
  func.func @transform_0(%arg0: i32) -> (i32, i32) {
    %c0_i32 = arith.constant 0 : i32
    %c0_i32_0 = arith.constant 0 : i32
    return %arg0, %c0_i32 : i32, i32
  }
  func.func @transform_1(%arg0: i32) -> (i32, i32) {
    %c0_i32 = arith.constant 0 : i32
    %c0_i32_0 = arith.constant 0 : i32
    %c0_i32_1 = arith.constant 0 : i32
    return %c0_i32, %c0_i32_0 : i32, i32
  }
  func.func @transform_2(%arg0: i32) -> (i32, i32) {
    %c0_i32 = arith.constant 0 : i32
    %c0_i32_0 = arith.constant 0 : i32
    return %arg0, %c0_i32 : i32, i32
  }
}

module attributes {stable_mosaic.version = 11 : i64} {
  func.func @head_kernel(%arg0: i32, %arg1: memref<8x512xbf16, #tpu.memory_space<vmem>>, %arg2: memref<512x256xbf16, #tpu.memory_space<vmem>>, %arg3: memref<1x256xf32, #tpu.memory_space<vmem>>, %arg4: memref<256x256xbf16, #tpu.memory_space<vmem>>, %arg5: memref<1x256xf32, #tpu.memory_space<vmem>>, %arg6: memref<256x1024xbf16, #tpu.memory_space<vmem>>, %arg7: memref<1x1024xf32, #tpu.memory_space<vmem>>, %arg8: memref<512x1024xbf16, #tpu.memory_space<vmem>>, %arg9: memref<1x1024xf32, #tpu.memory_space<vmem>>, %arg10: memref<1024x256xbf16, #tpu.memory_space<vmem>>, %arg11: memref<1x256xf32, #tpu.memory_space<vmem>>, %arg12: memref<256x256xbf16, #tpu.memory_space<vmem>>, %arg13: memref<1x256xf32, #tpu.memory_space<vmem>>, %arg14: memref<256x1024xbf16, #tpu.memory_space<vmem>>, %arg15: memref<1x1024xf32, #tpu.memory_space<vmem>>, %arg16: memref<1024x256xbf16, #tpu.memory_space<vmem>>, %arg17: memref<1x256xf32, #tpu.memory_space<vmem>>, %arg18: memref<256x256xbf16, #tpu.memory_space<vmem>>, %arg19: memref<1x256xf32, #tpu.memory_space<vmem>>, %arg20: memref<256x1024xbf16, #tpu.memory_space<vmem>>, %arg21: memref<1x1024xf32, #tpu.memory_space<vmem>>, %arg22: memref<8x1024xf32, #tpu.memory_space<vmem>>) attributes {dimension_semantics = [#tpu.dimension_semantics<parallel>], iteration_bounds = array<i64: 2>, scalar_prefetch = 0 : i64, scratch_operands = 0 : i64, tpu.core_type = #tpu.core_type<tc>, window_params = [{transform_indices = @transform_0, window_bounds = array<i64: 8, 512>}, {pipeline_mode = #tpu.pipeline_mode<synchronous>, transform_indices = @transform_1, window_bounds = array<i64: 512, 256>}, {pipeline_mode = #tpu.pipeline_mode<synchronous>, transform_indices = @transform_2, window_bounds = array<i64: 1, 256>}, {pipeline_mode = #tpu.pipeline_mode<synchronous>, transform_indices = @transform_3, window_bounds = array<i64: 256, 256>}, {pipeline_mode = #tpu.pipeline_mode<synchronous>, transform_indices = @transform_4, window_bounds = array<i64: 1, 256>}, {pipeline_mode = #tpu.pipeline_mode<synchronous>, transform_indices = @transform_5, window_bounds = array<i64: 256, 1024>}, {pipeline_mode = #tpu.pipeline_mode<synchronous>, transform_indices = @transform_6, window_bounds = array<i64: 1, 1024>}, {pipeline_mode = #tpu.pipeline_mode<synchronous>, transform_indices = @transform_7, window_bounds = array<i64: 512, 1024>}, {pipeline_mode = #tpu.pipeline_mode<synchronous>, transform_indices = @transform_8, window_bounds = array<i64: 1, 1024>}, {pipeline_mode = #tpu.pipeline_mode<synchronous>, transform_indices = @transform_9, window_bounds = array<i64: 1024, 256>}, {pipeline_mode = #tpu.pipeline_mode<synchronous>, transform_indices = @transform_10, window_bounds = array<i64: 1, 256>}, {pipeline_mode = #tpu.pipeline_mode<synchronous>, transform_indices = @transform_11, window_bounds = array<i64: 256, 256>}, {pipeline_mode = #tpu.pipeline_mode<synchronous>, transform_indices = @transform_12, window_bounds = array<i64: 1, 256>}, {pipeline_mode = #tpu.pipeline_mode<synchronous>, transform_indices = @transform_13, window_bounds = array<i64: 256, 1024>}, {pipeline_mode = #tpu.pipeline_mode<synchronous>, transform_indices = @transform_14, window_bounds = array<i64: 1, 1024>}, {pipeline_mode = #tpu.pipeline_mode<synchronous>, transform_indices = @transform_15, window_bounds = array<i64: 1024, 256>}, {pipeline_mode = #tpu.pipeline_mode<synchronous>, transform_indices = @transform_16, window_bounds = array<i64: 1, 256>}, {pipeline_mode = #tpu.pipeline_mode<synchronous>, transform_indices = @transform_17, window_bounds = array<i64: 256, 256>}, {pipeline_mode = #tpu.pipeline_mode<synchronous>, transform_indices = @transform_18, window_bounds = array<i64: 1, 256>}, {pipeline_mode = #tpu.pipeline_mode<synchronous>, transform_indices = @transform_19, window_bounds = array<i64: 256, 1024>}, {pipeline_mode = #tpu.pipeline_mode<synchronous>, transform_indices = @transform_20, window_bounds = array<i64: 1, 1024>}, {transform_indices = @transform_21, window_bounds = array<i64: 8, 1024>}]} {
    %c0 = arith.constant 0 : index
    %c0_0 = arith.constant 0 : index
    %0 = vector.load %arg1[%c0, %c0_0] : memref<8x512xbf16, #tpu.memory_space<vmem>>, vector<8x512xbf16>
    %c0_1 = arith.constant 0 : index
    %c0_2 = arith.constant 0 : index
    %1 = vector.load %arg2[%c0_1, %c0_2] : memref<512x256xbf16, #tpu.memory_space<vmem>>, vector<512x256xbf16>
    %cst = arith.constant dense<0.000000e+00> : vector<8x256xf32>
    %2 = tpu.matmul %0, %1, %cst {dimension_numbers = #tpu.dot_dimension_numbers<[1], [0], [0], [1], [0, 0, 1, 1], [], []>} : vector<8x512xbf16>, vector<512x256xbf16>, vector<8x256xf32> -> vector<8x256xf32>
    %c0_3 = arith.constant 0 : index
    %c0_4 = arith.constant 0 : index
    %3 = vector.load %arg3[%c0_3, %c0_4] : memref<1x256xf32, #tpu.memory_space<vmem>>, vector<1x256xf32>
    %4 = vector.broadcast %3 : vector<1x256xf32> to vector<8x256xf32>
    %5 = arith.addf %2, %4 : vector<8x256xf32>
    %cst_5 = arith.constant 0.000000e+00 : f32
    %6 = vector.broadcast %cst_5 : f32 to vector<8x256xf32>
    %7 = arith.maximumf %5, %6 : vector<8x256xf32>
    %8 = arith.truncf %7 : vector<8x256xf32> to vector<8x256xbf16>
    %c0_6 = arith.constant 0 : index
    %c0_7 = arith.constant 0 : index
    %9 = vector.load %arg4[%c0_6, %c0_7] : memref<256x256xbf16, #tpu.memory_space<vmem>>, vector<256x256xbf16>
    %cst_8 = arith.constant dense<0.000000e+00> : vector<8x256xf32>
    %10 = tpu.matmul %8, %9, %cst_8 {dimension_numbers = #tpu.dot_dimension_numbers<[1], [0], [0], [1], [0, 0, 1, 1], [], []>} : vector<8x256xbf16>, vector<256x256xbf16>, vector<8x256xf32> -> vector<8x256xf32>
    %c0_9 = arith.constant 0 : index
    %c0_10 = arith.constant 0 : index
    %11 = vector.load %arg5[%c0_9, %c0_10] : memref<1x256xf32, #tpu.memory_space<vmem>>, vector<1x256xf32>
    %12 = vector.broadcast %11 : vector<1x256xf32> to vector<8x256xf32>
    %13 = arith.addf %10, %12 : vector<8x256xf32>
    %cst_11 = arith.constant 0.000000e+00 : f32
    %14 = vector.broadcast %cst_11 : f32 to vector<8x256xf32>
    %15 = arith.maximumf %13, %14 : vector<8x256xf32>
    %16 = arith.truncf %15 : vector<8x256xf32> to vector<8x256xbf16>
    %c0_12 = arith.constant 0 : index
    %c0_13 = arith.constant 0 : index
    %17 = vector.load %arg6[%c0_12, %c0_13] : memref<256x1024xbf16, #tpu.memory_space<vmem>>, vector<256x1024xbf16>
    %cst_14 = arith.constant dense<0.000000e+00> : vector<8x1024xf32>
    %18 = tpu.matmul %16, %17, %cst_14 {dimension_numbers = #tpu.dot_dimension_numbers<[1], [0], [0], [1], [0, 0, 1, 1], [], []>} : vector<8x256xbf16>, vector<256x1024xbf16>, vector<8x1024xf32> -> vector<8x1024xf32>
    %c0_15 = arith.constant 0 : index
    %c0_16 = arith.constant 0 : index
    %19 = vector.load %arg7[%c0_15, %c0_16] : memref<1x1024xf32, #tpu.memory_space<vmem>>, vector<1x1024xf32>
    %20 = vector.broadcast %19 : vector<1x1024xf32> to vector<8x1024xf32>
    %21 = arith.addf %18, %20 : vector<8x1024xf32>
    %c0_17 = arith.constant 0 : index
    %c0_18 = arith.constant 0 : index
    %22 = vector.load %arg8[%c0_17, %c0_18] : memref<512x1024xbf16, #tpu.memory_space<vmem>>, vector<512x1024xbf16>
    %cst_19 = arith.constant dense<0.000000e+00> : vector<8x1024xf32>
    %23 = tpu.matmul %0, %22, %cst_19 {dimension_numbers = #tpu.dot_dimension_numbers<[1], [0], [0], [1], [0, 0, 1, 1], [], []>} : vector<8x512xbf16>, vector<512x1024xbf16>, vector<8x1024xf32> -> vector<8x1024xf32>
    %c0_20 = arith.constant 0 : index
    %c0_21 = arith.constant 0 : index
    %24 = vector.load %arg9[%c0_20, %c0_21] : memref<1x1024xf32, #tpu.memory_space<vmem>>, vector<1x1024xf32>
    %25 = vector.broadcast %24 : vector<1x1024xf32> to vector<8x1024xf32>
    %26 = arith.addf %23, %25 : vector<8x1024xf32>
    %27 = arith.addf %21, %26 : vector<8x1024xf32>
    %cst_22 = arith.constant 0.000000e+00 : f32
    %28 = vector.broadcast %cst_22 : f32 to vector<8x1024xf32>
    %29 = arith.maximumf %27, %28 : vector<8x1024xf32>
    %30 = arith.truncf %29 : vector<8x1024xf32> to vector<8x1024xbf16>
    %c0_23 = arith.constant 0 : index
    %c0_24 = arith.constant 0 : index
    %31 = vector.load %arg10[%c0_23, %c0_24] : memref<1024x256xbf16, #tpu.memory_space<vmem>>, vector<1024x256xbf16>
    %cst_25 = arith.constant dense<0.000000e+00> : vector<8x256xf32>
    %32 = tpu.matmul %30, %31, %cst_25 {dimension_numbers = #tpu.dot_dimension_numbers<[1], [0], [0], [1], [0, 0, 1, 1], [], []>} : vector<8x1024xbf16>, vector<1024x256xbf16>, vector<8x256xf32> -> vector<8x256xf32>
    %c0_26 = arith.constant 0 : index
    %c0_27 = arith.constant 0 : index
    %33 = vector.load %arg11[%c0_26, %c0_27] : memref<1x256xf32, #tpu.memory_space<vmem>>, vector<1x256xf32>
    %34 = vector.broadcast %33 : vector<1x256xf32> to vector<8x256xf32>
    %35 = arith.addf %32, %34 : vector<8x256xf32>
    %cst_28 = arith.constant 0.000000e+00 : f32
    %36 = vector.broadcast %cst_28 : f32 to vector<8x256xf32>
    %37 = arith.maximumf %35, %36 : vector<8x256xf32>
    %38 = arith.truncf %37 : vector<8x256xf32> to vector<8x256xbf16>
    %c0_29 = arith.constant 0 : index
    %c0_30 = arith.constant 0 : index
    %39 = vector.load %arg12[%c0_29, %c0_30] : memref<256x256xbf16, #tpu.memory_space<vmem>>, vector<256x256xbf16>
    %cst_31 = arith.constant dense<0.000000e+00> : vector<8x256xf32>
    %40 = tpu.matmul %38, %39, %cst_31 {dimension_numbers = #tpu.dot_dimension_numbers<[1], [0], [0], [1], [0, 0, 1, 1], [], []>} : vector<8x256xbf16>, vector<256x256xbf16>, vector<8x256xf32> -> vector<8x256xf32>
    %c0_32 = arith.constant 0 : index
    %c0_33 = arith.constant 0 : index
    %41 = vector.load %arg13[%c0_32, %c0_33] : memref<1x256xf32, #tpu.memory_space<vmem>>, vector<1x256xf32>
    %42 = vector.broadcast %41 : vector<1x256xf32> to vector<8x256xf32>
    %43 = arith.addf %40, %42 : vector<8x256xf32>
    %cst_34 = arith.constant 0.000000e+00 : f32
    %44 = vector.broadcast %cst_34 : f32 to vector<8x256xf32>
    %45 = arith.maximumf %43, %44 : vector<8x256xf32>
    %46 = arith.truncf %45 : vector<8x256xf32> to vector<8x256xbf16>
    %c0_35 = arith.constant 0 : index
    %c0_36 = arith.constant 0 : index
    %47 = vector.load %arg14[%c0_35, %c0_36] : memref<256x1024xbf16, #tpu.memory_space<vmem>>, vector<256x1024xbf16>
    %cst_37 = arith.constant dense<0.000000e+00> : vector<8x1024xf32>
    %48 = tpu.matmul %46, %47, %cst_37 {dimension_numbers = #tpu.dot_dimension_numbers<[1], [0], [0], [1], [0, 0, 1, 1], [], []>} : vector<8x256xbf16>, vector<256x1024xbf16>, vector<8x1024xf32> -> vector<8x1024xf32>
    %c0_38 = arith.constant 0 : index
    %c0_39 = arith.constant 0 : index
    %49 = vector.load %arg15[%c0_38, %c0_39] : memref<1x1024xf32, #tpu.memory_space<vmem>>, vector<1x1024xf32>
    %50 = vector.broadcast %49 : vector<1x1024xf32> to vector<8x1024xf32>
    %51 = arith.addf %48, %50 : vector<8x1024xf32>
    %52 = arith.addf %51, %29 : vector<8x1024xf32>
    %cst_40 = arith.constant 0.000000e+00 : f32
    %53 = vector.broadcast %cst_40 : f32 to vector<8x1024xf32>
    %54 = arith.maximumf %52, %53 : vector<8x1024xf32>
    %55 = arith.truncf %54 : vector<8x1024xf32> to vector<8x1024xbf16>
    %c0_41 = arith.constant 0 : index
    %c0_42 = arith.constant 0 : index
    %56 = vector.load %arg16[%c0_41, %c0_42] : memref<1024x256xbf16, #tpu.memory_space<vmem>>, vector<1024x256xbf16>
    %cst_43 = arith.constant dense<0.000000e+00> : vector<8x256xf32>
    %57 = tpu.matmul %55, %56, %cst_43 {dimension_numbers = #tpu.dot_dimension_numbers<[1], [0], [0], [1], [0, 0, 1, 1], [], []>} : vector<8x1024xbf16>, vector<1024x256xbf16>, vector<8x256xf32> -> vector<8x256xf32>
    %c0_44 = arith.constant 0 : index
    %c0_45 = arith.constant 0 : index
    %58 = vector.load %arg17[%c0_44, %c0_45] : memref<1x256xf32, #tpu.memory_space<vmem>>, vector<1x256xf32>
    %59 = vector.broadcast %58 : vector<1x256xf32> to vector<8x256xf32>
    %60 = arith.addf %57, %59 : vector<8x256xf32>
    %cst_46 = arith.constant 0.000000e+00 : f32
    %61 = vector.broadcast %cst_46 : f32 to vector<8x256xf32>
    %62 = arith.maximumf %60, %61 : vector<8x256xf32>
    %63 = arith.truncf %62 : vector<8x256xf32> to vector<8x256xbf16>
    %c0_47 = arith.constant 0 : index
    %c0_48 = arith.constant 0 : index
    %64 = vector.load %arg18[%c0_47, %c0_48] : memref<256x256xbf16, #tpu.memory_space<vmem>>, vector<256x256xbf16>
    %cst_49 = arith.constant dense<0.000000e+00> : vector<8x256xf32>
    %65 = tpu.matmul %63, %64, %cst_49 {dimension_numbers = #tpu.dot_dimension_numbers<[1], [0], [0], [1], [0, 0, 1, 1], [], []>} : vector<8x256xbf16>, vector<256x256xbf16>, vector<8x256xf32> -> vector<8x256xf32>
    %c0_50 = arith.constant 0 : index
    %c0_51 = arith.constant 0 : index
    %66 = vector.load %arg19[%c0_50, %c0_51] : memref<1x256xf32, #tpu.memory_space<vmem>>, vector<1x256xf32>
    %67 = vector.broadcast %66 : vector<1x256xf32> to vector<8x256xf32>
    %68 = arith.addf %65, %67 : vector<8x256xf32>
    %cst_52 = arith.constant 0.000000e+00 : f32
    %69 = vector.broadcast %cst_52 : f32 to vector<8x256xf32>
    %70 = arith.maximumf %68, %69 : vector<8x256xf32>
    %71 = arith.truncf %70 : vector<8x256xf32> to vector<8x256xbf16>
    %c0_53 = arith.constant 0 : index
    %c0_54 = arith.constant 0 : index
    %72 = vector.load %arg20[%c0_53, %c0_54] : memref<256x1024xbf16, #tpu.memory_space<vmem>>, vector<256x1024xbf16>
    %cst_55 = arith.constant dense<0.000000e+00> : vector<8x1024xf32>
    %73 = tpu.matmul %71, %72, %cst_55 {dimension_numbers = #tpu.dot_dimension_numbers<[1], [0], [0], [1], [0, 0, 1, 1], [], []>} : vector<8x256xbf16>, vector<256x1024xbf16>, vector<8x1024xf32> -> vector<8x1024xf32>
    %c0_56 = arith.constant 0 : index
    %c0_57 = arith.constant 0 : index
    %74 = vector.load %arg21[%c0_56, %c0_57] : memref<1x1024xf32, #tpu.memory_space<vmem>>, vector<1x1024xf32>
    %75 = vector.broadcast %74 : vector<1x1024xf32> to vector<8x1024xf32>
    %76 = arith.addf %73, %75 : vector<8x1024xf32>
    %77 = arith.addf %76, %54 : vector<8x1024xf32>
    %cst_58 = arith.constant 0.000000e+00 : f32
    %78 = vector.broadcast %cst_58 : f32 to vector<8x1024xf32>
    %79 = arith.maximumf %77, %78 : vector<8x1024xf32>
    %c0_59 = arith.constant 0 : index
    %c0_60 = arith.constant 0 : index
    %80 = vector.load %arg22[%c0_59, %c0_60] : memref<8x1024xf32, #tpu.memory_space<vmem>>, vector<8x1024xf32>
    tpu.vector_store %arg22[%c0_59, %c0_60], %79 {strides = array<i32>} : memref<8x1024xf32, #tpu.memory_space<vmem>>, vector<8x1024xf32>,
    return
  }
  func.func @transform_0(%arg0: i32) -> (i32, i32) {
    %c0_i32 = arith.constant 0 : i32
    %c0_i32_0 = arith.constant 0 : i32
    return %arg0, %c0_i32 : i32, i32
  }
  func.func @transform_1(%arg0: i32) -> (i32, i32) {
    %c0_i32 = arith.constant 0 : i32
    %c0_i32_0 = arith.constant 0 : i32
    %c0_i32_1 = arith.constant 0 : i32
    return %c0_i32, %c0_i32_0 : i32, i32
  }
  func.func @transform_2(%arg0: i32) -> (i32, i32) {
    %c0_i32 = arith.constant 0 : i32
    %c0_i32_0 = arith.constant 0 : i32
    %c0_i32_1 = arith.constant 0 : i32
    return %c0_i32, %c0_i32_0 : i32, i32
  }
  func.func @transform_3(%arg0: i32) -> (i32, i32) {
    %c0_i32 = arith.constant 0 : i32
    %c0_i32_0 = arith.constant 0 : i32
    %c0_i32_1 = arith.constant 0 : i32
    return %c0_i32, %c0_i32_0 : i32, i32
  }
  func.func @transform_4(%arg0: i32) -> (i32, i32) {
    %c0_i32 = arith.constant 0 : i32
    %c0_i32_0 = arith.constant 0 : i32
    %c0_i32_1 = arith.constant 0 : i32
    return %c0_i32, %c0_i32_0 : i32, i32
  }
  func.func @transform_5(%arg0: i32) -> (i32, i32) {
    %c0_i32 = arith.constant 0 : i32
    %c0_i32_0 = arith.constant 0 : i32
    %c0_i32_1 = arith.constant 0 : i32
    return %c0_i32, %c0_i32_0 : i32, i32
  }
  func.func @transform_6(%arg0: i32) -> (i32, i32) {
    %c0_i32 = arith.constant 0 : i32
    %c0_i32_0 = arith.constant 0 : i32
    %c0_i32_1 = arith.constant 0 : i32
    return %c0_i32, %c0_i32_0 : i32, i32
  }
  func.func @transform_7(%arg0: i32) -> (i32, i32) {
    %c0_i32 = arith.constant 0 : i32
    %c0_i32_0 = arith.constant 0 : i32
    %c0_i32_1 = arith.constant 0 : i32
    return %c0_i32, %c0_i32_0 : i32, i32
  }
  func.func @transform_8(%arg0: i32) -> (i32, i32) {
    %c0_i32 = arith.constant 0 : i32
    %c0_i32_0 = arith.constant 0 : i32
    %c0_i32_1 = arith.constant 0 : i32
    return %c0_i32, %c0_i32_0 : i32, i32
  }
  func.func @transform_9(%arg0: i32) -> (i32, i32) {
    %c0_i32 = arith.constant 0 : i32
    %c0_i32_0 = arith.constant 0 : i32
    %c0_i32_1 = arith.constant 0 : i32
    return %c0_i32, %c0_i32_0 : i32, i32
  }
  func.func @transform_10(%arg0: i32) -> (i32, i32) {
    %c0_i32 = arith.constant 0 : i32
    %c0_i32_0 = arith.constant 0 : i32
    %c0_i32_1 = arith.constant 0 : i32
    return %c0_i32, %c0_i32_0 : i32, i32
  }
  func.func @transform_11(%arg0: i32) -> (i32, i32) {
    %c0_i32 = arith.constant 0 : i32
    %c0_i32_0 = arith.constant 0 : i32
    %c0_i32_1 = arith.constant 0 : i32
    return %c0_i32, %c0_i32_0 : i32, i32
  }
  func.func @transform_12(%arg0: i32) -> (i32, i32) {
    %c0_i32 = arith.constant 0 : i32
    %c0_i32_0 = arith.constant 0 : i32
    %c0_i32_1 = arith.constant 0 : i32
    return %c0_i32, %c0_i32_0 : i32, i32
  }
  func.func @transform_13(%arg0: i32) -> (i32, i32) {
    %c0_i32 = arith.constant 0 : i32
    %c0_i32_0 = arith.constant 0 : i32
    %c0_i32_1 = arith.constant 0 : i32
    return %c0_i32, %c0_i32_0 : i32, i32
  }
  func.func @transform_14(%arg0: i32) -> (i32, i32) {
    %c0_i32 = arith.constant 0 : i32
    %c0_i32_0 = arith.constant 0 : i32
    %c0_i32_1 = arith.constant 0 : i32
    return %c0_i32, %c0_i32_0 : i32, i32
  }
  func.func @transform_15(%arg0: i32) -> (i32, i32) {
    %c0_i32 = arith.constant 0 : i32
    %c0_i32_0 = arith.constant 0 : i32
    %c0_i32_1 = arith.constant 0 : i32
    return %c0_i32, %c0_i32_0 : i32, i32
  }
  func.func @transform_16(%arg0: i32) -> (i32, i32) {
    %c0_i32 = arith.constant 0 : i32
    %c0_i32_0 = arith.constant 0 : i32
    %c0_i32_1 = arith.constant 0 : i32
    return %c0_i32, %c0_i32_0 : i32, i32
  }
  func.func @transform_17(%arg0: i32) -> (i32, i32) {
    %c0_i32 = arith.constant 0 : i32
    %c0_i32_0 = arith.constant 0 : i32
    %c0_i32_1 = arith.constant 0 : i32
    return %c0_i32, %c0_i32_0 : i32, i32
  }
  func.func @transform_18(%arg0: i32) -> (i32, i32) {
    %c0_i32 = arith.constant 0 : i32
    %c0_i32_0 = arith.constant 0 : i32
    %c0_i32_1 = arith.constant 0 : i32
    return %c0_i32, %c0_i32_0 : i32, i32
  }
  func.func @transform_19(%arg0: i32) -> (i32, i32) {
    %c0_i32 = arith.constant 0 : i32
    %c0_i32_0 = arith.constant 0 : i32
    %c0_i32_1 = arith.constant 0 : i32
    return %c0_i32, %c0_i32_0 : i32, i32
  }
  func.func @transform_20(%arg0: i32) -> (i32, i32) {
    %c0_i32 = arith.constant 0 : i32
    %c0_i32_0 = arith.constant 0 : i32
    %c0_i32_1 = arith.constant 0 : i32
    return %c0_i32, %c0_i32_0 : i32, i32
  }
  func.func @transform_21(%arg0: i32) -> (i32, i32) {
    %c0_i32 = arith.constant 0 : i32
    %c0_i32_0 = arith.constant 0 : i32
    return %arg0, %c0_i32 : i32, i32
  }
}

</mosaic_0001>

<bundles_post_ra>
// kernel: roi_box_feature_extractor.2
= control target key start
LH: loop header
LB: loop body
LE: loop exit
PB: predicated region body
PF: predicated region fallthrough
CT: control target
= control target key end

     0   :  { %s1278_s9 = smov 0   ;;  %s1465_s0 = inlined_call_operand.vmem [shape: bf16[256,512], index: 0, kind: input, shape index: {}]   ;;  %s1466_s1 = inlined_call_operand.vmem [shape: bf16[512,32], index: 1, kind: input, shape index: {}]   ;;  %s1467_s2 = inlined_call_operand.vmem [shape: bf16[256,32], index: 2, kind: output, shape index: {}]  }
   0x1 LB: > { %s930_s10 = sadd.s32 4294967295, %s1261_s9   ;;  %p934_p0 = scmp.ge.s32.totalorder %s1261_s9, 1  ;;  %s1261_s9 = sphi %s1278_s9, %s12_s9  }
   0x2   : > { %p114_p1 = scmp.lt.s32.totalorder %s1261_s9, 3 }
   0x4   : > { %p115_p2 = pnand %p934_p0, %p114_p1 }
   0x5   : > { %v1175_v0 = vld [vmem:[%s1466_s1 + $0x40] sm:$0xff] (!%p115_p2)   ;;  %v1179_v4 = vld [vmem:[%s1466_s1 + $0x48] sm:$0xff] (!%p115_p2)   ;;  %v1183_v8 = vld [vmem:[%s1466_s1 + $0x50] sm:$0xff] (!%p115_p2)   ;;  %s935_s17 = sshll.u32 (!%p115_p2), %s930_s10, 4  ;;  %vm857_vm0 = vcmask (!%p115_p2), 257024  }
   0x6   : > { %118 = sbr.rel (%p115_p2) target bundleno = 318 (0x13e), region = 28  ;;  %v1176_v1 = vld [vmem:[%s1466_s1 + $0xc0] sm:$0xff] (!%p115_p2)   ;;  %1039 = vmatprep.subr.bf16.mxu0 (!%p115_p2), %v1175_v0  ;;  %v1180_v5 = vld [vmem:[%s1466_s1 + $0xc8] sm:$0xff] (!%p115_p2)   ;;  %v1184_v9 = vld [vmem:[%s1466_s1 + $0xd0] sm:$0xff] (!%p115_p2)   ;;  %p138_p3 = scmp.lt.s32.totalorder (!%p115_p2), %s935_s17, 31 }
   0x7   : > { %v1177_v2 = vld [vmem:[%s1466_s1] sm:$0xff] (!%p115_p2)   ;;  %1103 = vmatprep.subr.bf16.mxu1 (!%p115_p2), %v1176_v1  ;;  %v1181_v6 = vld [vmem:[%s1466_s1 + $0x8] sm:$0xff] (!%p115_p2)   ;;  %v1185_v10 = vld [vmem:[%s1466_s1 + $0x10] sm:$0xff] (!%p115_p2)  }
   0x8   : > { %v1178_v3 = vld [vmem:[%s1466_s1 + $0x80] sm:$0xff] (!%p115_p2)   ;;  %1040 = vmatpush3.bf16.msra.mxu0 (!%p115_p2), %v1177_v2  ;;  %v1182_v7 = vld [vmem:[%s1466_s1 + $0x88] sm:$0xff] (!%p115_p2)   ;;  %v1186_v11 = vld [vmem:[%s1466_s1 + $0x90] sm:$0xff] (!%p115_p2)  }
   0x9   : > { %1104 = vmatpush3.bf16.msra.mxu1 (!%p115_p2), %v1178_v3  ;;  %1041 = vmatprep.subr.bf16.mxu0 (!%p115_p2), %v1179_v4  ;;  %v1187_v12 = vld [vmem:[%s1466_s1 + $0x58] sm:$0xff] (!%p115_p2)   ;;  %v1191_v16 = vld [vmem:[%s1466_s1 + $0x60] sm:$0xff] (!%p115_p2)   ;;  %v1195_v20 = vld [vmem:[%s1466_s1 + $0x68] sm:$0xff] (!%p115_p2)  }
   0xa   : > { %1105 = vmatprep.subr.bf16.mxu1 (!%p115_p2), %v1180_v5  ;;  %v1188_v13 = vld [vmem:[%s1466_s1 + $0xd8] sm:$0xff] (!%p115_p2)   ;;  %v1192_v17 = vld [vmem:[%s1466_s1 + $0xe0] sm:$0xff] (!%p115_p2)   ;;  %v1196_v21 = vld [vmem:[%s1466_s1 + $0xe8] sm:$0xff] (!%p115_p2)  }
   0xb   : > { %v1189_v14 = vld [vmem:[%s1466_s1 + $0x18] sm:$0xff] (!%p115_p2)   ;;  %v1193_v18 = vld [vmem:[%s1466_s1 + $0x20] sm:$0xff] (!%p115_p2)   ;;  %v1197_v22 = vld [vmem:[%s1466_s1 + $0x28] sm:$0xff] (!%p115_p2)  }
   0xc   : > { %1042 = vmatpush3.bf16.msra.mxu0 (!%p115_p2), %v1181_v6  ;;  %v1190_v15 = vld [vmem:[%s1466_s1 + $0x98] sm:$0xff] (!%p115_p2)   ;;  %v1194_v19 = vld [vmem:[%s1466_s1 + $0xa0] sm:$0xff] (!%p115_p2)   ;;  %v1198_v23 = vld [vmem:[%s1466_s1 + $0xa8] sm:$0xff] (!%p115_p2)  }
   0xd   : > { %1106 = vmatpush3.bf16.msra.mxu1 %v1182_v7  ;;  %1043 = vmatprep.subr.bf16.mxu0 %v1183_v8  ;;  %s1469_s17 = smov (!%p138_p3, %s935_s17), 31  ;;  %v1199_v24 = vld [vmem:[%s1466_s1 + $0x70] sm:$0xff]   ;;  %v1203_v28 = vld [vmem:[%s1466_s1 + $0x78] sm:$0xff]  }
   0xe   : > { %1107 = vmatprep.subr.bf16.mxu1 %v1184_v9  ;;  %v1200_v25 = vld [vmem:[%s1466_s1 + $0xf0] sm:$0xff]   ;;  %s1022_s13 = sshll.u32 %s1469_s17, 4  ;;  %v1204_v29 = vld [vmem:[%s1466_s1 + $0xf8] sm:$0xff]   ;;  %s939_s27 = sshll.u32 %s1469_s17, 2 }
   0xf   : > { %v1201_v26 = vld [vmem:[%s1466_s1 + $0x30] sm:$0xff]   ;;  %s1384_s23 = scalar_lea.vmem %s1465_s0, %s1022_s13  ;;  %v1205_v30 = vld [vmem:[%s1466_s1 + $0x38] sm:$0xff]   ;;  %s1428_s30 = scalar_lea.vmem %s1467_s2, %s939_s27 }
  0x10   : > { %1044 = vmatpush3.bf16.msra.mxu0 %v1185_v10  ;;  %v1202_v27 = vld [vmem:[%s1466_s1 + $0xb0] sm:$0xff]   ;;  %v1206_v31 = vld [vmem:[%s1466_s1 + $0xb8] sm:$0xff]  }
  0x11   : > { %1108 = vmatpush3.bf16.msra.mxu1 %v1186_v11  ;;  %1045 = vmatprep.subr.bf16.mxu0 %v1187_v12  ;;  %v1207_v32 = vld [vmem:[%s1384_s23] ss:$16 sps:$4 sm:$0xff]   ;;  %v1209_v33 = vld [vmem:[%s1384_s23 + $0x4] ss:$16 sps:$4 sm:$0xff]   ;;  %v1210_v34 = vld [vmem:[%s1384_s23 + $0x8] ss:$16 sps:$4 sm:$0xff]  }
  0x12   : > { %1109 = vmatprep.subr.bf16.mxu1 %v1188_v13  ;;  %v1212_v35 = vld [vmem:[%s1384_s23 + $0xc] ss:$16 sps:$4 sm:$0xff]   ;;  %631 = vmatprep.mubr.bf16.mxu0 %v1209_v33  ;;  %v1213_v36 = vld [vmem:[%s1384_s23 + $0x24] ss:$16 sps:$4 sm:$0xff]   ;;  %v1217_v38 = vld [vmem:[%s1384_s23 + $0x20] ss:$16 sps:$4 sm:$0xff]  }
  0x13   : > { %728 = vmatprep.mubr.bf16.mxu1 %v1212_v35  ;;  %v1215_v37 = vld [vmem:[%s1384_s23 + $0x2c] ss:$16 sps:$4 sm:$0xff]   ;;  %v1218_v39 = vld [vmem:[%s1384_s23 + $0x28] ss:$16 sps:$4 sm:$0xff]   ;;  %v1219_v40 = vld [vmem:[%s1384_s23 + $0x44] ss:$16 sps:$4 sm:$0xff]  }
  0x14   : > { %1046 = vmatpush3.bf16.msra.mxu0 %v1189_v14  ;;  %v1221_v41 = vld [vmem:[%s1384_s23 + $0x4c] ss:$16 sps:$4 sm:$0xff]   ;;  %v1223_v42 = vld [vmem:[%s1384_s23 + $0x40] ss:$16 sps:$4 sm:$0xff]   ;;  %v1224_v43 = vld [vmem:[%s1384_s23 + $0x48] ss:$16 sps:$4 sm:$0xff]  }
  0x15   : > { %1110 = vmatpush3.bf16.msra.mxu1 %v1190_v15  ;;  %1047 = vmatprep.subr.bf16.mxu0 %v1191_v16  ;;  %v1225_v44 = vld [vmem:[%s1384_s23 + $0x64] ss:$16 sps:$4 sm:$0xff]   ;;  %v1227_v45 = vld [vmem:[%s1384_s23 + $0x6c] ss:$16 sps:$4 sm:$0xff]   ;;  %v1229_v46 = vld [vmem:[%s1384_s23 + $0x60] ss:$16 sps:$4 sm:$0xff]  }
  0x16   : > { %1111 = vmatprep.subr.bf16.mxu1 %v1192_v17  ;;  %v1230_v47 = vld [vmem:[%s1384_s23 + $0x68] ss:$16 sps:$4 sm:$0xff]   ;;  %v1231_v48 = vld [vmem:[%s1384_s23 + $0x84] ss:$16 sps:$4 sm:$0xff]   ;;  %v1233_v49 = vld [vmem:[%s1384_s23 + $0x8c] ss:$16 sps:$4 sm:$0xff]  }
  0x17   : > { %v1235_v50 = vld [vmem:[%s1384_s23 + $0x80] ss:$16 sps:$4 sm:$0xff]   ;;  %v1236_v51 = vld [vmem:[%s1384_s23 + $0x88] ss:$16 sps:$4 sm:$0xff]   ;;  %v1237_v52 = vld [vmem:[%s1384_s23 + $0xa4] ss:$16 sps:$4 sm:$0xff]  }
  0x18   : > { %1048 = vmatpush3.bf16.msra.mxu0 %v1193_v18  ;;  %v1239_v53 = vld [vmem:[%s1384_s23 + $0xac] ss:$16 sps:$4 sm:$0xff]   ;;  %v1241_v54 = vld [vmem:[%s1384_s23 + $0xa0] ss:$16 sps:$4 sm:$0xff]   ;;  %v1242_v55 = vld [vmem:[%s1384_s23 + $0xa8] ss:$16 sps:$4 sm:$0xff]  }
  0x19   : > { %1112 = vmatpush3.bf16.msra.mxu1 %v1194_v19  ;;  %1049 = vmatprep.subr.bf16.mxu0 %v1195_v20  ;;  %v1243_v56 = vld [vmem:[%s1384_s23 + $0xc4] ss:$16 sps:$4 sm:$0xff]   ;;  %v1245_v57 = vld [vmem:[%s1384_s23 + $0xcc] ss:$16 sps:$4 sm:$0xff]   ;;  %v1247_v58 = vld [vmem:[%s1384_s23 + $0xc0] ss:$16 sps:$4 sm:$0xff]  }
  0x1a   : > { %1113 = vmatprep.subr.bf16.mxu1 %v1196_v21  ;;  %v1248_v59 = vld [vmem:[%s1384_s23 + $0xc8] ss:$16 sps:$4 sm:$0xff]   ;;  %v1249_v60 = vld [vmem:[%s1384_s23 + $0xe4] ss:$16 sps:$4 sm:$0xff]   ;;  %v1251_v61 = vld [vmem:[%s1384_s23 + $0xec] ss:$16 sps:$4 sm:$0xff]  }
  0x1b   : > { %v1253_v62 = vld [vmem:[%s1384_s23 + $0xe0] ss:$16 sps:$4 sm:$0xff]   ;;  %v1254_v63 = vld [vmem:[%s1384_s23 + $0xe8] ss:$16 sps:$4 sm:$0xff]  }
  0x1c   : > { %1050 = vmatpush3.bf16.msra.mxu0 %v1197_v22 }
  0x1d   : > { %1114 = vmatpush3.bf16.msra.mxu1 %v1198_v23  ;;  %1051 = vmatprep.subr.bf16.mxu0 %v1199_v24 }
  0x1e   : > { %1115 = vmatprep.subr.bf16.mxu1 %v1200_v25 }
  0x20   : > { %1052 = vmatpush3.bf16.msra.mxu0 %v1201_v26 }
  0x21   : > { %1116 = vmatpush3.bf16.msra.mxu1 %v1202_v27  ;;  %1053 = vmatprep.subr.bf16.mxu0 %v1203_v28 }
  0x22   : > { %1117 = vmatprep.subr.bf16.mxu1 %v1204_v29 }
  0x24   : > { %1054 = vmatpush3.bf16.msra.mxu0 %v1205_v30 }
  0x25   : > { %1118 = vmatpush3.bf16.msra.mxu1 %v1206_v31 }
  0x27   : > { %632 = vmatmul.mubr.bf16.vlgmr.msra.gmra.mrb[0].mxu0 %v1207_v32 }
  0x28   : > { %729 = vmatmul.mubr.bf16.vlgmr.msra.gmra.mrb[0].mxu1 %v1210_v34  ;;  %639 = vmatprep.mubr.bf16.mxu0 %v1213_v36 }
  0x29   : > { %736 = vmatprep.mubr.bf16.mxu1 %v1215_v37 }
  0x2f   : > { %640 = vmatmul.mubr.bf16.gmra.mrb[4].mxu0 %v1217_v38 }
  0x30   : > { %737 = vmatmul.mubr.bf16.gmra.mrb[4].mxu1 %v1218_v39  ;;  %647 = vmatprep.mubr.bf16.mxu0 %v1219_v40 }
  0x31   : > { %744 = vmatprep.mubr.bf16.mxu1 %v1221_v41 }
  0x37   : > { %648 = vmatmul.mubr.bf16.gmra.mrb[8].mxu0 %v1223_v42 }
  0x38   : > { %745 = vmatmul.mubr.bf16.gmra.mrb[8].mxu1 %v1224_v43  ;;  %655 = vmatprep.mubr.bf16.mxu0 %v1225_v44 }
  0x39   : > { %752 = vmatprep.mubr.bf16.mxu1 %v1227_v45 }
  0x3f   : > { %656 = vmatmul.mubr.bf16.gmra.mrb[12].mxu0 %v1229_v46 }
  0x40   : > { %753 = vmatmul.mubr.bf16.gmra.mrb[12].mxu1 %v1230_v47  ;;  %663 = vmatprep.mubr.bf16.mxu0 %v1231_v48 }
  0x41   : > { %760 = vmatprep.mubr.bf16.mxu1 %v1233_v49 }
  0x47   : > { %664 = vmatmul.mubr.bf16.gmra.mrb[16].mxu0 %v1235_v50 }
  0x48   : > { %761 = vmatmul.mubr.bf16.gmra.mrb[16].mxu1 %v1236_v51  ;;  %671 = vmatprep.mubr.bf16.mxu0 %v1237_v52 }
  0x49   : > { %768 = vmatprep.mubr.bf16.mxu1 %v1239_v53 }
  0x4f   : > { %672 = vmatmul.mubr.bf16.gmra.mrb[20].mxu0 %v1241_v54 }
  0x50   : > { %769 = vmatmul.mubr.bf16.gmra.mrb[20].mxu1 %v1242_v55  ;;  %679 = vmatprep.mubr.bf16.mxu0 %v1243_v56 }
  0x51   : > { %776 = vmatprep.mubr.bf16.mxu1 %v1245_v57 }
  0x57   : > { %680 = vmatmul.mubr.bf16.gmra.mrb[24].mxu0 %v1247_v58 }
  0x58   : > { %777 = vmatmul.mubr.bf16.gmra.mrb[24].mxu1 %v1248_v59  ;;  %687 = vmatprep.mubr.bf16.mxu0 %v1249_v60 }
  0x59   : > { %784 = vmatprep.mubr.bf16.mxu1 %v1251_v61 }
  0x5f   : > { %688 = vmatmul.mubr.bf16.gmra.mrb[28].mxu0 %v1253_v62 }
  0x60   : > { %785 = vmatmul.mubr.bf16.gmra.mrb[28].mxu1 %v1254_v63 }
  0xfa   : > { %v1055_v0 = vpop.f32.mrb[0].mxu0 }
  0xfb   : > { %v1119_v1 = vpop.f32.mrb[0].mxu1  ;;  %v1056_v2 = vpop.f32.mrb[1].mxu0 }
  0xfc   : > { %v1057_v3 = vadd.f32 %v1056_v2, %v1055_v0  ;;  %v1120_v4 = vpop.f32.mrb[1].mxu1  ;;  %v1058_v5 = vpop.f32.mrb[2].mxu0 }
  0xfd   : > { %v1121_v6 = vadd.f32 %v1120_v4, %v1119_v1  ;;  %v1122_v7 = vpop.f32.mrb[2].mxu1  ;;  %v1059_v8 = vpop.f32.mrb[3].mxu0 }
  0xfe   : > { %v1060_v9 = vadd.f32 %v1059_v8, %v1058_v5  ;;  %v1123_v10 = vpop.f32.mrb[3].mxu1 }
  0xff   : > { %v731_v11 = vadd.f32 %v1121_v6, %v1057_v3  ;;  %v1124_v12 = vadd.f32 %v1123_v10, %v1122_v7 }
 0x101   : > { %v1023_v13 = vpack.c.bf16 %v731_v11, %v731_v11  ;;  %v734_v14 = vadd.f32 %v1124_v12, %v1060_v9 }
 0x102   : > { %v1061_v15 = vpop.f32.mrb[4].mxu0 }
 0x103   : > { %858 = vst.msk [vmem:[%s1428_s30] sm:$0xf] %vm857_vm0, %v1023_v13  ;;  %v1024_v16 = vpack.c.bf16 %v734_v14, %v734_v14  ;;  %v1125_v17 = vpop.f32.mrb[4].mxu1  ;;  %v1062_v18 = vpop.f32.mrb[5].mxu0 }
 0x104   : > { %v1063_v19 = vadd.f32 %v1062_v18, %v1061_v15  ;;  %v1126_v20 = vpop.f32.mrb[5].mxu1  ;;  %v1064_v21 = vpop.f32.mrb[6].mxu0 }
 0x105   : > { %859 = vst.msk [vmem:[%s1428_s30 + $0x4] sm:$0xf] %vm857_vm0, %v1024_v16  ;;  %v1127_v22 = vadd.f32 %v1126_v20, %v1125_v17  ;;  %v1128_v23 = vpop.f32.mrb[6].mxu1  ;;  %v1065_v24 = vpop.f32.mrb[7].mxu0 }
 0x106   : > { %v1066_v25 = vadd.f32 %v1065_v24, %v1064_v21  ;;  %v1129_v26 = vpop.f32.mrb[7].mxu1 }
 0x107   : > { %v739_v27 = vadd.f32 %v1127_v22, %v1063_v19  ;;  %v1130_v28 = vadd.f32 %v1129_v26, %v1128_v23 }
 0x109   : > { %v1025_v29 = vpack.c.bf16 %v739_v27, %v739_v27  ;;  %v742_v30 = vadd.f32 %v1130_v28, %v1066_v25 }
 0x10a   : > { %v1067_v31 = vpop.f32.mrb[8].mxu0 }
 0x10b   : > { %860 = vst.msk [vmem:[%s1428_s30 + $0x8] sm:$0xf] %vm857_vm0, %v1025_v29  ;;  %v1026_v32 = vpack.c.bf16 %v742_v30, %v742_v30  ;;  %v1131_v33 = vpop.f32.mrb[8].mxu1  ;;  %v1068_v34 = vpop.f32.mrb[9].mxu0 }
 0x10c   : > { %v1069_v35 = vadd.f32 %v1068_v34, %v1067_v31  ;;  %v1132_v36 = vpop.f32.mrb[9].mxu1  ;;  %v1070_v37 = vpop.f32.mrb[10].mxu0 }
 0x10d   : > { %861 = vst.msk [vmem:[%s1428_s30 + $0xc] sm:$0xf] %vm857_vm0, %v1026_v32  ;;  %v1133_v38 = vadd.f32 %v1132_v36, %v1131_v33  ;;  %v1134_v39 = vpop.f32.mrb[10].mxu1  ;;  %v1071_v40 = vpop.f32.mrb[11].mxu0 }
 0x10e   : > { %v1072_v41 = vadd.f32 %v1071_v40, %v1070_v37  ;;  %v1135_v42 = vpop.f32.mrb[11].mxu1 }
 0x10f   : > { %v747_v43 = vadd.f32 %v1133_v38, %v1069_v35  ;;  %v1136_v44 = vadd.f32 %v1135_v42, %v1134_v39 }
 0x111   : > { %v1027_v45 = vpack.c.bf16 %v747_v43, %v747_v43  ;;  %v750_v46 = vadd.f32 %v1136_v44, %v1072_v41 }
 0x112   : > { %v1073_v47 = vpop.f32.mrb[12].mxu0 }
 0x113   : > { %862 = vst.msk [vmem:[%s1428_s30 + $0x10] sm:$0xf] %vm857_vm0, %v1027_v45  ;;  %v1028_v48 = vpack.c.bf16 %v750_v46, %v750_v46  ;;  %v1137_v49 = vpop.f32.mrb[12].mxu1  ;;  %v1074_v50 = vpop.f32.mrb[13].mxu0 }
 0x114   : > { %v1075_v51 = vadd.f32 %v1074_v50, %v1073_v47  ;;  %v1138_v52 = vpop.f32.mrb[13].mxu1  ;;  %v1076_v53 = vpop.f32.mrb[14].mxu0 }
 0x115   : > { %863 = vst.msk [vmem:[%s1428_s30 + $0x14] sm:$0xf] %vm857_vm0, %v1028_v48  ;;  %v1139_v54 = vadd.f32 %v1138_v52, %v1137_v49  ;;  %v1140_v55 = vpop.f32.mrb[14].mxu1  ;;  %v1077_v56 = vpop.f32.mrb[15].mxu0 }
 0x116   : > { %v1078_v57 = vadd.f32 %v1077_v56, %v1076_v53  ;;  %v1141_v58 = vpop.f32.mrb[15].mxu1 }
 0x117   : > { %v755_v59 = vadd.f32 %v1139_v54, %v1075_v51  ;;  %v1142_v60 = vadd.f32 %v1141_v58, %v1140_v55 }
 0x119   : > { %v1029_v61 = vpack.c.bf16 %v755_v59, %v755_v59  ;;  %v758_v62 = vadd.f32 %v1142_v60, %v1078_v57 }
 0x11a   : > { %v1079_v63 = vpop.f32.mrb[16].mxu0 }
 0x11b   : > { %864 = vst.msk [vmem:[%s1428_s30 + $0x18] sm:$0xf] %vm857_vm0, %v1029_v61  ;;  %v1030_v0 = vpack.c.bf16 %v758_v62, %v758_v62  ;;  %v1143_v1 = vpop.f32.mrb[16].mxu1  ;;  %v1080_v2 = vpop.f32.mrb[17].mxu0 }
 0x11c   : > { %v1081_v3 = vadd.f32 %v1080_v2, %v1079_v63  ;;  %v1144_v4 = vpop.f32.mrb[17].mxu1  ;;  %v1082_v5 = vpop.f32.mrb[18].mxu0 }
 0x11d   : > { %865 = vst.msk [vmem:[%s1428_s30 + $0x1c] sm:$0xf] %vm857_vm0, %v1030_v0  ;;  %v1145_v6 = vadd.f32 %v1144_v4, %v1143_v1  ;;  %v1146_v7 = vpop.f32.mrb[18].mxu1  ;;  %v1083_v8 = vpop.f32.mrb[19].mxu0 }
 0x11e   : > { %v1084_v9 = vadd.f32 %v1083_v8, %v1082_v5  ;;  %v1147_v10 = vpop.f32.mrb[19].mxu1 }
 0x11f   : > { %v763_v11 = vadd.f32 %v1145_v6, %v1081_v3  ;;  %v1148_v12 = vadd.f32 %v1147_v10, %v1146_v7 }
 0x121   : > { %v1031_v13 = vpack.c.bf16 %v763_v11, %v763_v11  ;;  %v766_v14 = vadd.f32 %v1148_v12, %v1084_v9 }
 0x122   : > { %v1085_v15 = vpop.f32.mrb[20].mxu0 }
 0x123   : > { %866 = vst.msk [vmem:[%s1428_s30 + $0x20] sm:$0xf] %vm857_vm0, %v1031_v13  ;;  %v1032_v16 = vpack.c.bf16 %v766_v14, %v766_v14  ;;  %v1149_v17 = vpop.f32.mrb[20].mxu1  ;;  %v1086_v18 = vpop.f32.mrb[21].mxu0 }
 0x124   : > { %v1087_v19 = vadd.f32 %v1086_v18, %v1085_v15  ;;  %v1150_v20 = vpop.f32.mrb[21].mxu1  ;;  %v1088_v21 = vpop.f32.mrb[22].mxu0 }
 0x125   : > { %867 = vst.msk [vmem:[%s1428_s30 + $0x24] sm:$0xf] %vm857_vm0, %v1032_v16  ;;  %v1151_v22 = vadd.f32 %v1150_v20, %v1149_v17  ;;  %v1152_v23 = vpop.f32.mrb[22].mxu1  ;;  %v1089_v24 = vpop.f32.mrb[23].mxu0 }
 0x126   : > { %v1090_v25 = vadd.f32 %v1089_v24, %v1088_v21  ;;  %v1153_v26 = vpop.f32.mrb[23].mxu1 }
 0x127   : > { %v771_v27 = vadd.f32 %v1151_v22, %v1087_v19  ;;  %v1154_v28 = vadd.f32 %v1153_v26, %v1152_v23 }
 0x129   : > { %v1033_v29 = vpack.c.bf16 %v771_v27, %v771_v27  ;;  %v774_v30 = vadd.f32 %v1154_v28, %v1090_v25 }
 0x12a   : > { %v1091_v31 = vpop.f32.mrb[24].mxu0 }
 0x12b   : > { %868 = vst.msk [vmem:[%s1428_s30 + $0x28] sm:$0xf] %vm857_vm0, %v1033_v29  ;;  %v1034_v32 = vpack.c.bf16 %v774_v30, %v774_v30  ;;  %v1155_v33 = vpop.f32.mrb[24].mxu1  ;;  %v1092_v34 = vpop.f32.mrb[25].mxu0 }
 0x12c   : > { %v1093_v35 = vadd.f32 %v1092_v34, %v1091_v31  ;;  %v1156_v36 = vpop.f32.mrb[25].mxu1  ;;  %v1094_v37 = vpop.f32.mrb[26].mxu0 }
 0x12d   : > { %869 = vst.msk [vmem:[%s1428_s30 + $0x2c] sm:$0xf] %vm857_vm0, %v1034_v32  ;;  %v1157_v38 = vadd.f32 %v1156_v36, %v1155_v33  ;;  %v1158_v39 = vpop.f32.mrb[26].mxu1  ;;  %v1095_v40 = vpop.f32.mrb[27].mxu0 }
 0x12e   : > { %v1096_v41 = vadd.f32 %v1095_v40, %v1094_v37  ;;  %v1159_v42 = vpop.f32.mrb[27].mxu1 }
 0x12f   : > { %v779_v43 = vadd.f32 %v1157_v38, %v1093_v35  ;;  %v1160_v44 = vadd.f32 %v1159_v42, %v1158_v39 }
 0x131   : > { %v1035_v45 = vpack.c.bf16 %v779_v43, %v779_v43  ;;  %v782_v46 = vadd.f32 %v1160_v44, %v1096_v41 }
 0x132   : > { %v1097_v47 = vpop.f32.mrb[28].mxu0 }
 0x133   : > { %870 = vst.msk [vmem:[%s1428_s30 + $0x30] sm:$0xf] %vm857_vm0, %v1035_v45  ;;  %v1036_v48 = vpack.c.bf16 %v782_v46, %v782_v46  ;;  %v1161_v49 = vpop.f32.mrb[28].mxu1  ;;  %v1098_v50 = vpop.f32.mrb[29].mxu0 }
 0x134   : > { %v1099_v51 = vadd.f32 %v1098_v50, %v1097_v47  ;;  %v1162_v52 = vpop.f32.mrb[29].mxu1  ;;  %v1100_v53 = vpop.f32.mrb[30].mxu0 }
 0x135   : > { %871 = vst.msk [vmem:[%s1428_s30 + $0x34] sm:$0xf] %vm857_vm0, %v1036_v48  ;;  %v1163_v54 = vadd.f32 %v1162_v52, %v1161_v49  ;;  %v1164_v55 = vpop.f32.mrb[30].mxu1  ;;  %v1101_v56 = vpop.f32.mrb[31].mxu0 }
 0x136   : > { %v1102_v57 = vadd.f32 %v1101_v56, %v1100_v53  ;;  %v1165_v58 = vpop.f32.mrb[31].mxu1 }
 0x137   : > { %v787_v59 = vadd.f32 %v1163_v54, %v1099_v51  ;;  %v1166_v60 = vadd.f32 %v1165_v58, %v1164_v55 }
 0x139   : > { %v1037_v61 = vpack.c.bf16 %v787_v59, %v787_v59  ;;  %v790_v62 = vadd.f32 %v1166_v60, %v1102_v57 }
 0x13b   : > { %872 = vst.msk [vmem:[%s1428_s30 + $0x38] sm:$0xf] %vm857_vm0, %v1037_v61  ;;  %v1038_v63 = vpack.c.bf16 %v790_v62, %v790_v62 }
 0x13d   : > { %873 = vst.msk [vmem:[%s1428_s30 + $0x3c] sm:$0xf] %vm857_vm0, %v1038_v63 }
 0x13e PF: > { %s12_s9 = sadd.s32 1, %s1261_s9  }
 0x13f   : > { %p9_p4 = scmp.ge.s32.totalorder %s12_s9, 4  }
 0x141   :  { %11 = sbr.rel (!%p9_p4) target bundleno = 1 (0x1), region = 58 }

// kernel: tile.63
= control target key start
LH: loop header
LB: loop body
LE: loop exit
PB: predicated region body
PF: predicated region fallthrough
CT: control target
= control target key end

     0   :  { %s28_s0 = inlined_call_operand.vmem [shape: f32[64], index: 0, kind: input, shape index: {}]   ;;  %s29_s1 = inlined_call_operand.vmem [shape: f32[16,64], index: 1, kind: output, shape index: {}]  }
   0x1   :  { %v4_v0 = vld [vmem:[%s28_s0] ss:$0 sm:$0xff] }
   0x2   :  { %5 = vst [vmem:[%s29_s1] sm:$0xff] %v4_v0  ;;  %8 = vst [vmem:[%s29_s1 + $0x8] sm:$0xff] %v4_v0 }

// kernel: tile.64
= control target key start
LH: loop header
LB: loop body
LE: loop exit
PB: predicated region body
PF: predicated region fallthrough
CT: control target
= control target key end

     0   :  { %vm3_vm0 = vcmask 523264   ;;  %vm10_vm1 = vcmask 1048064   ;;  %s116_s0 = inlined_call_operand.vmem [shape: f32[16,64], index: 0, kind: input, shape index: {}]   ;;  %s117_s1 = inlined_call_operand.vmem [shape: f32[1,1024], index: 1, kind: output, shape index: {}]  }
   0x1   :  { %v66_v0 = vld [vmem:[%s116_s0 + $0x1] ss:$2 sm:$0xff]   ;;  %v2_v1 = vld [vmem:[%s116_s0] ss:$2 sm:$0xff]   ;;  %s75_s0 = smov 64  }
   0x2   :  { %8 = vrot.lane.b32.xlu0 %v66_v0, %s75_s0  ;;  %4 = vst.msk [vmem:[#allocation0] ss:$8 sm:$0xf] %vm3_vm0, %v2_v1   ;;  %5 = vst.msk [vmem:[#allocation0] ss:$8 sm:$0xf0] %vm3_vm0, %v2_v1  }
  0x74   :  { %v9_v2 = vpop.permute.xlu0 %8  }
  0x75   :  { %11 = vst.msk [vmem:[#allocation0] ss:$8 sm:$0xf] %vm10_vm1, %v9_v2   ;;  %12 = vst.msk [vmem:[#allocation0] ss:$8 sm:$0xf0] %vm10_vm1, %v9_v2  }
  0x7c   :  { %v16_v3 = vld [vmem:[#allocation0] sm:$0x1]  ;;  %v20_v4 = vld [vmem:[#allocation0 + $0x8] sm:$0x1]  ;;  %v25_v5 = vld [vmem:[#allocation0 + $0x10] sm:$0x1] }
  0x7d   :  { %18 = vst [vmem:[%s117_s1] sm:$0x1] %v16_v3  ;;  %67 = vst [vmem:[%s117_s1 + $0x1] sm:$0x1] %v20_v4  ;;  %v31_v6 = vld [vmem:[#allocation0 + $0x18] sm:$0x1] }
  0x7e   :  { %68 = vst [vmem:[%s117_s1 + $0x2] sm:$0x1] %v25_v5  ;;  %v37_v7 = vld [vmem:[#allocation0 + $0x20] sm:$0x1]  ;;  %v43_v8 = vld [vmem:[#allocation0 + $0x28] sm:$0x1] }
  0x7f   :  { %69 = vst [vmem:[%s117_s1 + $0x3] sm:$0x1] %v31_v6  ;;  %70 = vst [vmem:[%s117_s1 + $0x4] sm:$0x1] %v37_v7  ;;  %v49_v9 = vld [vmem:[#allocation0 + $0x30] sm:$0x1] }
  0x80   :  { %71 = vst [vmem:[%s117_s1 + $0x5] sm:$0x1] %v43_v8  ;;  %v55_v10 = vld [vmem:[#allocation0 + $0x38] sm:$0x1]  ;;  %72 = vst [vmem:[%s117_s1 + $0x6] sm:$0x1] %v49_v9 }
  0x81   :  { %73 = vst [vmem:[%s117_s1 + $0x7] sm:$0x1] %v55_v10 }

// kernel: tile.53
= control target key start
LH: loop header
LB: loop body
LE: loop exit
PB: predicated region body
PF: predicated region fallthrough
CT: control target
= control target key end

     0   :  { %s28_s0 = inlined_call_operand.vmem [shape: f32[16], index: 0, kind: input, shape index: {}]   ;;  %s29_s1 = inlined_call_operand.vmem [shape: f32[16,16], index: 1, kind: output, shape index: {}]  }
   0x1   :  { %v4_v0 = vld [vmem:[%s28_s0] ss:$0 sm:$0xff] }
   0x2   :  { %5 = vst [vmem:[%s29_s1] sm:$0xff] %v4_v0  ;;  %8 = vst [vmem:[%s29_s1 + $0x8] sm:$0xff] %v4_v0 }

// kernel: tile.54
= control target key start
LH: loop header
LB: loop body
LE: loop exit
PB: predicated region body
PF: predicated region fallthrough
CT: control target
= control target key end

     0   :  { %s7_s6 = smov 3  ;;  %s21_s9 = smov 3  ;;  %vm4_vm0 = vcmask 130048   ;;  %vm11_vm1 = vcmask 1048448   ;;  %vm18_vm2 = vcmask 917248   ;;  %vm25_vm3 = vcmask 786048   ;;  %s128_s0 = inlined_call_operand.vmem [shape: f32[16,16], index: 0, kind: input, shape index: {}]   ;;  %s129_s1 = inlined_call_operand.vmem [shape: f32[1,256], index: 1, kind: output, shape index: {}]  }
   0x1   :  { %v66_v0 = vld [vmem:[%s128_s0 + $0x7] ss:$8 sm:%s7_s6]   ;;  %s81_s10 = smov 112   ;;  %v68_v1 = vld [vmem:[%s128_s0 + $0x5] ss:$8 sm:%s21_s9]   ;;  %s14_s13 = smov 3 }
   0x2   :  { %9 = vrot.lane.b32.xlu0 %v66_v0, %s81_s10  ;;  %s82_s14 = smov 80   ;;  %v67_v2 = vld [vmem:[%s128_s0 + $0x6] ss:$8 sm:%s14_s13]   ;;  %s28_s17 = smov 3  ;;  %vm32_vm4 = vcmask 654848   ;;  %vm39_vm5 = vcmask 523648  }
   0x3   :  { %23 = vrot.lane.b32.xlu1 %v68_v1, %s82_s14  ;;  %v69_v3 = vld [vmem:[%s128_s0 + $0x4] ss:$8 sm:%s28_s17]   ;;  %s35_s20 = smov 3  ;;  %s42_s21 = smov 3  ;;  %vm46_vm6 = vcmask 392448   ;;  %vm53_vm7 = vcmask 261248  }
   0x4   :  { %s83_s22 = smov 96   ;;  %s84_s23 = smov 64   ;;  %v70_v4 = vld [vmem:[%s128_s0 + $0x3] ss:$8 sm:%s35_s20]   ;;  %v71_v5 = vld [vmem:[%s128_s0 + $0x2] ss:$8 sm:%s42_s21]  }
   0x5   :  { %s2_s26 = smov 3  ;;  %s49_s29 = smov 3 }
   0x6   :  { %16 = vrot.lane.b32.xlu0 %v67_v2, %s83_s22  ;;  %v3_v6 = vld [vmem:[%s128_s0] ss:$8 sm:%s2_s26]   ;;  %s85_s3 = smov 48   ;;  %s86_s4 = smov 32  }
   0x7   :  { %30 = vrot.lane.b32.xlu1 %v69_v3, %s84_s23  ;;  %5 = vst.msk [vmem:[#allocation0] ss:$8 sm:$0x3] %vm4_vm0, %v3_v6   ;;  %v72_v7 = vld [vmem:[%s128_s0 + $0x1] ss:$8 sm:%s49_s29]   ;;  %s87_s0 = smov 16  }
   0xa   :  { %37 = vrot.lane.b32.xlu0 %v70_v4, %s85_s3 }
   0xb   :  { %44 = vrot.lane.b32.xlu1 %v71_v5, %s86_s4 }
   0xe   :  { %51 = vrot.lane.b32.xlu0 %v72_v7, %s87_s0 }
  0x74   :  { %v10_v8 = vpop.permute.xlu0 %9  }
  0x75   :  { %12 = vst.msk [vmem:[#allocation0] ss:$8 sm:$0x3] %vm11_vm1, %v10_v8   ;;  %v24_v9 = vpop.permute.xlu1 %23  }
  0x78   :  { %v17_v10 = vpop.permute.xlu0 %16  }
  0x79   :  { %19 = vst.msk [vmem:[#allocation0] ss:$8 sm:$0x3] %vm18_vm2, %v17_v10   ;;  %v31_v11 = vpop.permute.xlu1 %30  }
  0x7a   :  { %26 = vst.msk [vmem:[#allocation0] ss:$8 sm:$0x3] %vm25_vm3, %v24_v9  }
  0x7b   :  { %33 = vst.msk [vmem:[#allocation0] ss:$8 sm:$0x3] %vm32_vm4, %v31_v11  }
  0x7c   :  { %v38_v12 = vpop.permute.xlu0 %37  }
  0x7d   :  { %40 = vst.msk [vmem:[#allocation0] ss:$8 sm:$0x3] %vm39_vm5, %v38_v12   ;;  %v45_v13 = vpop.permute.xlu1 %44  }
  0x7e   :  { %47 = vst.msk [vmem:[#allocation0] ss:$8 sm:$0x3] %vm46_vm6, %v45_v13  }
  0x80   :  { %v52_v14 = vpop.permute.xlu0 %51  }
  0x81   :  { %54 = vst.msk [vmem:[#allocation0] ss:$8 sm:$0x3] %vm53_vm7, %v52_v14  }
  0x88   :  { %v58_v15 = vld [vmem:[#allocation0] sm:$0x1]  ;;  %v62_v16 = vld [vmem:[#allocation0 + $0x8] sm:$0x1] }
  0x89   :  { %60 = vst [vmem:[%s129_s1] sm:$0x1] %v58_v15  ;;  %73 = vst [vmem:[%s129_s1 + $0x1] sm:$0x1] %v62_v16 }

// kernel: roi_box_feature_extractor.3
= control target key start
LH: loop header
LB: loop body
LE: loop exit
PB: predicated region body
PF: predicated region fallthrough
CT: control target
= control target key end

     0   :  { %s14190_s0 = inlined_call_operand.vmem [shape: bf16[16,512], index: 0, kind: input, shape index: {}]   ;;  %s14191_s1 = inlined_call_operand.vmem [shape: bf16[512,256], index: 1, kind: input, shape index: {}]   ;;  %s14192_s2 = inlined_call_operand.vmem [shape: f32[1,256], index: 2, kind: input, shape index: {}]   ;;  %s14193_s3 = inlined_call_operand.vmem [shape: bf16[256,256], index: 3, kind: input, shape index: {}]   ;;  %s14194_s4 = inlined_call_operand.vmem [shape: f32[1,256], index: 4, kind: input, shape index: {}]   ;;  %s14195_s5 = inlined_call_operand.vmem [shape: bf16[256,1024], index: 5, kind: input, shape index: {}]   ;;  %s14196_s6 = inlined_call_operand.vmem [shape: f32[1,1024], index: 6, kind: input, shape index: {}]   ;;  %s14197_s7 = inlined_call_operand.vmem [shape: bf16[512,1024], index: 7, kind: input, shape index: {}]   ;;  %s14198_s8 = inlined_call_operand.vmem [shape: f32[1,1024], index: 8, kind: input, shape index: {}]   ;;  %s14199_s9 = inlined_call_operand.vmem [shape: bf16[1024,256], index: 9, kind: input, shape index: {}]   ;;  %s14200_s10 = inlined_call_operand.vmem [shape: f32[1,256], index: 10, kind: input, shape index: {}]   ;;  %s14201_s11 = inlined_call_operand.vmem [shape: bf16[256,256], index: 11, kind: input, shape index: {}]   ;;  %s14202_s12 = inlined_call_operand.vmem [shape: f32[1,256], index: 12, kind: input, shape index: {}]   ;;  %s14203_s13 = inlined_call_operand.vmem [shape: bf16[256,1024], index: 13, kind: input, shape index: {}]   ;;  %s14204_s14 = inlined_call_operand.vmem [shape: f32[1,1024], index: 14, kind: input, shape index: {}]   ;;  %s14205_s15 = inlined_call_operand.vmem [shape: bf16[1024,256], index: 15, kind: input, shape index: {}]   ;;  %s14206_s16 = inlined_call_operand.vmem [shape: f32[1,256], index: 16, kind: input, shape index: {}]   ;;  %s14207_s17 = inlined_call_operand.vmem [shape: bf16[256,256], index: 17, kind: input, shape index: {}]   ;;  %s14208_s18 = inlined_call_operand.vmem [shape: f32[1,256], index: 18, kind: input, shape index: {}]   ;;  %s14209_s19 = inlined_call_operand.vmem [shape: bf16[256,1024], index: 19, kind: input, shape index: {}]   ;;  %s14210_s20 = inlined_call_operand.vmem [shape: f32[1,1024], index: 20, kind: input, shape index: {}]   ;;  %s14211_s21 = inlined_call_operand.vmem [shape: f32[16,1024], index: 21, kind: output, shape index: {}]  }
   0x1   :  { %14215 = sst [smem:[#allocation2_spill]] %s14190_s0 }
   0x2   :  { %14216 = sst [smem:[#allocation3_spill]] %s14191_s1 }
   0x3   :  { %14217 = sst [smem:[#allocation4_spill]] %s14192_s2  ;;  %s10662_s2 = smov 0  }
   0x4   :  { %14218 = sst [smem:[#allocation5_spill]] %s14193_s3 }
   0x5   :  { %14219 = sst [smem:[#allocation6_spill]] %s14194_s4 }
   0x6   :  { %14220 = sst [smem:[#allocation7_spill]] %s14195_s5 }
   0x7 LB: > { %s8753_s25 = sadd.s32 4294967295, %s10550_s2   ;;  %p8757_p0 = scmp.ge.s32.totalorder %s10550_s2, 1  ;;  %s10550_s2 = sphi %s10662_s2, %s31_s2  }
   0x8   : > { %p587_p1 = scmp.lt.s32.totalorder %s10550_s2, 3 }
   0xa   : > { %p588_p2 = pnand %p8757_p0, %p587_p1 }
   0xb   : > { %s14221_s3 = sld [smem:[#allocation3_spill]] (!%p588_p2)  ;;  %p647_p3 = scmp.lt.s32.totalorder (!%p588_p2), %s8753_s25, 1 }
   0xc   : > { %591 = sbr.rel (%p588_p2) target bundleno = 2832 (0xb10), region = 104  ;;  %s14222_s27 = sld [smem:[#allocation2_spill]] (!%p588_p2) }
   0xd   : > { %s14223_s24 = sld [smem:[#allocation5_spill]] (!%p588_p2)  ;;  %s14224_s29 = sld [smem:[#allocation7_spill]] (!%p588_p2) }
   0xe   : > { %s14225_s0 = sld [smem:[#allocation4_spill]] (!%p588_p2) }
  0x11   : > { %v9916_v0 = vld [vmem:[%s14221_s3 + $0x4] ss:$8 sps:$4 sm:$0xff] (!%p588_p2)   ;;  %v9918_v1 = vld [vmem:[%s14221_s3] ss:$8 sps:$4 sm:$0xff] (!%p588_p2)   ;;  %v9919_v2 = vld [vmem:[%s14221_s3 + $0x14] ss:$8 sps:$4 sm:$0xff] (!%p588_p2)  }
  0x12   : > { %1069 = vmatprep.subr.bf16.mxu0 (!%p588_p2), %v9916_v0  ;;  %v9921_v3 = vld [vmem:[%s14221_s3 + $0x10] ss:$8 sps:$4 sm:$0xff] (!%p588_p2)   ;;  %v9922_v4 = vld [vmem:[%s14221_s3 + $0x24] ss:$8 sps:$4 sm:$0xff] (!%p588_p2)   ;;  %v9924_v5 = vld [vmem:[%s14221_s3 + $0x20] ss:$8 sps:$4 sm:$0xff] (!%p588_p2)  }
  0x13   : > { %1070 = vmatpush1.bf16.msra.mxu0 %v9918_v1  ;;  %v9925_v6 = vld [vmem:[%s14221_s3 + $0x34] ss:$8 sps:$4 sm:$0xff]   ;;  %v9927_v7 = vld [vmem:[%s14221_s3 + $0x30] ss:$8 sps:$4 sm:$0xff]   ;;  %s14228_s25 = smov (!%p647_p3, %s8753_s25), 1 }
  0x14   : > { %1071 = vmatprep.subr.bf16.mxu0 %v9919_v2  ;;  %v9928_v8 = vld [vmem:[%s14221_s3 + $0x44] ss:$8 sps:$4 sm:$0xff]   ;;  %v9930_v9 = vld [vmem:[%s14221_s3 + $0x40] ss:$8 sps:$4 sm:$0xff]   ;;  %s9824_s22 = sshll.u32 %s14228_s25, 4 }
  0x15   : > { %v9931_v10 = vld [vmem:[%s14221_s3 + $0x54] ss:$8 sps:$4 sm:$0xff]   ;;  %s10709_s28 = scalar_lea.vmem %s14222_s27, %s9824_s22  ;;  %v9933_v11 = vld [vmem:[%s14221_s3 + $0x50] ss:$8 sps:$4 sm:$0xff]   ;;  %v9934_v12 = vld [vmem:[%s14221_s3 + $0x64] ss:$8 sps:$4 sm:$0xff]  }
  0x16   : > { %v10718_v13 = vld [vmem:[%s10709_s28] sm:$0xff]  ;;  %v9937_v16 = vld [vmem:[%s14221_s3 + $0x74] ss:$8 sps:$4 sm:$0xff]   ;;  %v9939_v17 = vld [vmem:[%s14221_s3 + $0x70] ss:$8 sps:$4 sm:$0xff]   ;;  %s14226_s27 = sld [smem:[#allocation6_spill]] }
  0x17   : > { %1072 = vmatpush1.bf16.msra.mxu0 %v9921_v3  ;;  %v10722_v14 = vcombine.high %v10718_v13, %v10718_v13  ;;  %v9936_v15 = vld [vmem:[%s14221_s3 + $0x60] ss:$8 sps:$4 sm:$0xff]   ;;  %v9940_v18 = vld [vmem:[%s14221_s3 + $0x84] ss:$8 sps:$4 sm:$0xff]   ;;  %v9943_v20 = vld [vmem:[%s14221_s3 + $0x94] ss:$8 sps:$4 sm:$0xff]   ;;  %v10826_v48 = vcombine.low %v10718_v13, %v10718_v13 }
  0x18   : > { %1073 = vmatprep.subr.bf16.mxu0 %v9922_v4  ;;  %v9942_v19 = vld [vmem:[%s14221_s3 + $0x80] ss:$8 sps:$4 sm:$0xff]   ;;  %v9945_v21 = vld [vmem:[%s14221_s3 + $0x90] ss:$8 sps:$4 sm:$0xff]   ;;  %v9946_v22 = vld [vmem:[%s14221_s3 + $0xa4] ss:$8 sps:$4 sm:$0xff]  }
  0x19   : > { %1101 = vmatprep.mubr.bf16.mxu0 %v10722_v14  ;;  %v9948_v23 = vld [vmem:[%s14221_s3 + $0xa0] ss:$8 sps:$4 sm:$0xff]   ;;  %v9949_v24 = vld [vmem:[%s14221_s3 + $0xb4] ss:$8 sps:$4 sm:$0xff]   ;;  %v9951_v25 = vld [vmem:[%s14221_s3 + $0xb0] ss:$8 sps:$4 sm:$0xff]  }
  0x1a   : > { %v9952_v26 = vld [vmem:[%s14221_s3 + $0xc4] ss:$8 sps:$4 sm:$0xff]   ;;  %v10018_v28 = vld [vmem:[%s14223_s24] ss:$8 sps:$4 sm:$0xff]   ;;  %v10019_v29 = vld [vmem:[%s14223_s24 + $0x14] ss:$8 sps:$4 sm:$0xff]  }
  0x1b   : > { %1074 = vmatpush1.bf16.msra.mxu0 %v9924_v5  ;;  %v10016_v27 = vld [vmem:[%s14223_s24 + $0x4] ss:$8 sps:$4 sm:$0xff]   ;;  %v9954_v30 = vld [vmem:[%s14221_s3 + $0xc0] ss:$8 sps:$4 sm:$0xff]   ;;  %v10021_v31 = vld [vmem:[%s14223_s24 + $0x10] ss:$8 sps:$4 sm:$0xff]  }
  0x1c   : > { %1075 = vmatprep.subr.bf16.mxu0 %v9925_v6  ;;  %1359 = vmatprep.subr.bf16.mxu1 %v10016_v27  ;;  %v9955_v32 = vld [vmem:[%s14221_s3 + $0xd4] ss:$8 sps:$4 sm:$0xff]   ;;  %v10022_v33 = vld [vmem:[%s14223_s24 + $0x24] ss:$8 sps:$4 sm:$0xff]   ;;  %v9957_v34 = vld [vmem:[%s14221_s3 + $0xd0] ss:$8 sps:$4 sm:$0xff]  }
  0x1d   : > { %1360 = vmatpush1.bf16.msra.mxu1 %v10018_v28  ;;  %v10024_v35 = vld [vmem:[%s14223_s24 + $0x20] ss:$8 sps:$4 sm:$0xff]   ;;  %v9958_v36 = vld [vmem:[%s14221_s3 + $0xe4] ss:$8 sps:$4 sm:$0xff]   ;;  %v10025_v37 = vld [vmem:[%s14223_s24 + $0x34] ss:$8 sps:$4 sm:$0xff]  }
  0x1e   : > { %1361 = vmatprep.subr.bf16.mxu1 %v10019_v29  ;;  %v9960_v38 = vld [vmem:[%s14221_s3 + $0xe0] ss:$8 sps:$4 sm:$0xff]   ;;  %v10027_v39 = vld [vmem:[%s14223_s24 + $0x30] ss:$8 sps:$4 sm:$0xff]   ;;  %v9961_v40 = vld [vmem:[%s14221_s3 + $0xf4] ss:$8 sps:$4 sm:$0xff]  }
  0x1f   : > { %1076 = vmatpush1.bf16.msra.mxu0 %v9927_v7  ;;  %v10028_v41 = vld [vmem:[%s14223_s24 + $0x44] ss:$8 sps:$4 sm:$0xff]   ;;  %v9963_v42 = vld [vmem:[%s14221_s3 + $0xf0] ss:$8 sps:$4 sm:$0xff]   ;;  %v10030_v44 = vld [vmem:[%s14223_s24 + $0x40] ss:$8 sps:$4 sm:$0xff]  }
  0x20   : > { %1077 = vmatprep.subr.bf16.mxu0 %v9928_v8  ;;  %v9967_v43 = vld [vmem:[%s14221_s3 + $0x104] ss:$8 sps:$4 sm:$0xff]   ;;  %v10031_v46 = vld [vmem:[%s14223_s24 + $0x54] ss:$8 sps:$4 sm:$0xff]   ;;  %v9965_v47 = vld [vmem:[%s14221_s3 + $0x100] ss:$8 sps:$4 sm:$0xff]  }
  0x21   : > { %1362 = vmatpush1.bf16.msra.mxu1 %v10021_v31  ;;  %v10816_v45 = vld [vmem:[%s10709_s28 + $0x8] sm:$0xff]  ;;  %v9971_v49 = vld [vmem:[%s14221_s3 + $0x114] ss:$8 sps:$4 sm:$0xff]   ;;  %v10033_v50 = vld [vmem:[%s14223_s24 + $0x50] ss:$8 sps:$4 sm:$0xff]  }
  0x22   : > { %1363 = vmatprep.subr.bf16.mxu1 %v10022_v33  ;;  %v10836_v51 = vcombine.high %v10816_v45, %v10816_v45  ;;  %v10034_v52 = vld [vmem:[%s14223_s24 + $0x64] ss:$8 sps:$4 sm:$0xff]   ;;  %v9969_v53 = vld [vmem:[%s14221_s3 + $0x110] ss:$8 sps:$4 sm:$0xff]   ;;  %v10036_v55 = vld [vmem:[%s14223_s24 + $0x60] ss:$8 sps:$4 sm:$0xff]  }
  0x23   : > { %1078 = vmatpush1.bf16.msra.mxu0 %v9930_v9  ;;  %v9974_v54 = vld [vmem:[%s14221_s3 + $0x124] ss:$8 sps:$4 sm:$0xff]   ;;  %v10037_v56 = vld [vmem:[%s14223_s24 + $0x74] ss:$8 sps:$4 sm:$0xff]   ;;  %v9972_v57 = vld [vmem:[%s14221_s3 + $0x120] ss:$8 sps:$4 sm:$0xff]  }
  0x24   : > { %1079 = vmatprep.subr.bf16.mxu0 %v9931_v10  ;;  %v9977_v58 = vld [vmem:[%s14221_s3 + $0x134] ss:$8 sps:$4 sm:$0xff]   ;;  %v10039_v59 = vld [vmem:[%s14223_s24 + $0x70] ss:$8 sps:$4 sm:$0xff]   ;;  %v10040_v60 = vld [vmem:[%s14223_s24 + $0x84] ss:$8 sps:$4 sm:$0xff]  }
  0x25   : > { %1364 = vmatpush1.bf16.msra.mxu1 %v10024_v35  ;;  %v9975_v61 = vld [vmem:[%s14221_s3 + $0x130] ss:$8 sps:$4 sm:$0xff]   ;;  %v9980_v62 = vld [vmem:[%s14221_s3 + $0x144] ss:$8 sps:$4 sm:$0xff]   ;;  %v10042_v63 = vld [vmem:[%s14223_s24 + $0x80] ss:$8 sps:$4 sm:$0xff]  }
  0x26   : > { %1365 = vmatprep.subr.bf16.mxu1 %v10025_v37  ;;  %v10043_v0 = vld [vmem:[%s14223_s24 + $0x94] ss:$8 sps:$4 sm:$0xff]   ;;  %v9978_v1 = vld [vmem:[%s14221_s3 + $0x140] ss:$8 sps:$4 sm:$0xff]   ;;  %v10045_v3 = vld [vmem:[%s14223_s24 + $0x90] ss:$8 sps:$4 sm:$0xff]  }
  0x27   : > { %1080 = vmatpush1.bf16.msra.mxu0 %v9933_v11  ;;  %v9983_v2 = vld [vmem:[%s14221_s3 + $0x154] ss:$8 sps:$4 sm:$0xff]   ;;  %v10046_v4 = vld [vmem:[%s14223_s24 + $0xa4] ss:$8 sps:$4 sm:$0xff]   ;;  %v9981_v5 = vld [vmem:[%s14221_s3 + $0x150] ss:$8 sps:$4 sm:$0xff]  }
  0x28   : > { %1081 = vmatprep.subr.bf16.mxu0 %v9934_v12  ;;  %v9986_v6 = vld [vmem:[%s14221_s3 + $0x164] ss:$8 sps:$4 sm:$0xff]   ;;  %v10048_v7 = vld [vmem:[%s14223_s24 + $0xa0] ss:$8 sps:$4 sm:$0xff]   ;;  %v10049_v8 = vld [vmem:[%s14223_s24 + $0xb4] ss:$8 sps:$4 sm:$0xff]  }
  0x29   : > { %1366 = vmatpush1.bf16.msra.mxu1 %v10027_v39  ;;  %v9984_v9 = vld [vmem:[%s14221_s3 + $0x160] ss:$8 sps:$4 sm:$0xff]   ;;  %v9989_v10 = vld [vmem:[%s14221_s3 + $0x174] ss:$8 sps:$4 sm:$0xff]   ;;  %v10051_v11 = vld [vmem:[%s14223_s24 + $0xb0] ss:$8 sps:$4 sm:$0xff]  }
  0x2a   : > { %1367 = vmatprep.subr.bf16.mxu1 %v10028_v41  ;;  %v10052_v12 = vld [vmem:[%s14223_s24 + $0xc4] ss:$8 sps:$4 sm:$0xff]   ;;  %v9987_v13 = vld [vmem:[%s14221_s3 + $0x170] ss:$8 sps:$4 sm:$0xff]   ;;  %v10002_v27 = vld [vmem:[%s14221_s3 + $0x1c0] ss:$8 sps:$4 sm:$0xff]  }
  0x2b   : > { %1082 = vmatpush1.bf16.msra.mxu0 %v9936_v15  ;;  %v9992_v15 = vld [vmem:[%s14221_s3 + $0x184] ss:$8 sps:$4 sm:$0xff]   ;;  %v10007_v28 = vld [vmem:[%s14221_s3 + $0x1d4] ss:$8 sps:$4 sm:$0xff]   ;;  %v10005_v29 = vld [vmem:[%s14221_s3 + $0x1d0] ss:$8 sps:$4 sm:$0xff]  }
  0x2c   : > { %1083 = vmatprep.subr.bf16.mxu0 %v9937_v16  ;;  %v10054_v16 = vld [vmem:[%s14223_s24 + $0xc0] ss:$8 sps:$4 sm:$0xff]   ;;  %v10011_v33 = vld [vmem:[%s14221_s3 + $0x1f0] ss:$8 sps:$4 sm:$0xff]   ;;  %v10058_v35 = vld [vmem:[%s14223_s24 + $0xe4] ss:$8 sps:$4 sm:$0xff]  }
  0x2d   : > { %1368 = vmatpush1.bf16.msra.mxu1 %v10030_v44  ;;  %v10008_v31 = vld [vmem:[%s14221_s3 + $0x1e0] ss:$8 sps:$4 sm:$0xff]   ;;  %v10061_v37 = vld [vmem:[%s14223_s24 + $0xf4] ss:$8 sps:$4 sm:$0xff]  }
  0x2e   : > { %1369 = vmatprep.subr.bf16.mxu1 %v10031_v46  ;;  %v10995_v39 = vld [vmem:[%s14224_s29] sm:$0xff]  ;;  %v1405_v41 = vld [vmem:[%s14224_s29 + $0x8] sm:$0xff] }
  0x2f   : > { %1084 = vmatpush1.bf16.msra.mxu0 %v9939_v17  ;;  %v10055_v17 = vld [vmem:[%s14223_s24 + $0xd4] ss:$8 sps:$4 sm:$0xff]   ;;  %v1409_v44 = vld [vmem:[%s14224_s29 + $0x28] sm:$0xff] }
  0x30   : > { %1085 = vmatprep.subr.bf16.mxu0 %v9940_v18  ;;  %v9990_v18 = vld [vmem:[%s14221_s3 + $0x180] ss:$8 sps:$4 sm:$0xff]   ;;  %v8865_v46 = vcombine.high %v1405_v41, %v1409_v44 }
  0x31   : > { %1370 = vmatpush1.bf16.msra.mxu1 %v10033_v50 }
  0x32   : > { %1371 = vmatprep.subr.bf16.mxu1 %v10034_v52 }
  0x33   : > { %1086 = vmatpush1.bf16.msra.mxu0 %v9942_v19  ;;  %v9995_v19 = vld [vmem:[%s14221_s3 + $0x194] ss:$8 sps:$4 sm:$0xff]  }
  0x34   : > { %1087 = vmatprep.subr.bf16.mxu0 %v9943_v20  ;;  %v10057_v20 = vld [vmem:[%s14223_s24 + $0xd0] ss:$8 sps:$4 sm:$0xff]  }
  0x35   : > { %1372 = vmatpush1.bf16.msra.mxu1 %v10036_v55 }
  0x36   : > { %1373 = vmatprep.subr.bf16.mxu1 %v10037_v56 }
  0x37   : > { %1088 = vmatpush1.bf16.msra.mxu0 %v9945_v21  ;;  %v9993_v21 = vld [vmem:[%s14221_s3 + $0x190] ss:$8 sps:$4 sm:$0xff]  }
  0x38   : > { %1089 = vmatprep.subr.bf16.mxu0 %v9946_v22  ;;  %v9998_v22 = vld [vmem:[%s14221_s3 + $0x1a4] ss:$8 sps:$4 sm:$0xff]  }
  0x39   : > { %1374 = vmatpush1.bf16.msra.mxu1 %v10039_v59 }
  0x3a   : > { %1375 = vmatprep.subr.bf16.mxu1 %v10040_v60 }
  0x3b   : > { %1090 = vmatpush1.bf16.msra.mxu0 %v9948_v23  ;;  %v9996_v23 = vld [vmem:[%s14221_s3 + $0x1a0] ss:$8 sps:$4 sm:$0xff]  }
  0x3c   : > { %1091 = vmatprep.subr.bf16.mxu0 %v9949_v24  ;;  %v10001_v24 = vld [vmem:[%s14221_s3 + $0x1b4] ss:$8 sps:$4 sm:$0xff]  }
  0x3d   : > { %1376 = vmatpush1.bf16.msra.mxu1 %v10042_v63 }
  0x3e   : > { %1377 = vmatprep.subr.bf16.mxu1 %v10043_v0 }
  0x3f   : > { %1092 = vmatpush1.bf16.msra.mxu0 %v9951_v25  ;;  %v9999_v25 = vld [vmem:[%s14221_s3 + $0x1b0] ss:$8 sps:$4 sm:$0xff]  }
  0x40   : > { %1093 = vmatprep.subr.bf16.mxu0 %v9952_v26  ;;  %v10004_v26 = vld [vmem:[%s14221_s3 + $0x1c4] ss:$8 sps:$4 sm:$0xff]  }
  0x41   : > { %1378 = vmatpush1.bf16.msra.mxu1 %v10045_v3 }
  0x42   : > { %1379 = vmatprep.subr.bf16.mxu1 %v10046_v4 }
  0x43   : > { %1094 = vmatpush1.bf16.msra.mxu0 %v9954_v30  ;;  %v10010_v30 = vld [vmem:[%s14221_s3 + $0x1e4] ss:$8 sps:$4 sm:$0xff]  }
  0x44   : > { %1095 = vmatprep.subr.bf16.mxu0 %v9955_v32  ;;  %v10013_v32 = vld [vmem:[%s14221_s3 + $0x1f4] ss:$8 sps:$4 sm:$0xff]  }
  0x45   : > { %1380 = vmatpush1.bf16.msra.mxu1 %v10048_v7 }
  0x46   : > { %1381 = vmatprep.subr.bf16.mxu1 %v10049_v8 }
  0x47   : > { %1096 = vmatpush1.bf16.msra.mxu0 %v9957_v34  ;;  %v10977_v34 = vcombine.low %v10816_v45, %v10816_v45  ;;  %v8864_v45 = vcombine.low %v1405_v41, %v1409_v44  ;;  %v725_v41 = vlaneseq }
  0x48   : > { %1097 = vmatprep.subr.bf16.mxu0 %v9958_v36  ;;  %v10060_v36 = vld [vmem:[%s14223_s24 + $0xe0] ss:$8 sps:$4 sm:$0xff]  }
  0x49   : > { %1382 = vmatpush1.bf16.msra.mxu1 %v10051_v11 }
  0x4a   : > { %1383 = vmatprep.subr.bf16.mxu1 %v10052_v12 }
  0x4b   : > { %1098 = vmatpush1.bf16.msra.mxu0 %v9960_v38  ;;  %v10063_v38 = vld [vmem:[%s14223_s24 + $0xf0] ss:$8 sps:$4 sm:$0xff]  }
  0x4c   : > { %1099 = vmatprep.subr.bf16.mxu0 %v9961_v40  ;;  %v11000_v40 = vld [vmem:[%s14224_s29 + $0x20] sm:$0xff] }
  0x4d   : > { %1384 = vmatpush1.bf16.msra.mxu1 %v10054_v16 }
  0x4e   : > { %1385 = vmatprep.subr.bf16.mxu1 %v10055_v17 }
  0x4f   : > { %1100 = vmatpush1.bf16.msra.mxu0 %v9963_v42  ;;  %v8862_v42 = vcombine.low %v10995_v39, %v11000_v40 }
  0x50   : > { %1110 = vmatprep.subr.bf16.mxu0 %v9967_v43  ;;  %v8863_v43 = vcombine.high %v10995_v39, %v11000_v40  ;;  %v1436_v39 = vld [vmem:[%s14224_s29 + $0x100] sm:$0xff] }
  0x51   : > { %1386 = vmatpush1.bf16.msra.mxu1 %v10057_v20  ;;  %v1440_v40 = vld [vmem:[%s14224_s29 + $0x120] sm:$0xff] }
  0x52   : > { %1102 = vmatmul.mubr.bf16.vlgmr.msra.gmra.mrb[0].mxu0 %v10826_v48  ;;  %1387 = vmatprep.subr.bf16.mxu1 %v10058_v35  ;;  %v1509_v35 = vld [vmem:[%s14224_s29 + $0x348] sm:$0xff] }
  0x53   : > { %1111 = vmatpush1.bf16.msra.mxu0 %v9965_v47  ;;  %1142 = vmatprep.mubr.bf16.mxu0 %v10836_v51  ;;  %v1413_v47 = vld [vmem:[%s14224_s29 + $0x48] sm:$0xff] }
  0x54   : > { %1112 = vmatprep.subr.bf16.mxu0 %v9971_v49  ;;  %v1417_v49 = vld [vmem:[%s14224_s29 + $0x68] sm:$0xff] }
  0x55   : > { %1388 = vmatpush1.bf16.msra.mxu1 %v10060_v36  ;;  %v8873_v50 = vcombine.high %v1413_v47, %v1417_v49  ;;  %v8872_v52 = vcombine.low %v1413_v47, %v1417_v49  ;;  %v1513_v36 = vld [vmem:[%s14224_s29 + $0x368] sm:$0xff] }
  0x56   : > { %1389 = vmatprep.subr.bf16.mxu1 %v10061_v37  ;;  %v8969_v37 = vcombine.high %v1509_v35, %v1513_v36 }
  0x57   : > { %1113 = vmatpush1.bf16.msra.mxu0 %v9969_v53  ;;  %v1421_v53 = vld [vmem:[%s14224_s29 + $0x88] sm:$0xff] }
  0x58   : > { %1114 = vmatprep.subr.bf16.mxu0 %v9974_v54  ;;  %v1425_v54 = vld [vmem:[%s14224_s29 + $0xa8] sm:$0xff] }
  0x59   : > { %1390 = vmatpush1.bf16.msra.mxu1 %v10063_v38  ;;  %v8881_v55 = vcombine.high %v1421_v53, %v1425_v54  ;;  %v8880_v56 = vcombine.low %v1421_v53, %v1425_v54  ;;  %v8968_v38 = vcombine.low %v1509_v35, %v1513_v36  ;;  %v1492_v35 = vld [vmem:[%s14224_s29 + $0x2c0] sm:$0xff] }
  0x5a   : > { %2214 = vmatprep.subr.bf16.mxu1 %v8863_v43  ;;  %v11090_v43 = vshrl.u32 %v725_v41, 7  ;;  %v1496_v36 = vld [vmem:[%s14224_s29 + $0x2e0] sm:$0xff] }
  0x5b   : > { %1115 = vmatpush1.bf16.msra.mxu0 %v9972_v57  ;;  %v1429_v57 = vld [vmem:[%s14224_s29 + $0xc8] sm:$0xff]  ;;  %v1500_v41 = vld [vmem:[%s14224_s29 + $0x300] sm:$0xff] }
  0x5c   : > { %1116 = vmatprep.subr.bf16.mxu0 %v9977_v58  ;;  %v1433_v58 = vld [vmem:[%s14224_s29 + $0xe8] sm:$0xff]  ;;  %v11093_v44 = vsub.s32 0, %v11090_v43 }
  0x5d   : > { %v8889_v59 = vcombine.high %v1429_v57, %v1433_v58  ;;  %v8888_v60 = vcombine.low %v1429_v57, %v1433_v58 }
  0x5f   : > { %1117 = vmatpush1.bf16.msra.mxu0 %v9975_v61  ;;  %v1437_v61 = vld [vmem:[%s14224_s29 + $0x108] sm:$0xff] }
  0x60   : > { %1118 = vmatprep.subr.bf16.mxu0 %v9980_v62  ;;  %v1441_v62 = vld [vmem:[%s14224_s29 + $0x128] sm:$0xff] }
  0x61   : > { %v8897_v63 = vcombine.high %v1437_v61, %v1441_v62  ;;  %v8896_v0 = vcombine.low %v1437_v61, %v1441_v62 }
  0x63   : > { %1119 = vmatpush1.bf16.msra.mxu0 %v9978_v1  ;;  %v1445_v1 = vld [vmem:[%s14224_s29 + $0x148] sm:$0xff] }
  0x64   : > { %1120 = vmatprep.subr.bf16.mxu0 %v9983_v2  ;;  %v1449_v2 = vld [vmem:[%s14224_s29 + $0x168] sm:$0xff] }
  0x65   : > { %v8905_v3 = vcombine.high %v1445_v1, %v1449_v2  ;;  %v8904_v4 = vcombine.low %v1445_v1, %v1449_v2  ;;  %v1424_v1 = vld [vmem:[%s14224_s29 + $0xa0] sm:$0xff] }
  0x67   : > { %1121 = vmatpush1.bf16.msra.mxu0 %v9981_v5  ;;  %v1453_v5 = vld [vmem:[%s14224_s29 + $0x188] sm:$0xff] }
  0x68   : > { %1122 = vmatprep.subr.bf16.mxu0 %v9986_v6  ;;  %v1457_v6 = vld [vmem:[%s14224_s29 + $0x1a8] sm:$0xff] }
  0x69   : > { %v8913_v7 = vcombine.high %v1453_v5, %v1457_v6  ;;  %v8912_v8 = vcombine.low %v1453_v5, %v1457_v6  ;;  %v1432_v5 = vld [vmem:[%s14224_s29 + $0xe0] sm:$0xff] }
  0x6b   : > { %1123 = vmatpush1.bf16.msra.mxu0 %v9984_v9  ;;  %v1461_v9 = vld [vmem:[%s14224_s29 + $0x1c8] sm:$0xff] }
  0x6c   : > { %1124 = vmatprep.subr.bf16.mxu0 %v9989_v10  ;;  %v1465_v10 = vld [vmem:[%s14224_s29 + $0x1e8] sm:$0xff] }
  0x6d   : > { %v8921_v11 = vcombine.high %v1461_v9, %v1465_v10  ;;  %v8920_v12 = vcombine.low %v1461_v9, %v1465_v10  ;;  %v1444_v9 = vld [vmem:[%s14224_s29 + $0x140] sm:$0xff] }
  0x6e   : > { %v1448_v10 = vld [vmem:[%s14224_s29 + $0x160] sm:$0xff] }
  0x6f   : > { %1125 = vmatpush1.bf16.msra.mxu0 %v9987_v13  ;;  %v1469_v13 = vld [vmem:[%s14224_s29 + $0x208] sm:$0xff] }
  0x70   : > { %1126 = vmatprep.subr.bf16.mxu0 %v9992_v15  ;;  %v1473_v15 = vld [vmem:[%s14224_s29 + $0x228] sm:$0xff] }
  0x71   : > { %v8929_v16 = vcombine.high %v1469_v13, %v1473_v15  ;;  %v8928_v17 = vcombine.low %v1469_v13, %v1473_v15  ;;  %v1452_v13 = vld [vmem:[%s14224_s29 + $0x180] sm:$0xff] }
  0x72   : > { %v1456_v15 = vld [vmem:[%s14224_s29 + $0x1a0] sm:$0xff] }
  0x73   : > { %1127 = vmatpush1.bf16.msra.mxu0 %v9990_v18  ;;  %v1477_v18 = vld [vmem:[%s14224_s29 + $0x248] sm:$0xff] }
  0x74   : > { %1128 = vmatprep.subr.bf16.mxu0 %v9995_v19  ;;  %v1481_v19 = vld [vmem:[%s14224_s29 + $0x268] sm:$0xff] }
  0x75   : > { %v8937_v20 = vcombine.high %v1477_v18, %v1481_v19 }
  0x77   : > { %1129 = vmatpush1.bf16.msra.mxu0 %v9993_v21  ;;  %v8936_v21 = vcombine.low %v1477_v18, %v1481_v19  ;;  %v1460_v18 = vld [vmem:[%s14224_s29 + $0x1c0] sm:$0xff] }
  0x78   : > { %1130 = vmatprep.subr.bf16.mxu0 %v9998_v22  ;;  %v1485_v22 = vld [vmem:[%s14224_s29 + $0x288] sm:$0xff]  ;;  %v1464_v19 = vld [vmem:[%s14224_s29 + $0x1e0] sm:$0xff] }
  0x7b   : > { %1131 = vmatpush1.bf16.msra.mxu0 %v9996_v23  ;;  %v1489_v23 = vld [vmem:[%s14224_s29 + $0x2a8] sm:$0xff] }
  0x7c   : > { %1132 = vmatprep.subr.bf16.mxu0 %v10001_v24  ;;  %v8945_v24 = vcombine.high %v1485_v22, %v1489_v23 }
  0x7f   : > { %1133 = vmatpush1.bf16.msra.mxu0 %v9999_v25  ;;  %v8944_v25 = vcombine.low %v1485_v22, %v1489_v23  ;;  %v1468_v22 = vld [vmem:[%s14224_s29 + $0x200] sm:$0xff] }
  0x80   : > { %1134 = vmatprep.subr.bf16.mxu0 %v10004_v26  ;;  %v1493_v26 = vld [vmem:[%s14224_s29 + $0x2c8] sm:$0xff]  ;;  %v1472_v23 = vld [vmem:[%s14224_s29 + $0x220] sm:$0xff] }
  0x83   : > { %1135 = vmatpush1.bf16.msra.mxu0 %v10002_v27  ;;  %v1497_v27 = vld [vmem:[%s14224_s29 + $0x2e8] sm:$0xff] }
  0x84   : > { %1136 = vmatprep.subr.bf16.mxu0 %v10007_v28  ;;  %v8953_v28 = vcombine.high %v1493_v26, %v1497_v27 }
  0x87   : > { %1137 = vmatpush1.bf16.msra.mxu0 %v10005_v29  ;;  %v8952_v29 = vcombine.low %v1493_v26, %v1497_v27  ;;  %v1476_v26 = vld [vmem:[%s14224_s29 + $0x240] sm:$0xff] }
  0x88   : > { %1138 = vmatprep.subr.bf16.mxu0 %v10010_v30  ;;  %v1501_v30 = vld [vmem:[%s14224_s29 + $0x308] sm:$0xff]  ;;  %v1480_v27 = vld [vmem:[%s14224_s29 + $0x260] sm:$0xff] }
  0x8b   : > { %1139 = vmatpush1.bf16.msra.mxu0 %v10008_v31  ;;  %v1505_v31 = vld [vmem:[%s14224_s29 + $0x328] sm:$0xff] }
  0x8c   : > { %1140 = vmatprep.subr.bf16.mxu0 %v10013_v32  ;;  %v8961_v32 = vcombine.high %v1501_v30, %v1505_v31 }
  0x8f   : > { %1141 = vmatpush1.bf16.msra.mxu0 %v10011_v33  ;;  %v8960_v33 = vcombine.low %v1501_v30, %v1505_v31  ;;  %v1484_v30 = vld [vmem:[%s14224_s29 + $0x280] sm:$0xff] }
  0x90   : > { %2255 = vmatprep.subr.bf16.mxu0 %v8865_v46  ;;  %v11099_v46 = vsub.s32 1, %v11090_v43  ;;  %v1488_v31 = vld [vmem:[%s14224_s29 + $0x2a0] sm:$0xff] }
  0x92   : > { %1143 = vmatmul.mubr.bf16.vlgmr.msra.gmra.mrb[0].mxu0 %v10977_v34 }
  0x93   : > { %2256 = vmatpush1.bf16.msra.mxu0 %v8864_v45  ;;  %v723_v45 = vld [vmem:[%s14225_s0] sm:$0x3]  ;;  %s9825_s0 = sshll.u32 %s14228_s25, 6 }
  0x94   : > { %2257 = vmatprep.subr.bf16.mxu0 %v8873_v50  ;;  %v728_v47 = vrot.slane %v723_v45, %v11093_v44  ;;  %v732_v49 = vrot.slane %v723_v45, %v11099_v46  ;;  %v1504_v45 = vld [vmem:[%s14224_s29 + $0x320] sm:$0xff]  ;;  %s14167_s5 = scalar_lea.vmem %s14211_s21, %s9825_s0 }
  0x97   : > { %2258 = vmatpush1.bf16.msra.mxu0 %v8872_v52 }
  0x98   : > { %2259 = vmatprep.subr.bf16.mxu0 %v8881_v55 }
  0x9b   : > { %2260 = vmatpush1.bf16.msra.mxu0 %v8880_v56 }
  0x9c   : > { %2261 = vmatprep.subr.bf16.mxu0 %v8889_v59  ;;  %v1412_v59 = vld [vmem:[%s14224_s29 + $0x40] sm:$0xff] }
  0x9f   : > { %2262 = vmatpush1.bf16.msra.mxu0 %v8888_v60  ;;  %v1416_v60 = vld [vmem:[%s14224_s29 + $0x60] sm:$0xff] }
  0xa0   : > { %2263 = vmatprep.subr.bf16.mxu0 %v8897_v63  ;;  %v8871_v63 = vcombine.high %v1412_v59, %v1416_v60  ;;  %v8870_v2 = vcombine.low %v1412_v59, %v1416_v60  ;;  %v1521_v60 = vld [vmem:[%s14224_s29 + $0x3a8] sm:$0xff] }
  0xa3   : > { %2264 = vmatpush1.bf16.msra.mxu0 %v8896_v0  ;;  %v1420_v0 = vld [vmem:[%s14224_s29 + $0x80] sm:$0xff] }
  0xa4   : > { %2265 = vmatprep.subr.bf16.mxu0 %v8905_v3  ;;  %v8879_v3 = vcombine.high %v1420_v0, %v1424_v1  ;;  %v8878_v6 = vcombine.low %v1420_v0, %v1424_v1  ;;  %v1524_v0 = vld [vmem:[%s14224_s29 + $0x3c0] sm:$0xff] }
  0xa5   : > { %v1528_v1 = vld [vmem:[%s14224_s29 + $0x3e0] sm:$0xff] }
  0xa7   : > { %2266 = vmatpush1.bf16.msra.mxu0 %v8904_v4  ;;  %v1428_v4 = vld [vmem:[%s14224_s29 + $0xc0] sm:$0xff] }
  0xa8   : > { %2267 = vmatprep.subr.bf16.mxu0 %v8913_v7  ;;  %v8887_v7 = vcombine.high %v1428_v4, %v1432_v5 }
  0xab   : > { %2268 = vmatpush1.bf16.msra.mxu0 %v8912_v8  ;;  %v8895_v8 = vcombine.high %v1436_v39, %v1440_v40 }
  0xac   : > { %2269 = vmatprep.subr.bf16.mxu0 %v8921_v11  ;;  %v8894_v11 = vcombine.low %v1436_v39, %v1440_v40  ;;  %v1406_v39 = vld [vmem:[%s14224_s29 + $0x10] sm:$0xff] }
  0xad   : > { %v1410_v40 = vld [vmem:[%s14224_s29 + $0x30] sm:$0xff] }
  0xaf   : > { %2270 = vmatpush1.bf16.msra.mxu0 %v8920_v12  ;;  %v8903_v12 = vcombine.high %v1444_v9, %v1448_v10 }
  0xb0   : > { %2271 = vmatprep.subr.bf16.mxu0 %v8929_v16  ;;  %v8902_v16 = vcombine.low %v1444_v9, %v1448_v10  ;;  %v1411_v9 = vld [vmem:[%s14224_s29 + $0x38] sm:$0xff]  ;;  %v8866_v10 = vcombine.low %v1406_v39, %v1410_v40 }
  0xb3   : > { %2272 = vmatpush1.bf16.msra.mxu0 %v8928_v17  ;;  %v8911_v17 = vcombine.high %v1452_v13, %v1456_v15 }
  0xb4   : > { %2273 = vmatprep.subr.bf16.mxu0 %v8937_v20  ;;  %v8910_v20 = vcombine.low %v1452_v13, %v1456_v15  ;;  %v1187_v13 = vld [vmem:[%s14226_s27] sm:$0x3] }
  0xb5   : > { %v1192_v15 = vrot.slane %v1187_v13, %v11093_v44 }
  0xb7   : > { %2274 = vmatpush1.bf16.msra.mxu0 %v8936_v21  ;;  %v8919_v21 = vcombine.high %v1460_v18, %v1464_v19 }
  0xb8   : > { %2275 = vmatprep.subr.bf16.mxu0 %v8945_v24  ;;  %v8918_v24 = vcombine.low %v1460_v18, %v1464_v19 }
  0xbb   : > { %2276 = vmatpush1.bf16.msra.mxu0 %v8944_v25  ;;  %v8927_v25 = vcombine.high %v1468_v22, %v1472_v23 }
  0xbc   : > { %2277 = vmatprep.subr.bf16.mxu0 %v8953_v28  ;;  %v8926_v28 = vcombine.low %v1468_v22, %v1472_v23 }
  0xbf   : > { %2278 = vmatpush1.bf16.msra.mxu0 %v8952_v29  ;;  %v8935_v29 = vcombine.high %v1476_v26, %v1480_v27 }
  0xc0   : > { %2279 = vmatprep.subr.bf16.mxu0 %v8961_v32  ;;  %v8934_v32 = vcombine.low %v1476_v26, %v1480_v27  ;;  %v1418_v26 = vld [vmem:[%s14224_s29 + $0x70] sm:$0xff]  ;;  %v1415_v27 = vld [vmem:[%s14224_s29 + $0x58] sm:$0xff] }
  0xc3   : > { %2280 = vmatpush1.bf16.msra.mxu0 %v8960_v33  ;;  %v8943_v33 = vcombine.high %v1484_v30, %v1488_v31 }
  0xc4   : > { %2281 = vmatprep.subr.bf16.mxu0 %v8969_v37  ;;  %v8942_v37 = vcombine.low %v1484_v30, %v1488_v31  ;;  %v1422_v31 = vld [vmem:[%s14224_s29 + $0x90] sm:$0xff] }
  0xc7   : > { %2282 = vmatpush1.bf16.msra.mxu0 %v8968_v38  ;;  %v8951_v38 = vcombine.high %v1492_v35, %v1496_v36 }
 0x165   : > { %v1144_v50 = vpop.f32.mrb[0].mxu0 }
 0x166   : > { %v9826_v52 = vadd.f32 %v1144_v50, %v728_v47  ;;  %v1146_v53 = vpop.f32.mrb[1].mxu0  ;;  %v8950_v47 = vcombine.low %v1492_v35, %v1496_v36  ;;  %v1508_v50 = vld [vmem:[%s14224_s29 + $0x340] sm:$0xff]  ;;  %v1426_v35 = vld [vmem:[%s14224_s29 + $0xb0] sm:$0xff]  ;;  %v1423_v36 = vld [vmem:[%s14224_s29 + $0x98] sm:$0xff] }
 0x167   : > { %v9827_v54 = vadd.f32 %v1146_v53, %v732_v49  ;;  %v1148_v55 = vpop.f32.mrb[2].mxu0  ;;  %v8959_v49 = vcombine.high %v1500_v41, %v1504_v45  ;;  %v8958_v53 = vcombine.low %v1500_v41, %v1504_v45  ;;  %v8883_v45 = vcombine.high %v1422_v31, %v1426_v35 }
 0x168   : > { %v1151_v56 = vmax.f32 %v9826_v52, 0.0  ;;  %v1149_v57 = vpop.f32.mrb[3].mxu0  ;;  %v1512_v52 = vld [vmem:[%s14224_s29 + $0x360] sm:$0xff] }
 0x169   : > { %v1152_v58 = vmax.f32 %v9827_v54, 0.0  ;;  %v8967_v54 = vcombine.high %v1508_v50, %v1512_v52  ;;  %v8966_v55 = vcombine.low %v1508_v50, %v1512_v52  ;;  %v1520_v57 = vld [vmem:[%s14224_s29 + $0x3a0] sm:$0xff]  ;;  %v1434_v50 = vld [vmem:[%s14224_s29 + $0xf0] sm:$0xff]  ;;  %v1431_v52 = vld [vmem:[%s14224_s29 + $0xd8] sm:$0xff] }
 0x16a   : > { %v1153_v62 = vpack.c.bf16 %v1151_v56, %v1151_v56  ;;  %v1516_v56 = vld [vmem:[%s14224_s29 + $0x380] sm:$0xff] }
 0x16b   : > { %v1154_v61 = vpack.c.bf16 %v1152_v58, %v1152_v58  ;;  %v1517_v58 = vld [vmem:[%s14224_s29 + $0x388] sm:$0xff]  ;;  %v8975_v59 = vcombine.high %v1516_v56, %v1520_v57 }
 0x16d   : > { %1391 = vmatprep.mubr.bf16.mxu1 %v1154_v61  ;;  %v8974_v61 = vcombine.low %v1516_v56, %v1520_v57 }
 0x16e   : > { %1392 = vmatmul.mubr.bf16.vlgmr.msra.gmra.mrb[0].mxu1 %v1153_v62  ;;  %v8976_v62 = vcombine.low %v1517_v58, %v1521_v60 }
 0x16f   : > { %2215 = vmatpush1.bf16.msra.mxu1 %v8862_v42  ;;  %v8886_v42 = vcombine.low %v1428_v4, %v1432_v5  ;;  %v1529_v4 = vld [vmem:[%s14224_s29 + $0x3e8] sm:$0xff]  ;;  %v8982_v5 = vcombine.low %v1524_v0, %v1528_v1 }
 0x170   : > { %2216 = vmatprep.subr.bf16.mxu1 %v8871_v63  ;;  %v8977_v63 = vcombine.high %v1517_v58, %v1521_v60  ;;  %v1438_v58 = vld [vmem:[%s14224_s29 + $0x110] sm:$0xff]  ;;  %v1439_v60 = vld [vmem:[%s14224_s29 + $0x118] sm:$0xff] }
 0x172   : > { %2283 = vmatprep.subr.bf16.mxu0 %v8977_v63 }
 0x173   : > { %2217 = vmatpush1.bf16.msra.mxu1 %v8870_v2  ;;  %v1525_v2 = vld [vmem:[%s14224_s29 + $0x3c8] sm:$0xff]  ;;  %2284 = vmatpush1.bf16.msra.mxu0 %v8976_v62 }
 0x174   : > { %2218 = vmatprep.subr.bf16.mxu1 %v8879_v3  ;;  %v8983_v3 = vcombine.high %v1524_v0, %v1528_v1 }
 0x177   : > { %2219 = vmatpush1.bf16.msra.mxu1 %v8878_v6  ;;  %v8984_v6 = vcombine.low %v1525_v2, %v1529_v4 }
 0x178   : > { %2220 = vmatprep.subr.bf16.mxu1 %v8887_v7  ;;  %v8985_v7 = vcombine.high %v1525_v2, %v1529_v4  ;;  %v1446_v2 = vld [vmem:[%s14224_s29 + $0x150] sm:$0xff]  ;;  %v1447_v4 = vld [vmem:[%s14224_s29 + $0x158] sm:$0xff] }
 0x17a   : > { %2285 = vmatprep.subr.bf16.mxu0 %v8985_v7 }
 0x17b   : > { %2221 = vmatpush1.bf16.msra.mxu1 %v8886_v42  ;;  %v1407_v42 = vld [vmem:[%s14224_s29 + $0x18] sm:$0xff]  ;;  %2286 = vmatpush1.bf16.msra.mxu0 %v8984_v6 }
 0x17c   : > { %2222 = vmatprep.subr.bf16.mxu1 %v8895_v8  ;;  %v8867_v8 = vcombine.high %v1406_v39, %v1410_v40 }
 0x17f   : > { %2223 = vmatpush1.bf16.msra.mxu1 %v8894_v11  ;;  %v8868_v11 = vcombine.low %v1407_v42, %v1411_v9 }
 0x180   : > { %2224 = vmatprep.subr.bf16.mxu1 %v8903_v12  ;;  %v8869_v12 = vcombine.high %v1407_v42, %v1411_v9  ;;  %v1454_v42 = vld [vmem:[%s14224_s29 + $0x190] sm:$0xff]  ;;  %v1455_v9 = vld [vmem:[%s14224_s29 + $0x198] sm:$0xff] }
 0x182   : > { %2337 = vmatprep.subr.bf16.mxu0 %v8869_v12 }
 0x183   : > { %2225 = vmatpush1.bf16.msra.mxu1 %v8902_v16  ;;  %v1196_v16 = vrot.slane %v1187_v13, %v11099_v46 }
 0x184   : > { %2226 = vmatprep.subr.bf16.mxu1 %v8911_v17 }
 0x187   : > { %2227 = vmatpush1.bf16.msra.mxu1 %v8910_v20 }
 0x188   : > { %2228 = vmatprep.subr.bf16.mxu1 %v8919_v21 }
 0x18b   : > { %2229 = vmatpush1.bf16.msra.mxu1 %v8918_v24 }
 0x18c   : > { %2230 = vmatprep.subr.bf16.mxu1 %v8927_v25  ;;  %v1414_v25 = vld [vmem:[%s14224_s29 + $0x50] sm:$0xff] }
 0x18f   : > { %2231 = vmatpush1.bf16.msra.mxu1 %v8926_v28  ;;  %v1419_v28 = vld [vmem:[%s14224_s29 + $0x78] sm:$0xff] }
 0x190   : > { %2232 = vmatprep.subr.bf16.mxu1 %v8935_v29  ;;  %v8876_v41 = vcombine.low %v1415_v27, %v1419_v28 }
 0x193   : > { %2233 = vmatpush1.bf16.msra.mxu1 %v8934_v32  ;;  %v8875_v32 = vcombine.high %v1414_v25, %v1418_v26 }
 0x194   : > { %2234 = vmatprep.subr.bf16.mxu1 %v8943_v33  ;;  %v8877_v33 = vcombine.high %v1415_v27, %v1419_v28  ;;  %v1475_v27 = vld [vmem:[%s14224_s29 + $0x238] sm:$0xff] }
 0x197   : > { %2235 = vmatpush1.bf16.msra.mxu1 %v8942_v37  ;;  %v1427_v37 = vld [vmem:[%s14224_s29 + $0xb8] sm:$0xff] }
 0x198   : > { %2236 = vmatprep.subr.bf16.mxu1 %v8951_v38  ;;  %v8874_v38 = vcombine.low %v1414_v25, %v1418_v26  ;;  %v1474_v25 = vld [vmem:[%s14224_s29 + $0x230] sm:$0xff]  ;;  %v1471_v26 = vld [vmem:[%s14224_s29 + $0x218] sm:$0xff] }
 0x19b   : > { %2237 = vmatpush1.bf16.msra.mxu1 %v8950_v47  ;;  %v8885_v47 = vcombine.high %v1423_v36, %v1427_v37 }
 0x19c   : > { %2238 = vmatprep.subr.bf16.mxu1 %v8959_v49  ;;  %v1430_v49 = vld [vmem:[%s14224_s29 + $0xd0] sm:$0xff] }
 0x19d   : > { %v8891_v56 = vcombine.high %v1430_v49, %v1434_v50  ;;  %v8890_v62 = vcombine.low %v1430_v49, %v1434_v50  ;;  %v1486_v49 = vld [vmem:[%s14224_s29 + $0x290] sm:$0xff] }
 0x19e   : > { %v1490_v50 = vld [vmem:[%s14224_s29 + $0x2b0] sm:$0xff] }
 0x19f   : > { %2239 = vmatpush1.bf16.msra.mxu1 %v8958_v53  ;;  %v1435_v53 = vld [vmem:[%s14224_s29 + $0xf8] sm:$0xff] }
 0x1a0   : > { %2240 = vmatprep.subr.bf16.mxu1 %v8967_v54  ;;  %v8882_v54 = vcombine.low %v1422_v31, %v1426_v35  ;;  %v8893_v57 = vcombine.high %v1431_v52, %v1435_v53  ;;  %v8892_v63 = vcombine.low %v1431_v52, %v1435_v53  ;;  %v1482_v35 = vld [vmem:[%s14224_s29 + $0x270] sm:$0xff]  ;;  %v1487_v52 = vld [vmem:[%s14224_s29 + $0x298] sm:$0xff] }
 0x1a1   : > { %v1491_v53 = vld [vmem:[%s14224_s29 + $0x2b8] sm:$0xff] }
 0x1a3   : > { %2241 = vmatpush1.bf16.msra.mxu1 %v8966_v55  ;;  %v8884_v55 = vcombine.low %v1423_v36, %v1427_v37  ;;  %v1479_v36 = vld [vmem:[%s14224_s29 + $0x258] sm:$0xff] }
 0x1a4   : > { %2242 = vmatprep.subr.bf16.mxu1 %v8975_v59  ;;  %v1442_v59 = vld [vmem:[%s14224_s29 + $0x130] sm:$0xff]  ;;  %v1483_v37 = vld [vmem:[%s14224_s29 + $0x278] sm:$0xff] }
 0x1a5   : > { %v8899_v0 = vcombine.high %v1438_v58, %v1442_v59  ;;  %v8898_v6 = vcombine.low %v1438_v58, %v1442_v59  ;;  %v1494_v58 = vld [vmem:[%s14224_s29 + $0x2d0] sm:$0xff] }
 0x1a6   : > { %v1498_v59 = vld [vmem:[%s14224_s29 + $0x2f0] sm:$0xff] }
 0x1a7   : > { %2243 = vmatpush1.bf16.msra.mxu1 %v8974_v61  ;;  %v1443_v61 = vld [vmem:[%s14224_s29 + $0x138] sm:$0xff] }
 0x1a8   : > { %2244 = vmatprep.subr.bf16.mxu1 %v8983_v3  ;;  %v8901_v1 = vcombine.high %v1439_v60, %v1443_v61  ;;  %v1450_v3 = vld [vmem:[%s14224_s29 + $0x170] sm:$0xff]  ;;  %v8900_v7 = vcombine.low %v1439_v60, %v1443_v61  ;;  %v1495_v60 = vld [vmem:[%s14224_s29 + $0x2d8] sm:$0xff] }
 0x1a9   : > { %v8907_v39 = vcombine.high %v1446_v2, %v1450_v3  ;;  %v1499_v61 = vld [vmem:[%s14224_s29 + $0x2f8] sm:$0xff] }
 0x1ab   : > { %2245 = vmatpush1.bf16.msra.mxu1 %v8982_v5  ;;  %v1451_v5 = vld [vmem:[%s14224_s29 + $0x178] sm:$0xff] }
 0x1ac   : > { %2296 = vmatprep.subr.bf16.mxu1 %v8867_v8  ;;  %v8909_v40 = vcombine.high %v1447_v4, %v1451_v5  ;;  %v1458_v8 = vld [vmem:[%s14224_s29 + $0x1b0] sm:$0xff]  ;;  %v8908_v12 = vcombine.low %v1447_v4, %v1451_v5  ;;  %v1503_v4 = vld [vmem:[%s14224_s29 + $0x318] sm:$0xff] }
 0x1ad   : > { %v8915_v13 = vcombine.high %v1454_v42, %v1458_v8  ;;  %v1507_v5 = vld [vmem:[%s14224_s29 + $0x338] sm:$0xff] }
 0x241   : > { %v1393_v17 = vpop.f32.mrb[0].mxu1 }
 0x242   : > { %v1394_v18 = vadd.f32 %v1393_v17, %v1192_v15  ;;  %v1395_v19 = vpop.f32.mrb[1].mxu1  ;;  %v1466_v17 = vld [vmem:[%s14224_s29 + $0x1f0] sm:$0xff] }
 0x243   : > { %v1396_v20 = vadd.f32 %v1395_v19, %v1196_v16  ;;  %v1397_v21 = vpop.f32.mrb[2].mxu1  ;;  %v1462_v16 = vld [vmem:[%s14224_s29 + $0x1d0] sm:$0xff]  ;;  %v1467_v19 = vld [vmem:[%s14224_s29 + $0x1f8] sm:$0xff] }
 0x244   : > { %v1400_v22 = vmax.f32 %v1394_v18, 0.0  ;;  %v1398_v23 = vpop.f32.mrb[3].mxu1  ;;  %v1463_v18 = vld [vmem:[%s14224_s29 + $0x1d8] sm:$0xff]  ;;  %v8922_v28 = vcombine.low %v1462_v16, %v1466_v17 }
 0x245   : > { %v1401_v24 = vmax.f32 %v1396_v20, 0.0  ;;  %v8914_v20 = vcombine.low %v1454_v42, %v1458_v8  ;;  %v8925_v23 = vcombine.high %v1463_v18, %v1467_v19  ;;  %v1510_v42 = vld [vmem:[%s14224_s29 + $0x350] sm:$0xff] }
 0x246   : > { %v11237_v30 = vpack.c.bf16 %v1400_v22, %v1400_v22  ;;  %v8923_v22 = vcombine.high %v1462_v16, %v1466_v17  ;;  %v1514_v8 = vld [vmem:[%s14224_s29 + $0x370] sm:$0xff] }
 0x247   : > { %v1403_v29 = vpack.c.bf16 %v1401_v24, %v1401_v24  ;;  %v1470_v24 = vld [vmem:[%s14224_s29 + $0x210] sm:$0xff] }
 0x248   : > { %v8931_v31 = vcombine.high %v1470_v24, %v1474_v25  ;;  %v1518_v16 = vld [vmem:[%s14224_s29 + $0x390] sm:$0xff] }
 0x249   : > { %2246 = vmatprep.mubr.bf16.mxu1 %v1403_v29  ;;  %2287 = vmatprep.mubr.bf16.mxu0 %v1403_v29  ;;  %v1522_v17 = vld [vmem:[%s14224_s29 + $0x3b0] sm:$0xff] }
 0x24a   : > { %2247 = vmatmul.mubr.bf16.vlgmr.msra.gmra.mrb[4].mxu1 %v11237_v30  ;;  %2288 = vmatmul.mubr.bf16.vlgmr.msra.gmra.mrb[4].mxu0 %v11237_v30 }
 0x24b   : > { %2297 = vmatpush1.bf16.msra.mxu1 %v8866_v10  ;;  %2338 = vmatpush1.bf16.msra.mxu0 %v8868_v11  ;;  %v1459_v10 = vld [vmem:[%s14224_s29 + $0x1b8] sm:$0xff]  ;;  %v8906_v11 = vcombine.low %v1446_v2, %v1450_v3  ;;  %v1502_v2 = vld [vmem:[%s14224_s29 + $0x310] sm:$0xff] }
 0x24c   : > { %2328 = vmatprep.mubr.bf16.mxu1 %v1403_v29  ;;  %2369 = vmatprep.mubr.bf16.mxu0 %v1403_v29  ;;  %v8917_v15 = vcombine.high %v1455_v9, %v1459_v10  ;;  %v8916_v21 = vcombine.low %v1455_v9, %v1459_v10  ;;  %v8924_v29 = vcombine.low %v1463_v18, %v1467_v19  ;;  %v1506_v3 = vld [vmem:[%s14224_s29 + $0x330] sm:$0xff]  ;;  %v1511_v9 = vld [vmem:[%s14224_s29 + $0x358] sm:$0xff] }
 0x24d   : > { %2298 = vmatprep.subr.bf16.mxu1 %v8875_v32  ;;  %2339 = vmatprep.subr.bf16.mxu0 %v8877_v33  ;;  %v8933_v32 = vcombine.high %v1471_v26, %v1475_v27  ;;  %v1478_v33 = vld [vmem:[%s14224_s29 + $0x250] sm:$0xff]  ;;  %v1515_v10 = vld [vmem:[%s14224_s29 + $0x378] sm:$0xff] }
 0x24e   : > { %v1519_v18 = vld [vmem:[%s14224_s29 + $0x398] sm:$0xff] }
 0x24f   : > { %2299 = vmatpush1.bf16.msra.mxu1 %v8874_v38  ;;  %2340 = vmatpush1.bf16.msra.mxu0 %v8876_v41  ;;  %v8930_v38 = vcombine.low %v1470_v24, %v1474_v25  ;;  %v8932_v41 = vcombine.low %v1471_v26, %v1475_v27  ;;  %v1523_v19 = vld [vmem:[%s14224_s29 + $0x3b8] sm:$0xff]  ;;  %v1526_v24 = vld [vmem:[%s14224_s29 + $0x3d0] sm:$0xff] }
 0x250   : > { %2300 = vmatprep.subr.bf16.mxu1 %v8883_v45  ;;  %2341 = vmatprep.subr.bf16.mxu0 %v8885_v47  ;;  %v8939_v45 = vcombine.high %v1478_v33, %v1482_v35  ;;  %v8941_v47 = vcombine.high %v1479_v36, %v1483_v37  ;;  %v1530_v25 = vld [vmem:[%s14224_s29 + $0x3f0] sm:$0xff]  ;;  %v1527_v26 = vld [vmem:[%s14224_s29 + $0x3d8] sm:$0xff] }
 0x251   : > { %v1531_v27 = vld [vmem:[%s14224_s29 + $0x3f8] sm:$0xff] }
 0x253   : > { %2301 = vmatpush1.bf16.msra.mxu1 %v8882_v54  ;;  %2342 = vmatpush1.bf16.msra.mxu0 %v8884_v55  ;;  %v8938_v54 = vcombine.low %v1478_v33, %v1482_v35  ;;  %v8940_v55 = vcombine.low %v1479_v36, %v1483_v37  ;;  %v2378_v33 = vld [vmem:[%s14197_s7] sm:$0xff]  ;;  %v2379_v36 = vld [vmem:[%s14197_s7 + $0x8] sm:$0xff] }
 0x254   : > { %2302 = vmatprep.subr.bf16.mxu1 %v8891_v56  ;;  %2343 = vmatprep.subr.bf16.mxu0 %v8893_v57  ;;  %v8947_v56 = vcombine.high %v1486_v49, %v1490_v50  ;;  %v8949_v57 = vcombine.high %v1487_v52, %v1491_v53  ;;  %v2382_v35 = vld [vmem:[%s14197_s7 + $0x20] sm:$0xff]  ;;  %v2383_v37 = vld [vmem:[%s14197_s7 + $0x28] sm:$0xff] }
 0x257   : > { %2303 = vmatpush1.bf16.msra.mxu1 %v8890_v62  ;;  %2344 = vmatpush1.bf16.msra.mxu0 %v8892_v63  ;;  %v8946_v62 = vcombine.low %v1486_v49, %v1490_v50  ;;  %v8948_v63 = vcombine.low %v1487_v52, %v1491_v53  ;;  %v2386_v49 = vld [vmem:[%s14197_s7 + $0x40] sm:$0xff]  ;;  %v2387_v52 = vld [vmem:[%s14197_s7 + $0x48] sm:$0xff] }
 0x258   : > { %2304 = vmatprep.subr.bf16.mxu1 %v8899_v0  ;;  %2345 = vmatprep.subr.bf16.mxu0 %v8901_v1  ;;  %v8955_v0 = vcombine.high %v1494_v58, %v1498_v59  ;;  %v8957_v1 = vcombine.high %v1495_v60, %v1499_v61  ;;  %v2390_v50 = vld [vmem:[%s14197_s7 + $0x60] sm:$0xff]  ;;  %v2391_v53 = vld [vmem:[%s14197_s7 + $0x68] sm:$0xff] }
 0x25b   : > { %2305 = vmatpush1.bf16.msra.mxu1 %v8898_v6  ;;  %2346 = vmatpush1.bf16.msra.mxu0 %v8900_v7  ;;  %v8954_v6 = vcombine.low %v1494_v58, %v1498_v59  ;;  %v8956_v7 = vcombine.low %v1495_v60, %v1499_v61  ;;  %v2394_v58 = vld [vmem:[%s14197_s7 + $0x80] sm:$0xff]  ;;  %v2395_v60 = vld [vmem:[%s14197_s7 + $0x88] sm:$0xff] }
 0x25c   : > { %2306 = vmatprep.subr.bf16.mxu1 %v8907_v39  ;;  %2347 = vmatprep.subr.bf16.mxu0 %v8909_v40  ;;  %v8963_v39 = vcombine.high %v1502_v2, %v1506_v3  ;;  %v8965_v40 = vcombine.high %v1503_v4, %v1507_v5  ;;  %v2398_v59 = vld [vmem:[%s14197_s7 + $0xa0] sm:$0xff]  ;;  %v2399_v61 = vld [vmem:[%s14197_s7 + $0xa8] sm:$0xff] }
 0x25f   : > { %2307 = vmatpush1.bf16.msra.mxu1 %v8906_v11  ;;  %2348 = vmatpush1.bf16.msra.mxu0 %v8908_v12  ;;  %v8962_v11 = vcombine.low %v1502_v2, %v1506_v3  ;;  %v8964_v12 = vcombine.low %v1503_v4, %v1507_v5  ;;  %v2402_v2 = vld [vmem:[%s14197_s7 + $0xc0] sm:$0xff]  ;;  %v2407_v4 = vld [vmem:[%s14197_s7 + $0xe8] sm:$0xff]  ;;  %v9006_v5 = vcombine.low %v2394_v58, %v2398_v59 }
 0x260   : > { %2308 = vmatprep.subr.bf16.mxu1 %v8915_v13  ;;  %2349 = vmatprep.subr.bf16.mxu0 %v8917_v15  ;;  %v8971_v13 = vcombine.high %v1510_v42, %v1514_v8  ;;  %v8973_v15 = vcombine.high %v1511_v9, %v1515_v10  ;;  %v2406_v3 = vld [vmem:[%s14197_s7 + $0xe0] sm:$0xff] }
 0x263   : > { %2309 = vmatpush1.bf16.msra.mxu1 %v8914_v20  ;;  %2350 = vmatpush1.bf16.msra.mxu0 %v8916_v21  ;;  %v8970_v20 = vcombine.low %v1510_v42, %v1514_v8  ;;  %v8972_v21 = vcombine.low %v1511_v9, %v1515_v10  ;;  %v2414_v42 = vld [vmem:[%s14197_s7 + $0x120] sm:$0xff]  ;;  %v2411_v8 = vld [vmem:[%s14197_s7 + $0x108] sm:$0xff]  ;;  %v9014_v10 = vcombine.low %v2402_v2, %v2406_v3 }
 0x264   : > { %2310 = vmatprep.subr.bf16.mxu1 %v8923_v22  ;;  %2351 = vmatprep.subr.bf16.mxu0 %v8925_v23  ;;  %v8979_v22 = vcombine.high %v1518_v16, %v1522_v17  ;;  %v8981_v23 = vcombine.high %v1519_v18, %v1523_v19  ;;  %v2415_v9 = vld [vmem:[%s14197_s7 + $0x128] sm:$0xff] }
 0x267   : > { %2311 = vmatpush1.bf16.msra.mxu1 %v8922_v28  ;;  %2352 = vmatpush1.bf16.msra.mxu0 %v8924_v29  ;;  %v8978_v28 = vcombine.low %v1518_v16, %v1522_v17  ;;  %v8980_v29 = vcombine.low %v1519_v18, %v1523_v19  ;;  %v2422_v16 = vld [vmem:[%s14197_s7 + $0x160] sm:$0xff]  ;;  %v2419_v17 = vld [vmem:[%s14197_s7 + $0x148] sm:$0xff] }
 0x268   : > { %2312 = vmatprep.subr.bf16.mxu1 %v8931_v31  ;;  %2353 = vmatprep.subr.bf16.mxu0 %v8933_v32  ;;  %v8987_v31 = vcombine.high %v1526_v24, %v1530_v25  ;;  %v8989_v32 = vcombine.high %v1527_v26, %v1531_v27  ;;  %v2423_v18 = vld [vmem:[%s14197_s7 + $0x168] sm:$0xff] }
 0x26b   : > { %2313 = vmatpush1.bf16.msra.mxu1 %v8930_v38  ;;  %2354 = vmatpush1.bf16.msra.mxu0 %v8932_v41  ;;  %v8986_v38 = vcombine.low %v1526_v24, %v1530_v25  ;;  %v8988_v41 = vcombine.low %v1527_v26, %v1531_v27  ;;  %v2430_v24 = vld [vmem:[%s14197_s7 + $0x1a0] sm:$0xff]  ;;  %v2427_v25 = vld [vmem:[%s14197_s7 + $0x188] sm:$0xff] }
 0x26c   : > { %2314 = vmatprep.subr.bf16.mxu1 %v8939_v45  ;;  %2355 = vmatprep.subr.bf16.mxu0 %v8941_v47  ;;  %v8991_v45 = vcombine.high %v2378_v33, %v2382_v35  ;;  %v8993_v47 = vcombine.high %v2379_v36, %v2383_v37  ;;  %v2431_v26 = vld [vmem:[%s14197_s7 + $0x1a8] sm:$0xff] }
 0x26f   : > { %2315 = vmatpush1.bf16.msra.mxu1 %v8938_v54  ;;  %2356 = vmatpush1.bf16.msra.mxu0 %v8940_v55  ;;  %v8990_v54 = vcombine.low %v2378_v33, %v2382_v35  ;;  %v8992_v55 = vcombine.low %v2379_v36, %v2383_v37  ;;  %v2438_v33 = vld [vmem:[%s14197_s7 + $0x1e0] sm:$0xff]  ;;  %v2435_v35 = vld [vmem:[%s14197_s7 + $0x1c8] sm:$0xff] }
 0x270   : > { %2316 = vmatprep.subr.bf16.mxu1 %v8947_v56  ;;  %2357 = vmatprep.subr.bf16.mxu0 %v8949_v57  ;;  %v8999_v56 = vcombine.high %v2386_v49, %v2390_v50  ;;  %v9001_v57 = vcombine.high %v2387_v52, %v2391_v53  ;;  %v2439_v36 = vld [vmem:[%s14197_s7 + $0x1e8] sm:$0xff] }
 0x273   : > { %2317 = vmatpush1.bf16.msra.mxu1 %v8946_v62  ;;  %2358 = vmatpush1.bf16.msra.mxu0 %v8948_v63  ;;  %v8998_v62 = vcombine.low %v2386_v49, %v2390_v50  ;;  %v9000_v63 = vcombine.low %v2387_v52, %v2391_v53  ;;  %v2446_v49 = vld [vmem:[%s14197_s7 + $0x220] sm:$0xff]  ;;  %v2443_v50 = vld [vmem:[%s14197_s7 + $0x208] sm:$0xff] }
 0x274   : > { %2318 = vmatprep.subr.bf16.mxu1 %v8955_v0  ;;  %2359 = vmatprep.subr.bf16.mxu0 %v8957_v1  ;;  %v9007_v0 = vcombine.high %v2394_v58, %v2398_v59  ;;  %v9009_v1 = vcombine.high %v2395_v60, %v2399_v61  ;;  %v2447_v52 = vld [vmem:[%s14197_s7 + $0x228] sm:$0xff]  ;;  %v2454_v58 = vld [vmem:[%s14197_s7 + $0x260] sm:$0xff] }
 0x275   : > { %v2451_v59 = vld [vmem:[%s14197_s7 + $0x248] sm:$0xff] }
 0x277   : > { %2319 = vmatpush1.bf16.msra.mxu1 %v8954_v6  ;;  %2360 = vmatpush1.bf16.msra.mxu0 %v8956_v7  ;;  %v9008_v6 = vcombine.low %v2395_v60, %v2399_v61  ;;  %v9015_v7 = vcombine.high %v2402_v2, %v2406_v3  ;;  %v2455_v60 = vld [vmem:[%s14197_s7 + $0x268] sm:$0xff]  ;;  %v2462_v2 = vld [vmem:[%s14197_s7 + $0x2a0] sm:$0xff] }
 0x278   : > { %2320 = vmatprep.subr.bf16.mxu1 %v8963_v39  ;;  %2361 = vmatprep.subr.bf16.mxu0 %v8965_v40  ;;  %v2410_v40 = vld [vmem:[%s14197_s7 + $0x100] sm:$0xff]  ;;  %v2459_v3 = vld [vmem:[%s14197_s7 + $0x288] sm:$0xff] }
 0x279   : > { %v9022_v19 = vcombine.low %v2410_v40, %v2414_v42 }
 0x27b   : > { %2321 = vmatpush1.bf16.msra.mxu1 %v8962_v11  ;;  %2362 = vmatpush1.bf16.msra.mxu0 %v8964_v12  ;;  %v9023_v12 = vcombine.high %v2410_v40, %v2414_v42  ;;  %v2470_v40 = vld [vmem:[%s14197_s7 + $0x2e0] sm:$0xff]  ;;  %v2467_v42 = vld [vmem:[%s14197_s7 + $0x2c8] sm:$0xff] }
 0x27c   : > { %2322 = vmatprep.subr.bf16.mxu1 %v8971_v13  ;;  %2363 = vmatprep.subr.bf16.mxu0 %v8973_v15  ;;  %v9025_v13 = vcombine.high %v2411_v8, %v2415_v9  ;;  %v2418_v15 = vld [vmem:[%s14197_s7 + $0x140] sm:$0xff] }
 0x27d   : > { %v9030_v27 = vcombine.low %v2418_v15, %v2422_v16 }
 0x27f   : > { %2323 = vmatpush1.bf16.msra.mxu1 %v8970_v20  ;;  %2364 = vmatpush1.bf16.msra.mxu0 %v8972_v21  ;;  %v9024_v20 = vcombine.low %v2411_v8, %v2415_v9  ;;  %v9031_v21 = vcombine.high %v2418_v15, %v2422_v16  ;;  %v2471_v8 = vld [vmem:[%s14197_s7 + $0x2e8] sm:$0xff]  ;;  %v2478_v15 = vld [vmem:[%s14197_s7 + $0x320] sm:$0xff] }
 0x280   : > { %2324 = vmatprep.subr.bf16.mxu1 %v8979_v22  ;;  %2365 = vmatprep.subr.bf16.mxu0 %v8981_v23  ;;  %v9033_v22 = vcombine.high %v2419_v17, %v2423_v18  ;;  %v2426_v23 = vld [vmem:[%s14197_s7 + $0x180] sm:$0xff]  ;;  %v2475_v16 = vld [vmem:[%s14197_s7 + $0x308] sm:$0xff] }
 0x281   : > { %v9038_v37 = vcombine.low %v2426_v23, %v2430_v24 }
 0x283   : > { %2325 = vmatpush1.bf16.msra.mxu1 %v8978_v28  ;;  %2366 = vmatpush1.bf16.msra.mxu0 %v8980_v29  ;;  %v9032_v28 = vcombine.low %v2419_v17, %v2423_v18  ;;  %v9039_v29 = vcombine.high %v2426_v23, %v2430_v24  ;;  %v2479_v17 = vld [vmem:[%s14197_s7 + $0x328] sm:$0xff]  ;;  %v2486_v23 = vld [vmem:[%s14197_s7 + $0x360] sm:$0xff] }
 0x284   : > { %2326 = vmatprep.subr.bf16.mxu1 %v8987_v31  ;;  %2367 = vmatprep.subr.bf16.mxu0 %v8989_v32  ;;  %v9041_v31 = vcombine.high %v2427_v25, %v2431_v26  ;;  %v2434_v32 = vld [vmem:[%s14197_s7 + $0x1c0] sm:$0xff]  ;;  %v2483_v24 = vld [vmem:[%s14197_s7 + $0x348] sm:$0xff] }
 0x285   : > { %v9046_v53 = vcombine.low %v2434_v32, %v2438_v33 }
 0x287   : > { %2327 = vmatpush1.bf16.msra.mxu1 %v8986_v38  ;;  %2368 = vmatpush1.bf16.msra.mxu0 %v8988_v41  ;;  %v9040_v38 = vcombine.low %v2427_v25, %v2431_v26  ;;  %v9047_v41 = vcombine.high %v2434_v32, %v2438_v33  ;;  %v2487_v25 = vld [vmem:[%s14197_s7 + $0x368] sm:$0xff]  ;;  %v2494_v32 = vld [vmem:[%s14197_s7 + $0x3a0] sm:$0xff] }
 0x288   : > { %3956 = vmatprep.subr.bf16.mxu1 %v8991_v45  ;;  %4038 = vmatprep.subr.bf16.mxu0 %v8993_v47  ;;  %v9049_v45 = vcombine.high %v2435_v35, %v2439_v36  ;;  %v2442_v47 = vld [vmem:[%s14197_s7 + $0x200] sm:$0xff]  ;;  %v2491_v33 = vld [vmem:[%s14197_s7 + $0x388] sm:$0xff] }
 0x289   : > { %v9054_v61 = vcombine.low %v2442_v47, %v2446_v49 }
 0x28a   : > { %2329 = vmatmul.mubr.bf16.vlgmr.msra.gmra.mrb[8].mxu1 %v11237_v30  ;;  %2370 = vmatmul.mubr.bf16.vlgmr.msra.gmra.mrb[8].mxu0 %v11237_v30  ;;  %v2403_v30 = vld [vmem:[%s14197_s7 + $0xc8] sm:$0xff] }
 0x28b   : > { %3957 = vmatpush1.bf16.msra.mxu1 %v8990_v54  ;;  %4039 = vmatpush1.bf16.msra.mxu0 %v8992_v55  ;;  %v9017_v39 = vcombine.high %v2403_v30, %v2407_v4  ;;  %v9016_v11 = vcombine.low %v2403_v30, %v2407_v4  ;;  %v9048_v54 = vcombine.low %v2435_v35, %v2439_v36  ;;  %v2463_v30 = vld [vmem:[%s14197_s7 + $0x2a8] sm:$0xff] }
 0x28c   : > { %3958 = vmatprep.subr.bf16.mxu1 %v8999_v56  ;;  %4040 = vmatprep.subr.bf16.mxu0 %v9001_v57  ;;  %v9055_v55 = vcombine.high %v2442_v47, %v2446_v49  ;;  %v9057_v56 = vcombine.high %v2443_v50, %v2447_v52  ;;  %v2450_v57 = vld [vmem:[%s14197_s7 + $0x240] sm:$0xff]  ;;  %v2495_v35 = vld [vmem:[%s14197_s7 + $0x3a8] sm:$0xff] }
 0x28d   : > { %3988 = vmatprep.mubr.bf16.mxu1 %v10722_v14  ;;  %4070 = vmatprep.mubr.bf16.mxu0 %v10722_v14  ;;  %v9062_v4 = vcombine.low %v2450_v57, %v2454_v58  ;;  %v2502_v47 = vld [vmem:[%s14197_s7 + $0x3e0] sm:$0xff]  ;;  %v2499_v49 = vld [vmem:[%s14197_s7 + $0x3c8] sm:$0xff] }
 0x28f   : > { %3959 = vmatpush1.bf16.msra.mxu1 %v8998_v62  ;;  %4041 = vmatpush1.bf16.msra.mxu0 %v9000_v63  ;;  %v9056_v62 = vcombine.low %v2443_v50, %v2447_v52  ;;  %v9063_v63 = vcombine.high %v2450_v57, %v2454_v58  ;;  %v2503_v50 = vld [vmem:[%s14197_s7 + $0x3e8] sm:$0xff]  ;;  %v2510_v57 = vld [vmem:[%s14197_s7 + $0x420] sm:$0xff] }
 0x290   : > { %3960 = vmatprep.subr.bf16.mxu1 %v9007_v0  ;;  %4042 = vmatprep.subr.bf16.mxu0 %v9009_v1  ;;  %v9065_v0 = vcombine.high %v2451_v59, %v2455_v60  ;;  %v2458_v1 = vld [vmem:[%s14197_s7 + $0x280] sm:$0xff]  ;;  %v2507_v58 = vld [vmem:[%s14197_s7 + $0x408] sm:$0xff] }
 0x291   : > { %v9070_v9 = vcombine.low %v2458_v1, %v2462_v2 }
 0x293   : > { %3961 = vmatpush1.bf16.msra.mxu1 %v9006_v5  ;;  %4043 = vmatpush1.bf16.msra.mxu0 %v9008_v6  ;;  %v9064_v5 = vcombine.low %v2451_v59, %v2455_v60  ;;  %v9071_v6 = vcombine.high %v2458_v1, %v2462_v2  ;;  %v2511_v59 = vld [vmem:[%s14197_s7 + $0x428] sm:$0xff]  ;;  %v2518_v1 = vld [vmem:[%s14197_s7 + $0x460] sm:$0xff] }
 0x294   : > { %3962 = vmatprep.subr.bf16.mxu1 %v9015_v7  ;;  %4044 = vmatprep.subr.bf16.mxu0 %v9017_v39  ;;  %v9073_v7 = vcombine.high %v2459_v3, %v2463_v30  ;;  %v2466_v39 = vld [vmem:[%s14197_s7 + $0x2c0] sm:$0xff]  ;;  %v2515_v2 = vld [vmem:[%s14197_s7 + $0x448] sm:$0xff] }
 0x295   : > { %v9078_v18 = vcombine.low %v2466_v39, %v2470_v40 }
 0x297   : > { %3963 = vmatpush1.bf16.msra.mxu1 %v9014_v10  ;;  %4045 = vmatpush1.bf16.msra.mxu0 %v9016_v11  ;;  %v9072_v10 = vcombine.low %v2459_v3, %v2463_v30  ;;  %v9079_v11 = vcombine.high %v2466_v39, %v2470_v40  ;;  %v2519_v3 = vld [vmem:[%s14197_s7 + $0x468] sm:$0xff]  ;;  %v2526_v39 = vld [vmem:[%s14197_s7 + $0x4a0] sm:$0xff] }
 0x298   : > { %3964 = vmatprep.subr.bf16.mxu1 %v9023_v12  ;;  %4046 = vmatprep.subr.bf16.mxu0 %v9025_v13  ;;  %v9081_v12 = vcombine.high %v2467_v42, %v2471_v8  ;;  %v2474_v13 = vld [vmem:[%s14197_s7 + $0x300] sm:$0xff]  ;;  %v2523_v40 = vld [vmem:[%s14197_s7 + $0x488] sm:$0xff] }
 0x299   : > { %v9086_v26 = vcombine.low %v2474_v13, %v2478_v15 }
 0x29b   : > { %3965 = vmatpush1.bf16.msra.mxu1 %v9022_v19  ;;  %4047 = vmatpush1.bf16.msra.mxu0 %v9024_v20  ;;  %v9080_v19 = vcombine.low %v2467_v42, %v2471_v8  ;;  %v9087_v20 = vcombine.high %v2474_v13, %v2478_v15  ;;  %v2527_v42 = vld [vmem:[%s14197_s7 + $0x4a8] sm:$0xff]  ;;  %v2534_v13 = vld [vmem:[%s14197_s7 + $0x4e0] sm:$0xff] }
 0x29c   : > { %3966 = vmatprep.subr.bf16.mxu1 %v9031_v21  ;;  %4048 = vmatprep.subr.bf16.mxu0 %v9033_v22  ;;  %v9089_v21 = vcombine.high %v2475_v16, %v2479_v17  ;;  %v2482_v22 = vld [vmem:[%s14197_s7 + $0x340] sm:$0xff]  ;;  %v2531_v15 = vld [vmem:[%s14197_s7 + $0x4c8] sm:$0xff] }
 0x29d   : > { %v9094_v36 = vcombine.low %v2482_v22, %v2486_v23 }
 0x29f   : > { %3967 = vmatpush1.bf16.msra.mxu1 %v9030_v27  ;;  %4049 = vmatpush1.bf16.msra.mxu0 %v9032_v28  ;;  %v9088_v27 = vcombine.low %v2475_v16, %v2479_v17  ;;  %v9095_v28 = vcombine.high %v2482_v22, %v2486_v23  ;;  %v2535_v16 = vld [vmem:[%s14197_s7 + $0x4e8] sm:$0xff]  ;;  %v2542_v22 = vld [vmem:[%s14197_s7 + $0x520] sm:$0xff] }
 0x2a0   : > { %3968 = vmatprep.subr.bf16.mxu1 %v9039_v29  ;;  %4050 = vmatprep.subr.bf16.mxu0 %v9041_v31  ;;  %v9097_v29 = vcombine.high %v2483_v24, %v2487_v25  ;;  %v2490_v31 = vld [vmem:[%s14197_s7 + $0x380] sm:$0xff]  ;;  %v2539_v23 = vld [vmem:[%s14197_s7 + $0x508] sm:$0xff] }
 0x2a1   : > { %v9102_v52 = vcombine.low %v2490_v31, %v2494_v32 }
 0x2a3   : > { %3969 = vmatpush1.bf16.msra.mxu1 %v9038_v37  ;;  %4051 = vmatpush1.bf16.msra.mxu0 %v9040_v38  ;;  %v9096_v37 = vcombine.low %v2483_v24, %v2487_v25  ;;  %v9103_v38 = vcombine.high %v2490_v31, %v2494_v32  ;;  %v2543_v24 = vld [vmem:[%s14197_s7 + $0x528] sm:$0xff]  ;;  %v2550_v31 = vld [vmem:[%s14197_s7 + $0x560] sm:$0xff] }
 0x2a4   : > { %3970 = vmatprep.subr.bf16.mxu1 %v9047_v41  ;;  %4052 = vmatprep.subr.bf16.mxu0 %v9049_v45  ;;  %v9105_v41 = vcombine.high %v2491_v33, %v2495_v35  ;;  %v2498_v45 = vld [vmem:[%s14197_s7 + $0x3c0] sm:$0xff]  ;;  %v2547_v32 = vld [vmem:[%s14197_s7 + $0x548] sm:$0xff] }
 0x2a5   : > { %v9110_v60 = vcombine.low %v2498_v45, %v2502_v47 }
 0x2a7   : > { %3971 = vmatpush1.bf16.msra.mxu1 %v9046_v53  ;;  %4053 = vmatpush1.bf16.msra.mxu0 %v9048_v54  ;;  %v9104_v53 = vcombine.low %v2491_v33, %v2495_v35  ;;  %v9111_v54 = vcombine.high %v2498_v45, %v2502_v47  ;;  %v2551_v33 = vld [vmem:[%s14197_s7 + $0x568] sm:$0xff]  ;;  %v2558_v45 = vld [vmem:[%s14197_s7 + $0x5a0] sm:$0xff] }
 0x2a8   : > { %3972 = vmatprep.subr.bf16.mxu1 %v9055_v55  ;;  %4054 = vmatprep.subr.bf16.mxu0 %v9057_v56  ;;  %v9113_v55 = vcombine.high %v2499_v49, %v2503_v50  ;;  %v2506_v56 = vld [vmem:[%s14197_s7 + $0x400] sm:$0xff]  ;;  %v2555_v47 = vld [vmem:[%s14197_s7 + $0x588] sm:$0xff] }
 0x2a9   : > { %v9118_v30 = vcombine.low %v2506_v56, %v2510_v57 }
 0x2ab   : > { %3973 = vmatpush1.bf16.msra.mxu1 %v9054_v61  ;;  %4055 = vmatpush1.bf16.msra.mxu0 %v9056_v62  ;;  %v9112_v61 = vcombine.low %v2499_v49, %v2503_v50  ;;  %v9119_v62 = vcombine.high %v2506_v56, %v2510_v57  ;;  %v2559_v49 = vld [vmem:[%s14197_s7 + $0x5a8] sm:$0xff]  ;;  %v2566_v56 = vld [vmem:[%s14197_s7 + $0x5e0] sm:$0xff] }
 0x2ac   : > { %3974 = vmatprep.subr.bf16.mxu1 %v9063_v63  ;;  %4056 = vmatprep.subr.bf16.mxu0 %v9065_v0  ;;  %v9121_v63 = vcombine.high %v2507_v58, %v2511_v59  ;;  %v2514_v0 = vld [vmem:[%s14197_s7 + $0x440] sm:$0xff]  ;;  %v2563_v57 = vld [vmem:[%s14197_s7 + $0x5c8] sm:$0xff] }
 0x2ad   : > { %v9126_v8 = vcombine.low %v2514_v0, %v2518_v1 }
 0x2af   : > { %3975 = vmatpush1.bf16.msra.mxu1 %v9062_v4  ;;  %4057 = vmatpush1.bf16.msra.mxu0 %v9064_v5  ;;  %v9120_v4 = vcombine.low %v2507_v58, %v2511_v59  ;;  %v9127_v5 = vcombine.high %v2514_v0, %v2518_v1  ;;  %v2567_v58 = vld [vmem:[%s14197_s7 + $0x5e8] sm:$0xff]  ;;  %v2574_v0 = vld [vmem:[%s14197_s7 + $0x620] sm:$0xff] }
 0x2b0   : > { %3976 = vmatprep.subr.bf16.mxu1 %v9071_v6  ;;  %4058 = vmatprep.subr.bf16.mxu0 %v9073_v7  ;;  %v9129_v6 = vcombine.high %v2515_v2, %v2519_v3  ;;  %v2522_v7 = vld [vmem:[%s14197_s7 + $0x480] sm:$0xff]  ;;  %v2571_v1 = vld [vmem:[%s14197_s7 + $0x608] sm:$0xff] }
 0x2b1   : > { %v9134_v17 = vcombine.low %v2522_v7, %v2526_v39 }
 0x2b3   : > { %3977 = vmatpush1.bf16.msra.mxu1 %v9070_v9  ;;  %4059 = vmatpush1.bf16.msra.mxu0 %v9072_v10  ;;  %v9128_v9 = vcombine.low %v2515_v2, %v2519_v3  ;;  %v9135_v10 = vcombine.high %v2522_v7, %v2526_v39  ;;  %v2575_v2 = vld [vmem:[%s14197_s7 + $0x628] sm:$0xff]  ;;  %v2582_v7 = vld [vmem:[%s14197_s7 + $0x660] sm:$0xff] }
 0x2b4   : > { %3978 = vmatprep.subr.bf16.mxu1 %v9079_v11  ;;  %4060 = vmatprep.subr.bf16.mxu0 %v9081_v12  ;;  %v9137_v11 = vcombine.high %v2523_v40, %v2527_v42  ;;  %v2530_v12 = vld [vmem:[%s14197_s7 + $0x4c0] sm:$0xff]  ;;  %v2579_v39 = vld [vmem:[%s14197_s7 + $0x648] sm:$0xff] }
 0x2b5   : > { %v9142_v25 = vcombine.low %v2530_v12, %v2534_v13 }
 0x2b7   : > { %3979 = vmatpush1.bf16.msra.mxu1 %v9078_v18  ;;  %4061 = vmatpush1.bf16.msra.mxu0 %v9080_v19  ;;  %v9136_v18 = vcombine.low %v2523_v40, %v2527_v42  ;;  %v9143_v19 = vcombine.high %v2530_v12, %v2534_v13  ;;  %v2583_v40 = vld [vmem:[%s14197_s7 + $0x668] sm:$0xff]  ;;  %v2590_v12 = vld [vmem:[%s14197_s7 + $0x6a0] sm:$0xff] }
 0x2b8   : > { %3980 = vmatprep.subr.bf16.mxu1 %v9087_v20  ;;  %4062 = vmatprep.subr.bf16.mxu0 %v9089_v21  ;;  %v9145_v20 = vcombine.high %v2531_v15, %v2535_v16  ;;  %v2538_v21 = vld [vmem:[%s14197_s7 + $0x500] sm:$0xff]  ;;  %v2587_v13 = vld [vmem:[%s14197_s7 + $0x688] sm:$0xff] }
 0x2b9   : > { %v9150_v35 = vcombine.low %v2538_v21, %v2542_v22 }
 0x2bb   : > { %3981 = vmatpush1.bf16.msra.mxu1 %v9086_v26  ;;  %4063 = vmatpush1.bf16.msra.mxu0 %v9088_v27  ;;  %v9144_v26 = vcombine.low %v2531_v15, %v2535_v16  ;;  %v9151_v27 = vcombine.high %v2538_v21, %v2542_v22  ;;  %v2591_v15 = vld [vmem:[%s14197_s7 + $0x6a8] sm:$0xff]  ;;  %v2598_v21 = vld [vmem:[%s14197_s7 + $0x6e0] sm:$0xff] }
 0x2bc   : > { %3982 = vmatprep.subr.bf16.mxu1 %v9095_v28  ;;  %4064 = vmatprep.subr.bf16.mxu0 %v9097_v29  ;;  %v9153_v28 = vcombine.high %v2539_v23, %v2543_v24  ;;  %v2546_v29 = vld [vmem:[%s14197_s7 + $0x540] sm:$0xff]  ;;  %v2595_v22 = vld [vmem:[%s14197_s7 + $0x6c8] sm:$0xff] }
 0x2bd   : > { %v9158_v50 = vcombine.low %v2546_v29, %v2550_v31 }
 0x2bf   : > { %3983 = vmatpush1.bf16.msra.mxu1 %v9094_v36  ;;  %4065 = vmatpush1.bf16.msra.mxu0 %v9096_v37  ;;  %v9152_v36 = vcombine.low %v2539_v23, %v2543_v24  ;;  %v9159_v37 = vcombine.high %v2546_v29, %v2550_v31  ;;  %v2599_v23 = vld [vmem:[%s14197_s7 + $0x6e8] sm:$0xff]  ;;  %v2606_v29 = vld [vmem:[%s14197_s7 + $0x720] sm:$0xff] }
 0x2c0   : > { %3984 = vmatprep.subr.bf16.mxu1 %v9103_v38  ;;  %4066 = vmatprep.subr.bf16.mxu0 %v9105_v41  ;;  %v9161_v38 = vcombine.high %v2547_v32, %v2551_v33  ;;  %v2554_v41 = vld [vmem:[%s14197_s7 + $0x580] sm:$0xff]  ;;  %v2603_v31 = vld [vmem:[%s14197_s7 + $0x708] sm:$0xff] }
 0x2c1   : > { %v9166_v59 = vcombine.low %v2554_v41, %v2558_v45 }
 0x2c3   : > { %3985 = vmatpush1.bf16.msra.mxu1 %v9102_v52  ;;  %4067 = vmatpush1.bf16.msra.mxu0 %v9104_v53  ;;  %v9160_v52 = vcombine.low %v2547_v32, %v2551_v33  ;;  %v9167_v53 = vcombine.high %v2554_v41, %v2558_v45  ;;  %v2607_v32 = vld [vmem:[%s14197_s7 + $0x728] sm:$0xff]  ;;  %v2614_v41 = vld [vmem:[%s14197_s7 + $0x760] sm:$0xff] }
 0x2c4   : > { %3986 = vmatprep.subr.bf16.mxu1 %v9111_v54  ;;  %4068 = vmatprep.subr.bf16.mxu0 %v9113_v55  ;;  %v9169_v54 = vcombine.high %v2555_v47, %v2559_v49  ;;  %v2562_v55 = vld [vmem:[%s14197_s7 + $0x5c0] sm:$0xff]  ;;  %v2611_v45 = vld [vmem:[%s14197_s7 + $0x748] sm:$0xff] }
 0x2c5   : > { %v9174_v3 = vcombine.low %v2562_v55, %v2566_v56 }
 0x2c7   : > { %3987 = vmatpush1.bf16.msra.mxu1 %v9110_v60  ;;  %4069 = vmatpush1.bf16.msra.mxu0 %v9112_v61  ;;  %v9168_v60 = vcombine.low %v2555_v47, %v2559_v49  ;;  %v9175_v61 = vcombine.high %v2562_v55, %v2566_v56  ;;  %v2615_v47 = vld [vmem:[%s14197_s7 + $0x768] sm:$0xff]  ;;  %v2622_v55 = vld [vmem:[%s14197_s7 + $0x7a0] sm:$0xff] }
 0x2c8   : > { %3997 = vmatprep.subr.bf16.mxu1 %v9119_v62  ;;  %4079 = vmatprep.subr.bf16.mxu0 %v9121_v63  ;;  %v9177_v62 = vcombine.high %v2563_v57, %v2567_v58  ;;  %v2570_v63 = vld [vmem:[%s14197_s7 + $0x600] sm:$0xff]  ;;  %v2619_v56 = vld [vmem:[%s14197_s7 + $0x788] sm:$0xff] }
 0x2c9   : > { %v9182_v42 = vcombine.low %v2570_v63, %v2574_v0 }
 0x2ca   : > { %3989 = vmatmul.mubr.bf16.vlgmr.msra.gmra.mrb[4].mxu1 %v10826_v48  ;;  %4071 = vmatmul.mubr.bf16.vlgmr.msra.gmra.mrb[4].mxu0 %v10826_v48 }
 0x2cb   : > { %3998 = vmatpush1.bf16.msra.mxu1 %v9118_v30  ;;  %4080 = vmatpush1.bf16.msra.mxu0 %v9120_v4  ;;  %v9176_v30 = vcombine.low %v2563_v57, %v2567_v58  ;;  %v9183_v4 = vcombine.high %v2570_v63, %v2574_v0  ;;  %v2623_v57 = vld [vmem:[%s14197_s7 + $0x7a8] sm:$0xff]  ;;  %v2630_v63 = vld [vmem:[%s14197_s7 + $0x7e0] sm:$0xff] }
 0x2cc   : > { %3999 = vmatprep.subr.bf16.mxu1 %v9127_v5  ;;  %4081 = vmatprep.subr.bf16.mxu0 %v9129_v6  ;;  %v9185_v5 = vcombine.high %v2571_v1, %v2575_v2  ;;  %v2578_v6 = vld [vmem:[%s14197_s7 + $0x640] sm:$0xff]  ;;  %v2627_v0 = vld [vmem:[%s14197_s7 + $0x7c8] sm:$0xff] }
 0x2cd   : > { %4029 = vmatprep.mubr.bf16.mxu1 %v10836_v51  ;;  %4111 = vmatprep.mubr.bf16.mxu0 %v10836_v51  ;;  %v9190_v16 = vcombine.low %v2578_v6, %v2582_v7 }
 0x2cf   : > { %4000 = vmatpush1.bf16.msra.mxu1 %v9126_v8  ;;  %4082 = vmatpush1.bf16.msra.mxu0 %v9128_v9  ;;  %v9184_v8 = vcombine.low %v2571_v1, %v2575_v2  ;;  %v9191_v9 = vcombine.high %v2578_v6, %v2582_v7  ;;  %v2631_v1 = vld [vmem:[%s14197_s7 + $0x7e8] sm:$0xff]  ;;  %v2384_v6 = vld [vmem:[%s14197_s7 + $0x30] sm:$0xff]  ;;  %v2381_v7 = vld [vmem:[%s14197_s7 + $0x18] sm:$0xff] }
 0x2d0   : > { %4001 = vmatprep.subr.bf16.mxu1 %v9135_v10  ;;  %4083 = vmatprep.subr.bf16.mxu0 %v9137_v11  ;;  %v9193_v10 = vcombine.high %v2579_v39, %v2583_v40  ;;  %v2586_v11 = vld [vmem:[%s14197_s7 + $0x680] sm:$0xff] }
 0x2d1   : > { %v9198_v24 = vcombine.low %v2586_v11, %v2590_v12 }
 0x2d3   : > { %4002 = vmatpush1.bf16.msra.mxu1 %v9134_v17  ;;  %4084 = vmatpush1.bf16.msra.mxu0 %v9136_v18  ;;  %v9192_v17 = vcombine.low %v2579_v39, %v2583_v40  ;;  %v9199_v18 = vcombine.high %v2586_v11, %v2590_v12  ;;  %v2385_v39 = vld [vmem:[%s14197_s7 + $0x38] sm:$0xff]  ;;  %v2392_v11 = vld [vmem:[%s14197_s7 + $0x70] sm:$0xff] }
 0x2d4   : > { %4003 = vmatprep.subr.bf16.mxu1 %v9143_v19  ;;  %4085 = vmatprep.subr.bf16.mxu0 %v9145_v20  ;;  %v9201_v19 = vcombine.high %v2587_v13, %v2591_v15  ;;  %v2594_v20 = vld [vmem:[%s14197_s7 + $0x6c0] sm:$0xff]  ;;  %v2389_v12 = vld [vmem:[%s14197_s7 + $0x58] sm:$0xff] }
 0x2d5   : > { %v9206_v33 = vcombine.low %v2594_v20, %v2598_v21 }
 0x2d7   : > { %4004 = vmatpush1.bf16.msra.mxu1 %v9142_v25  ;;  %4086 = vmatpush1.bf16.msra.mxu0 %v9144_v26  ;;  %v9200_v25 = vcombine.low %v2587_v13, %v2591_v15  ;;  %v9207_v26 = vcombine.high %v2594_v20, %v2598_v21  ;;  %v2393_v13 = vld [vmem:[%s14197_s7 + $0x78] sm:$0xff]  ;;  %v2400_v20 = vld [vmem:[%s14197_s7 + $0xb0] sm:$0xff] }
 0x2d8   : > { %4005 = vmatprep.subr.bf16.mxu1 %v9151_v27  ;;  %4087 = vmatprep.subr.bf16.mxu0 %v9153_v28  ;;  %v9209_v27 = vcombine.high %v2595_v22, %v2599_v23  ;;  %v2602_v28 = vld [vmem:[%s14197_s7 + $0x700] sm:$0xff]  ;;  %v2397_v21 = vld [vmem:[%s14197_s7 + $0x98] sm:$0xff] }
 0x2d9   : > { %v9214_v49 = vcombine.low %v2602_v28, %v2606_v29 }
 0x2db   : > { %4006 = vmatpush1.bf16.msra.mxu1 %v9150_v35  ;;  %4088 = vmatpush1.bf16.msra.mxu0 %v9152_v36  ;;  %v9208_v35 = vcombine.low %v2595_v22, %v2599_v23  ;;  %v9215_v36 = vcombine.high %v2602_v28, %v2606_v29  ;;  %v2401_v22 = vld [vmem:[%s14197_s7 + $0xb8] sm:$0xff]  ;;  %v2408_v28 = vld [vmem:[%s14197_s7 + $0xf0] sm:$0xff] }
 0x2dc   : > { %4007 = vmatprep.subr.bf16.mxu1 %v9159_v37  ;;  %4089 = vmatprep.subr.bf16.mxu0 %v9161_v38  ;;  %v9217_v37 = vcombine.high %v2603_v31, %v2607_v32  ;;  %v2610_v38 = vld [vmem:[%s14197_s7 + $0x740] sm:$0xff]  ;;  %v2405_v29 = vld [vmem:[%s14197_s7 + $0xd8] sm:$0xff] }
 0x2dd   : > { %v9222_v58 = vcombine.low %v2610_v38, %v2614_v41 }
 0x2df   : > { %4008 = vmatpush1.bf16.msra.mxu1 %v9158_v50  ;;  %4090 = vmatpush1.bf16.msra.mxu0 %v9160_v52  ;;  %v9216_v50 = vcombine.low %v2603_v31, %v2607_v32  ;;  %v9223_v52 = vcombine.high %v2610_v38, %v2614_v41  ;;  %v2409_v31 = vld [vmem:[%s14197_s7 + $0xf8] sm:$0xff]  ;;  %v2416_v38 = vld [vmem:[%s14197_s7 + $0x130] sm:$0xff] }
 0x2e0   : > { %4009 = vmatprep.subr.bf16.mxu1 %v9167_v53  ;;  %4091 = vmatprep.subr.bf16.mxu0 %v9169_v54  ;;  %v9225_v53 = vcombine.high %v2611_v45, %v2615_v47  ;;  %v2618_v54 = vld [vmem:[%s14197_s7 + $0x780] sm:$0xff]  ;;  %v2417_v41 = vld [vmem:[%s14197_s7 + $0x138] sm:$0xff] }
 0x2e1   : > { %v9230_v2 = vcombine.low %v2618_v54, %v2622_v55 }
 0x2e3   : > { %4010 = vmatpush1.bf16.msra.mxu1 %v9166_v59  ;;  %4092 = vmatpush1.bf16.msra.mxu0 %v9168_v60  ;;  %v9224_v59 = vcombine.low %v2611_v45, %v2615_v47  ;;  %v9231_v60 = vcombine.high %v2618_v54, %v2622_v55  ;;  %v9020_v47 = vcombine.low %v2405_v29, %v2409_v31  ;;  %v2421_v54 = vld [vmem:[%s14197_s7 + $0x158] sm:$0xff] }
 0x2e4   : > { %4011 = vmatprep.subr.bf16.mxu1 %v9175_v61  ;;  %4093 = vmatprep.subr.bf16.mxu0 %v9177_v62  ;;  %v9233_v61 = vcombine.high %v2619_v56, %v2623_v57  ;;  %v2626_v62 = vld [vmem:[%s14197_s7 + $0x7c0] sm:$0xff]  ;;  %v2425_v55 = vld [vmem:[%s14197_s7 + $0x178] sm:$0xff] }
 0x2e5   : > { %v9238_v40 = vcombine.low %v2626_v62, %v2630_v63 }
 0x2e7   : > { %4012 = vmatpush1.bf16.msra.mxu1 %v9174_v3  ;;  %4094 = vmatpush1.bf16.msra.mxu0 %v9176_v30  ;;  %v9232_v3 = vcombine.low %v2619_v56, %v2623_v57  ;;  %v9239_v30 = vcombine.high %v2626_v62, %v2630_v63  ;;  %v2429_v62 = vld [vmem:[%s14197_s7 + $0x198] sm:$0xff] }
 0x2e8   : > { %4013 = vmatprep.subr.bf16.mxu1 %v9183_v4  ;;  %4095 = vmatprep.subr.bf16.mxu0 %v9185_v5  ;;  %v9241_v4 = vcombine.high %v2627_v0, %v2631_v1  ;;  %v2380_v5 = vld [vmem:[%s14197_s7 + $0x10] sm:$0xff]  ;;  %v2433_v63 = vld [vmem:[%s14197_s7 + $0x1b8] sm:$0xff] }
 0x2e9   : > { %v8994_v15 = vcombine.low %v2380_v5, %v2384_v6 }
 0x2eb   : > { %4014 = vmatpush1.bf16.msra.mxu1 %v9182_v42  ;;  %4096 = vmatpush1.bf16.msra.mxu0 %v9184_v8  ;;  %v9240_v42 = vcombine.low %v2627_v0, %v2631_v1  ;;  %v8995_v8 = vcombine.high %v2380_v5, %v2384_v6  ;;  %v9036_v1 = vcombine.low %v2421_v54, %v2425_v55  ;;  %v2437_v5 = vld [vmem:[%s14197_s7 + $0x1d8] sm:$0xff] }
 0x2ec   : > { %4015 = vmatprep.subr.bf16.mxu1 %v9191_v9  ;;  %4097 = vmatprep.subr.bf16.mxu0 %v9193_v10  ;;  %v8997_v9 = vcombine.high %v2381_v7, %v2385_v39  ;;  %v2388_v10 = vld [vmem:[%s14197_s7 + $0x50] sm:$0xff]  ;;  %v2441_v6 = vld [vmem:[%s14197_s7 + $0x1f8] sm:$0xff] }
 0x2ed   : > { %v9002_v23 = vcombine.low %v2388_v10, %v2392_v11 }
 0x2ef   : > { %4016 = vmatpush1.bf16.msra.mxu1 %v9190_v16  ;;  %4098 = vmatpush1.bf16.msra.mxu0 %v9192_v17  ;;  %v8996_v16 = vcombine.low %v2381_v7, %v2385_v39  ;;  %v9003_v17 = vcombine.high %v2388_v10, %v2392_v11  ;;  %v9044_v39 = vcombine.low %v2429_v62, %v2433_v63  ;;  %v2445_v10 = vld [vmem:[%s14197_s7 + $0x218] sm:$0xff] }
 0x2f0   : > { %4017 = vmatprep.subr.bf16.mxu1 %v9199_v18  ;;  %4099 = vmatprep.subr.bf16.mxu0 %v9201_v19  ;;  %v9005_v18 = vcombine.high %v2389_v12, %v2393_v13  ;;  %v2396_v19 = vld [vmem:[%s14197_s7 + $0x90] sm:$0xff]  ;;  %v2449_v11 = vld [vmem:[%s14197_s7 + $0x238] sm:$0xff] }
 0x2f1   : > { %v9010_v32 = vcombine.low %v2396_v19, %v2400_v20 }
 0x2f3   : > { %4018 = vmatpush1.bf16.msra.mxu1 %v9198_v24  ;;  %4100 = vmatpush1.bf16.msra.mxu0 %v9200_v25  ;;  %v9004_v24 = vcombine.low %v2389_v12, %v2393_v13  ;;  %v9011_v25 = vcombine.high %v2396_v19, %v2400_v20  ;;  %v9052_v13 = vcombine.low %v2437_v5, %v2441_v6  ;;  %v2453_v19 = vld [vmem:[%s14197_s7 + $0x258] sm:$0xff] }
 0x2f4   : > { %4019 = vmatprep.subr.bf16.mxu1 %v9207_v26  ;;  %4101 = vmatprep.subr.bf16.mxu0 %v9209_v27  ;;  %v9013_v26 = vcombine.high %v2397_v21, %v2401_v22  ;;  %v2404_v27 = vld [vmem:[%s14197_s7 + $0xd0] sm:$0xff]  ;;  %v2457_v20 = vld [vmem:[%s14197_s7 + $0x278] sm:$0xff] }
 0x2f5   : > { %v9018_v45 = vcombine.low %v2404_v27, %v2408_v28 }
 0x2f7   : > { %4020 = vmatpush1.bf16.msra.mxu1 %v9206_v33  ;;  %4102 = vmatpush1.bf16.msra.mxu0 %v9208_v35  ;;  %v9012_v33 = vcombine.low %v2397_v21, %v2401_v22  ;;  %v9019_v35 = vcombine.high %v2404_v27, %v2408_v28  ;;  %v9060_v22 = vcombine.low %v2445_v10, %v2449_v11  ;;  %v2461_v27 = vld [vmem:[%s14197_s7 + $0x298] sm:$0xff] }
 0x2f8   : > { %4021 = vmatprep.subr.bf16.mxu1 %v9215_v36  ;;  %4103 = vmatprep.subr.bf16.mxu0 %v9217_v37  ;;  %v9021_v36 = vcombine.high %v2405_v29, %v2409_v31  ;;  %v2412_v37 = vld [vmem:[%s14197_s7 + $0x110] sm:$0xff]  ;;  %v2465_v28 = vld [vmem:[%s14197_s7 + $0x2b8] sm:$0xff]  ;;  %v9068_v31 = vcombine.low %v2453_v19, %v2457_v20 }
 0x2f9   : > { %v9026_v56 = vcombine.low %v2412_v37, %v2416_v38 }
 0x2fb   : > { %4022 = vmatpush1.bf16.msra.mxu1 %v9214_v49  ;;  %4104 = vmatpush1.bf16.msra.mxu0 %v9216_v50  ;;  %v9027_v49 = vcombine.high %v2412_v37, %v2416_v38  ;;  %v2469_v37 = vld [vmem:[%s14197_s7 + $0x2d8] sm:$0xff] }
 0x2fc   : > { %4023 = vmatprep.subr.bf16.mxu1 %v9223_v52  ;;  %4105 = vmatprep.subr.bf16.mxu0 %v9225_v53  ;;  %v2420_v52 = vld [vmem:[%s14197_s7 + $0x150] sm:$0xff]  ;;  %v2473_v38 = vld [vmem:[%s14197_s7 + $0x2f8] sm:$0xff] }
 0x2fd   : > { %v2424_v53 = vld [vmem:[%s14197_s7 + $0x170] sm:$0xff] }
 0x2fe   : > { %v9034_v0 = vcombine.low %v2420_v52, %v2424_v53 }
 0x2ff   : > { %4024 = vmatpush1.bf16.msra.mxu1 %v9222_v58  ;;  %4106 = vmatpush1.bf16.msra.mxu0 %v9224_v59  ;;  %v9035_v58 = vcombine.high %v2420_v52, %v2424_v53  ;;  %v9037_v59 = vcombine.high %v2421_v54, %v2425_v55  ;;  %v2477_v52 = vld [vmem:[%s14197_s7 + $0x318] sm:$0xff]  ;;  %v9084_v55 = vcombine.low %v2469_v37, %v2473_v38 }
 0x300   : > { %4025 = vmatprep.subr.bf16.mxu1 %v9231_v60  ;;  %4107 = vmatprep.subr.bf16.mxu0 %v9233_v61  ;;  %v2428_v60 = vld [vmem:[%s14197_s7 + $0x190] sm:$0xff]  ;;  %v2481_v53 = vld [vmem:[%s14197_s7 + $0x338] sm:$0xff] }
 0x301   : > { %v2432_v61 = vld [vmem:[%s14197_s7 + $0x1b0] sm:$0xff] }
 0x302   : > { %v9042_v7 = vcombine.low %v2428_v60, %v2432_v61 }
 0x303   : > { %4026 = vmatpush1.bf16.msra.mxu1 %v9230_v2  ;;  %4108 = vmatpush1.bf16.msra.mxu0 %v9232_v3  ;;  %v9043_v2 = vcombine.high %v2428_v60, %v2432_v61  ;;  %v9045_v3 = vcombine.high %v2429_v62, %v2433_v63  ;;  %v2485_v60 = vld [vmem:[%s14197_s7 + $0x358] sm:$0xff]  ;;  %v9092_v63 = vcombine.low %v2477_v52, %v2481_v53 }
 0x304   : > { %4027 = vmatprep.subr.bf16.mxu1 %v9239_v30  ;;  %4109 = vmatprep.subr.bf16.mxu0 %v9241_v4  ;;  %v2436_v30 = vld [vmem:[%s14197_s7 + $0x1d0] sm:$0xff]  ;;  %v2489_v61 = vld [vmem:[%s14197_s7 + $0x378] sm:$0xff] }
 0x305   : > { %v2440_v4 = vld [vmem:[%s14197_s7 + $0x1f0] sm:$0xff] }
 0x306   : > { %v9050_v12 = vcombine.low %v2436_v30, %v2440_v4 }
 0x307   : > { %4028 = vmatpush1.bf16.msra.mxu1 %v9238_v40  ;;  %4110 = vmatpush1.bf16.msra.mxu0 %v9240_v42  ;;  %v9051_v40 = vcombine.high %v2436_v30, %v2440_v4  ;;  %v9053_v42 = vcombine.high %v2437_v5, %v2441_v6  ;;  %v2493_v30 = vld [vmem:[%s14197_s7 + $0x398] sm:$0xff]  ;;  %v9100_v6 = vcombine.low %v2485_v60, %v2489_v61 }
 0x308   : > { %4120 = vmatprep.subr.bf16.mxu1 %v8995_v8  ;;  %4202 = vmatprep.subr.bf16.mxu0 %v8997_v9  ;;  %v2444_v8 = vld [vmem:[%s14197_s7 + $0x210] sm:$0xff]  ;;  %v2497_v4 = vld [vmem:[%s14197_s7 + $0x3b8] sm:$0xff] }
 0x309   : > { %v2448_v9 = vld [vmem:[%s14197_s7 + $0x230] sm:$0xff] }
 0x30a   : > { %4030 = vmatmul.mubr.bf16.vlgmr.msra.gmra.mrb[4].mxu1 %v10977_v34  ;;  %4112 = vmatmul.mubr.bf16.vlgmr.msra.gmra.mrb[4].mxu0 %v10977_v34  ;;  %v9058_v21 = vcombine.low %v2444_v8, %v2448_v9 }
 0x30b   : > { %4121 = vmatpush1.bf16.msra.mxu1 %v8994_v15  ;;  %4203 = vmatpush1.bf16.msra.mxu0 %v8996_v16  ;;  %v9059_v15 = vcombine.high %v2444_v8, %v2448_v9  ;;  %v9061_v16 = vcombine.high %v2445_v10, %v2449_v11  ;;  %v2501_v8 = vld [vmem:[%s14197_s7 + $0x3d8] sm:$0xff]  ;;  %v9108_v11 = vcombine.low %v2493_v30, %v2497_v4 }
 0x30c   : > { %4122 = vmatprep.subr.bf16.mxu1 %v9003_v17  ;;  %4204 = vmatprep.subr.bf16.mxu0 %v9005_v18  ;;  %v2452_v17 = vld [vmem:[%s14197_s7 + $0x250] sm:$0xff]  ;;  %v2505_v9 = vld [vmem:[%s14197_s7 + $0x3f8] sm:$0xff] }
 0x30d   : > { %4152 = vmatprep.mubr.bf16.mxu1 %v10722_v14  ;;  %4234 = vmatprep.mubr.bf16.mxu0 %v10722_v14  ;;  %v2413_v14 = vld [vmem:[%s14197_s7 + $0x118] sm:$0xff]  ;;  %v2456_v18 = vld [vmem:[%s14197_s7 + $0x270] sm:$0xff] }
 0x30e   : > { %v9029_v50 = vcombine.high %v2413_v14, %v2417_v41  ;;  %v9028_v57 = vcombine.low %v2413_v14, %v2417_v41  ;;  %v9066_v29 = vcombine.low %v2452_v17, %v2456_v18  ;;  %v9076_v41 = vcombine.low %v2461_v27, %v2465_v28 }
 0x30f   : > { %4123 = vmatpush1.bf16.msra.mxu1 %v9002_v23  ;;  %4205 = vmatpush1.bf16.msra.mxu0 %v9004_v24  ;;  %v9067_v23 = vcombine.high %v2452_v17, %v2456_v18  ;;  %v9069_v24 = vcombine.high %v2453_v19, %v2457_v20  ;;  %v2509_v17 = vld [vmem:[%s14197_s7 + $0x418] sm:$0xff]  ;;  %v9116_v20 = vcombine.low %v2501_v8, %v2505_v9 }
 0x310   : > { %4124 = vmatprep.subr.bf16.mxu1 %v9011_v25  ;;  %4206 = vmatprep.subr.bf16.mxu0 %v9013_v26  ;;  %v2460_v25 = vld [vmem:[%s14197_s7 + $0x290] sm:$0xff]  ;;  %v2513_v18 = vld [vmem:[%s14197_s7 + $0x438] sm:$0xff] }
 0x311   : > { %v2464_v26 = vld [vmem:[%s14197_s7 + $0x2b0] sm:$0xff] }
 0x312   : > { %v9074_v14 = vcombine.low %v2460_v25, %v2464_v26 }
 0x313   : > { %4125 = vmatpush1.bf16.msra.mxu1 %v9010_v32  ;;  %4207 = vmatpush1.bf16.msra.mxu0 %v9012_v33  ;;  %v9075_v32 = vcombine.high %v2460_v25, %v2464_v26  ;;  %v9077_v33 = vcombine.high %v2461_v27, %v2465_v28  ;;  %v2517_v25 = vld [vmem:[%s14197_s7 + $0x458] sm:$0xff]  ;;  %v9124_v28 = vcombine.low %v2509_v17, %v2513_v18 }
 0x314   : > { %4126 = vmatprep.subr.bf16.mxu1 %v9019_v35  ;;  %4208 = vmatprep.subr.bf16.mxu0 %v9021_v36  ;;  %v2468_v35 = vld [vmem:[%s14197_s7 + $0x2d0] sm:$0xff]  ;;  %v2521_v26 = vld [vmem:[%s14197_s7 + $0x478] sm:$0xff] }
 0x315   : > { %v2472_v36 = vld [vmem:[%s14197_s7 + $0x2f0] sm:$0xff] }
 0x316   : > { %v9082_v54 = vcombine.low %v2468_v35, %v2472_v36 }
 0x317   : > { %4127 = vmatpush1.bf16.msra.mxu1 %v9018_v45  ;;  %4209 = vmatpush1.bf16.msra.mxu0 %v9020_v47  ;;  %v9083_v45 = vcombine.high %v2468_v35, %v2472_v36  ;;  %v9085_v47 = vcombine.high %v2469_v37, %v2473_v38  ;;  %v2525_v35 = vld [vmem:[%s14197_s7 + $0x498] sm:$0xff]  ;;  %v9132_v38 = vcombine.low %v2517_v25, %v2521_v26 }
 0x318   : > { %4128 = vmatprep.subr.bf16.mxu1 %v9027_v49  ;;  %4210 = vmatprep.subr.bf16.mxu0 %v9029_v50  ;;  %v2476_v49 = vld [vmem:[%s14197_s7 + $0x310] sm:$0xff]  ;;  %v2529_v36 = vld [vmem:[%s14197_s7 + $0x4b8] sm:$0xff] }
 0x319   : > { %v2480_v50 = vld [vmem:[%s14197_s7 + $0x330] sm:$0xff] }
 0x31a   : > { %v9090_v62 = vcombine.low %v2476_v49, %v2480_v50 }
 0x31b   : > { %4129 = vmatpush1.bf16.msra.mxu1 %v9026_v56  ;;  %4211 = vmatpush1.bf16.msra.mxu0 %v9028_v57  ;;  %v9091_v56 = vcombine.high %v2476_v49, %v2480_v50  ;;  %v9093_v57 = vcombine.high %v2477_v52, %v2481_v53  ;;  %v2537_v49 = vld [vmem:[%s14197_s7 + $0x4f8] sm:$0xff]  ;;  %v9140_v52 = vcombine.low %v2525_v35, %v2529_v36 }
 0x31c   : > { %4130 = vmatprep.subr.bf16.mxu1 %v9035_v58  ;;  %4212 = vmatprep.subr.bf16.mxu0 %v9037_v59  ;;  %v2484_v58 = vld [vmem:[%s14197_s7 + $0x350] sm:$0xff] }
 0x31d   : > { %v2488_v59 = vld [vmem:[%s14197_s7 + $0x370] sm:$0xff] }
 0x31e   : > { %v9098_v5 = vcombine.low %v2484_v58, %v2488_v59 }
 0x31f   : > { %4131 = vmatpush1.bf16.msra.mxu1 %v9034_v0  ;;  %4213 = vmatpush1.bf16.msra.mxu0 %v9036_v1  ;;  %v9099_v0 = vcombine.high %v2484_v58, %v2488_v59  ;;  %v9101_v1 = vcombine.high %v2485_v60, %v2489_v61 }
 0x320   : > { %4132 = vmatprep.subr.bf16.mxu1 %v9043_v2  ;;  %4214 = vmatprep.subr.bf16.mxu0 %v9045_v3  ;;  %v2492_v2 = vld [vmem:[%s14197_s7 + $0x390] sm:$0xff] }
 0x321   : > { %v2496_v3 = vld [vmem:[%s14197_s7 + $0x3b0] sm:$0xff] }
 0x322   : > { %v9106_v10 = vcombine.low %v2492_v2, %v2496_v3 }
 0x323   : > { %4133 = vmatpush1.bf16.msra.mxu1 %v9042_v7  ;;  %4215 = vmatpush1.bf16.msra.mxu0 %v9044_v39  ;;  %v9107_v7 = vcombine.high %v2492_v2, %v2496_v3  ;;  %v9109_v39 = vcombine.high %v2493_v30, %v2497_v4 }
 0x324   : > { %4134 = vmatprep.subr.bf16.mxu1 %v9051_v40  ;;  %4216 = vmatprep.subr.bf16.mxu0 %v9053_v42  ;;  %v2500_v40 = vld [vmem:[%s14197_s7 + $0x3d0] sm:$0xff] }
 0x325   : > { %v2504_v42 = vld [vmem:[%s14197_s7 + $0x3f0] sm:$0xff] }
 0x326   : > { %v9114_v19 = vcombine.low %v2500_v40, %v2504_v42 }
 0x327   : > { %4135 = vmatpush1.bf16.msra.mxu1 %v9050_v12  ;;  %4217 = vmatpush1.bf16.msra.mxu0 %v9052_v13  ;;  %v9115_v12 = vcombine.high %v2500_v40, %v2504_v42  ;;  %v9117_v13 = vcombine.high %v2501_v8, %v2505_v9 }
 0x328   : > { %4136 = vmatprep.subr.bf16.mxu1 %v9059_v15  ;;  %4218 = vmatprep.subr.bf16.mxu0 %v9061_v16  ;;  %v2508_v15 = vld [vmem:[%s14197_s7 + $0x410] sm:$0xff] }
 0x329   : > { %v2512_v16 = vld [vmem:[%s14197_s7 + $0x430] sm:$0xff] }
 0x32a   : > { %v9122_v27 = vcombine.low %v2508_v15, %v2512_v16 }
 0x32b   : > { %4137 = vmatpush1.bf16.msra.mxu1 %v9058_v21  ;;  %4219 = vmatpush1.bf16.msra.mxu0 %v9060_v22  ;;  %v9123_v21 = vcombine.high %v2508_v15, %v2512_v16  ;;  %v9125_v22 = vcombine.high %v2509_v17, %v2513_v18 }
 0x32c   : > { %4138 = vmatprep.subr.bf16.mxu1 %v9067_v23  ;;  %4220 = vmatprep.subr.bf16.mxu0 %v9069_v24  ;;  %v2516_v23 = vld [vmem:[%s14197_s7 + $0x450] sm:$0xff] }
 0x32d   : > { %v2520_v24 = vld [vmem:[%s14197_s7 + $0x470] sm:$0xff] }
 0x32e   : > { %v9130_v37 = vcombine.low %v2516_v23, %v2520_v24 }
 0x32f   : > { %4139 = vmatpush1.bf16.msra.mxu1 %v9066_v29  ;;  %4221 = vmatpush1.bf16.msra.mxu0 %v9068_v31  ;;  %v9131_v29 = vcombine.high %v2516_v23, %v2520_v24  ;;  %v9133_v31 = vcombine.high %v2517_v25, %v2521_v26 }
 0x330   : > { %4140 = vmatprep.subr.bf16.mxu1 %v9075_v32  ;;  %4222 = vmatprep.subr.bf16.mxu0 %v9077_v33  ;;  %v2524_v32 = vld [vmem:[%s14197_s7 + $0x490] sm:$0xff] }
 0x331   : > { %v2528_v33 = vld [vmem:[%s14197_s7 + $0x4b0] sm:$0xff] }
 0x332   : > { %v9138_v50 = vcombine.low %v2524_v32, %v2528_v33 }
 0x333   : > { %4141 = vmatpush1.bf16.msra.mxu1 %v9074_v14  ;;  %4223 = vmatpush1.bf16.msra.mxu0 %v9076_v41  ;;  %v9139_v14 = vcombine.high %v2524_v32, %v2528_v33  ;;  %v9141_v41 = vcombine.high %v2525_v35, %v2529_v36 }
 0x334   : > { %4142 = vmatprep.subr.bf16.mxu1 %v9083_v45  ;;  %4224 = vmatprep.subr.bf16.mxu0 %v9085_v47  ;;  %v2532_v45 = vld [vmem:[%s14197_s7 + $0x4d0] sm:$0xff] }
 0x335   : > { %v2536_v47 = vld [vmem:[%s14197_s7 + $0x4f0] sm:$0xff] }
 0x336   : > { %v9147_v53 = vcombine.high %v2532_v45, %v2536_v47  ;;  %v9146_v58 = vcombine.low %v2532_v45, %v2536_v47 }
 0x337   : > { %4143 = vmatpush1.bf16.msra.mxu1 %v9082_v54  ;;  %4225 = vmatpush1.bf16.msra.mxu0 %v9084_v55  ;;  %v2540_v55 = vld [vmem:[%s14197_s7 + $0x510] sm:$0xff] }
 0x338   : > { %4144 = vmatprep.subr.bf16.mxu1 %v9091_v56  ;;  %4226 = vmatprep.subr.bf16.mxu0 %v9093_v57  ;;  %v2544_v56 = vld [vmem:[%s14197_s7 + $0x530] sm:$0xff]  ;;  %v2545_v57 = vld [vmem:[%s14197_s7 + $0x538] sm:$0xff] }
 0x339   : > { %v9155_v60 = vcombine.high %v2540_v55, %v2544_v56  ;;  %v9154_v2 = vcombine.low %v2540_v55, %v2544_v56 }
 0x33b   : > { %4145 = vmatpush1.bf16.msra.mxu1 %v9090_v62  ;;  %4227 = vmatpush1.bf16.msra.mxu0 %v9092_v63  ;;  %v2548_v62 = vld [vmem:[%s14197_s7 + $0x550] sm:$0xff] }
 0x33c   : > { %4146 = vmatprep.subr.bf16.mxu1 %v9099_v0  ;;  %4228 = vmatprep.subr.bf16.mxu0 %v9101_v1  ;;  %v2552_v63 = vld [vmem:[%s14197_s7 + $0x570] sm:$0xff]  ;;  %v2549_v0 = vld [vmem:[%s14197_s7 + $0x558] sm:$0xff] }
 0x33d   : > { %v2553_v1 = vld [vmem:[%s14197_s7 + $0x578] sm:$0xff]  ;;  %v9163_v30 = vcombine.high %v2548_v62, %v2552_v63  ;;  %v9162_v40 = vcombine.low %v2548_v62, %v2552_v63 }
 0x33e   : > { %v9165_v4 = vcombine.high %v2549_v0, %v2553_v1  ;;  %v9164_v42 = vcombine.low %v2549_v0, %v2553_v1 }
 0x33f   : > { %4147 = vmatpush1.bf16.msra.mxu1 %v9098_v5  ;;  %4229 = vmatpush1.bf16.msra.mxu0 %v9100_v6  ;;  %v2556_v5 = vld [vmem:[%s14197_s7 + $0x590] sm:$0xff] }
 0x340   : > { %4148 = vmatprep.subr.bf16.mxu1 %v9107_v7  ;;  %4230 = vmatprep.subr.bf16.mxu0 %v9109_v39  ;;  %v2560_v6 = vld [vmem:[%s14197_s7 + $0x5b0] sm:$0xff]  ;;  %v2557_v7 = vld [vmem:[%s14197_s7 + $0x598] sm:$0xff] }
 0x341   : > { %v2561_v39 = vld [vmem:[%s14197_s7 + $0x5b8] sm:$0xff]  ;;  %v9171_v8 = vcombine.high %v2556_v5, %v2560_v6  ;;  %v9170_v15 = vcombine.low %v2556_v5, %v2560_v6 }
 0x342   : > { %v9173_v9 = vcombine.high %v2557_v7, %v2561_v39  ;;  %v9172_v16 = vcombine.low %v2557_v7, %v2561_v39 }
 0x343   : > { %4149 = vmatpush1.bf16.msra.mxu1 %v9106_v10  ;;  %4231 = vmatpush1.bf16.msra.mxu0 %v9108_v11  ;;  %v2564_v10 = vld [vmem:[%s14197_s7 + $0x5d0] sm:$0xff] }
 0x344   : > { %4150 = vmatprep.subr.bf16.mxu1 %v9115_v12  ;;  %4232 = vmatprep.subr.bf16.mxu0 %v9117_v13  ;;  %v2568_v11 = vld [vmem:[%s14197_s7 + $0x5f0] sm:$0xff]  ;;  %v2565_v12 = vld [vmem:[%s14197_s7 + $0x5d8] sm:$0xff] }
 0x345   : > { %v2569_v13 = vld [vmem:[%s14197_s7 + $0x5f8] sm:$0xff]  ;;  %v9179_v17 = vcombine.high %v2564_v10, %v2568_v11  ;;  %v9178_v23 = vcombine.low %v2564_v10, %v2568_v11 }
 0x346   : > { %v9181_v18 = vcombine.high %v2565_v12, %v2569_v13  ;;  %v9180_v24 = vcombine.low %v2565_v12, %v2569_v13 }
 0x347   : > { %4151 = vmatpush1.bf16.msra.mxu1 %v9114_v19  ;;  %4233 = vmatpush1.bf16.msra.mxu0 %v9116_v20  ;;  %v2572_v19 = vld [vmem:[%s14197_s7 + $0x610] sm:$0xff] }
 0x348   : > { %4161 = vmatprep.subr.bf16.mxu1 %v9123_v21  ;;  %4243 = vmatprep.subr.bf16.mxu0 %v9125_v22  ;;  %v2576_v20 = vld [vmem:[%s14197_s7 + $0x630] sm:$0xff]  ;;  %v2573_v21 = vld [vmem:[%s14197_s7 + $0x618] sm:$0xff] }
 0x349   : > { %v2577_v22 = vld [vmem:[%s14197_s7 + $0x638] sm:$0xff]  ;;  %v9187_v25 = vcombine.high %v2572_v19, %v2576_v20  ;;  %v9186_v32 = vcombine.low %v2572_v19, %v2576_v20 }
 0x34a   : > { %4153 = vmatmul.mubr.bf16.vlgmr.msra.gmra.mrb[8].mxu1 %v10826_v48  ;;  %4235 = vmatmul.mubr.bf16.vlgmr.msra.gmra.mrb[8].mxu0 %v10826_v48  ;;  %v2533_v48 = vld [vmem:[%s14197_s7 + $0x4d8] sm:$0xff]  ;;  %v9189_v26 = vcombine.high %v2573_v21, %v2577_v22  ;;  %v9188_v33 = vcombine.low %v2573_v21, %v2577_v22 }
 0x34b   : > { %4162 = vmatpush1.bf16.msra.mxu1 %v9122_v27  ;;  %4244 = vmatpush1.bf16.msra.mxu0 %v9124_v28  ;;  %v9149_v54 = vcombine.high %v2533_v48, %v2537_v49  ;;  %v9148_v59 = vcombine.low %v2533_v48, %v2537_v49  ;;  %v2580_v27 = vld [vmem:[%s14197_s7 + $0x650] sm:$0xff] }
 0x34c   : > { %4163 = vmatprep.subr.bf16.mxu1 %v9131_v29  ;;  %4245 = vmatprep.subr.bf16.mxu0 %v9133_v31  ;;  %v2584_v28 = vld [vmem:[%s14197_s7 + $0x670] sm:$0xff]  ;;  %v2581_v29 = vld [vmem:[%s14197_s7 + $0x658] sm:$0xff] }
 0x34d   : > { %4193 = vmatprep.mubr.bf16.mxu1 %v10836_v51  ;;  %4275 = vmatprep.mubr.bf16.mxu0 %v10836_v51  ;;  %v2541_v51 = vld [vmem:[%s14197_s7 + $0x518] sm:$0xff]  ;;  %v9195_v35 = vcombine.high %v2580_v27, %v2584_v28  ;;  %v9194_v45 = vcombine.low %v2580_v27, %v2584_v28 }
 0x34e   : > { %v9157_v61 = vcombine.high %v2541_v51, %v2545_v57  ;;  %v9156_v3 = vcombine.low %v2541_v51, %v2545_v57  ;;  %v2585_v31 = vld [vmem:[%s14197_s7 + $0x678] sm:$0xff] }
 0x34f   : > { %4164 = vmatpush1.bf16.msra.mxu1 %v9130_v37  ;;  %4246 = vmatpush1.bf16.msra.mxu0 %v9132_v38  ;;  %v9197_v36 = vcombine.high %v2581_v29, %v2585_v31  ;;  %v2588_v37 = vld [vmem:[%s14197_s7 + $0x690] sm:$0xff]  ;;  %v9196_v47 = vcombine.low %v2581_v29, %v2585_v31  ;;  %v10072_v29 = vld [vmem:[%s14199_s9 + $0x24] ss:$8 sps:$4 sm:$0xff]   ;;  %v10070_v31 = vld [vmem:[%s14199_s9 + $0x20] ss:$8 sps:$4 sm:$0xff]  }
 0x350   : > { %4165 = vmatprep.subr.bf16.mxu1 %v9139_v14  ;;  %4247 = vmatprep.subr.bf16.mxu0 %v9141_v41  ;;  %v2592_v38 = vld [vmem:[%s14197_s7 + $0x6b0] sm:$0xff]  ;;  %v2589_v14 = vld [vmem:[%s14197_s7 + $0x698] sm:$0xff] }
 0x351   : > { %v2593_v41 = vld [vmem:[%s14197_s7 + $0x6b8] sm:$0xff]  ;;  %v9203_v48 = vcombine.high %v2588_v37, %v2592_v38  ;;  %v9202_v55 = vcombine.low %v2588_v37, %v2592_v38  ;;  %v10084_v38 = vld [vmem:[%s14199_s9 + $0x64] ss:$8 sps:$4 sm:$0xff]  }
 0x352   : > { %v9205_v49 = vcombine.high %v2589_v14, %v2593_v41  ;;  %v9204_v56 = vcombine.low %v2589_v14, %v2593_v41  ;;  %v10069_v27 = vld [vmem:[%s14199_s9 + $0x14] ss:$8 sps:$4 sm:$0xff]   ;;  %v10067_v28 = vld [vmem:[%s14199_s9 + $0x10] ss:$8 sps:$4 sm:$0xff]   ;;  %v10082_v14 = vld [vmem:[%s14199_s9 + $0x60] ss:$8 sps:$4 sm:$0xff]  }
 0x353   : > { %4166 = vmatpush1.bf16.msra.mxu1 %v9138_v50  ;;  %4248 = vmatpush1.bf16.msra.mxu0 %v9140_v52  ;;  %v2596_v50 = vld [vmem:[%s14197_s7 + $0x6d0] sm:$0xff] }
 0x354   : > { %4167 = vmatprep.subr.bf16.mxu1 %v9147_v53  ;;  %4249 = vmatprep.subr.bf16.mxu0 %v9149_v54  ;;  %v2600_v52 = vld [vmem:[%s14197_s7 + $0x6f0] sm:$0xff]  ;;  %v2597_v53 = vld [vmem:[%s14197_s7 + $0x6d8] sm:$0xff] }
 0x355   : > { %v2601_v54 = vld [vmem:[%s14197_s7 + $0x6f8] sm:$0xff]  ;;  %v9211_v51 = vcombine.high %v2596_v50, %v2600_v52  ;;  %v9210_v62 = vcombine.low %v2596_v50, %v2600_v52  ;;  %v10096_v52 = vld [vmem:[%s14199_s9 + $0xa4] ss:$8 sps:$4 sm:$0xff]  }
 0x356   : > { %v9213_v57 = vcombine.high %v2597_v53, %v2601_v54  ;;  %v9212_v63 = vcombine.low %v2597_v53, %v2601_v54  ;;  %v10079_v37 = vld [vmem:[%s14199_s9 + $0x50] ss:$8 sps:$4 sm:$0xff]   ;;  %v10087_v41 = vld [vmem:[%s14199_s9 + $0x74] ss:$8 sps:$4 sm:$0xff]   ;;  %v10094_v53 = vld [vmem:[%s14199_s9 + $0xa0] ss:$8 sps:$4 sm:$0xff]  }
 0x357   : > { %4168 = vmatpush1.bf16.msra.mxu1 %v9146_v58  ;;  %4250 = vmatpush1.bf16.msra.mxu0 %v9148_v59  ;;  %v2604_v58 = vld [vmem:[%s14197_s7 + $0x710] sm:$0xff] }
 0x358   : > { %4169 = vmatprep.subr.bf16.mxu1 %v9155_v60  ;;  %4251 = vmatprep.subr.bf16.mxu0 %v9157_v61  ;;  %v2608_v59 = vld [vmem:[%s14197_s7 + $0x730] sm:$0xff]  ;;  %v2605_v60 = vld [vmem:[%s14197_s7 + $0x718] sm:$0xff] }
 0x359   : > { %v2609_v61 = vld [vmem:[%s14197_s7 + $0x738] sm:$0xff]  ;;  %v9219_v0 = vcombine.high %v2604_v58, %v2608_v59  ;;  %v9218_v5 = vcombine.low %v2604_v58, %v2608_v59  ;;  %v10108_v59 = vld [vmem:[%s14199_s9 + $0xe4] ss:$8 sps:$4 sm:$0xff]  }
 0x35a   : > { %v9221_v1 = vcombine.high %v2605_v60, %v2609_v61  ;;  %v9220_v6 = vcombine.low %v2605_v60, %v2609_v61  ;;  %v10091_v50 = vld [vmem:[%s14199_s9 + $0x90] ss:$8 sps:$4 sm:$0xff]   ;;  %v10099_v54 = vld [vmem:[%s14199_s9 + $0xb4] ss:$8 sps:$4 sm:$0xff]   ;;  %v10106_v60 = vld [vmem:[%s14199_s9 + $0xe0] ss:$8 sps:$4 sm:$0xff]  }
 0x35b   : > { %4170 = vmatpush1.bf16.msra.mxu1 %v9154_v2  ;;  %4252 = vmatpush1.bf16.msra.mxu0 %v9156_v3  ;;  %v2612_v2 = vld [vmem:[%s14197_s7 + $0x750] sm:$0xff] }
 0x35c   : > { %4171 = vmatprep.subr.bf16.mxu1 %v9163_v30  ;;  %4253 = vmatprep.subr.bf16.mxu0 %v9165_v4  ;;  %v2616_v3 = vld [vmem:[%s14197_s7 + $0x770] sm:$0xff]  ;;  %v2613_v30 = vld [vmem:[%s14197_s7 + $0x758] sm:$0xff] }
 0x35d   : > { %v2617_v4 = vld [vmem:[%s14197_s7 + $0x778] sm:$0xff]  ;;  %v9227_v7 = vcombine.high %v2612_v2, %v2616_v3  ;;  %v9226_v10 = vcombine.low %v2612_v2, %v2616_v3  ;;  %v12305_v2 = vsub.s32 3, %v11090_v43 }
 0x35e   : > { %v9229_v39 = vcombine.high %v2613_v30, %v2617_v4  ;;  %v9228_v11 = vcombine.low %v2613_v30, %v2617_v4  ;;  %v10103_v58 = vld [vmem:[%s14199_s9 + $0xd0] ss:$8 sps:$4 sm:$0xff]   ;;  %v10111_v61 = vld [vmem:[%s14199_s9 + $0xf4] ss:$8 sps:$4 sm:$0xff]  }
 0x35f   : > { %4172 = vmatpush1.bf16.msra.mxu1 %v9162_v40  ;;  %4254 = vmatpush1.bf16.msra.mxu0 %v9164_v42  ;;  %v2620_v40 = vld [vmem:[%s14197_s7 + $0x790] sm:$0xff] }
 0x360   : > { %4173 = vmatprep.subr.bf16.mxu1 %v9171_v8  ;;  %4255 = vmatprep.subr.bf16.mxu0 %v9173_v9  ;;  %v2624_v42 = vld [vmem:[%s14197_s7 + $0x7b0] sm:$0xff]  ;;  %v2621_v8 = vld [vmem:[%s14197_s7 + $0x798] sm:$0xff] }
 0x361   : > { %v2625_v9 = vld [vmem:[%s14197_s7 + $0x7b8] sm:$0xff]  ;;  %v9235_v12 = vcombine.high %v2620_v40, %v2624_v42  ;;  %v9234_v19 = vcombine.low %v2620_v40, %v2624_v42 }
 0x362   : > { %v9237_v13 = vcombine.high %v2621_v8, %v2625_v9  ;;  %v9236_v20 = vcombine.low %v2621_v8, %v2625_v9 }
 0x363   : > { %4174 = vmatpush1.bf16.msra.mxu1 %v9170_v15  ;;  %4256 = vmatpush1.bf16.msra.mxu0 %v9172_v16  ;;  %v2628_v15 = vld [vmem:[%s14197_s7 + $0x7d0] sm:$0xff] }
 0x364   : > { %4175 = vmatprep.subr.bf16.mxu1 %v9179_v17  ;;  %4257 = vmatprep.subr.bf16.mxu0 %v9181_v18  ;;  %v2632_v16 = vld [vmem:[%s14197_s7 + $0x7f0] sm:$0xff]  ;;  %v2629_v17 = vld [vmem:[%s14197_s7 + $0x7d8] sm:$0xff] }
 0x365   : > { %v2633_v18 = vld [vmem:[%s14197_s7 + $0x7f8] sm:$0xff]  ;;  %v9243_v21 = vcombine.high %v2628_v15, %v2632_v16 }
 0x366   : > { %v9245_v22 = vcombine.high %v2629_v17, %v2633_v18 }
 0x367   : > { %4176 = vmatpush1.bf16.msra.mxu1 %v9178_v23  ;;  %4258 = vmatpush1.bf16.msra.mxu0 %v9180_v24  ;;  %v9242_v23 = vcombine.low %v2628_v15, %v2632_v16  ;;  %v9244_v24 = vcombine.low %v2629_v17, %v2633_v18 }
 0x368   : > { %4177 = vmatprep.subr.bf16.mxu1 %v9187_v25  ;;  %4259 = vmatprep.subr.bf16.mxu0 %v9189_v26  ;;  %v10066_v25 = vld [vmem:[%s14199_s9 + $0x4] ss:$8 sps:$4 sm:$0xff]   ;;  %v10064_v26 = vld [vmem:[%s14199_s9] ss:$8 sps:$4 sm:$0xff]  }
 0x36b   : > { %4178 = vmatpush1.bf16.msra.mxu1 %v9186_v32  ;;  %4260 = vmatpush1.bf16.msra.mxu0 %v9188_v33  ;;  %v10073_v32 = vld [vmem:[%s14199_s9 + $0x30] ss:$8 sps:$4 sm:$0xff]   ;;  %v10078_v33 = vld [vmem:[%s14199_s9 + $0x44] ss:$8 sps:$4 sm:$0xff]  }
 0x36c   : > { %4179 = vmatprep.subr.bf16.mxu1 %v9195_v35  ;;  %4261 = vmatprep.subr.bf16.mxu0 %v9197_v36  ;;  %v10076_v35 = vld [vmem:[%s14199_s9 + $0x40] ss:$8 sps:$4 sm:$0xff]   ;;  %v10081_v36 = vld [vmem:[%s14199_s9 + $0x54] ss:$8 sps:$4 sm:$0xff]  }
 0x36f   : > { %4180 = vmatpush1.bf16.msra.mxu1 %v9194_v45  ;;  %4262 = vmatpush1.bf16.msra.mxu0 %v9196_v47  ;;  %v10085_v45 = vld [vmem:[%s14199_s9 + $0x70] ss:$8 sps:$4 sm:$0xff]   ;;  %v10090_v47 = vld [vmem:[%s14199_s9 + $0x84] ss:$8 sps:$4 sm:$0xff]  }
 0x370   : > { %4181 = vmatprep.subr.bf16.mxu1 %v9203_v48  ;;  %4263 = vmatprep.subr.bf16.mxu0 %v9205_v49  ;;  %v10088_v48 = vld [vmem:[%s14199_s9 + $0x80] ss:$8 sps:$4 sm:$0xff]   ;;  %v10093_v49 = vld [vmem:[%s14199_s9 + $0x94] ss:$8 sps:$4 sm:$0xff]  }
 0x373   : > { %4182 = vmatpush1.bf16.msra.mxu1 %v9202_v55  ;;  %4264 = vmatpush1.bf16.msra.mxu0 %v9204_v56  ;;  %v10097_v55 = vld [vmem:[%s14199_s9 + $0xb0] ss:$8 sps:$4 sm:$0xff]   ;;  %v10102_v56 = vld [vmem:[%s14199_s9 + $0xc4] ss:$8 sps:$4 sm:$0xff]  }
 0x374   : > { %4183 = vmatprep.subr.bf16.mxu1 %v9211_v51  ;;  %4265 = vmatprep.subr.bf16.mxu0 %v9213_v57  ;;  %v10100_v51 = vld [vmem:[%s14199_s9 + $0xc0] ss:$8 sps:$4 sm:$0xff]   ;;  %v10105_v57 = vld [vmem:[%s14199_s9 + $0xd4] ss:$8 sps:$4 sm:$0xff]  }
 0x377   : > { %4184 = vmatpush1.bf16.msra.mxu1 %v9210_v62  ;;  %4266 = vmatpush1.bf16.msra.mxu0 %v9212_v63  ;;  %v10109_v62 = vld [vmem:[%s14199_s9 + $0xf0] ss:$8 sps:$4 sm:$0xff]   ;;  %v10114_v63 = vld [vmem:[%s14199_s9 + $0x104] ss:$8 sps:$4 sm:$0xff]  }
 0x378   : > { %4185 = vmatprep.subr.bf16.mxu1 %v9219_v0  ;;  %4267 = vmatprep.subr.bf16.mxu0 %v9221_v1  ;;  %v12297_v0 = vld [vmem:[%s14196_s6] sm:$0xff] }
 0x379   : > { %v12302_v1 = vld [vmem:[%s14198_s8] sm:$0xff]  ;;  %v1537_v3 = vrot.slane %v12297_v0, %v11093_v44  ;;  %v1541_v4 = vrot.slane %v12297_v0, %v11099_v46 }
 0x37a   : > { %v2639_v30 = vrot.slane %v12302_v1, %v11093_v44 }
 0x37b   : > { %4186 = vmatpush1.bf16.msra.mxu1 %v9218_v5  ;;  %4268 = vmatpush1.bf16.msra.mxu0 %v9220_v6  ;;  %v2643_v5 = vrot.slane %v12302_v1, %v11099_v46  ;;  %v1549_v6 = vrot.slane %v12297_v0, %v12305_v2 }
 0x37c   : > { %4187 = vmatprep.subr.bf16.mxu1 %v9227_v7  ;;  %4269 = vmatprep.subr.bf16.mxu0 %v9229_v39  ;;  %v2651_v7 = vrot.slane %v12302_v1, %v12305_v2  ;;  %v9828_v39 = vadd.f32 %v2639_v30, %v1537_v3  ;;  %v10154_v3 = vld [vmem:[%s14199_s9 + $0x1e0] ss:$8 sps:$4 sm:$0xff]  }
 0x37d   : > { %v9830_v40 = vadd.f32 %v2643_v5, %v1541_v4  ;;  %v10159_v4 = vld [vmem:[%s14199_s9 + $0x1f4] ss:$8 sps:$4 sm:$0xff]   ;;  %v10157_v5 = vld [vmem:[%s14199_s9 + $0x1f0] ss:$8 sps:$4 sm:$0xff]  }
 0x37e   : > { %v9834_v42 = vadd.f32 %v2651_v7, %v1549_v6  ;;  %v10162_v7 = vld [vmem:[%s14199_s9 + $0x204] ss:$8 sps:$4 sm:$0xff]  }
 0x37f   : > { %4188 = vmatpush1.bf16.msra.mxu1 %v9226_v10  ;;  %4270 = vmatpush1.bf16.msra.mxu0 %v9228_v11 }
 0x380   : > { %4189 = vmatprep.subr.bf16.mxu1 %v9235_v12  ;;  %4271 = vmatprep.subr.bf16.mxu0 %v9237_v13 }
 0x383   : > { %4190 = vmatpush1.bf16.msra.mxu1 %v9234_v19  ;;  %4272 = vmatpush1.bf16.msra.mxu0 %v9236_v20 }
 0x384   : > { %4191 = vmatprep.subr.bf16.mxu1 %v9243_v21  ;;  %4273 = vmatprep.subr.bf16.mxu0 %v9245_v22 }
 0x387   : > { %4192 = vmatpush1.bf16.msra.mxu1 %v9242_v23  ;;  %4274 = vmatpush1.bf16.msra.mxu0 %v9244_v24  ;;  %v10112_v24 = vld [vmem:[%s14199_s9 + $0x100] ss:$8 sps:$4 sm:$0xff]  }
 0x388   : > { %5088 = vmatprep.subr.bf16.mxu1 %v10066_v25 }
 0x38a   : > { %4194 = vmatmul.mubr.bf16.vlgmr.msra.gmra.mrb[8].mxu1 %v10977_v34  ;;  %4276 = vmatmul.mubr.bf16.vlgmr.msra.gmra.mrb[8].mxu0 %v10977_v34  ;;  %v10075_v34 = vld [vmem:[%s14199_s9 + $0x34] ss:$8 sps:$4 sm:$0xff]  }
 0x38b   : > { %5089 = vmatpush1.bf16.msra.mxu1 %v10064_v26  ;;  %v10117_v26 = vld [vmem:[%s14199_s9 + $0x114] ss:$8 sps:$4 sm:$0xff]  }
 0x38c   : > { %5090 = vmatprep.subr.bf16.mxu1 %v10069_v27 }
 0x38f   : > { %5091 = vmatpush1.bf16.msra.mxu1 %v10067_v28  ;;  %v10115_v28 = vld [vmem:[%s14199_s9 + $0x110] ss:$8 sps:$4 sm:$0xff]  }
 0x390   : > { %5092 = vmatprep.subr.bf16.mxu1 %v10072_v29  ;;  %v10120_v29 = vld [vmem:[%s14199_s9 + $0x124] ss:$8 sps:$4 sm:$0xff]  }
 0x393   : > { %5093 = vmatpush1.bf16.msra.mxu1 %v10070_v31  ;;  %v10118_v31 = vld [vmem:[%s14199_s9 + $0x120] ss:$8 sps:$4 sm:$0xff]  }
 0x394   : > { %5094 = vmatprep.subr.bf16.mxu1 %v10075_v34  ;;  %v10123_v34 = vld [vmem:[%s14199_s9 + $0x134] ss:$8 sps:$4 sm:$0xff]  }
 0x397   : > { %5095 = vmatpush1.bf16.msra.mxu1 %v10073_v32  ;;  %v10121_v32 = vld [vmem:[%s14199_s9 + $0x130] ss:$8 sps:$4 sm:$0xff]  }
 0x398   : > { %5096 = vmatprep.subr.bf16.mxu1 %v10078_v33  ;;  %v10126_v33 = vld [vmem:[%s14199_s9 + $0x144] ss:$8 sps:$4 sm:$0xff]  }
 0x39b   : > { %5097 = vmatpush1.bf16.msra.mxu1 %v10076_v35  ;;  %v10124_v35 = vld [vmem:[%s14199_s9 + $0x140] ss:$8 sps:$4 sm:$0xff]  }
 0x39c   : > { %5098 = vmatprep.subr.bf16.mxu1 %v10081_v36  ;;  %v10129_v36 = vld [vmem:[%s14199_s9 + $0x154] ss:$8 sps:$4 sm:$0xff]  }
 0x39f   : > { %5099 = vmatpush1.bf16.msra.mxu1 %v10079_v37  ;;  %v10127_v37 = vld [vmem:[%s14199_s9 + $0x150] ss:$8 sps:$4 sm:$0xff]  }
 0x3a0   : > { %5100 = vmatprep.subr.bf16.mxu1 %v10084_v38  ;;  %v10132_v38 = vld [vmem:[%s14199_s9 + $0x164] ss:$8 sps:$4 sm:$0xff]  }
 0x3a3   : > { %5101 = vmatpush1.bf16.msra.mxu1 %v10082_v14  ;;  %v10130_v14 = vld [vmem:[%s14199_s9 + $0x160] ss:$8 sps:$4 sm:$0xff]  }
 0x3a4   : > { %5102 = vmatprep.subr.bf16.mxu1 %v10087_v41  ;;  %v10135_v41 = vld [vmem:[%s14199_s9 + $0x174] ss:$8 sps:$4 sm:$0xff]  }
 0x3a7   : > { %5103 = vmatpush1.bf16.msra.mxu1 %v10085_v45  ;;  %v10133_v45 = vld [vmem:[%s14199_s9 + $0x170] ss:$8 sps:$4 sm:$0xff]  }
 0x3a8   : > { %5104 = vmatprep.subr.bf16.mxu1 %v10090_v47  ;;  %v10138_v47 = vld [vmem:[%s14199_s9 + $0x184] ss:$8 sps:$4 sm:$0xff]  }
 0x3ab   : > { %5105 = vmatpush1.bf16.msra.mxu1 %v10088_v48  ;;  %v10136_v48 = vld [vmem:[%s14199_s9 + $0x180] ss:$8 sps:$4 sm:$0xff]  }
 0x3ac   : > { %5106 = vmatprep.subr.bf16.mxu1 %v10093_v49  ;;  %v10141_v49 = vld [vmem:[%s14199_s9 + $0x194] ss:$8 sps:$4 sm:$0xff]  }
 0x3af   : > { %5107 = vmatpush1.bf16.msra.mxu1 %v10091_v50  ;;  %v10139_v50 = vld [vmem:[%s14199_s9 + $0x190] ss:$8 sps:$4 sm:$0xff]  }
 0x3b0   : > { %5108 = vmatprep.subr.bf16.mxu1 %v10096_v52  ;;  %v10144_v52 = vld [vmem:[%s14199_s9 + $0x1a4] ss:$8 sps:$4 sm:$0xff]  }
 0x3b3   : > { %5109 = vmatpush1.bf16.msra.mxu1 %v10094_v53  ;;  %v10142_v53 = vld [vmem:[%s14199_s9 + $0x1a0] ss:$8 sps:$4 sm:$0xff]  }
 0x3b4   : > { %5110 = vmatprep.subr.bf16.mxu1 %v10099_v54  ;;  %v10147_v54 = vld [vmem:[%s14199_s9 + $0x1b4] ss:$8 sps:$4 sm:$0xff]  }
 0x3b7   : > { %5111 = vmatpush1.bf16.msra.mxu1 %v10097_v55  ;;  %v10145_v55 = vld [vmem:[%s14199_s9 + $0x1b0] ss:$8 sps:$4 sm:$0xff]  }
 0x3b8   : > { %5112 = vmatprep.subr.bf16.mxu1 %v10102_v56  ;;  %v12403_v56 = vsub.s32 2, %v11090_v43 }
 0x3bb   : > { %5113 = vmatpush1.bf16.msra.mxu1 %v10100_v51  ;;  %v10150_v51 = vld [vmem:[%s14199_s9 + $0x1c4] ss:$8 sps:$4 sm:$0xff]  }
 0x3bc   : > { %5114 = vmatprep.subr.bf16.mxu1 %v10105_v57  ;;  %v10148_v57 = vld [vmem:[%s14199_s9 + $0x1c0] ss:$8 sps:$4 sm:$0xff]  }
 0x3bf   : > { %5115 = vmatpush1.bf16.msra.mxu1 %v10103_v58  ;;  %v1545_v58 = vrot.slane %v12297_v0, %v12403_v56 }
 0x3c0   : > { %5116 = vmatprep.subr.bf16.mxu1 %v10108_v59  ;;  %v2647_v59 = vrot.slane %v12302_v1, %v12403_v56 }
 0x3c3   : > { %5117 = vmatpush1.bf16.msra.mxu1 %v10106_v60  ;;  %v10153_v60 = vld [vmem:[%s14199_s9 + $0x1d4] ss:$8 sps:$4 sm:$0xff]  }
 0x3c4   : > { %5118 = vmatprep.subr.bf16.mxu1 %v10111_v61  ;;  %v10151_v61 = vld [vmem:[%s14199_s9 + $0x1d0] ss:$8 sps:$4 sm:$0xff]  }
 0x3c7   : > { %5119 = vmatpush1.bf16.msra.mxu1 %v10109_v62  ;;  %v9832_v62 = vadd.f32 %v2647_v59, %v1545_v58  ;;  %v10190_v58 = vld [vmem:[%s14199_s9 + $0x2a0] ss:$8 sps:$4 sm:$0xff]   ;;  %v10195_v59 = vld [vmem:[%s14199_s9 + $0x2b4] ss:$8 sps:$4 sm:$0xff]  }
 0x3c8   : > { %5129 = vmatprep.subr.bf16.mxu1 %v10114_v63  ;;  %v10156_v63 = vld [vmem:[%s14199_s9 + $0x1e4] ss:$8 sps:$4 sm:$0xff]  }
 0x3dd   : > { %v4031_v8 = vpop.f32.mrb[4].mxu1  ;;  %v12319_v9 = vpop.f32.mrb[4].mxu0 }
 0x3de   : > { %v9829_v10 = vadd.f32 %v9828_v39, %v4031_v8  ;;  %v4033_v11 = vpop.f32.mrb[5].mxu1  ;;  %v4115_v12 = vpop.f32.mrb[5].mxu0  ;;  %v9833_v30 = vadd.f32 %v9832_v62, %v12319_v9  ;;  %v10160_v39 = vld [vmem:[%s14199_s9 + $0x200] ss:$8 sps:$4 sm:$0xff]   ;;  %v10258_v9 = vld [vmem:[%s14201_s11 + $0x4] ss:$8 sps:$4 sm:$0xff]  }
 0x3df   : > { %v9831_v13 = vadd.f32 %v9830_v40, %v4033_v11  ;;  %v9835_v15 = vadd.f32 %v9834_v42, %v4115_v12  ;;  %v4035_v16 = vpop.f32.mrb[6].mxu1  ;;  %v4117_v17 = vpop.f32.mrb[6].mxu0  ;;  %v10165_v42 = vld [vmem:[%s14199_s9 + $0x214] ss:$8 sps:$4 sm:$0xff]   ;;  %v10256_v8 = vld [vmem:[%s14201_s11] ss:$8 sps:$4 sm:$0xff]   ;;  %5460 = vmatprep.subr.bf16.mxu0 %v10258_v9 }
 0x3e0   : > { %v12321_v18 = vmax.f32 %v9829_v10, 0.0  ;;  %v4036_v19 = vpop.f32.mrb[7].mxu1  ;;  %v4118_v20 = vpop.f32.mrb[7].mxu0  ;;  %v12434_v6 = vmax.f32 %v9833_v30, 0.0  ;;  %v10163_v10 = vld [vmem:[%s14199_s9 + $0x210] ss:$8 sps:$4 sm:$0xff]   ;;  %5461 = vmatpush1.bf16.msra.mxu0 %v10256_v8 }
 0x3e1   : > { %v12323_v21 = vmax.f32 %v9831_v13, 0.0  ;;  %v12325_v22 = vmax.f32 %v9835_v15, 0.0  ;;  %v10261_v11 = vld [vmem:[%s14201_s11 + $0x14] ss:$8 sps:$4 sm:$0xff]   ;;  %v10168_v12 = vld [vmem:[%s14199_s9 + $0x224] ss:$8 sps:$4 sm:$0xff]  }
 0x3e2   : > { %v4300_v25 = vpack.c.bf16 %v12321_v18, %v12321_v18  ;;  %v4302_v40 = vpack.c.bf16 %v12434_v6, %v12434_v6  ;;  %v10259_v13 = vld [vmem:[%s14201_s11 + $0x10] ss:$8 sps:$4 sm:$0xff]   ;;  %5462 = vmatprep.subr.bf16.mxu0 %v10261_v11  ;;  %v10264_v15 = vld [vmem:[%s14201_s11 + $0x24] ss:$8 sps:$4 sm:$0xff]   ;;  %v10166_v16 = vld [vmem:[%s14199_s9 + $0x220] ss:$8 sps:$4 sm:$0xff]  }
 0x3e3   : > { %v4301_v23 = vpack.c.bf16 %v12323_v21, %v12323_v21  ;;  %v4303_v27 = vpack.c.bf16 %v12325_v22, %v12325_v22  ;;  %v10171_v17 = vld [vmem:[%s14199_s9 + $0x234] ss:$8 sps:$4 sm:$0xff]   ;;  %v10262_v19 = vld [vmem:[%s14201_s11 + $0x20] ss:$8 sps:$4 sm:$0xff]   ;;  %v10193_v62 = vld [vmem:[%s14199_s9 + $0x2b0] ss:$8 sps:$4 sm:$0xff]  }
 0x3e4   : > { %5463 = vmatpush1.bf16.msra.mxu0 %v10259_v13  ;;  %v10267_v20 = vld [vmem:[%s14201_s11 + $0x34] ss:$8 sps:$4 sm:$0xff]   ;;  %v12586_v30 = vsub.s32 4, %v11090_v43  ;;  %v10199_v11 = vld [vmem:[%s14199_s9 + $0x2d0] ss:$8 sps:$4 sm:$0xff]  }
 0x3e5   : > { %5120 = vmatprep.mubr.bf16.mxu1 %v4301_v23  ;;  %5464 = vmatprep.subr.bf16.mxu0 %v10264_v15  ;;  %v10169_v23 = vld [vmem:[%s14199_s9 + $0x230] ss:$8 sps:$4 sm:$0xff]  }
 0x3e6   : > { %5121 = vmatmul.mubr.bf16.vlgmr.msra.gmra.mrb[12].mxu1 %v4300_v25  ;;  %v10265_v25 = vld [vmem:[%s14201_s11 + $0x30] ss:$8 sps:$4 sm:$0xff]   ;;  %v1553_v8 = vrot.slane %v12297_v0, %v12586_v30  ;;  %v2655_v9 = vrot.slane %v12302_v1, %v12586_v30 }
 0x3e7   : > { %5130 = vmatpush1.bf16.msra.mxu1 %v10112_v24  ;;  %5161 = vmatprep.mubr.bf16.mxu1 %v4303_v27  ;;  %v10174_v24 = vld [vmem:[%s14199_s9 + $0x244] ss:$8 sps:$4 sm:$0xff]   ;;  %v10172_v27 = vld [vmem:[%s14199_s9 + $0x240] ss:$8 sps:$4 sm:$0xff]  }
 0x3e8   : > { %5131 = vmatprep.subr.bf16.mxu1 %v10117_v26  ;;  %5465 = vmatpush1.bf16.msra.mxu0 %v10262_v19  ;;  %v10270_v26 = vld [vmem:[%s14201_s11 + $0x44] ss:$8 sps:$4 sm:$0xff]   ;;  %v10295_v19 = vld [vmem:[%s14201_s11 + $0xd0] ss:$8 sps:$4 sm:$0xff]  }
 0x3e9   : > { %5466 = vmatprep.subr.bf16.mxu0 %v10267_v20  ;;  %v9836_v20 = vadd.f32 %v2655_v9, %v1553_v8  ;;  %v10232_v8 = vld [vmem:[%s14199_s9 + $0x380] ss:$8 sps:$4 sm:$0xff]   ;;  %v10237_v9 = vld [vmem:[%s14199_s9 + $0x394] ss:$8 sps:$4 sm:$0xff]  }
 0x3eb   : > { %5132 = vmatpush1.bf16.msra.mxu1 %v10115_v28  ;;  %v10177_v28 = vld [vmem:[%s14199_s9 + $0x254] ss:$8 sps:$4 sm:$0xff]  }
 0x3ec   : > { %5133 = vmatprep.subr.bf16.mxu1 %v10120_v29  ;;  %5467 = vmatpush1.bf16.msra.mxu0 %v10265_v25  ;;  %v10268_v29 = vld [vmem:[%s14201_s11 + $0x40] ss:$8 sps:$4 sm:$0xff]  }
 0x3ed   : > { %5468 = vmatprep.subr.bf16.mxu0 %v10270_v26  ;;  %v10207_v26 = vld [vmem:[%s14199_s9 + $0x2f4] ss:$8 sps:$4 sm:$0xff]  }
 0x3ef   : > { %5134 = vmatpush1.bf16.msra.mxu1 %v10118_v31  ;;  %v10273_v31 = vld [vmem:[%s14201_s11 + $0x54] ss:$8 sps:$4 sm:$0xff]  }
 0x3f0   : > { %5135 = vmatprep.subr.bf16.mxu1 %v10123_v34  ;;  %v10175_v34 = vld [vmem:[%s14199_s9 + $0x250] ss:$8 sps:$4 sm:$0xff]   ;;  %5469 = vmatpush1.bf16.msra.mxu0 %v10268_v29 }
 0x3f1   : > { %5470 = vmatprep.subr.bf16.mxu0 %v10273_v31 }
 0x3f3   : > { %5136 = vmatpush1.bf16.msra.mxu1 %v10121_v32  ;;  %v10180_v32 = vld [vmem:[%s14199_s9 + $0x264] ss:$8 sps:$4 sm:$0xff]  }
 0x3f4   : > { %5137 = vmatprep.subr.bf16.mxu1 %v10126_v33  ;;  %v10271_v33 = vld [vmem:[%s14201_s11 + $0x50] ss:$8 sps:$4 sm:$0xff]  }
 0x3f5   : > { %5471 = vmatpush1.bf16.msra.mxu0 %v10271_v33 }
 0x3f7   : > { %5138 = vmatpush1.bf16.msra.mxu1 %v10124_v35  ;;  %v10276_v35 = vld [vmem:[%s14201_s11 + $0x64] ss:$8 sps:$4 sm:$0xff]  }
 0x3f8   : > { %5139 = vmatprep.subr.bf16.mxu1 %v10129_v36  ;;  %v10178_v36 = vld [vmem:[%s14199_s9 + $0x260] ss:$8 sps:$4 sm:$0xff]   ;;  %5472 = vmatprep.subr.bf16.mxu0 %v10276_v35 }
 0x3fb   : > { %5140 = vmatpush1.bf16.msra.mxu1 %v10127_v37  ;;  %v10183_v37 = vld [vmem:[%s14199_s9 + $0x274] ss:$8 sps:$4 sm:$0xff]  }
 0x3fc   : > { %5141 = vmatprep.subr.bf16.mxu1 %v10132_v38  ;;  %v10274_v38 = vld [vmem:[%s14201_s11 + $0x60] ss:$8 sps:$4 sm:$0xff]  }
 0x3fd   : > { %5473 = vmatpush1.bf16.msra.mxu0 %v10274_v38 }
 0x3ff   : > { %5142 = vmatpush1.bf16.msra.mxu1 %v10130_v14  ;;  %v10279_v14 = vld [vmem:[%s14201_s11 + $0x74] ss:$8 sps:$4 sm:$0xff]  }
 0x400   : > { %5143 = vmatprep.subr.bf16.mxu1 %v10135_v41  ;;  %v10181_v41 = vld [vmem:[%s14199_s9 + $0x270] ss:$8 sps:$4 sm:$0xff]   ;;  %5474 = vmatprep.subr.bf16.mxu0 %v10279_v14 }
 0x403   : > { %5144 = vmatpush1.bf16.msra.mxu1 %v10133_v45  ;;  %v10186_v45 = vld [vmem:[%s14199_s9 + $0x284] ss:$8 sps:$4 sm:$0xff]  }
 0x404   : > { %5145 = vmatprep.subr.bf16.mxu1 %v10138_v47  ;;  %v10277_v47 = vld [vmem:[%s14201_s11 + $0x70] ss:$8 sps:$4 sm:$0xff]  }
 0x405   : > { %5475 = vmatpush1.bf16.msra.mxu0 %v10277_v47 }
 0x407   : > { %5146 = vmatpush1.bf16.msra.mxu1 %v10136_v48  ;;  %v10282_v48 = vld [vmem:[%s14201_s11 + $0x84] ss:$8 sps:$4 sm:$0xff]  }
 0x408   : > { %5147 = vmatprep.subr.bf16.mxu1 %v10141_v49  ;;  %v10184_v49 = vld [vmem:[%s14199_s9 + $0x280] ss:$8 sps:$4 sm:$0xff]   ;;  %5476 = vmatprep.subr.bf16.mxu0 %v10282_v48 }
 0x40b   : > { %5148 = vmatpush1.bf16.msra.mxu1 %v10139_v50  ;;  %v10189_v50 = vld [vmem:[%s14199_s9 + $0x294] ss:$8 sps:$4 sm:$0xff]  }
 0x40c   : > { %5149 = vmatprep.subr.bf16.mxu1 %v10144_v52  ;;  %v10280_v52 = vld [vmem:[%s14201_s11 + $0x80] ss:$8 sps:$4 sm:$0xff]  }
 0x40d   : > { %5477 = vmatpush1.bf16.msra.mxu0 %v10280_v52 }
 0x40f   : > { %5150 = vmatpush1.bf16.msra.mxu1 %v10142_v53  ;;  %v10285_v53 = vld [vmem:[%s14201_s11 + $0x94] ss:$8 sps:$4 sm:$0xff]  }
 0x410   : > { %5151 = vmatprep.subr.bf16.mxu1 %v10147_v54  ;;  %v10187_v54 = vld [vmem:[%s14199_s9 + $0x290] ss:$8 sps:$4 sm:$0xff]   ;;  %5478 = vmatprep.subr.bf16.mxu0 %v10285_v53  ;;  %v10213_v53 = vld [vmem:[%s14199_s9 + $0x314] ss:$8 sps:$4 sm:$0xff]  }
 0x413   : > { %5152 = vmatpush1.bf16.msra.mxu1 %v10145_v55  ;;  %v10192_v55 = vld [vmem:[%s14199_s9 + $0x2a4] ss:$8 sps:$4 sm:$0xff]  }
 0x414   : > { %5153 = vmatprep.subr.bf16.mxu1 %v10150_v51  ;;  %v10283_v51 = vld [vmem:[%s14201_s11 + $0x90] ss:$8 sps:$4 sm:$0xff]  }
 0x415   : > { %5479 = vmatpush1.bf16.msra.mxu0 %v10283_v51  ;;  %v10216_v51 = vld [vmem:[%s14199_s9 + $0x324] ss:$8 sps:$4 sm:$0xff]  }
 0x417   : > { %5154 = vmatpush1.bf16.msra.mxu1 %v10148_v57  ;;  %v10288_v57 = vld [vmem:[%s14201_s11 + $0xa4] ss:$8 sps:$4 sm:$0xff]  }
 0x418   : > { %5155 = vmatprep.subr.bf16.mxu1 %v10153_v60  ;;  %v10286_v60 = vld [vmem:[%s14201_s11 + $0xa0] ss:$8 sps:$4 sm:$0xff]   ;;  %5480 = vmatprep.subr.bf16.mxu0 %v10288_v57 }
 0x419   : > { %5481 = vmatpush1.bf16.msra.mxu0 %v10286_v60  ;;  %v10214_v57 = vld [vmem:[%s14199_s9 + $0x320] ss:$8 sps:$4 sm:$0xff]   ;;  %v10222_v60 = vld [vmem:[%s14199_s9 + $0x344] ss:$8 sps:$4 sm:$0xff]  }
 0x41b   : > { %5156 = vmatpush1.bf16.msra.mxu1 %v10151_v61  ;;  %v10291_v61 = vld [vmem:[%s14201_s11 + $0xb4] ss:$8 sps:$4 sm:$0xff]  }
 0x41c   : > { %5157 = vmatprep.subr.bf16.mxu1 %v10156_v63  ;;  %v10198_v63 = vld [vmem:[%s14199_s9 + $0x2c4] ss:$8 sps:$4 sm:$0xff]   ;;  %5482 = vmatprep.subr.bf16.mxu0 %v10291_v61  ;;  %v10220_v61 = vld [vmem:[%s14199_s9 + $0x340] ss:$8 sps:$4 sm:$0xff]  }
 0x41f   : > { %5158 = vmatpush1.bf16.msra.mxu1 %v10154_v3  ;;  %v10289_v3 = vld [vmem:[%s14201_s11 + $0xb0] ss:$8 sps:$4 sm:$0xff]  }
 0x420   : > { %5159 = vmatprep.subr.bf16.mxu1 %v10159_v4  ;;  %v10294_v4 = vld [vmem:[%s14201_s11 + $0xc4] ss:$8 sps:$4 sm:$0xff]   ;;  %5483 = vmatpush1.bf16.msra.mxu0 %v10289_v3 }
 0x421   : > { %5484 = vmatprep.subr.bf16.mxu0 %v10294_v4  ;;  %v10228_v3 = vld [vmem:[%s14199_s9 + $0x364] ss:$8 sps:$4 sm:$0xff]   ;;  %v10226_v4 = vld [vmem:[%s14199_s9 + $0x360] ss:$8 sps:$4 sm:$0xff]  }
 0x423   : > { %5160 = vmatpush1.bf16.msra.mxu1 %v10157_v5  ;;  %v10196_v5 = vld [vmem:[%s14199_s9 + $0x2c0] ss:$8 sps:$4 sm:$0xff]  }
 0x424   : > { %5170 = vmatprep.subr.bf16.mxu1 %v10162_v7  ;;  %v12595_v7 = vsub.s32 5, %v11090_v43 }
 0x426   : > { %5162 = vmatmul.mubr.bf16.vlgmr.msra.gmra.mrb[12].mxu1 %v4302_v40  ;;  %v10201_v40 = vld [vmem:[%s14199_s9 + $0x2d4] ss:$8 sps:$4 sm:$0xff]   ;;  %v2659_v13 = vrot.slane %v12302_v1, %v12595_v7 }
 0x427   : > { %5171 = vmatpush1.bf16.msra.mxu1 %v10160_v39  ;;  %v12598_v39 = vsub.s32 7, %v11090_v43 }
 0x428   : > { %5172 = vmatprep.subr.bf16.mxu1 %v10165_v42  ;;  %v10292_v42 = vld [vmem:[%s14201_s11 + $0xc0] ss:$8 sps:$4 sm:$0xff]  }
 0x429   : > { %v1565_v15 = vrot.slane %v12297_v0, %v12598_v39  ;;  %5485 = vmatpush1.bf16.msra.mxu0 %v10292_v42  ;;  %v10234_v42 = vld [vmem:[%s14199_s9 + $0x384] ss:$8 sps:$4 sm:$0xff]  }
 0x42b   : > { %5173 = vmatpush1.bf16.msra.mxu1 %v10163_v10  ;;  %v10297_v10 = vld [vmem:[%s14201_s11 + $0xd4] ss:$8 sps:$4 sm:$0xff]  }
 0x42c   : > { %5174 = vmatprep.subr.bf16.mxu1 %v10168_v12  ;;  %v1557_v12 = vrot.slane %v12297_v0, %v12595_v7  ;;  %5486 = vmatprep.subr.bf16.mxu0 %v10297_v10  ;;  %v10235_v10 = vld [vmem:[%s14199_s9 + $0x390] ss:$8 sps:$4 sm:$0xff]  }
 0x42d   : > { %5487 = vmatpush1.bf16.msra.mxu0 %v10295_v19  ;;  %v10244_v19 = vld [vmem:[%s14199_s9 + $0x3c0] ss:$8 sps:$4 sm:$0xff]  }
 0x42f   : > { %5175 = vmatpush1.bf16.msra.mxu1 %v10166_v16  ;;  %v2667_v16 = vrot.slane %v12302_v1, %v12598_v39 }
 0x430   : > { %5176 = vmatprep.subr.bf16.mxu1 %v10171_v17  ;;  %v10204_v17 = vld [vmem:[%s14199_s9 + $0x2e4] ss:$8 sps:$4 sm:$0xff]  }
 0x431   : > { %v9842_v25 = vadd.f32 %v2667_v16, %v1565_v15  ;;  %v10241_v15 = vld [vmem:[%s14199_s9 + $0x3b0] ss:$8 sps:$4 sm:$0xff]   ;;  %v12726_v16 = vsub.s32 6, %v11090_v43  ;;  %v10249_v43 = vld [vmem:[%s14199_s9 + $0x3d4] ss:$8 sps:$4 sm:$0xff]  }
 0x433   : > { %5177 = vmatpush1.bf16.msra.mxu1 %v10169_v23  ;;  %v10202_v23 = vld [vmem:[%s14199_s9 + $0x2e0] ss:$8 sps:$4 sm:$0xff]  }
 0x434   : > { %5178 = vmatprep.subr.bf16.mxu1 %v10174_v24  ;;  %v9838_v24 = vadd.f32 %v2659_v13, %v1557_v12  ;;  %v10238_v12 = vld [vmem:[%s14199_s9 + $0x3a0] ss:$8 sps:$4 sm:$0xff]   ;;  %v10243_v13 = vld [vmem:[%s14199_s9 + $0x3b4] ss:$8 sps:$4 sm:$0xff]  }
 0x437   : > { %5179 = vmatpush1.bf16.msra.mxu1 %v10172_v27 }
 0x438   : > { %5180 = vmatprep.subr.bf16.mxu1 %v10177_v28 }
 0x43b   : > { %5181 = vmatpush1.bf16.msra.mxu1 %v10175_v34 }
 0x43c   : > { %5182 = vmatprep.subr.bf16.mxu1 %v10180_v32 }
 0x43f   : > { %5183 = vmatpush1.bf16.msra.mxu1 %v10178_v36 }
 0x440   : > { %5184 = vmatprep.subr.bf16.mxu1 %v10183_v37  ;;  %v10205_v37 = vld [vmem:[%s14199_s9 + $0x2f0] ss:$8 sps:$4 sm:$0xff]  }
 0x443   : > { %5185 = vmatpush1.bf16.msra.mxu1 %v10181_v41 }
 0x444   : > { %5186 = vmatprep.subr.bf16.mxu1 %v10186_v45  ;;  %v10210_v45 = vld [vmem:[%s14199_s9 + $0x304] ss:$8 sps:$4 sm:$0xff]  }
 0x447   : > { %5187 = vmatpush1.bf16.msra.mxu1 %v10184_v49 }
 0x448   : > { %5188 = vmatprep.subr.bf16.mxu1 %v10189_v50  ;;  %v10208_v50 = vld [vmem:[%s14199_s9 + $0x300] ss:$8 sps:$4 sm:$0xff]  }
 0x44b   : > { %5189 = vmatpush1.bf16.msra.mxu1 %v10187_v54 }
 0x44c   : > { %5190 = vmatprep.subr.bf16.mxu1 %v10192_v55  ;;  %v10211_v55 = vld [vmem:[%s14199_s9 + $0x310] ss:$8 sps:$4 sm:$0xff]  }
 0x44f   : > { %5191 = vmatpush1.bf16.msra.mxu1 %v10190_v58  ;;  %v10219_v58 = vld [vmem:[%s14199_s9 + $0x334] ss:$8 sps:$4 sm:$0xff]  }
 0x450   : > { %5192 = vmatprep.subr.bf16.mxu1 %v10195_v59  ;;  %v10217_v59 = vld [vmem:[%s14199_s9 + $0x330] ss:$8 sps:$4 sm:$0xff]  }
 0x453   : > { %5193 = vmatpush1.bf16.msra.mxu1 %v10193_v62  ;;  %v10225_v62 = vld [vmem:[%s14199_s9 + $0x354] ss:$8 sps:$4 sm:$0xff]  }
 0x454   : > { %5194 = vmatprep.subr.bf16.mxu1 %v10198_v63  ;;  %v10223_v63 = vld [vmem:[%s14199_s9 + $0x350] ss:$8 sps:$4 sm:$0xff]  }
 0x457   : > { %5195 = vmatpush1.bf16.msra.mxu1 %v10196_v5  ;;  %v10231_v5 = vld [vmem:[%s14199_s9 + $0x374] ss:$8 sps:$4 sm:$0xff]  }
 0x458   : > { %5196 = vmatprep.subr.bf16.mxu1 %v10201_v40  ;;  %v10229_v40 = vld [vmem:[%s14199_s9 + $0x370] ss:$8 sps:$4 sm:$0xff]  }
 0x45b   : > { %5197 = vmatpush1.bf16.msra.mxu1 %v10199_v11  ;;  %v10240_v11 = vld [vmem:[%s14199_s9 + $0x3a4] ss:$8 sps:$4 sm:$0xff]  }
 0x45c   : > { %5198 = vmatprep.subr.bf16.mxu1 %v10204_v17  ;;  %v10246_v17 = vld [vmem:[%s14199_s9 + $0x3c4] ss:$8 sps:$4 sm:$0xff]  }
 0x45d   : > { %v4195_v27 = vpop.f32.mrb[8].mxu1  ;;  %v12636_v28 = vpop.f32.mrb[8].mxu0 }
 0x45e   : > { %v9837_v29 = vadd.f32 %v9836_v20, %v4195_v27  ;;  %v4197_v31 = vpop.f32.mrb[9].mxu1  ;;  %v4279_v34 = vpop.f32.mrb[9].mxu0  ;;  %v1561_v20 = vrot.slane %v12297_v0, %v12726_v16  ;;  %v10250_v0 = vld [vmem:[%s14199_s9 + $0x3e0] ss:$8 sps:$4 sm:$0xff]   ;;  %v10255_v27 = vld [vmem:[%s14199_s9 + $0x3f4] ss:$8 sps:$4 sm:$0xff]  }
 0x45f   : > { %v9839_v32 = vadd.f32 %v9838_v24, %v4197_v31  ;;  %v9843_v33 = vadd.f32 %v9842_v25, %v4279_v34  ;;  %5199 = vmatpush1.bf16.msra.mxu1 %v10202_v23  ;;  %v4199_v35 = vpop.f32.mrb[10].mxu1  ;;  %v4281_v36 = vpop.f32.mrb[10].mxu0  ;;  %v2663_v23 = vrot.slane %v12302_v1, %v12726_v16  ;;  %v10247_v24 = vld [vmem:[%s14199_s9 + $0x3d0] ss:$8 sps:$4 sm:$0xff]  }
 0x460   : > { %v12641_v38 = vmax.f32 %v9837_v29, 0.0  ;;  %v4200_v14 = vpop.f32.mrb[11].mxu1  ;;  %v4282_v41 = vpop.f32.mrb[11].mxu0  ;;  %5200 = vmatprep.subr.bf16.mxu1 %v10207_v26  ;;  %v10252_v26 = vld [vmem:[%s14199_s9 + $0x3e4] ss:$8 sps:$4 sm:$0xff]  }
 0x461   : > { %v12646_v47 = vmax.f32 %v9839_v32, 0.0  ;;  %v12648_v48 = vmax.f32 %v9843_v33, 0.0  ;;  %v9840_v25 = vadd.f32 %v2663_v23, %v1561_v20  ;;  %v10253_v29 = vld [vmem:[%s14199_s9 + $0x3f0] ss:$8 sps:$4 sm:$0xff]   ;;  %v10298_v32 = vld [vmem:[%s14201_s11 + $0xe0] ss:$8 sps:$4 sm:$0xff]  }
 0x462   : > { %v4304_v52 = vpack.c.bf16 %v12641_v38, %v12641_v38  ;;  %v10303_v33 = vld [vmem:[%s14201_s11 + $0xf4] ss:$8 sps:$4 sm:$0xff]   ;;  %v10301_v35 = vld [vmem:[%s14201_s11 + $0xf0] ss:$8 sps:$4 sm:$0xff]   ;;  %v12776_v36 = vld [vmem:[%s14203_s13] sm:$0xff] }
 0x463   : > { %v4305_v49 = vpack.c.bf16 %v12646_v47, %v12646_v47  ;;  %5201 = vmatpush1.bf16.msra.mxu1 %v10205_v37  ;;  %v4307_v54 = vpack.c.bf16 %v12648_v48, %v12648_v48  ;;  %v9841_v1 = vadd.f32 %v9840_v25, %v12636_v28  ;;  %v10300_v28 = vld [vmem:[%s14201_s11 + $0xe4] ss:$8 sps:$4 sm:$0xff]   ;;  %v5568_v20 = vld [vmem:[%s14203_s13 + $0x1f8] sm:$0xff] }
 0x464   : > { %5211 = vmatprep.subr.bf16.mxu1 %v10210_v45  ;;  %5488 = vmatprep.subr.bf16.mxu0 %v10300_v28  ;;  %v12781_v37 = vld [vmem:[%s14203_s13 + $0x20] sm:$0xff]  ;;  %v5508_v45 = vld [vmem:[%s14203_s13 + $0x18] sm:$0xff] }
 0x465   : > { %5202 = vmatprep.mubr.bf16.mxu1 %v4305_v49  ;;  %v12757_v31 = vmax.f32 %v9841_v1, 0.0  ;;  %5489 = vmatpush1.bf16.msra.mxu0 %v10298_v32  ;;  %v9406_v14 = vcombine.low %v12776_v36, %v12781_v37  ;;  %v9407_v41 = vcombine.high %v12776_v36, %v12781_v37  ;;  %v5512_v49 = vld [vmem:[%s14203_s13 + $0x38] sm:$0xff]  ;;  %v5537_v36 = vld [vmem:[%s14203_s13 + $0x100] sm:$0xff] }
 0x466   : > { %5203 = vmatmul.mubr.bf16.vlgmr.msra.gmra.mrb[12].mxu1 %v4304_v52  ;;  %5490 = vmatprep.subr.bf16.mxu0 %v10303_v33  ;;  %v9413_v52 = vcombine.high %v5508_v45, %v5512_v49  ;;  %v5576_v25 = vld [vmem:[%s14203_s13 + $0x238] sm:$0xff]  ;;  %v5541_v37 = vld [vmem:[%s14203_s13 + $0x120] sm:$0xff] }
 0x467   : > { %5212 = vmatpush1.bf16.msra.mxu1 %v10208_v50  ;;  %5243 = vmatprep.mubr.bf16.mxu1 %v4307_v54  ;;  %v4306_v34 = vpack.c.bf16 %v12757_v31, %v12757_v31  ;;  %v9412_v50 = vcombine.low %v5508_v45, %v5512_v49  ;;  %v5520_v54 = vld [vmem:[%s14203_s13 + $0x78] sm:$0xff] }
 0x468   : > { %5213 = vmatprep.subr.bf16.mxu1 %v10213_v53  ;;  %v5516_v53 = vld [vmem:[%s14203_s13 + $0x58] sm:$0xff] }
 0x469   : > { %5491 = vmatpush1.bf16.msra.mxu0 %v10301_v35  ;;  %v5580_v1 = vld [vmem:[%s14203_s13 + $0x258] sm:$0xff] }
 0x46a   : > { %6315 = vmatprep.subr.bf16.mxu0 %v9407_v41  ;;  %v5588_v28 = vld [vmem:[%s14203_s13 + $0x298] sm:$0xff] }
 0x46b   : > { %5214 = vmatpush1.bf16.msra.mxu1 %v10211_v55  ;;  %v9420_v55 = vcombine.low %v5516_v53, %v5520_v54  ;;  %v5592_v32 = vld [vmem:[%s14203_s13 + $0x2b8] sm:$0xff] }
 0x46c   : > { %5215 = vmatprep.subr.bf16.mxu1 %v10216_v51  ;;  %v9421_v51 = vcombine.high %v5516_v53, %v5520_v54  ;;  %v9492_v33 = vcombine.low %v5588_v28, %v5592_v32  ;;  %v9493_v35 = vcombine.high %v5588_v28, %v5592_v32  ;;  %v5596_v41 = vld [vmem:[%s14203_s13 + $0x2d8] sm:$0xff]  ;;  %v5553_v28 = vld [vmem:[%s14203_s13 + $0x180] sm:$0xff] }
 0x46d   : > { %v5600_v45 = vld [vmem:[%s14203_s13 + $0x2f8] sm:$0xff]  ;;  %v5557_v32 = vld [vmem:[%s14203_s13 + $0x1a0] sm:$0xff] }
 0x46e   : > { %v9500_v49 = vcombine.low %v5596_v41, %v5600_v45  ;;  %v5608_v53 = vld [vmem:[%s14203_s13 + $0x338] sm:$0xff] }
 0x46f   : > { %5216 = vmatpush1.bf16.msra.mxu1 %v10214_v57  ;;  %v5524_v57 = vld [vmem:[%s14203_s13 + $0x98] sm:$0xff] }
 0x470   : > { %5217 = vmatprep.subr.bf16.mxu1 %v10219_v58  ;;  %v5528_v58 = vld [vmem:[%s14203_s13 + $0xb8] sm:$0xff] }
 0x473   : > { %5218 = vmatpush1.bf16.msra.mxu1 %v10217_v59  ;;  %v9428_v59 = vcombine.low %v5524_v57, %v5528_v58 }
 0x474   : > { %5219 = vmatprep.subr.bf16.mxu1 %v10222_v60  ;;  %v9429_v60 = vcombine.high %v5524_v57, %v5528_v58  ;;  %v5616_v57 = vld [vmem:[%s14203_s13 + $0x378] sm:$0xff] }
 0x477   : > { %5220 = vmatpush1.bf16.msra.mxu1 %v10220_v61  ;;  %v5532_v61 = vld [vmem:[%s14203_s13 + $0xd8] sm:$0xff] }
 0x478   : > { %5221 = vmatprep.subr.bf16.mxu1 %v10225_v62  ;;  %v5536_v62 = vld [vmem:[%s14203_s13 + $0xf8] sm:$0xff] }
 0x47b   : > { %5222 = vmatpush1.bf16.msra.mxu1 %v10223_v63  ;;  %v9436_v63 = vcombine.low %v5532_v61, %v5536_v62 }
 0x47c   : > { %5223 = vmatprep.subr.bf16.mxu1 %v10228_v3  ;;  %v9437_v3 = vcombine.high %v5532_v61, %v5536_v62 }
 0x47f   : > { %5224 = vmatpush1.bf16.msra.mxu1 %v10226_v4  ;;  %v5540_v4 = vld [vmem:[%s14203_s13 + $0x118] sm:$0xff] }
 0x480   : > { %5225 = vmatprep.subr.bf16.mxu1 %v10231_v5  ;;  %v5544_v5 = vld [vmem:[%s14203_s13 + $0x138] sm:$0xff] }
 0x483   : > { %5226 = vmatpush1.bf16.msra.mxu1 %v10229_v40  ;;  %v9444_v40 = vcombine.low %v5540_v4, %v5544_v5 }
 0x484   : > { %5227 = vmatprep.subr.bf16.mxu1 %v10234_v42  ;;  %v9445_v42 = vcombine.high %v5540_v4, %v5544_v5 }
 0x487   : > { %5228 = vmatpush1.bf16.msra.mxu1 %v10232_v8  ;;  %v5548_v8 = vld [vmem:[%s14203_s13 + $0x158] sm:$0xff] }
 0x488   : > { %5229 = vmatprep.subr.bf16.mxu1 %v10237_v9  ;;  %v5552_v9 = vld [vmem:[%s14203_s13 + $0x178] sm:$0xff] }
 0x48b   : > { %5230 = vmatpush1.bf16.msra.mxu1 %v10235_v10  ;;  %v9452_v10 = vcombine.low %v5548_v8, %v5552_v9 }
 0x48c   : > { %5231 = vmatprep.subr.bf16.mxu1 %v10240_v11  ;;  %v9453_v11 = vcombine.high %v5548_v8, %v5552_v9 }
 0x48f   : > { %5232 = vmatpush1.bf16.msra.mxu1 %v10238_v12  ;;  %v5556_v12 = vld [vmem:[%s14203_s13 + $0x198] sm:$0xff] }
 0x490   : > { %5233 = vmatprep.subr.bf16.mxu1 %v10243_v13  ;;  %v5560_v13 = vld [vmem:[%s14203_s13 + $0x1b8] sm:$0xff] }
 0x493   : > { %5234 = vmatpush1.bf16.msra.mxu1 %v10241_v15  ;;  %v9460_v15 = vcombine.low %v5556_v12, %v5560_v13 }
 0x494   : > { %5235 = vmatprep.subr.bf16.mxu1 %v10246_v17  ;;  %v9461_v17 = vcombine.high %v5556_v12, %v5560_v13 }
 0x497   : > { %5236 = vmatpush1.bf16.msra.mxu1 %v10244_v19  ;;  %v5564_v19 = vld [vmem:[%s14203_s13 + $0x1d8] sm:$0xff] }
 0x498   : > { %5237 = vmatprep.subr.bf16.mxu1 %v10249_v43  ;;  %v9468_v23 = vcombine.low %v5564_v19, %v5568_v20  ;;  %v9469_v43 = vcombine.high %v5564_v19, %v5568_v20  ;;  %v5525_v19 = vld [vmem:[%s14203_s13 + $0xa0] sm:$0xff] }
 0x49b   : > { %5238 = vmatpush1.bf16.msra.mxu1 %v10247_v24  ;;  %v5572_v24 = vld [vmem:[%s14203_s13 + $0x218] sm:$0xff] }
 0x49c   : > { %5239 = vmatprep.subr.bf16.mxu1 %v10252_v26  ;;  %v9476_v26 = vcombine.low %v5572_v24, %v5576_v25 }
 0x49f   : > { %5240 = vmatpush1.bf16.msra.mxu1 %v10250_v0  ;;  %v9477_v0 = vcombine.high %v5572_v24, %v5576_v25  ;;  %v5533_v24 = vld [vmem:[%s14203_s13 + $0xe0] sm:$0xff] }
 0x4a0   : > { %5241 = vmatprep.subr.bf16.mxu1 %v10255_v27  ;;  %v5584_v27 = vld [vmem:[%s14203_s13 + $0x278] sm:$0xff] }
 0x4a3   : > { %5242 = vmatpush1.bf16.msra.mxu1 %v10253_v29  ;;  %v9484_v29 = vcombine.low %v5580_v1, %v5584_v27 }
 0x4a4   : > { %6438 = vmatprep.subr.bf16.mxu1 %v9413_v52  ;;  %v5604_v52 = vld [vmem:[%s14203_s13 + $0x318] sm:$0xff] }
 0x4a5   : > { %v9508_v54 = vcombine.low %v5604_v52, %v5608_v53 }
 0x4a6   : > { %5244 = vmatmul.mubr.bf16.vlgmr.msra.gmra.mrb[12].mxu1 %v4306_v34  ;;  %v9485_v34 = vcombine.high %v5580_v1, %v5584_v27  ;;  %v5545_v1 = vld [vmem:[%s14203_s13 + $0x140] sm:$0xff] }
 0x4a7   : > { %6439 = vmatpush1.bf16.msra.mxu1 %v9412_v50  ;;  %v9501_v50 = vcombine.high %v5596_v41, %v5600_v45  ;;  %v5549_v27 = vld [vmem:[%s14203_s13 + $0x160] sm:$0xff] }
 0x4a8   : > { %6440 = vmatprep.subr.bf16.mxu1 %v9421_v51  ;;  %v5612_v51 = vld [vmem:[%s14203_s13 + $0x358] sm:$0xff]  ;;  %v5561_v41 = vld [vmem:[%s14203_s13 + $0x1c0] sm:$0xff] }
 0x4a9   : > { %v9516_v58 = vcombine.low %v5612_v51, %v5616_v57  ;;  %v5565_v45 = vld [vmem:[%s14203_s13 + $0x1e0] sm:$0xff] }
 0x4ab   : > { %6441 = vmatpush1.bf16.msra.mxu1 %v9420_v55  ;;  %v9509_v55 = vcombine.high %v5604_v52, %v5608_v53  ;;  %v5569_v52 = vld [vmem:[%s14203_s13 + $0x200] sm:$0xff] }
 0x4ac   : > { %6442 = vmatprep.subr.bf16.mxu1 %v9429_v60  ;;  %v4436_v60 = vld [vmem:[%s14200_s10] sm:$0x3] }
 0x4ad   : > { %v4441_v61 = vrot.slane %v4436_v60, %v11093_v44  ;;  %v4445_v62 = vrot.slane %v4436_v60, %v11099_v46  ;;  %v5573_v53 = vld [vmem:[%s14203_s13 + $0x220] sm:$0xff] }
 0x4ae   : > { %v5585_v60 = vld [vmem:[%s14203_s13 + $0x280] sm:$0xff] }
 0x4af   : > { %6443 = vmatpush1.bf16.msra.mxu1 %v9428_v59  ;;  %v9517_v59 = vcombine.high %v5612_v51, %v5616_v57  ;;  %v5577_v51 = vld [vmem:[%s14203_s13 + $0x240] sm:$0xff] }
 0x4b0   : > { %6444 = vmatprep.subr.bf16.mxu1 %v9437_v3  ;;  %v5581_v57 = vld [vmem:[%s14203_s13 + $0x260] sm:$0xff] }
 0x4b3   : > { %6445 = vmatpush1.bf16.msra.mxu1 %v9436_v63 }
 0x4b4   : > { %6446 = vmatprep.subr.bf16.mxu1 %v9445_v42 }
 0x4b7   : > { %6447 = vmatpush1.bf16.msra.mxu1 %v9444_v40 }
 0x4b8   : > { %6448 = vmatprep.subr.bf16.mxu1 %v9453_v11  ;;  %v5517_v11 = vld [vmem:[%s14203_s13 + $0x60] sm:$0xff] }
 0x4bb   : > { %6449 = vmatpush1.bf16.msra.mxu1 %v9452_v10  ;;  %v5513_v10 = vld [vmem:[%s14203_s13 + $0x40] sm:$0xff] }
 0x4bc   : > { %6450 = vmatprep.subr.bf16.mxu1 %v9461_v17  ;;  %v5521_v17 = vld [vmem:[%s14203_s13 + $0x80] sm:$0xff]  ;;  %v9414_v20 = vcombine.low %v5513_v10, %v5517_v11 }
 0x4bd   : > { %v9422_v25 = vcombine.low %v5521_v17, %v5525_v19 }
 0x4bf   : > { %6451 = vmatpush1.bf16.msra.mxu1 %v9460_v15  ;;  %v9415_v15 = vcombine.high %v5513_v10, %v5517_v11  ;;  %v5609_v11 = vld [vmem:[%s14203_s13 + $0x340] sm:$0xff] }
 0x4c0   : > { %6452 = vmatprep.subr.bf16.mxu1 %v9469_v43  ;;  %v5529_v43 = vld [vmem:[%s14203_s13 + $0xc0] sm:$0xff] }
 0x4c3   : > { %6453 = vmatpush1.bf16.msra.mxu1 %v9468_v23  ;;  %v9423_v23 = vcombine.high %v5521_v17, %v5525_v19  ;;  %v5617_v19 = vld [vmem:[%s14203_s13 + $0x380] sm:$0xff] }
 0x4c4   : > { %6454 = vmatprep.subr.bf16.mxu1 %v9477_v0  ;;  %v9439_v0 = vcombine.high %v5537_v36, %v5541_v37 }
 0x4c7   : > { %6455 = vmatpush1.bf16.msra.mxu1 %v9476_v26  ;;  %v9431_v26 = vcombine.high %v5529_v43, %v5533_v24 }
 0x4c8   : > { %6456 = vmatprep.subr.bf16.mxu1 %v9485_v34  ;;  %v9447_v34 = vcombine.high %v5545_v1, %v5549_v27 }
 0x4cb   : > { %6457 = vmatpush1.bf16.msra.mxu1 %v9484_v29  ;;  %v9438_v29 = vcombine.low %v5537_v36, %v5541_v37  ;;  %v5625_v37 = vld [vmem:[%s14203_s13 + $0x3c0] sm:$0xff] }
 0x4cc   : > { %6458 = vmatprep.subr.bf16.mxu1 %v9493_v35  ;;  %v9455_v35 = vcombine.high %v5553_v28, %v5557_v32 }
 0x4cf   : > { %6459 = vmatpush1.bf16.msra.mxu1 %v9492_v33  ;;  %v9446_v33 = vcombine.low %v5545_v1, %v5549_v27  ;;  %v5628_v1 = vld [vmem:[%s14203_s13 + $0x3d8] sm:$0xff] }
 0x4d0   : > { %6460 = vmatprep.subr.bf16.mxu1 %v9501_v50  ;;  %v9463_v50 = vcombine.high %v5561_v41, %v5565_v45  ;;  %v5632_v27 = vld [vmem:[%s14203_s13 + $0x3f8] sm:$0xff] }
 0x4d3   : > { %6461 = vmatpush1.bf16.msra.mxu1 %v9500_v49  ;;  %v9454_v49 = vcombine.low %v5553_v28, %v5557_v32  ;;  %v9532_v28 = vcombine.low %v5628_v1, %v5632_v27  ;;  %v5506_v32 = vld [vmem:[%s14203_s13 + $0x8] sm:$0xff] }
 0x4d4   : > { %6462 = vmatprep.subr.bf16.mxu1 %v9509_v55  ;;  %v9471_v55 = vcombine.high %v5569_v52, %v5573_v53 }
 0x4d7   : > { %6463 = vmatpush1.bf16.msra.mxu1 %v9508_v54  ;;  %v9462_v54 = vcombine.low %v5561_v41, %v5565_v45  ;;  %v5288_v45 = vld [vmem:[%s14202_s12] sm:$0x3] }
 0x4d8   : > { %6464 = vmatprep.subr.bf16.mxu1 %v9517_v59  ;;  %v9479_v59 = vcombine.high %v5577_v51, %v5581_v57 }
 0x4db   : > { %6465 = vmatpush1.bf16.msra.mxu1 %v9516_v58  ;;  %v9470_v58 = vcombine.low %v5569_v52, %v5573_v53 }
 0x579   : > { %v5245_v63 = vpop.f32.mrb[12].mxu1 }
 0x57a   : > { %v9844_v3 = vadd.f32 %v5245_v63, %v4441_v61  ;;  %v5247_v4 = vpop.f32.mrb[13].mxu1  ;;  %v5589_v61 = vld [vmem:[%s14203_s13 + $0x2a0] sm:$0xff] }
 0x57b   : > { %v9845_v5 = vadd.f32 %v5247_v4, %v4445_v62  ;;  %v5249_v40 = vpop.f32.mrb[14].mxu1  ;;  %v9478_v62 = vcombine.low %v5577_v51, %v5581_v57  ;;  %v9487_v63 = vcombine.high %v5585_v60, %v5589_v61  ;;  %v5597_v4 = vld [vmem:[%s14203_s13 + $0x2e0] sm:$0xff] }
 0x57c   : > { %v5252_v42 = vmax.f32 %v9844_v3, 0.0  ;;  %v5250_v8 = vpop.f32.mrb[15].mxu1  ;;  %v5593_v3 = vld [vmem:[%s14203_s13 + $0x2c0] sm:$0xff] }
 0x57d   : > { %v5253_v9 = vmax.f32 %v9845_v5, 0.0  ;;  %v9486_v5 = vcombine.low %v5585_v60, %v5589_v61  ;;  %v9495_v40 = vcombine.high %v5593_v3, %v5597_v4  ;;  %v5605_v8 = vld [vmem:[%s14203_s13 + $0x320] sm:$0xff]  ;;  %v5514_v60 = vld [vmem:[%s14203_s13 + $0x48] sm:$0xff] }
 0x57e   : > { %v5254_v13 = vpack.c.bf16 %v5252_v42, %v5252_v42  ;;  %v5601_v42 = vld [vmem:[%s14203_s13 + $0x300] sm:$0xff]  ;;  %v5518_v61 = vld [vmem:[%s14203_s13 + $0x68] sm:$0xff] }
 0x57f   : > { %v5255_v12 = vpack.c.bf16 %v5253_v9, %v5253_v9  ;;  %v9494_v9 = vcombine.low %v5593_v3, %v5597_v4  ;;  %v9503_v10 = vcombine.high %v5601_v42, %v5605_v8  ;;  %v9417_v3 = vcombine.high %v5514_v60, %v5518_v61  ;;  %v5522_v4 = vld [vmem:[%s14203_s13 + $0x88] sm:$0xff] }
 0x581   : > { %5492 = vmatprep.mubr.bf16.mxu0 %v5255_v12  ;;  %v5613_v12 = vld [vmem:[%s14203_s13 + $0x360] sm:$0xff] }
 0x582   : > { %5493 = vmatmul.mubr.bf16.vlgmr.msra.gmra.mrb[12].mxu0 %v5254_v13  ;;  %v9502_v13 = vcombine.low %v5601_v42, %v5605_v8  ;;  %v9510_v17 = vcombine.low %v5609_v11, %v5613_v12  ;;  %v5530_v8 = vld [vmem:[%s14203_s13 + $0xc8] sm:$0xff] }
 0x583   : > { %6316 = vmatpush1.bf16.msra.mxu0 %v9406_v14  ;;  %v9430_v14 = vcombine.low %v5529_v43, %v5533_v24  ;;  %v5620_v43 = vld [vmem:[%s14203_s13 + $0x398] sm:$0xff] }
 0x584   : > { %6317 = vmatprep.subr.bf16.mxu0 %v9415_v15  ;;  %v9511_v15 = vcombine.high %v5609_v11, %v5613_v12  ;;  %v5624_v24 = vld [vmem:[%s14203_s13 + $0x3b8] sm:$0xff]  ;;  %v5538_v12 = vld [vmem:[%s14203_s13 + $0x108] sm:$0xff] }
 0x585   : > { %v9524_v36 = vcombine.low %v5620_v43, %v5624_v24 }
 0x587   : > { %6318 = vmatpush1.bf16.msra.mxu0 %v9414_v20  ;;  %v5621_v20 = vld [vmem:[%s14203_s13 + $0x3a0] sm:$0xff] }
 0x588   : > { %6319 = vmatprep.subr.bf16.mxu0 %v9423_v23  ;;  %v9519_v23 = vcombine.high %v5617_v19, %v5621_v20 }
 0x58b   : > { %6320 = vmatpush1.bf16.msra.mxu0 %v9422_v25  ;;  %v9518_v25 = vcombine.low %v5617_v19, %v5621_v20  ;;  %v5546_v19 = vld [vmem:[%s14203_s13 + $0x148] sm:$0xff] }
 0x58c   : > { %6321 = vmatprep.subr.bf16.mxu0 %v9431_v26  ;;  %v9525_v26 = vcombine.high %v5620_v43, %v5624_v24  ;;  %v5550_v20 = vld [vmem:[%s14203_s13 + $0x168] sm:$0xff] }
 0x58d   : > { %v9449_v43 = vcombine.high %v5546_v19, %v5550_v20  ;;  %v5554_v24 = vld [vmem:[%s14203_s13 + $0x188] sm:$0xff] }
 0x58e   : > { %6466 = vmatprep.subr.bf16.mxu1 %v9525_v26  ;;  %v9448_v26 = vcombine.low %v5546_v19, %v5550_v20 }
 0x58f   : > { %6322 = vmatpush1.bf16.msra.mxu0 %v9430_v14  ;;  %v5629_v14 = vld [vmem:[%s14203_s13 + $0x3e0] sm:$0xff]  ;;  %6467 = vmatpush1.bf16.msra.mxu1 %v9524_v36 }
 0x590   : > { %6323 = vmatprep.subr.bf16.mxu0 %v9439_v0  ;;  %v9527_v0 = vcombine.high %v5625_v37, %v5629_v14 }
 0x593   : > { %6324 = vmatpush1.bf16.msra.mxu0 %v9438_v29  ;;  %v9526_v29 = vcombine.low %v5625_v37, %v5629_v14  ;;  %v5562_v37 = vld [vmem:[%s14203_s13 + $0x1c8] sm:$0xff] }
 0x594   : > { %6325 = vmatprep.subr.bf16.mxu0 %v9447_v34  ;;  %v9533_v34 = vcombine.high %v5628_v1, %v5632_v27  ;;  %v5566_v14 = vld [vmem:[%s14203_s13 + $0x1e8] sm:$0xff] }
 0x595   : > { %v9465_v1 = vcombine.high %v5562_v37, %v5566_v14  ;;  %v5570_v27 = vld [vmem:[%s14203_s13 + $0x208] sm:$0xff] }
 0x596   : > { %6468 = vmatprep.subr.bf16.mxu1 %v9533_v34  ;;  %v9464_v34 = vcombine.low %v5562_v37, %v5566_v14 }
 0x597   : > { %6326 = vmatpush1.bf16.msra.mxu0 %v9446_v33  ;;  %v5510_v33 = vld [vmem:[%s14203_s13 + $0x28] sm:$0xff]  ;;  %6469 = vmatpush1.bf16.msra.mxu1 %v9532_v28 }
 0x598   : > { %6327 = vmatprep.subr.bf16.mxu0 %v9455_v35  ;;  %v9409_v35 = vcombine.high %v5506_v32, %v5510_v33  ;;  %v9408_v41 = vcombine.low %v5506_v32, %v5510_v33  ;;  %v5578_v32 = vld [vmem:[%s14203_s13 + $0x248] sm:$0xff] }
 0x599   : > { %v5582_v33 = vld [vmem:[%s14203_s13 + $0x268] sm:$0xff] }
 0x59b   : > { %6328 = vmatpush1.bf16.msra.mxu0 %v9454_v49  ;;  %v5293_v49 = vrot.slane %v5288_v45, %v11093_v44 }
 0x59c   : > { %6329 = vmatprep.subr.bf16.mxu0 %v9463_v50  ;;  %v5297_v50 = vrot.slane %v5288_v45, %v11099_v46  ;;  %v5586_v45 = vld [vmem:[%s14203_s13 + $0x288] sm:$0xff] }
 0x59f   : > { %6330 = vmatpush1.bf16.msra.mxu0 %v9462_v54 }
 0x5a0   : > { %6331 = vmatprep.subr.bf16.mxu0 %v9471_v55 }
 0x5a3   : > { %6332 = vmatpush1.bf16.msra.mxu0 %v9470_v58 }
 0x5a4   : > { %6333 = vmatprep.subr.bf16.mxu0 %v9479_v59 }
 0x5a7   : > { %6334 = vmatpush1.bf16.msra.mxu0 %v9478_v62 }
 0x5a8   : > { %6335 = vmatprep.subr.bf16.mxu0 %v9487_v63 }
 0x5ab   : > { %6336 = vmatpush1.bf16.msra.mxu0 %v9486_v5  ;;  %v5526_v5 = vld [vmem:[%s14203_s13 + $0xa8] sm:$0xff] }
 0x5ac   : > { %6337 = vmatprep.subr.bf16.mxu0 %v9495_v40  ;;  %v9416_v40 = vcombine.low %v5514_v60, %v5518_v61  ;;  %v9425_v42 = vcombine.high %v5522_v4, %v5526_v5  ;;  %v5610_v61 = vld [vmem:[%s14203_s13 + $0x348] sm:$0xff] }
 0x5af   : > { %6338 = vmatpush1.bf16.msra.mxu0 %v9494_v9  ;;  %v5534_v9 = vld [vmem:[%s14203_s13 + $0xe8] sm:$0xff] }
 0x5b0   : > { %6339 = vmatprep.subr.bf16.mxu0 %v9503_v10  ;;  %v9424_v10 = vcombine.low %v5522_v4, %v5526_v5  ;;  %v9433_v11 = vcombine.high %v5530_v8, %v5534_v9 }
 0x5b3   : > { %6340 = vmatpush1.bf16.msra.mxu0 %v9502_v13  ;;  %v5542_v13 = vld [vmem:[%s14203_s13 + $0x128] sm:$0xff] }
 0x5b4   : > { %6341 = vmatprep.subr.bf16.mxu0 %v9511_v15  ;;  %v9432_v15 = vcombine.low %v5530_v8, %v5534_v9 }
 0x5b7   : > { %6342 = vmatpush1.bf16.msra.mxu0 %v9510_v17  ;;  %v9441_v17 = vcombine.high %v5538_v12, %v5542_v13 }
 0x5b8   : > { %6343 = vmatprep.subr.bf16.mxu0 %v9519_v23  ;;  %v9440_v23 = vcombine.low %v5538_v12, %v5542_v13 }
 0x5bb   : > { %6344 = vmatpush1.bf16.msra.mxu0 %v9518_v25  ;;  %v5558_v25 = vld [vmem:[%s14203_s13 + $0x1a8] sm:$0xff] }
 0x5bc   : > { %6345 = vmatprep.subr.bf16.mxu0 %v9527_v0  ;;  %v9457_v36 = vcombine.high %v5554_v24, %v5558_v25  ;;  %v9456_v0 = vcombine.low %v5554_v24, %v5558_v25 }
 0x5bf   : > { %6346 = vmatpush1.bf16.msra.mxu0 %v9526_v29  ;;  %v5574_v29 = vld [vmem:[%s14203_s13 + $0x228] sm:$0xff] }
 0x5c0   : > { %6356 = vmatprep.subr.bf16.mxu0 %v9409_v35  ;;  %v9473_v28 = vcombine.high %v5570_v27, %v5574_v29  ;;  %v9472_v35 = vcombine.low %v5570_v27, %v5574_v29 }
 0x655   : > { %v5494_v52 = vpop.f32.mrb[12].mxu0 }
 0x656   : > { %v5495_v53 = vadd.f32 %v5494_v52, %v5293_v49  ;;  %v5496_v54 = vpop.f32.mrb[13].mxu0  ;;  %v5590_v49 = vld [vmem:[%s14203_s13 + $0x2a8] sm:$0xff] }
 0x657   : > { %v5497_v55 = vadd.f32 %v5496_v54, %v5297_v50  ;;  %v5498_v51 = vpop.f32.mrb[14].mxu0  ;;  %v9480_v50 = vcombine.low %v5578_v32, %v5582_v33  ;;  %v9489_v52 = vcombine.high %v5586_v45, %v5590_v49  ;;  %v5598_v54 = vld [vmem:[%s14203_s13 + $0x2e8] sm:$0xff] }
 0x658   : > { %v5501_v57 = vmax.f32 %v5495_v53, 0.0  ;;  %v5499_v58 = vpop.f32.mrb[15].mxu0  ;;  %v5594_v53 = vld [vmem:[%s14203_s13 + $0x2c8] sm:$0xff] }
 0x659   : > { %v5502_v59 = vmax.f32 %v5497_v55, 0.0  ;;  %v9488_v55 = vcombine.low %v5586_v45, %v5590_v49  ;;  %v9497_v51 = vcombine.high %v5594_v53, %v5598_v54  ;;  %v5606_v58 = vld [vmem:[%s14203_s13 + $0x328] sm:$0xff]  ;;  %v5555_v49 = vld [vmem:[%s14203_s13 + $0x190] sm:$0xff] }
 0x65a   : > { %v13000_v63 = vpack.c.bf16 %v5501_v57, %v5501_v57  ;;  %v5602_v57 = vld [vmem:[%s14203_s13 + $0x308] sm:$0xff] }
 0x65b   : > { %v12998_v62 = vpack.c.bf16 %v5502_v59, %v5502_v59  ;;  %v9496_v59 = vcombine.low %v5594_v53, %v5598_v54  ;;  %v9505_v60 = vcombine.high %v5602_v57, %v5606_v58  ;;  %v9504_v4 = vcombine.low %v5602_v57, %v5606_v58  ;;  %v5563_v54 = vld [vmem:[%s14203_s13 + $0x1d0] sm:$0xff] }
 0x65c   : > { %v5571_v58 = vld [vmem:[%s14203_s13 + $0x210] sm:$0xff] }
 0x65d   : > { %6347 = vmatprep.mubr.bf16.mxu0 %v12998_v62  ;;  %6470 = vmatprep.mubr.bf16.mxu1 %v12998_v62 }
 0x65e   : > { %6348 = vmatmul.mubr.bf16.vlgmr.msra.gmra.mrb[16].mxu0 %v13000_v63  ;;  %6471 = vmatmul.mubr.bf16.vlgmr.msra.gmra.mrb[16].mxu1 %v13000_v63 }
 0x65f   : > { %6357 = vmatpush1.bf16.msra.mxu0 %v9408_v41  ;;  %6388 = vmatprep.mubr.bf16.mxu0 %v12998_v62  ;;  %v9481_v41 = vcombine.high %v5578_v32, %v5582_v33  ;;  %v5547_v33 = vld [vmem:[%s14203_s13 + $0x150] sm:$0xff] }
 0x660   : > { %6358 = vmatprep.subr.bf16.mxu0 %v9417_v3  ;;  %v5614_v3 = vld [vmem:[%s14203_s13 + $0x368] sm:$0xff] }
 0x661   : > { %v9513_v5 = vcombine.high %v5610_v61, %v5614_v3  ;;  %v9512_v8 = vcombine.low %v5610_v61, %v5614_v3  ;;  %v5579_v3 = vld [vmem:[%s14203_s13 + $0x250] sm:$0xff] }
 0x663   : > { %6359 = vmatpush1.bf16.msra.mxu0 %v9416_v40  ;;  %v5618_v40 = vld [vmem:[%s14203_s13 + $0x388] sm:$0xff] }
 0x664   : > { %6360 = vmatprep.subr.bf16.mxu0 %v9425_v42  ;;  %v5622_v42 = vld [vmem:[%s14203_s13 + $0x3a8] sm:$0xff] }
 0x665   : > { %v9521_v9 = vcombine.high %v5618_v40, %v5622_v42  ;;  %v9520_v12 = vcombine.low %v5618_v40, %v5622_v42  ;;  %v5587_v42 = vld [vmem:[%s14203_s13 + $0x290] sm:$0xff] }
 0x667   : > { %6361 = vmatpush1.bf16.msra.mxu0 %v9424_v10  ;;  %v5626_v10 = vld [vmem:[%s14203_s13 + $0x3c8] sm:$0xff] }
 0x668   : > { %6362 = vmatprep.subr.bf16.mxu0 %v9433_v11  ;;  %v5630_v11 = vld [vmem:[%s14203_s13 + $0x3e8] sm:$0xff] }
 0x669   : > { %v9529_v13 = vcombine.high %v5626_v10, %v5630_v11  ;;  %v9528_v19 = vcombine.low %v5626_v10, %v5630_v11  ;;  %v5595_v11 = vld [vmem:[%s14203_s13 + $0x2d0] sm:$0xff] }
 0x66b   : > { %6363 = vmatpush1.bf16.msra.mxu0 %v9432_v15  ;;  %v5507_v15 = vld [vmem:[%s14203_s13 + $0x10] sm:$0xff] }
 0x66c   : > { %6364 = vmatprep.subr.bf16.mxu0 %v9441_v17  ;;  %v5511_v17 = vld [vmem:[%s14203_s13 + $0x30] sm:$0xff] }
 0x66d   : > { %v9411_v20 = vcombine.high %v5507_v15, %v5511_v17  ;;  %v9410_v24 = vcombine.low %v5507_v15, %v5511_v17  ;;  %v5603_v17 = vld [vmem:[%s14203_s13 + $0x310] sm:$0xff] }
 0x66f   : > { %6365 = vmatpush1.bf16.msra.mxu0 %v9440_v23  ;;  %v5515_v23 = vld [vmem:[%s14203_s13 + $0x50] sm:$0xff] }
 0x670   : > { %6366 = vmatprep.subr.bf16.mxu0 %v9449_v43  ;;  %v5519_v43 = vld [vmem:[%s14203_s13 + $0x70] sm:$0xff] }
 0x671   : > { %v9419_v25 = vcombine.high %v5515_v23, %v5519_v43  ;;  %v9418_v37 = vcombine.low %v5515_v23, %v5519_v43  ;;  %v5611_v43 = vld [vmem:[%s14203_s13 + $0x350] sm:$0xff] }
 0x673   : > { %6367 = vmatpush1.bf16.msra.mxu0 %v9448_v26  ;;  %v5523_v26 = vld [vmem:[%s14203_s13 + $0x90] sm:$0xff] }
 0x674   : > { %6368 = vmatprep.subr.bf16.mxu0 %v9457_v36  ;;  %v5527_v36 = vld [vmem:[%s14203_s13 + $0xb0] sm:$0xff] }
 0x675   : > { %v9427_v14 = vcombine.high %v5523_v26, %v5527_v36  ;;  %v9426_v27 = vcombine.low %v5523_v26, %v5527_v36  ;;  %v5619_v36 = vld [vmem:[%s14203_s13 + $0x390] sm:$0xff] }
 0x677   : > { %6369 = vmatpush1.bf16.msra.mxu0 %v9456_v0  ;;  %v5531_v0 = vld [vmem:[%s14203_s13 + $0xd0] sm:$0xff] }
 0x678   : > { %6370 = vmatprep.subr.bf16.mxu0 %v9465_v1  ;;  %v5535_v1 = vld [vmem:[%s14203_s13 + $0xf0] sm:$0xff] }
 0x679   : > { %v9435_v29 = vcombine.high %v5531_v0, %v5535_v1 }
 0x67b   : > { %6371 = vmatpush1.bf16.msra.mxu0 %v9464_v34  ;;  %v5539_v34 = vld [vmem:[%s14203_s13 + $0x110] sm:$0xff] }
 0x67c   : > { %6372 = vmatprep.subr.bf16.mxu0 %v9473_v28  ;;  %v9434_v28 = vcombine.low %v5531_v0, %v5535_v1  ;;  %v5627_v1 = vld [vmem:[%s14203_s13 + $0x3d0] sm:$0xff] }
 0x67f   : > { %6373 = vmatpush1.bf16.msra.mxu0 %v9472_v35  ;;  %v5551_v35 = vld [vmem:[%s14203_s13 + $0x170] sm:$0xff] }
 0x680   : > { %6374 = vmatprep.subr.bf16.mxu0 %v9481_v41  ;;  %v9451_v45 = vcombine.high %v5547_v33, %v5551_v35 }
 0x683   : > { %6375 = vmatpush1.bf16.msra.mxu0 %v9480_v50  ;;  %v5559_v50 = vld [vmem:[%s14203_s13 + $0x1b0] sm:$0xff] }
 0x684   : > { %6376 = vmatprep.subr.bf16.mxu0 %v9489_v52  ;;  %v9450_v52 = vcombine.low %v5547_v33, %v5551_v35  ;;  %v9459_v53 = vcombine.high %v5555_v49, %v5559_v50  ;;  %v10309_v33 = vld [vmem:[%s14205_s15 + $0x14] ss:$8 sps:$4 sm:$0xff]   ;;  %v10307_v35 = vld [vmem:[%s14205_s15 + $0x10] ss:$8 sps:$4 sm:$0xff]  }
 0x687   : > { %6377 = vmatpush1.bf16.msra.mxu0 %v9488_v55  ;;  %v5567_v55 = vld [vmem:[%s14203_s13 + $0x1f0] sm:$0xff] }
 0x688   : > { %6378 = vmatprep.subr.bf16.mxu0 %v9497_v51  ;;  %v9458_v51 = vcombine.low %v5555_v49, %v5559_v50  ;;  %v9467_v57 = vcombine.high %v5563_v54, %v5567_v55  ;;  %v10313_v49 = vld [vmem:[%s14205_s15 + $0x30] ss:$8 sps:$4 sm:$0xff]   ;;  %v10318_v50 = vld [vmem:[%s14205_s15 + $0x44] ss:$8 sps:$4 sm:$0xff]  }
 0x68b   : > { %6379 = vmatpush1.bf16.msra.mxu0 %v9496_v59  ;;  %v5575_v59 = vld [vmem:[%s14203_s13 + $0x230] sm:$0xff] }
 0x68c   : > { %6380 = vmatprep.subr.bf16.mxu0 %v9505_v60  ;;  %v9466_v60 = vcombine.low %v5563_v54, %v5567_v55  ;;  %v9475_v61 = vcombine.high %v5571_v58, %v5575_v59  ;;  %v10319_v54 = vld [vmem:[%s14205_s15 + $0x50] ss:$8 sps:$4 sm:$0xff]   ;;  %v10324_v55 = vld [vmem:[%s14205_s15 + $0x64] ss:$8 sps:$4 sm:$0xff]  }
 0x68f   : > { %6381 = vmatpush1.bf16.msra.mxu0 %v9504_v4  ;;  %v5583_v4 = vld [vmem:[%s14203_s13 + $0x270] sm:$0xff] }
 0x690   : > { %6382 = vmatprep.subr.bf16.mxu0 %v9513_v5  ;;  %v9474_v5 = vcombine.low %v5571_v58, %v5575_v59  ;;  %v9483_v40 = vcombine.high %v5579_v3, %v5583_v4  ;;  %v10325_v58 = vld [vmem:[%s14205_s15 + $0x70] ss:$8 sps:$4 sm:$0xff]   ;;  %v10330_v59 = vld [vmem:[%s14205_s15 + $0x84] ss:$8 sps:$4 sm:$0xff]  }
 0x693   : > { %6383 = vmatpush1.bf16.msra.mxu0 %v9512_v8  ;;  %v5591_v8 = vld [vmem:[%s14203_s13 + $0x2b0] sm:$0xff] }
 0x694   : > { %6384 = vmatprep.subr.bf16.mxu0 %v9521_v9  ;;  %v9482_v9 = vcombine.low %v5579_v3, %v5583_v4  ;;  %v9491_v10 = vcombine.high %v5587_v42, %v5591_v8  ;;  %v10331_v3 = vld [vmem:[%s14205_s15 + $0x90] ss:$8 sps:$4 sm:$0xff]   ;;  %v10336_v4 = vld [vmem:[%s14205_s15 + $0xa4] ss:$8 sps:$4 sm:$0xff]  }
 0x697   : > { %6385 = vmatpush1.bf16.msra.mxu0 %v9520_v12  ;;  %v5599_v12 = vld [vmem:[%s14203_s13 + $0x2f0] sm:$0xff] }
 0x698   : > { %6386 = vmatprep.subr.bf16.mxu0 %v9529_v13  ;;  %v9490_v13 = vcombine.low %v5587_v42, %v5591_v8  ;;  %v9499_v15 = vcombine.high %v5595_v11, %v5599_v12  ;;  %v10337_v42 = vld [vmem:[%s14205_s15 + $0xb0] ss:$8 sps:$4 sm:$0xff]   ;;  %v10342_v8 = vld [vmem:[%s14205_s15 + $0xc4] ss:$8 sps:$4 sm:$0xff]  }
 0x69b   : > { %6387 = vmatpush1.bf16.msra.mxu0 %v9528_v19  ;;  %v5607_v19 = vld [vmem:[%s14203_s13 + $0x330] sm:$0xff] }
 0x69c   : > { %6397 = vmatprep.subr.bf16.mxu0 %v9411_v20  ;;  %v9498_v20 = vcombine.low %v5595_v11, %v5599_v12  ;;  %v9507_v23 = vcombine.high %v5603_v17, %v5607_v19  ;;  %v10343_v11 = vld [vmem:[%s14205_s15 + $0xd0] ss:$8 sps:$4 sm:$0xff]   ;;  %v10348_v12 = vld [vmem:[%s14205_s15 + $0xe4] ss:$8 sps:$4 sm:$0xff]  }
 0x69e   : > { %6389 = vmatmul.mubr.bf16.vlgmr.msra.gmra.mrb[20].mxu0 %v13000_v63 }
 0x69f   : > { %6398 = vmatpush1.bf16.msra.mxu0 %v9410_v24  ;;  %6429 = vmatprep.mubr.bf16.mxu0 %v12998_v62  ;;  %v5543_v62 = vld [vmem:[%s14203_s13 + $0x130] sm:$0xff] }
 0x6a0   : > { %6399 = vmatprep.subr.bf16.mxu0 %v9419_v25  ;;  %v9443_v32 = vcombine.high %v5539_v34, %v5543_v62  ;;  %v9442_v41 = vcombine.low %v5539_v34, %v5543_v62  ;;  %v5615_v24 = vld [vmem:[%s14203_s13 + $0x370] sm:$0xff]  ;;  %v9506_v25 = vcombine.low %v5603_v17, %v5607_v19  ;;  %v10354_v19 = vld [vmem:[%s14205_s15 + $0x104] ss:$8 sps:$4 sm:$0xff]  }
 0x6a1   : > { %v9515_v26 = vcombine.high %v5611_v43, %v5615_v24  ;;  %v10349_v17 = vld [vmem:[%s14205_s15 + $0xf0] ss:$8 sps:$4 sm:$0xff]  }
 0x6a3   : > { %6400 = vmatpush1.bf16.msra.mxu0 %v9418_v37  ;;  %v5623_v37 = vld [vmem:[%s14203_s13 + $0x3b0] sm:$0xff] }
 0x6a4   : > { %6401 = vmatprep.subr.bf16.mxu0 %v9427_v14  ;;  %v9514_v14 = vcombine.low %v5611_v43, %v5615_v24  ;;  %v9523_v0 = vcombine.high %v5619_v36, %v5623_v37 }
 0x6a7   : > { %6402 = vmatpush1.bf16.msra.mxu0 %v9426_v27  ;;  %v5631_v27 = vld [vmem:[%s14203_s13 + $0x3f0] sm:$0xff] }
 0x6a8   : > { %6403 = vmatprep.subr.bf16.mxu0 %v9435_v29  ;;  %v9522_v29 = vcombine.low %v5619_v36, %v5623_v37  ;;  %v9531_v34 = vcombine.high %v5627_v1, %v5631_v27  ;;  %v9530_v62 = vcombine.low %v5627_v1, %v5631_v27 }
 0x6ab   : > { %6404 = vmatpush1.bf16.msra.mxu0 %v9434_v28  ;;  %v10306_v28 = vld [vmem:[%s14205_s15 + $0x4] ss:$8 sps:$4 sm:$0xff]  }
 0x6ac   : > { %6405 = vmatprep.subr.bf16.mxu0 %v9443_v32  ;;  %v10304_v32 = vld [vmem:[%s14205_s15] ss:$8 sps:$4 sm:$0xff]  }
 0x6af   : > { %6406 = vmatpush1.bf16.msra.mxu0 %v9442_v41  ;;  %v10312_v41 = vld [vmem:[%s14205_s15 + $0x24] ss:$8 sps:$4 sm:$0xff]  }
 0x6b0   : > { %6407 = vmatprep.subr.bf16.mxu0 %v9451_v45  ;;  %v10310_v45 = vld [vmem:[%s14205_s15 + $0x20] ss:$8 sps:$4 sm:$0xff]  }
 0x6b3   : > { %6408 = vmatpush1.bf16.msra.mxu0 %v9450_v52  ;;  %v10316_v52 = vld [vmem:[%s14205_s15 + $0x40] ss:$8 sps:$4 sm:$0xff]  }
 0x6b4   : > { %6409 = vmatprep.subr.bf16.mxu0 %v9459_v53  ;;  %v10321_v53 = vld [vmem:[%s14205_s15 + $0x54] ss:$8 sps:$4 sm:$0xff]  }
 0x6b7   : > { %6410 = vmatpush1.bf16.msra.mxu0 %v9458_v51  ;;  %v10322_v51 = vld [vmem:[%s14205_s15 + $0x60] ss:$8 sps:$4 sm:$0xff]  }
 0x6b8   : > { %6411 = vmatprep.subr.bf16.mxu0 %v9467_v57  ;;  %v10327_v57 = vld [vmem:[%s14205_s15 + $0x74] ss:$8 sps:$4 sm:$0xff]  }
 0x6bb   : > { %6412 = vmatpush1.bf16.msra.mxu0 %v9466_v60  ;;  %v10328_v60 = vld [vmem:[%s14205_s15 + $0x80] ss:$8 sps:$4 sm:$0xff]  }
 0x6bc   : > { %6413 = vmatprep.subr.bf16.mxu0 %v9475_v61  ;;  %v10333_v61 = vld [vmem:[%s14205_s15 + $0x94] ss:$8 sps:$4 sm:$0xff]  }
 0x6bf   : > { %6414 = vmatpush1.bf16.msra.mxu0 %v9474_v5  ;;  %v10334_v5 = vld [vmem:[%s14205_s15 + $0xa0] ss:$8 sps:$4 sm:$0xff]  }
 0x6c0   : > { %6415 = vmatprep.subr.bf16.mxu0 %v9483_v40  ;;  %v10339_v40 = vld [vmem:[%s14205_s15 + $0xb4] ss:$8 sps:$4 sm:$0xff]  }
 0x6c3   : > { %6416 = vmatpush1.bf16.msra.mxu0 %v9482_v9  ;;  %v10340_v9 = vld [vmem:[%s14205_s15 + $0xc0] ss:$8 sps:$4 sm:$0xff]  }
 0x6c4   : > { %6417 = vmatprep.subr.bf16.mxu0 %v9491_v10  ;;  %v10345_v10 = vld [vmem:[%s14205_s15 + $0xd4] ss:$8 sps:$4 sm:$0xff]  }
 0x6c7   : > { %6418 = vmatpush1.bf16.msra.mxu0 %v9490_v13  ;;  %v10346_v13 = vld [vmem:[%s14205_s15 + $0xe0] ss:$8 sps:$4 sm:$0xff]  }
 0x6c8   : > { %6419 = vmatprep.subr.bf16.mxu0 %v9499_v15  ;;  %v10351_v15 = vld [vmem:[%s14205_s15 + $0xf4] ss:$8 sps:$4 sm:$0xff]  }
 0x6cb   : > { %6420 = vmatpush1.bf16.msra.mxu0 %v9498_v20  ;;  %v13292_v20 = vld [vmem:[%s14204_s14] sm:$0xff] }
 0x6cc   : > { %6421 = vmatprep.subr.bf16.mxu0 %v9507_v23  ;;  %v5638_v23 = vrot.slane %v13292_v20, %v11093_v44  ;;  %v5642_v43 = vrot.slane %v13292_v20, %v11099_v46 }
 0x6cf   : > { %6422 = vmatpush1.bf16.msra.mxu0 %v9506_v25 }
 0x6d0   : > { %6423 = vmatprep.subr.bf16.mxu0 %v9515_v26 }
 0x6d3   : > { %6424 = vmatpush1.bf16.msra.mxu0 %v9514_v14 }
 0x6d4   : > { %6425 = vmatprep.subr.bf16.mxu0 %v9523_v0 }
 0x6d7   : > { %6426 = vmatpush1.bf16.msra.mxu0 %v9522_v29 }
 0x6d8   : > { %6427 = vmatprep.subr.bf16.mxu0 %v9531_v34 }
 0x6db   : > { %6428 = vmatpush1.bf16.msra.mxu0 %v9530_v62 }
 0x6dc   : > { %7283 = vmatprep.subr.bf16.mxu0 %v10306_v28 }
 0x6de   : > { %6430 = vmatmul.mubr.bf16.vlgmr.msra.gmra.mrb[24].mxu0 %v13000_v63  ;;  %v10315_v63 = vld [vmem:[%s14205_s15 + $0x34] ss:$8 sps:$4 sm:$0xff]  }
 0x6df   : > { %7284 = vmatpush1.bf16.msra.mxu0 %v10304_v32 }
 0x6e0   : > { %7285 = vmatprep.subr.bf16.mxu0 %v10309_v33 }
 0x6e3   : > { %7286 = vmatpush1.bf16.msra.mxu0 %v10307_v35  ;;  %v10352_v35 = vld [vmem:[%s14205_s15 + $0x100] ss:$8 sps:$4 sm:$0xff]  }
 0x6e4   : > { %7287 = vmatprep.subr.bf16.mxu0 %v10312_v41 }
 0x6e7   : > { %7288 = vmatpush1.bf16.msra.mxu0 %v10310_v45  ;;  %v10360_v45 = vld [vmem:[%s14205_s15 + $0x124] ss:$8 sps:$4 sm:$0xff]  }
 0x6e8   : > { %7289 = vmatprep.subr.bf16.mxu0 %v10315_v63  ;;  %v10358_v63 = vld [vmem:[%s14205_s15 + $0x120] ss:$8 sps:$4 sm:$0xff]  }
 0x6eb   : > { %7290 = vmatpush1.bf16.msra.mxu0 %v10313_v49  ;;  %v10363_v49 = vld [vmem:[%s14205_s15 + $0x134] ss:$8 sps:$4 sm:$0xff]  }
 0x6ec   : > { %7291 = vmatprep.subr.bf16.mxu0 %v10318_v50  ;;  %v10361_v50 = vld [vmem:[%s14205_s15 + $0x130] ss:$8 sps:$4 sm:$0xff]  }
 0x6ef   : > { %7292 = vmatpush1.bf16.msra.mxu0 %v10316_v52  ;;  %v10366_v52 = vld [vmem:[%s14205_s15 + $0x144] ss:$8 sps:$4 sm:$0xff]  }
 0x6f0   : > { %7293 = vmatprep.subr.bf16.mxu0 %v10321_v53  ;;  %v10364_v53 = vld [vmem:[%s14205_s15 + $0x140] ss:$8 sps:$4 sm:$0xff]  }
 0x6f3   : > { %7294 = vmatpush1.bf16.msra.mxu0 %v10319_v54  ;;  %v10369_v54 = vld [vmem:[%s14205_s15 + $0x154] ss:$8 sps:$4 sm:$0xff]  }
 0x6f4   : > { %7295 = vmatprep.subr.bf16.mxu0 %v10324_v55  ;;  %v10367_v55 = vld [vmem:[%s14205_s15 + $0x150] ss:$8 sps:$4 sm:$0xff]  }
 0x6f7   : > { %7296 = vmatpush1.bf16.msra.mxu0 %v10322_v51  ;;  %v10372_v51 = vld [vmem:[%s14205_s15 + $0x164] ss:$8 sps:$4 sm:$0xff]  }
 0x6f8   : > { %7297 = vmatprep.subr.bf16.mxu0 %v10327_v57  ;;  %v10370_v57 = vld [vmem:[%s14205_s15 + $0x160] ss:$8 sps:$4 sm:$0xff]  }
 0x6fb   : > { %7298 = vmatpush1.bf16.msra.mxu0 %v10325_v58  ;;  %v10375_v58 = vld [vmem:[%s14205_s15 + $0x174] ss:$8 sps:$4 sm:$0xff]  }
 0x6fc   : > { %7299 = vmatprep.subr.bf16.mxu0 %v10330_v59  ;;  %v10373_v59 = vld [vmem:[%s14205_s15 + $0x170] ss:$8 sps:$4 sm:$0xff]  }
 0x6ff   : > { %7300 = vmatpush1.bf16.msra.mxu0 %v10328_v60  ;;  %v10378_v60 = vld [vmem:[%s14205_s15 + $0x184] ss:$8 sps:$4 sm:$0xff]  }
 0x700   : > { %7301 = vmatprep.subr.bf16.mxu0 %v10333_v61  ;;  %v10376_v61 = vld [vmem:[%s14205_s15 + $0x180] ss:$8 sps:$4 sm:$0xff]  }
 0x703   : > { %7302 = vmatpush1.bf16.msra.mxu0 %v10331_v3  ;;  %v10381_v3 = vld [vmem:[%s14205_s15 + $0x194] ss:$8 sps:$4 sm:$0xff]  }
 0x704   : > { %7303 = vmatprep.subr.bf16.mxu0 %v10336_v4  ;;  %v10379_v4 = vld [vmem:[%s14205_s15 + $0x190] ss:$8 sps:$4 sm:$0xff]  }
 0x707   : > { %7304 = vmatpush1.bf16.msra.mxu0 %v10334_v5  ;;  %v10384_v5 = vld [vmem:[%s14205_s15 + $0x1a4] ss:$8 sps:$4 sm:$0xff]  }
 0x708   : > { %7305 = vmatprep.subr.bf16.mxu0 %v10339_v40  ;;  %v10382_v40 = vld [vmem:[%s14205_s15 + $0x1a0] ss:$8 sps:$4 sm:$0xff]  }
 0x70b   : > { %7306 = vmatpush1.bf16.msra.mxu0 %v10337_v42  ;;  %v10387_v42 = vld [vmem:[%s14205_s15 + $0x1b4] ss:$8 sps:$4 sm:$0xff]  }
 0x70c   : > { %7307 = vmatprep.subr.bf16.mxu0 %v10342_v8  ;;  %v10385_v8 = vld [vmem:[%s14205_s15 + $0x1b0] ss:$8 sps:$4 sm:$0xff]  }
 0x70f   : > { %7308 = vmatpush1.bf16.msra.mxu0 %v10340_v9  ;;  %v10390_v9 = vld [vmem:[%s14205_s15 + $0x1c4] ss:$8 sps:$4 sm:$0xff]  }
 0x710   : > { %7309 = vmatprep.subr.bf16.mxu0 %v10345_v10  ;;  %v10388_v10 = vld [vmem:[%s14205_s15 + $0x1c0] ss:$8 sps:$4 sm:$0xff]  }
 0x713   : > { %7310 = vmatpush1.bf16.msra.mxu0 %v10343_v11  ;;  %v10393_v11 = vld [vmem:[%s14205_s15 + $0x1d4] ss:$8 sps:$4 sm:$0xff]  }
 0x714   : > { %7311 = vmatprep.subr.bf16.mxu0 %v10348_v12  ;;  %v10391_v12 = vld [vmem:[%s14205_s15 + $0x1d0] ss:$8 sps:$4 sm:$0xff]  }
 0x717   : > { %7312 = vmatpush1.bf16.msra.mxu0 %v10346_v13  ;;  %v5646_v13 = vrot.slane %v13292_v20, %v12403_v56 }
 0x718   : > { %7313 = vmatprep.subr.bf16.mxu0 %v10351_v15  ;;  %v10396_v15 = vld [vmem:[%s14205_s15 + $0x1e4] ss:$8 sps:$4 sm:$0xff]  }
 0x71b   : > { %7314 = vmatpush1.bf16.msra.mxu0 %v10349_v17  ;;  %v5650_v17 = vrot.slane %v13292_v20, %v12305_v2 }
 0x71c   : > { %7324 = vmatprep.subr.bf16.mxu0 %v10354_v19 }
 0x731   : > { %v6349_v24 = vpop.f32.mrb[16].mxu0  ;;  %v13298_v25 = vpop.f32.mrb[16].mxu1 }
 0x732   : > { %v6350_v26 = vadd.f32 %v6349_v24, %v5638_v23  ;;  %v6351_v36 = vpop.f32.mrb[17].mxu0  ;;  %v13300_v37 = vpop.f32.mrb[17].mxu1  ;;  %v10394_v23 = vld [vmem:[%s14205_s15 + $0x1e0] ss:$8 sps:$4 sm:$0xff]  }
 0x733   : > { %v6352_v14 = vadd.f32 %v6351_v36, %v5642_v43  ;;  %v6353_v0 = vpop.f32.mrb[18].mxu0  ;;  %v6476_v1 = vpop.f32.mrb[18].mxu1 }
 0x734   : > { %v6479_v27 = vadd.f32 %v6350_v26, %v12321_v18  ;;  %v6354_v29 = vpop.f32.mrb[19].mxu0  ;;  %v6477_v34 = vpop.f32.mrb[19].mxu1  ;;  %v10357_v18 = vld [vmem:[%s14205_s15 + $0x114] ss:$8 sps:$4 sm:$0xff]  }
 0x735   : > { %v6480_v62 = vadd.f32 %v6352_v14, %v12323_v21  ;;  %v10355_v21 = vld [vmem:[%s14205_s15 + $0x110] ss:$8 sps:$4 sm:$0xff]   ;;  %v10399_v26 = vld [vmem:[%s14205_s15 + $0x1f4] ss:$8 sps:$4 sm:$0xff]  }
 0x736   : > { %v13304_v28 = vmax.f32 %v6479_v27, 0.0  ;;  %v10397_v29 = vld [vmem:[%s14205_s15 + $0x1f0] ss:$8 sps:$4 sm:$0xff]  }
 0x737   : > { %v13306_v32 = vmax.f32 %v6480_v62, 0.0  ;;  %v10402_v62 = vld [vmem:[%s14205_s15 + $0x204] ss:$8 sps:$4 sm:$0xff]  }
 0x738   : > { %v6495_v41 = vpack.c.bf16 %v13304_v28, %v13304_v28 }
 0x739   : > { %v6496_v33 = vpack.c.bf16 %v13306_v32, %v13306_v32 }
 0x73b   : > { %7315 = vmatprep.mubr.bf16.mxu0 %v6496_v33 }
 0x73c   : > { %7316 = vmatmul.mubr.bf16.vlgmr.msra.gmra.mrb[28].mxu0 %v6495_v41  ;;  %v10405_v41 = vld [vmem:[%s14205_s15 + $0x214] ss:$8 sps:$4 sm:$0xff]  }
 0x73d   : > { %7325 = vmatpush1.bf16.msra.mxu0 %v10352_v35 }
 0x73e   : > { %7326 = vmatprep.subr.bf16.mxu0 %v10357_v18  ;;  %v10496_v18 = vld [vmem:[%s14207_s17] ss:$8 sps:$4 sm:$0xff]  }
 0x741   : > { %7327 = vmatpush1.bf16.msra.mxu0 %v10355_v21  ;;  %v10498_v21 = vld [vmem:[%s14207_s17 + $0x4] ss:$8 sps:$4 sm:$0xff]  }
 0x742   : > { %7328 = vmatprep.subr.bf16.mxu0 %v10360_v45  ;;  %v10403_v45 = vld [vmem:[%s14205_s15 + $0x210] ss:$8 sps:$4 sm:$0xff]   ;;  %7655 = vmatprep.subr.bf16.mxu1 %v10498_v21  ;;  %v10534_v21 = vld [vmem:[%s14207_s17 + $0xc4] ss:$8 sps:$4 sm:$0xff]  }
 0x743   : > { %7656 = vmatpush1.bf16.msra.mxu1 %v10496_v18  ;;  %v10529_v18 = vld [vmem:[%s14207_s17 + $0xb0] ss:$8 sps:$4 sm:$0xff]  }
 0x745   : > { %7329 = vmatpush1.bf16.msra.mxu0 %v10358_v63  ;;  %v10501_v63 = vld [vmem:[%s14207_s17 + $0x14] ss:$8 sps:$4 sm:$0xff]  }
 0x746   : > { %7330 = vmatprep.subr.bf16.mxu0 %v10363_v49  ;;  %v10408_v49 = vld [vmem:[%s14205_s15 + $0x224] ss:$8 sps:$4 sm:$0xff]   ;;  %7657 = vmatprep.subr.bf16.mxu1 %v10501_v63  ;;  %v10441_v63 = vld [vmem:[%s14205_s15 + $0x2d4] ss:$8 sps:$4 sm:$0xff]  }
 0x749   : > { %7331 = vmatpush1.bf16.msra.mxu0 %v10361_v50  ;;  %v10499_v50 = vld [vmem:[%s14207_s17 + $0x10] ss:$8 sps:$4 sm:$0xff]  }
 0x74a   : > { %7332 = vmatprep.subr.bf16.mxu0 %v10366_v52  ;;  %v10504_v52 = vld [vmem:[%s14207_s17 + $0x24] ss:$8 sps:$4 sm:$0xff]   ;;  %7658 = vmatpush1.bf16.msra.mxu1 %v10499_v50  ;;  %v10532_v50 = vld [vmem:[%s14207_s17 + $0xc0] ss:$8 sps:$4 sm:$0xff]  }
 0x74b   : > { %7659 = vmatprep.subr.bf16.mxu1 %v10504_v52  ;;  %v10537_v52 = vld [vmem:[%s14207_s17 + $0xd4] ss:$8 sps:$4 sm:$0xff]  }
 0x74d   : > { %7333 = vmatpush1.bf16.msra.mxu0 %v10364_v53  ;;  %v10406_v53 = vld [vmem:[%s14205_s15 + $0x220] ss:$8 sps:$4 sm:$0xff]  }
 0x74e   : > { %7334 = vmatprep.subr.bf16.mxu0 %v10369_v54  ;;  %v10411_v54 = vld [vmem:[%s14205_s15 + $0x234] ss:$8 sps:$4 sm:$0xff]  }
 0x751   : > { %7335 = vmatpush1.bf16.msra.mxu0 %v10367_v55  ;;  %v10502_v55 = vld [vmem:[%s14207_s17 + $0x20] ss:$8 sps:$4 sm:$0xff]  }
 0x752   : > { %7336 = vmatprep.subr.bf16.mxu0 %v10372_v51  ;;  %v10507_v51 = vld [vmem:[%s14207_s17 + $0x34] ss:$8 sps:$4 sm:$0xff]   ;;  %7660 = vmatpush1.bf16.msra.mxu1 %v10502_v55  ;;  %v10444_v55 = vld [vmem:[%s14205_s15 + $0x2e4] ss:$8 sps:$4 sm:$0xff]  }
 0x753   : > { %7661 = vmatprep.subr.bf16.mxu1 %v10507_v51 }
 0x755   : > { %7337 = vmatpush1.bf16.msra.mxu0 %v10370_v57  ;;  %v10409_v57 = vld [vmem:[%s14205_s15 + $0x230] ss:$8 sps:$4 sm:$0xff]  }
 0x756   : > { %7338 = vmatprep.subr.bf16.mxu0 %v10375_v58  ;;  %v10414_v58 = vld [vmem:[%s14205_s15 + $0x244] ss:$8 sps:$4 sm:$0xff]  }
 0x759   : > { %7339 = vmatpush1.bf16.msra.mxu0 %v10373_v59  ;;  %v10505_v59 = vld [vmem:[%s14207_s17 + $0x30] ss:$8 sps:$4 sm:$0xff]  }
 0x75a   : > { %7340 = vmatprep.subr.bf16.mxu0 %v10378_v60  ;;  %v10510_v60 = vld [vmem:[%s14207_s17 + $0x44] ss:$8 sps:$4 sm:$0xff]   ;;  %7662 = vmatpush1.bf16.msra.mxu1 %v10505_v59 }
 0x75b   : > { %7663 = vmatprep.subr.bf16.mxu1 %v10510_v60  ;;  %v10442_v60 = vld [vmem:[%s14205_s15 + $0x2e0] ss:$8 sps:$4 sm:$0xff]  }
 0x75d   : > { %7341 = vmatpush1.bf16.msra.mxu0 %v10376_v61  ;;  %v10412_v61 = vld [vmem:[%s14205_s15 + $0x240] ss:$8 sps:$4 sm:$0xff]  }
 0x75e   : > { %7342 = vmatprep.subr.bf16.mxu0 %v10381_v3  ;;  %v10417_v3 = vld [vmem:[%s14205_s15 + $0x254] ss:$8 sps:$4 sm:$0xff]  }
 0x761   : > { %7343 = vmatpush1.bf16.msra.mxu0 %v10379_v4  ;;  %v10508_v4 = vld [vmem:[%s14207_s17 + $0x40] ss:$8 sps:$4 sm:$0xff]  }
 0x762   : > { %7344 = vmatprep.subr.bf16.mxu0 %v10384_v5  ;;  %v10513_v5 = vld [vmem:[%s14207_s17 + $0x54] ss:$8 sps:$4 sm:$0xff]   ;;  %7664 = vmatpush1.bf16.msra.mxu1 %v10508_v4 }
 0x763   : > { %7665 = vmatprep.subr.bf16.mxu1 %v10513_v5 }
 0x765   : > { %7345 = vmatpush1.bf16.msra.mxu0 %v10382_v40  ;;  %v10415_v40 = vld [vmem:[%s14205_s15 + $0x250] ss:$8 sps:$4 sm:$0xff]  }
 0x766   : > { %7346 = vmatprep.subr.bf16.mxu0 %v10387_v42  ;;  %v10420_v42 = vld [vmem:[%s14205_s15 + $0x264] ss:$8 sps:$4 sm:$0xff]  }
 0x769   : > { %7347 = vmatpush1.bf16.msra.mxu0 %v10385_v8  ;;  %v10511_v8 = vld [vmem:[%s14207_s17 + $0x50] ss:$8 sps:$4 sm:$0xff]  }
 0x76a   : > { %7348 = vmatprep.subr.bf16.mxu0 %v10390_v9  ;;  %v10516_v9 = vld [vmem:[%s14207_s17 + $0x64] ss:$8 sps:$4 sm:$0xff]   ;;  %7666 = vmatpush1.bf16.msra.mxu1 %v10511_v8 }
 0x76b   : > { %7667 = vmatprep.subr.bf16.mxu1 %v10516_v9 }
 0x76d   : > { %7349 = vmatpush1.bf16.msra.mxu0 %v10388_v10  ;;  %v10418_v10 = vld [vmem:[%s14205_s15 + $0x260] ss:$8 sps:$4 sm:$0xff]  }
 0x76e   : > { %7350 = vmatprep.subr.bf16.mxu0 %v10393_v11  ;;  %v10423_v11 = vld [vmem:[%s14205_s15 + $0x274] ss:$8 sps:$4 sm:$0xff]  }
 0x771   : > { %v6390_v19 = vpop.f32.mrb[20].mxu0  ;;  %7351 = vmatpush1.bf16.msra.mxu0 %v10391_v12  ;;  %v10514_v12 = vld [vmem:[%s14207_s17 + $0x60] ss:$8 sps:$4 sm:$0xff]  }
 0x772   : > { %v6391_v43 = vadd.f32 %v6390_v19, %v5646_v13  ;;  %v6392_v24 = vpop.f32.mrb[21].mxu0  ;;  %7352 = vmatprep.subr.bf16.mxu0 %v10396_v15  ;;  %v10519_v13 = vld [vmem:[%s14207_s17 + $0x74] ss:$8 sps:$4 sm:$0xff]   ;;  %v10421_v15 = vld [vmem:[%s14205_s15 + $0x270] ss:$8 sps:$4 sm:$0xff]   ;;  %7668 = vmatpush1.bf16.msra.mxu1 %v10514_v12 }
 0x773   : > { %v6393_v36 = vadd.f32 %v6392_v24, %v5650_v17  ;;  %v6394_v14 = vpop.f32.mrb[22].mxu0  ;;  %v10426_v17 = vld [vmem:[%s14205_s15 + $0x284] ss:$8 sps:$4 sm:$0xff]   ;;  %v10517_v19 = vld [vmem:[%s14207_s17 + $0x70] ss:$8 sps:$4 sm:$0xff]   ;;  %7669 = vmatprep.subr.bf16.mxu1 %v10519_v13 }
 0x774   : > { %v6481_v0 = vadd.f32 %v6391_v43, %v12434_v6  ;;  %v6395_v1 = vpop.f32.mrb[23].mxu0  ;;  %v10424_v43 = vld [vmem:[%s14205_s15 + $0x280] ss:$8 sps:$4 sm:$0xff]   ;;  %v10429_v24 = vld [vmem:[%s14205_s15 + $0x294] ss:$8 sps:$4 sm:$0xff]  }
 0x775   : > { %v6482_v27 = vadd.f32 %v6393_v36, %v12325_v22  ;;  %7353 = vmatpush1.bf16.msra.mxu0 %v10394_v23  ;;  %v10400_v22 = vld [vmem:[%s14205_s15 + $0x200] ss:$8 sps:$4 sm:$0xff]   ;;  %v10522_v23 = vld [vmem:[%s14207_s17 + $0x84] ss:$8 sps:$4 sm:$0xff]   ;;  %v10525_v36 = vld [vmem:[%s14207_s17 + $0x94] ss:$8 sps:$4 sm:$0xff]  }
 0x776   : > { %v13411_v34 = vmax.f32 %v6481_v0, 0.0  ;;  %7354 = vmatprep.subr.bf16.mxu0 %v10399_v26  ;;  %7670 = vmatpush1.bf16.msra.mxu1 %v10517_v19  ;;  %v10520_v26 = vld [vmem:[%s14207_s17 + $0x80] ss:$8 sps:$4 sm:$0xff]   ;;  %v10427_v14 = vld [vmem:[%s14205_s15 + $0x290] ss:$8 sps:$4 sm:$0xff]  }
 0x777   : > { %v13416_v33 = vmax.f32 %v6482_v27, 0.0  ;;  %7671 = vmatprep.subr.bf16.mxu1 %v10522_v23  ;;  %v10432_v0 = vld [vmem:[%s14205_s15 + $0x2a4] ss:$8 sps:$4 sm:$0xff]   ;;  %v10523_v1 = vld [vmem:[%s14207_s17 + $0x90] ss:$8 sps:$4 sm:$0xff]  }
 0x778   : > { %v6497_v35 = vpack.c.bf16 %v13411_v34, %v13411_v34  ;;  %v10528_v27 = vld [vmem:[%s14207_s17 + $0xa4] ss:$8 sps:$4 sm:$0xff]   ;;  %v10451_v23 = vld [vmem:[%s14205_s15 + $0x310] ss:$8 sps:$4 sm:$0xff]  }
 0x779   : > { %7355 = vmatpush1.bf16.msra.mxu0 %v10397_v29  ;;  %v6498_v6 = vpack.c.bf16 %v13416_v33, %v13416_v33  ;;  %v10430_v29 = vld [vmem:[%s14205_s15 + $0x2a0] ss:$8 sps:$4 sm:$0xff]  }
 0x77a   : > { %7365 = vmatprep.subr.bf16.mxu0 %v10402_v62  ;;  %7672 = vmatpush1.bf16.msra.mxu1 %v10520_v26  ;;  %v10435_v62 = vld [vmem:[%s14205_s15 + $0x2b4] ss:$8 sps:$4 sm:$0xff]  }
 0x77b   : > { %7356 = vmatprep.mubr.bf16.mxu0 %v6498_v6  ;;  %7673 = vmatprep.subr.bf16.mxu1 %v10525_v36  ;;  %v10526_v6 = vld [vmem:[%s14207_s17 + $0xa0] ss:$8 sps:$4 sm:$0xff]   ;;  %v10459_v26 = vld [vmem:[%s14205_s15 + $0x334] ss:$8 sps:$4 sm:$0xff]   ;;  %v10457_v36 = vld [vmem:[%s14205_s15 + $0x330] ss:$8 sps:$4 sm:$0xff]  }
 0x77c   : > { %7357 = vmatmul.mubr.bf16.vlgmr.msra.gmra.mrb[28].mxu0 %v6497_v35  ;;  %v10433_v35 = vld [vmem:[%s14205_s15 + $0x2b0] ss:$8 sps:$4 sm:$0xff]  }
 0x77d   : > { %7366 = vmatpush1.bf16.msra.mxu0 %v10400_v22  ;;  %v10531_v22 = vld [vmem:[%s14207_s17 + $0xb4] ss:$8 sps:$4 sm:$0xff]  }
 0x77e   : > { %7367 = vmatprep.subr.bf16.mxu0 %v10405_v41  ;;  %7674 = vmatpush1.bf16.msra.mxu1 %v10523_v1  ;;  %v10438_v41 = vld [vmem:[%s14205_s15 + $0x2c4] ss:$8 sps:$4 sm:$0xff]   ;;  %v10465_v1 = vld [vmem:[%s14205_s15 + $0x354] ss:$8 sps:$4 sm:$0xff]  }
 0x77f   : > { %7675 = vmatprep.subr.bf16.mxu1 %v10528_v27  ;;  %v10463_v27 = vld [vmem:[%s14205_s15 + $0x350] ss:$8 sps:$4 sm:$0xff]  }
 0x781   : > { %7368 = vmatpush1.bf16.msra.mxu0 %v10403_v45  ;;  %v10436_v45 = vld [vmem:[%s14205_s15 + $0x2c0] ss:$8 sps:$4 sm:$0xff]  }
 0x782   : > { %7369 = vmatprep.subr.bf16.mxu0 %v10408_v49  ;;  %7676 = vmatpush1.bf16.msra.mxu1 %v10526_v6  ;;  %v5666_v49 = vrot.slane %v13292_v20, %v12598_v39  ;;  %v10471_v6 = vld [vmem:[%s14205_s15 + $0x374] ss:$8 sps:$4 sm:$0xff]  }
 0x783   : > { %7677 = vmatprep.subr.bf16.mxu1 %v10531_v22  ;;  %v10469_v22 = vld [vmem:[%s14205_s15 + $0x370] ss:$8 sps:$4 sm:$0xff]  }
 0x784   : > { %v6475_v51 = vadd.f32 %v13300_v37, %v5666_v49  ;;  %v10447_v37 = vld [vmem:[%s14205_s15 + $0x2f4] ss:$8 sps:$4 sm:$0xff]  }
 0x785   : > { %7370 = vmatpush1.bf16.msra.mxu0 %v10406_v53  ;;  %v10439_v53 = vld [vmem:[%s14205_s15 + $0x2d0] ss:$8 sps:$4 sm:$0xff]   ;;  %v10483_v49 = vld [vmem:[%s14205_s15 + $0x3b4] ss:$8 sps:$4 sm:$0xff]  }
 0x786   : > { %7371 = vmatprep.subr.bf16.mxu0 %v10411_v54  ;;  %7678 = vmatpush1.bf16.msra.mxu1 %v10529_v18  ;;  %v5654_v54 = vrot.slane %v13292_v20, %v12586_v30  ;;  %v6486_v4 = vadd.f32 %v6475_v51, %v12648_v48  ;;  %v10450_v48 = vld [vmem:[%s14205_s15 + $0x304] ss:$8 sps:$4 sm:$0xff]   ;;  %v10477_v18 = vld [vmem:[%s14205_s15 + $0x394] ss:$8 sps:$4 sm:$0xff]   ;;  %v10487_v51 = vld [vmem:[%s14205_s15 + $0x3d0] ss:$8 sps:$4 sm:$0xff]  }
 0x787   : > { %7679 = vmatprep.subr.bf16.mxu1 %v10534_v21  ;;  %v10475_v21 = vld [vmem:[%s14205_s15 + $0x390] ss:$8 sps:$4 sm:$0xff]  }
 0x788   : > { %v13614_v12 = vmax.f32 %v6486_v4, 0.0  ;;  %v10543_v4 = vld [vmem:[%s14207_s17 + $0xf4] ss:$8 sps:$4 sm:$0xff]  }
 0x789   : > { %7372 = vmatpush1.bf16.msra.mxu0 %v10409_v57  ;;  %v5658_v57 = vrot.slane %v13292_v20, %v12595_v7 }
 0x78a   : > { %7373 = vmatprep.subr.bf16.mxu0 %v10414_v58  ;;  %7680 = vmatpush1.bf16.msra.mxu1 %v10532_v50  ;;  %v10535_v58 = vld [vmem:[%s14207_s17 + $0xd0] ss:$8 sps:$4 sm:$0xff]   ;;  %v6502_v19 = vpack.c.bf16 %v13614_v12, %v13614_v12 }
 0x78b   : > { %7681 = vmatprep.subr.bf16.mxu1 %v10537_v52  ;;  %v10481_v50 = vld [vmem:[%s14205_s15 + $0x3b0] ss:$8 sps:$4 sm:$0xff]   ;;  %v10486_v52 = vld [vmem:[%s14205_s15 + $0x3c4] ss:$8 sps:$4 sm:$0xff]  }
 0x78d   : > { %7374 = vmatpush1.bf16.msra.mxu0 %v10412_v61 }
 0x78e   : > { %7375 = vmatprep.subr.bf16.mxu0 %v10417_v3  ;;  %7682 = vmatpush1.bf16.msra.mxu1 %v10535_v58  ;;  %v10492_v58 = vld [vmem:[%s14205_s15 + $0x3e4] ss:$8 sps:$4 sm:$0xff]  }
 0x791   : > { %7376 = vmatpush1.bf16.msra.mxu0 %v10415_v40 }
 0x792   : > { %7377 = vmatprep.subr.bf16.mxu0 %v10420_v42 }
 0x795   : > { %7378 = vmatpush1.bf16.msra.mxu0 %v10418_v10  ;;  %v10445_v10 = vld [vmem:[%s14205_s15 + $0x2f0] ss:$8 sps:$4 sm:$0xff]  }
 0x796   : > { %7379 = vmatprep.subr.bf16.mxu0 %v10423_v11 }
 0x799   : > { %7380 = vmatpush1.bf16.msra.mxu0 %v10421_v15 }
 0x79a   : > { %7381 = vmatprep.subr.bf16.mxu0 %v10426_v17  ;;  %v10453_v17 = vld [vmem:[%s14205_s15 + $0x314] ss:$8 sps:$4 sm:$0xff]  }
 0x79d   : > { %7382 = vmatpush1.bf16.msra.mxu0 %v10424_v43  ;;  %v10456_v43 = vld [vmem:[%s14205_s15 + $0x324] ss:$8 sps:$4 sm:$0xff]  }
 0x79e   : > { %7383 = vmatprep.subr.bf16.mxu0 %v10429_v24  ;;  %v10454_v24 = vld [vmem:[%s14205_s15 + $0x320] ss:$8 sps:$4 sm:$0xff]  }
 0x7a1   : > { %7384 = vmatpush1.bf16.msra.mxu0 %v10427_v14  ;;  %v10462_v14 = vld [vmem:[%s14205_s15 + $0x344] ss:$8 sps:$4 sm:$0xff]  }
 0x7a2   : > { %7385 = vmatprep.subr.bf16.mxu0 %v10432_v0  ;;  %v10460_v0 = vld [vmem:[%s14205_s15 + $0x340] ss:$8 sps:$4 sm:$0xff]  }
 0x7a5   : > { %7386 = vmatpush1.bf16.msra.mxu0 %v10430_v29  ;;  %v10468_v29 = vld [vmem:[%s14205_s15 + $0x364] ss:$8 sps:$4 sm:$0xff]  }
 0x7a6   : > { %7387 = vmatprep.subr.bf16.mxu0 %v10435_v62  ;;  %v10466_v62 = vld [vmem:[%s14205_s15 + $0x360] ss:$8 sps:$4 sm:$0xff]  }
 0x7a9   : > { %7388 = vmatpush1.bf16.msra.mxu0 %v10433_v35  ;;  %v10474_v35 = vld [vmem:[%s14205_s15 + $0x384] ss:$8 sps:$4 sm:$0xff]  }
 0x7aa   : > { %7389 = vmatprep.subr.bf16.mxu0 %v10438_v41  ;;  %v10472_v41 = vld [vmem:[%s14205_s15 + $0x380] ss:$8 sps:$4 sm:$0xff]  }
 0x7ad   : > { %7390 = vmatpush1.bf16.msra.mxu0 %v10436_v45  ;;  %v10480_v45 = vld [vmem:[%s14205_s15 + $0x3a4] ss:$8 sps:$4 sm:$0xff]  }
 0x7ae   : > { %7391 = vmatprep.subr.bf16.mxu0 %v10441_v63  ;;  %v10478_v63 = vld [vmem:[%s14205_s15 + $0x3a0] ss:$8 sps:$4 sm:$0xff]  }
 0x7b1   : > { %v6431_v59 = vpop.f32.mrb[24].mxu0  ;;  %7392 = vmatpush1.bf16.msra.mxu0 %v10439_v53  ;;  %v10484_v53 = vld [vmem:[%s14205_s15 + $0x3c0] ss:$8 sps:$4 sm:$0xff]  }
 0x7b2   : > { %v6432_v61 = vadd.f32 %v6431_v59, %v5654_v54  ;;  %v6433_v3 = vpop.f32.mrb[25].mxu0  ;;  %7393 = vmatprep.subr.bf16.mxu0 %v10444_v55  ;;  %v5662_v54 = vrot.slane %v13292_v20, %v12726_v16  ;;  %v10489_v55 = vld [vmem:[%s14205_s15 + $0x3d4] ss:$8 sps:$4 sm:$0xff]   ;;  %v10490_v20 = vld [vmem:[%s14205_s15 + $0x3e0] ss:$8 sps:$4 sm:$0xff]  }
 0x7b3   : > { %v6434_v5 = vadd.f32 %v6433_v3, %v5658_v57  ;;  %v6435_v40 = vpop.f32.mrb[26].mxu0 }
 0x7b4   : > { %v6483_v42 = vadd.f32 %v6432_v61, %v12641_v38  ;;  %v6436_v8 = vpop.f32.mrb[27].mxu0  ;;  %v6473_v57 = vadd.f32 %v13298_v25, %v5662_v54  ;;  %v10493_v25 = vld [vmem:[%s14205_s15 + $0x3f0] ss:$8 sps:$4 sm:$0xff]   ;;  %v13740_v40 = vld [vmem:[%s14209_s19] sm:$0xff] }
 0x7b5   : > { %v6484_v9 = vadd.f32 %v6434_v5, %v12646_v47  ;;  %7394 = vmatpush1.bf16.msra.mxu0 %v10442_v60  ;;  %v10448_v47 = vld [vmem:[%s14205_s15 + $0x300] ss:$8 sps:$4 sm:$0xff]   ;;  %v10495_v60 = vld [vmem:[%s14205_s15 + $0x3f4] ss:$8 sps:$4 sm:$0xff]   ;;  %v10541_v5 = vld [vmem:[%s14207_s17 + $0xf0] ss:$8 sps:$4 sm:$0xff]  }
 0x7b6   : > { %v13609_v11 = vmax.f32 %v6483_v42, 0.0  ;;  %7395 = vmatprep.subr.bf16.mxu0 %v10447_v37  ;;  %v6485_v59 = vadd.f32 %v6473_v57, %v12757_v31  ;;  %v10540_v31 = vld [vmem:[%s14207_s17 + $0xe4] ss:$8 sps:$4 sm:$0xff]   ;;  %v10538_v37 = vld [vmem:[%s14207_s17 + $0xe0] ss:$8 sps:$4 sm:$0xff]   ;;  %v7771_v57 = vld [vmem:[%s14209_s19 + $0x238] sm:$0xff] }
 0x7b7   : > { %v13616_v13 = vmax.f32 %v6484_v9, 0.0  ;;  %7683 = vmatprep.subr.bf16.mxu1 %v10540_v31  ;;  %v13745_v42 = vld [vmem:[%s14209_s19 + $0x20] sm:$0xff]  ;;  %v7783_v31 = vld [vmem:[%s14209_s19 + $0x298] sm:$0xff] }
 0x7b8   : > { %v6499_v15 = vpack.c.bf16 %v13609_v11, %v13609_v11  ;;  %v13721_v61 = vmax.f32 %v6485_v59, 0.0  ;;  %7684 = vmatpush1.bf16.msra.mxu1 %v10538_v37  ;;  %v9694_v8 = vcombine.low %v13740_v40, %v13745_v42  ;;  %v9695_v9 = vcombine.high %v13740_v40, %v13745_v42  ;;  %v7775_v59 = vld [vmem:[%s14209_s19 + $0x258] sm:$0xff]  ;;  %v7732_v40 = vld [vmem:[%s14209_s19 + $0x100] sm:$0xff] }
 0x7b9   : > { %7396 = vmatpush1.bf16.msra.mxu0 %v10445_v10  ;;  %v6500_v38 = vpack.c.bf16 %v13616_v13, %v13616_v13  ;;  %7685 = vmatprep.subr.bf16.mxu1 %v10543_v4  ;;  %v7703_v10 = vld [vmem:[%s14209_s19 + $0x18] sm:$0xff]  ;;  %v7736_v42 = vld [vmem:[%s14209_s19 + $0x120] sm:$0xff] }
 0x7ba   : > { %7406 = vmatprep.subr.bf16.mxu0 %v10450_v48  ;;  %v6501_v3 = vpack.c.bf16 %v13721_v61, %v13721_v61  ;;  %v7707_v48 = vld [vmem:[%s14209_s19 + $0x38] sm:$0xff] }
 0x7bb   : > { %7397 = vmatprep.mubr.bf16.mxu0 %v6500_v38  ;;  %v9700_v38 = vcombine.low %v7703_v10, %v7707_v48  ;;  %v7787_v37 = vld [vmem:[%s14209_s19 + $0x2b8] sm:$0xff] }
 0x7bc   : > { %7398 = vmatmul.mubr.bf16.vlgmr.msra.gmra.mrb[28].mxu0 %v6499_v15  ;;  %7686 = vmatpush1.bf16.msra.mxu1 %v10541_v5  ;;  %v7711_v15 = vld [vmem:[%s14209_s19 + $0x58] sm:$0xff]  ;;  %v9780_v4 = vcombine.low %v7783_v31, %v7787_v37  ;;  %v9781_v5 = vcombine.high %v7783_v31, %v7787_v37  ;;  %v7748_v31 = vld [vmem:[%s14209_s19 + $0x180] sm:$0xff] }
 0x7bd   : > { %7407 = vmatpush1.bf16.msra.mxu0 %v10448_v47  ;;  %7438 = vmatprep.mubr.bf16.mxu0 %v6502_v19  ;;  %v9701_v47 = vcombine.high %v7703_v10, %v7707_v48  ;;  %v7795_v10 = vld [vmem:[%s14209_s19 + $0x2f8] sm:$0xff]  ;;  %v7752_v37 = vld [vmem:[%s14209_s19 + $0x1a0] sm:$0xff] }
 0x7be   : > { %7408 = vmatprep.subr.bf16.mxu0 %v10453_v17  ;;  %8510 = vmatprep.subr.bf16.mxu1 %v9695_v9  ;;  %v7715_v17 = vld [vmem:[%s14209_s19 + $0x78] sm:$0xff] }
 0x7bf   : > { %v9708_v19 = vcombine.low %v7711_v15, %v7715_v17  ;;  %v7791_v9 = vld [vmem:[%s14209_s19 + $0x2d8] sm:$0xff] }
 0x7c0   : > { %v9788_v48 = vcombine.low %v7791_v9, %v7795_v10 }
 0x7c1   : > { %7409 = vmatpush1.bf16.msra.mxu0 %v10451_v23  ;;  %v9709_v23 = vcombine.high %v7711_v15, %v7715_v17  ;;  %v7803_v15 = vld [vmem:[%s14209_s19 + $0x338] sm:$0xff] }
 0x7c2   : > { %7410 = vmatprep.subr.bf16.mxu0 %v10456_v43  ;;  %v7719_v43 = vld [vmem:[%s14209_s19 + $0x98] sm:$0xff] }
 0x7c5   : > { %7411 = vmatpush1.bf16.msra.mxu0 %v10454_v24  ;;  %v7723_v24 = vld [vmem:[%s14209_s19 + $0xb8] sm:$0xff] }
 0x7c6   : > { %7412 = vmatprep.subr.bf16.mxu0 %v10459_v26  ;;  %v9716_v26 = vcombine.low %v7719_v43, %v7723_v24 }
 0x7c9   : > { %7413 = vmatpush1.bf16.msra.mxu0 %v10457_v36  ;;  %v9717_v36 = vcombine.high %v7719_v43, %v7723_v24  ;;  %v7811_v43 = vld [vmem:[%s14209_s19 + $0x378] sm:$0xff] }
 0x7ca   : > { %7414 = vmatprep.subr.bf16.mxu0 %v10462_v14  ;;  %v7727_v14 = vld [vmem:[%s14209_s19 + $0xd8] sm:$0xff] }
 0x7cd   : > { %7415 = vmatpush1.bf16.msra.mxu0 %v10460_v0  ;;  %v7731_v0 = vld [vmem:[%s14209_s19 + $0xf8] sm:$0xff] }
 0x7ce   : > { %7416 = vmatprep.subr.bf16.mxu0 %v10465_v1  ;;  %v9724_v1 = vcombine.low %v7727_v14, %v7731_v0 }
 0x7d1   : > { %7417 = vmatpush1.bf16.msra.mxu0 %v10463_v27  ;;  %v9725_v27 = vcombine.high %v7727_v14, %v7731_v0 }
 0x7d2   : > { %7418 = vmatprep.subr.bf16.mxu0 %v10468_v29  ;;  %v7735_v29 = vld [vmem:[%s14209_s19 + $0x118] sm:$0xff] }
 0x7d5   : > { %7419 = vmatpush1.bf16.msra.mxu0 %v10466_v62  ;;  %v7739_v62 = vld [vmem:[%s14209_s19 + $0x138] sm:$0xff] }
 0x7d6   : > { %7420 = vmatprep.subr.bf16.mxu0 %v10471_v6  ;;  %v9732_v6 = vcombine.low %v7735_v29, %v7739_v62 }
 0x7d9   : > { %7421 = vmatpush1.bf16.msra.mxu0 %v10469_v22  ;;  %v9733_v22 = vcombine.high %v7735_v29, %v7739_v62 }
 0x7da   : > { %7422 = vmatprep.subr.bf16.mxu0 %v10474_v35  ;;  %v7743_v35 = vld [vmem:[%s14209_s19 + $0x158] sm:$0xff] }
 0x7dd   : > { %7423 = vmatpush1.bf16.msra.mxu0 %v10472_v41  ;;  %v7747_v41 = vld [vmem:[%s14209_s19 + $0x178] sm:$0xff] }
 0x7de   : > { %7424 = vmatprep.subr.bf16.mxu0 %v10477_v18  ;;  %v9740_v18 = vcombine.low %v7743_v35, %v7747_v41 }
 0x7e1   : > { %7425 = vmatpush1.bf16.msra.mxu0 %v10475_v21  ;;  %v9741_v21 = vcombine.high %v7743_v35, %v7747_v41 }
 0x7e2   : > { %7426 = vmatprep.subr.bf16.mxu0 %v10480_v45  ;;  %v7751_v45 = vld [vmem:[%s14209_s19 + $0x198] sm:$0xff] }
 0x7e5   : > { %7427 = vmatpush1.bf16.msra.mxu0 %v10478_v63  ;;  %v7755_v63 = vld [vmem:[%s14209_s19 + $0x1b8] sm:$0xff] }
 0x7e6   : > { %7428 = vmatprep.subr.bf16.mxu0 %v10483_v49  ;;  %v9748_v49 = vcombine.low %v7751_v45, %v7755_v63 }
 0x7e9   : > { %7429 = vmatpush1.bf16.msra.mxu0 %v10481_v50  ;;  %v9749_v50 = vcombine.high %v7751_v45, %v7755_v63 }
 0x7ea   : > { %7430 = vmatprep.subr.bf16.mxu0 %v10486_v52  ;;  %v7759_v52 = vld [vmem:[%s14209_s19 + $0x1d8] sm:$0xff] }
 0x7ed   : > { %7431 = vmatpush1.bf16.msra.mxu0 %v10484_v53  ;;  %v7763_v53 = vld [vmem:[%s14209_s19 + $0x1f8] sm:$0xff] }
 0x7ee   : > { %7432 = vmatprep.subr.bf16.mxu0 %v10489_v55  ;;  %v9756_v54 = vcombine.low %v7759_v52, %v7763_v53  ;;  %v9757_v55 = vcombine.high %v7759_v52, %v7763_v53  ;;  %v7720_v52 = vld [vmem:[%s14209_s19 + $0xa0] sm:$0xff] }
 0x7f1   : > { %7433 = vmatpush1.bf16.msra.mxu0 %v10487_v51  ;;  %v7767_v51 = vld [vmem:[%s14209_s19 + $0x218] sm:$0xff] }
 0x7f2   : > { %7434 = vmatprep.subr.bf16.mxu0 %v10492_v58  ;;  %v9764_v58 = vcombine.low %v7767_v51, %v7771_v57 }
 0x7f5   : > { %7435 = vmatpush1.bf16.msra.mxu0 %v10490_v20  ;;  %v9765_v20 = vcombine.high %v7767_v51, %v7771_v57  ;;  %v7728_v51 = vld [vmem:[%s14209_s19 + $0xe0] sm:$0xff] }
 0x7f6   : > { %7436 = vmatprep.subr.bf16.mxu0 %v10495_v60  ;;  %v7779_v60 = vld [vmem:[%s14209_s19 + $0x278] sm:$0xff] }
 0x7f9   : > { %7437 = vmatpush1.bf16.msra.mxu0 %v10493_v25  ;;  %v9772_v25 = vcombine.low %v7775_v59, %v7779_v60 }
 0x7fa   : > { %8633 = vmatprep.subr.bf16.mxu0 %v9701_v47  ;;  %v7799_v47 = vld [vmem:[%s14209_s19 + $0x318] sm:$0xff] }
 0x7fb   : > { %v9796_v17 = vcombine.low %v7799_v47, %v7803_v15 }
 0x7fc   : > { %7439 = vmatmul.mubr.bf16.vlgmr.msra.gmra.mrb[28].mxu0 %v6501_v3  ;;  %v9773_v3 = vcombine.high %v7775_v59, %v7779_v60  ;;  %v7740_v59 = vld [vmem:[%s14209_s19 + $0x140] sm:$0xff] }
 0x7fd   : > { %8634 = vmatpush1.bf16.msra.mxu0 %v9700_v38  ;;  %v9789_v38 = vcombine.high %v7791_v9, %v7795_v10  ;;  %v7744_v60 = vld [vmem:[%s14209_s19 + $0x160] sm:$0xff] }
 0x7fe   : > { %8635 = vmatprep.subr.bf16.mxu0 %v9709_v23  ;;  %v7807_v23 = vld [vmem:[%s14209_s19 + $0x358] sm:$0xff]  ;;  %v7756_v9 = vld [vmem:[%s14209_s19 + $0x1c0] sm:$0xff] }
 0x7ff   : > { %v9804_v24 = vcombine.low %v7807_v23, %v7811_v43  ;;  %v7760_v10 = vld [vmem:[%s14209_s19 + $0x1e0] sm:$0xff] }
 0x801   : > { %8636 = vmatpush1.bf16.msra.mxu0 %v9708_v19  ;;  %v9797_v19 = vcombine.high %v7799_v47, %v7803_v15  ;;  %v7764_v47 = vld [vmem:[%s14209_s19 + $0x200] sm:$0xff] }
 0x802   : > { %8637 = vmatprep.subr.bf16.mxu0 %v9717_v36  ;;  %v6631_v36 = vld [vmem:[%s14206_s16] sm:$0x3] }
 0x803   : > { %v6636_v14 = vrot.slane %v6631_v36, %v11093_v44  ;;  %v6640_v0 = vrot.slane %v6631_v36, %v11099_v46  ;;  %v7768_v15 = vld [vmem:[%s14209_s19 + $0x220] sm:$0xff] }
 0x804   : > { %v7780_v36 = vld [vmem:[%s14209_s19 + $0x280] sm:$0xff] }
 0x805   : > { %8638 = vmatpush1.bf16.msra.mxu0 %v9716_v26  ;;  %v9805_v26 = vcombine.high %v7807_v23, %v7811_v43  ;;  %v7772_v23 = vld [vmem:[%s14209_s19 + $0x240] sm:$0xff] }
 0x806   : > { %8639 = vmatprep.subr.bf16.mxu0 %v9725_v27  ;;  %v7776_v43 = vld [vmem:[%s14209_s19 + $0x260] sm:$0xff] }
 0x809   : > { %8640 = vmatpush1.bf16.msra.mxu0 %v9724_v1 }
 0x80a   : > { %8641 = vmatprep.subr.bf16.mxu0 %v9733_v22 }
 0x80d   : > { %8642 = vmatpush1.bf16.msra.mxu0 %v9732_v6 }
 0x80e   : > { %8643 = vmatprep.subr.bf16.mxu0 %v9741_v21  ;;  %v7712_v21 = vld [vmem:[%s14209_s19 + $0x60] sm:$0xff] }
 0x811   : > { %8644 = vmatpush1.bf16.msra.mxu0 %v9740_v18  ;;  %v7708_v18 = vld [vmem:[%s14209_s19 + $0x40] sm:$0xff] }
 0x812   : > { %8645 = vmatprep.subr.bf16.mxu0 %v9749_v50  ;;  %v7716_v50 = vld [vmem:[%s14209_s19 + $0x80] sm:$0xff]  ;;  %v9702_v53 = vcombine.low %v7708_v18, %v7712_v21 }
 0x813   : > { %v9710_v57 = vcombine.low %v7716_v50, %v7720_v52 }
 0x815   : > { %8646 = vmatpush1.bf16.msra.mxu0 %v9748_v49  ;;  %v9703_v49 = vcombine.high %v7708_v18, %v7712_v21  ;;  %v7804_v21 = vld [vmem:[%s14209_s19 + $0x340] sm:$0xff] }
 0x816   : > { %8647 = vmatprep.subr.bf16.mxu0 %v9757_v55  ;;  %v7724_v55 = vld [vmem:[%s14209_s19 + $0xc0] sm:$0xff] }
 0x819   : > { %8648 = vmatpush1.bf16.msra.mxu0 %v9756_v54  ;;  %v9711_v54 = vcombine.high %v7716_v50, %v7720_v52  ;;  %v7812_v52 = vld [vmem:[%s14209_s19 + $0x380] sm:$0xff] }
 0x81a   : > { %8649 = vmatprep.subr.bf16.mxu0 %v9765_v20  ;;  %v9727_v20 = vcombine.high %v7732_v40, %v7736_v42 }
 0x81d   : > { %8650 = vmatpush1.bf16.msra.mxu0 %v9764_v58  ;;  %v9719_v58 = vcombine.high %v7724_v55, %v7728_v51 }
 0x81e   : > { %8651 = vmatprep.subr.bf16.mxu0 %v9773_v3  ;;  %v9735_v3 = vcombine.high %v7740_v59, %v7744_v60 }
 0x821   : > { %8652 = vmatpush1.bf16.msra.mxu0 %v9772_v25  ;;  %v9726_v25 = vcombine.low %v7732_v40, %v7736_v42  ;;  %v7820_v42 = vld [vmem:[%s14209_s19 + $0x3c0] sm:$0xff] }
 0x822   : > { %8653 = vmatprep.subr.bf16.mxu0 %v9781_v5  ;;  %v9743_v5 = vcombine.high %v7748_v31, %v7752_v37 }
 0x825   : > { %8654 = vmatpush1.bf16.msra.mxu0 %v9780_v4  ;;  %v9734_v4 = vcombine.low %v7740_v59, %v7744_v60  ;;  %v7823_v59 = vld [vmem:[%s14209_s19 + $0x3d8] sm:$0xff] }
 0x826   : > { %8655 = vmatprep.subr.bf16.mxu0 %v9789_v38  ;;  %v9751_v38 = vcombine.high %v7756_v9, %v7760_v10  ;;  %v7827_v60 = vld [vmem:[%s14209_s19 + $0x3f8] sm:$0xff] }
 0x829   : > { %8656 = vmatpush1.bf16.msra.mxu0 %v9788_v48  ;;  %v9742_v48 = vcombine.low %v7748_v31, %v7752_v37  ;;  %v9820_v31 = vcombine.low %v7823_v59, %v7827_v60  ;;  %v7701_v37 = vld [vmem:[%s14209_s19 + $0x8] sm:$0xff] }
 0x82a   : > { %8657 = vmatprep.subr.bf16.mxu0 %v9797_v19  ;;  %v9759_v19 = vcombine.high %v7764_v47, %v7768_v15 }
 0x82d   : > { %8658 = vmatpush1.bf16.msra.mxu0 %v9796_v17  ;;  %v9750_v17 = vcombine.low %v7756_v9, %v7760_v10  ;;  %v7483_v10 = vld [vmem:[%s14208_s18] sm:$0x3] }
 0x82e   : > { %8659 = vmatprep.subr.bf16.mxu0 %v9805_v26  ;;  %v9767_v26 = vcombine.high %v7772_v23, %v7776_v43 }
 0x831   : > { %8660 = vmatpush1.bf16.msra.mxu0 %v9804_v24  ;;  %v9758_v24 = vcombine.low %v7764_v47, %v7768_v15 }
 0x8cf   : > { %v7440_v1 = vpop.f32.mrb[28].mxu0 }
 0x8d0   : > { %v9846_v27 = vadd.f32 %v7440_v1, %v6636_v14  ;;  %v7442_v29 = vpop.f32.mrb[29].mxu0  ;;  %v7784_v14 = vld [vmem:[%s14209_s19 + $0x2a0] sm:$0xff] }
 0x8d1   : > { %v9847_v62 = vadd.f32 %v7442_v29, %v6640_v0  ;;  %v7444_v6 = vpop.f32.mrb[30].mxu0  ;;  %v9766_v0 = vcombine.low %v7772_v23, %v7776_v43  ;;  %v9775_v1 = vcombine.high %v7780_v36, %v7784_v14  ;;  %v7792_v29 = vld [vmem:[%s14209_s19 + $0x2e0] sm:$0xff] }
 0x8d2   : > { %v7447_v22 = vmax.f32 %v9846_v27, 0.0  ;;  %v7445_v35 = vpop.f32.mrb[31].mxu0  ;;  %v7788_v27 = vld [vmem:[%s14209_s19 + $0x2c0] sm:$0xff] }
 0x8d3   : > { %v7448_v41 = vmax.f32 %v9847_v62, 0.0  ;;  %v9774_v62 = vcombine.low %v7780_v36, %v7784_v14  ;;  %v9783_v6 = vcombine.high %v7788_v27, %v7792_v29  ;;  %v7800_v35 = vld [vmem:[%s14209_s19 + $0x320] sm:$0xff]  ;;  %v7709_v36 = vld [vmem:[%s14209_s19 + $0x48] sm:$0xff] }
 0x8d4   : > { %v7449_v63 = vpack.c.bf16 %v7447_v22, %v7447_v22  ;;  %v7796_v22 = vld [vmem:[%s14209_s19 + $0x300] sm:$0xff]  ;;  %v7713_v14 = vld [vmem:[%s14209_s19 + $0x68] sm:$0xff] }
 0x8d5   : > { %v7450_v45 = vpack.c.bf16 %v7448_v41, %v7448_v41  ;;  %v9782_v41 = vcombine.low %v7788_v27, %v7792_v29  ;;  %v9791_v18 = vcombine.high %v7796_v22, %v7800_v35  ;;  %v9705_v27 = vcombine.high %v7709_v36, %v7713_v14  ;;  %v7717_v29 = vld [vmem:[%s14209_s19 + $0x88] sm:$0xff] }
 0x8d7   : > { %7687 = vmatprep.mubr.bf16.mxu1 %v7450_v45  ;;  %v7808_v45 = vld [vmem:[%s14209_s19 + $0x360] sm:$0xff] }
 0x8d8   : > { %7688 = vmatmul.mubr.bf16.vlgmr.msra.gmra.mrb[20].mxu1 %v7449_v63  ;;  %v9790_v63 = vcombine.low %v7796_v22, %v7800_v35  ;;  %v9798_v50 = vcombine.low %v7804_v21, %v7808_v45  ;;  %v7725_v35 = vld [vmem:[%s14209_s19 + $0xc8] sm:$0xff] }
 0x8d9   : > { %8511 = vmatpush1.bf16.msra.mxu1 %v9694_v8  ;;  %v9718_v8 = vcombine.low %v7724_v55, %v7728_v51  ;;  %v7815_v55 = vld [vmem:[%s14209_s19 + $0x398] sm:$0xff] }
 0x8da   : > { %8512 = vmatprep.subr.bf16.mxu1 %v9703_v49  ;;  %v9799_v49 = vcombine.high %v7804_v21, %v7808_v45  ;;  %v7819_v51 = vld [vmem:[%s14209_s19 + $0x3b8] sm:$0xff]  ;;  %v7733_v45 = vld [vmem:[%s14209_s19 + $0x108] sm:$0xff] }
 0x8db   : > { %v9812_v40 = vcombine.low %v7815_v55, %v7819_v51 }
 0x8dd   : > { %8513 = vmatpush1.bf16.msra.mxu1 %v9702_v53  ;;  %v7816_v53 = vld [vmem:[%s14209_s19 + $0x3a0] sm:$0xff] }
 0x8de   : > { %8514 = vmatprep.subr.bf16.mxu1 %v9711_v54  ;;  %v9807_v54 = vcombine.high %v7812_v52, %v7816_v53 }
 0x8e1   : > { %8515 = vmatpush1.bf16.msra.mxu1 %v9710_v57  ;;  %v9806_v57 = vcombine.low %v7812_v52, %v7816_v53  ;;  %v7741_v52 = vld [vmem:[%s14209_s19 + $0x148] sm:$0xff] }
 0x8e2   : > { %8516 = vmatprep.subr.bf16.mxu1 %v9719_v58  ;;  %v9813_v58 = vcombine.high %v7815_v55, %v7819_v51  ;;  %v7745_v53 = vld [vmem:[%s14209_s19 + $0x168] sm:$0xff] }
 0x8e3   : > { %v9737_v55 = vcombine.high %v7741_v52, %v7745_v53  ;;  %v7749_v51 = vld [vmem:[%s14209_s19 + $0x188] sm:$0xff] }
 0x8e4   : > { %8661 = vmatprep.subr.bf16.mxu0 %v9813_v58  ;;  %v9736_v58 = vcombine.low %v7741_v52, %v7745_v53 }
 0x8e5   : > { %8517 = vmatpush1.bf16.msra.mxu1 %v9718_v8  ;;  %v7824_v8 = vld [vmem:[%s14209_s19 + $0x3e0] sm:$0xff]  ;;  %8662 = vmatpush1.bf16.msra.mxu0 %v9812_v40 }
 0x8e6   : > { %8518 = vmatprep.subr.bf16.mxu1 %v9727_v20  ;;  %v9815_v20 = vcombine.high %v7820_v42, %v7824_v8 }
 0x8e9   : > { %8519 = vmatpush1.bf16.msra.mxu1 %v9726_v25  ;;  %v9814_v25 = vcombine.low %v7820_v42, %v7824_v8  ;;  %v7757_v42 = vld [vmem:[%s14209_s19 + $0x1c8] sm:$0xff] }
 0x8ea   : > { %8520 = vmatprep.subr.bf16.mxu1 %v9735_v3  ;;  %v9821_v3 = vcombine.high %v7823_v59, %v7827_v60  ;;  %v7761_v8 = vld [vmem:[%s14209_s19 + $0x1e8] sm:$0xff] }
 0x8eb   : > { %v9753_v59 = vcombine.high %v7757_v42, %v7761_v8  ;;  %v7765_v60 = vld [vmem:[%s14209_s19 + $0x208] sm:$0xff] }
 0x8ec   : > { %8663 = vmatprep.subr.bf16.mxu0 %v9821_v3  ;;  %v9752_v3 = vcombine.low %v7757_v42, %v7761_v8 }
 0x8ed   : > { %8521 = vmatpush1.bf16.msra.mxu1 %v9734_v4  ;;  %v7705_v4 = vld [vmem:[%s14209_s19 + $0x28] sm:$0xff]  ;;  %8664 = vmatpush1.bf16.msra.mxu0 %v9820_v31 }
 0x8ee   : > { %8522 = vmatprep.subr.bf16.mxu1 %v9743_v5  ;;  %v9697_v5 = vcombine.high %v7701_v37, %v7705_v4  ;;  %v9696_v9 = vcombine.low %v7701_v37, %v7705_v4  ;;  %v7773_v37 = vld [vmem:[%s14209_s19 + $0x248] sm:$0xff] }
 0x8ef   : > { %v7777_v4 = vld [vmem:[%s14209_s19 + $0x268] sm:$0xff] }
 0x8f1   : > { %8523 = vmatpush1.bf16.msra.mxu1 %v9742_v48  ;;  %v7488_v48 = vrot.slane %v7483_v10, %v11093_v44 }
 0x8f2   : > { %8524 = vmatprep.subr.bf16.mxu1 %v9751_v38  ;;  %v7492_v38 = vrot.slane %v7483_v10, %v11099_v46  ;;  %v7781_v10 = vld [vmem:[%s14209_s19 + $0x288] sm:$0xff] }
 0x8f5   : > { %8525 = vmatpush1.bf16.msra.mxu1 %v9750_v17 }
 0x8f6   : > { %8526 = vmatprep.subr.bf16.mxu1 %v9759_v19 }
 0x8f9   : > { %8527 = vmatpush1.bf16.msra.mxu1 %v9758_v24 }
 0x8fa   : > { %8528 = vmatprep.subr.bf16.mxu1 %v9767_v26 }
 0x8fd   : > { %8529 = vmatpush1.bf16.msra.mxu1 %v9766_v0 }
 0x8fe   : > { %8530 = vmatprep.subr.bf16.mxu1 %v9775_v1 }
 0x901   : > { %8531 = vmatpush1.bf16.msra.mxu1 %v9774_v62  ;;  %v7721_v62 = vld [vmem:[%s14209_s19 + $0xa8] sm:$0xff] }
 0x902   : > { %8532 = vmatprep.subr.bf16.mxu1 %v9783_v6  ;;  %v9704_v6 = vcombine.low %v7709_v36, %v7713_v14  ;;  %v9713_v22 = vcombine.high %v7717_v29, %v7721_v62  ;;  %v7805_v14 = vld [vmem:[%s14209_s19 + $0x348] sm:$0xff] }
 0x905   : > { %8533 = vmatpush1.bf16.msra.mxu1 %v9782_v41  ;;  %v7729_v41 = vld [vmem:[%s14209_s19 + $0xe8] sm:$0xff] }
 0x906   : > { %8534 = vmatprep.subr.bf16.mxu1 %v9791_v18  ;;  %v9712_v18 = vcombine.low %v7717_v29, %v7721_v62  ;;  %v9721_v21 = vcombine.high %v7725_v35, %v7729_v41 }
 0x909   : > { %8535 = vmatpush1.bf16.msra.mxu1 %v9790_v63  ;;  %v7737_v63 = vld [vmem:[%s14209_s19 + $0x128] sm:$0xff] }
 0x90a   : > { %8536 = vmatprep.subr.bf16.mxu1 %v9799_v49  ;;  %v9720_v49 = vcombine.low %v7725_v35, %v7729_v41 }
 0x90d   : > { %8537 = vmatpush1.bf16.msra.mxu1 %v9798_v50  ;;  %v9729_v50 = vcombine.high %v7733_v45, %v7737_v63 }
 0x90e   : > { %8538 = vmatprep.subr.bf16.mxu1 %v9807_v54  ;;  %v9728_v54 = vcombine.low %v7733_v45, %v7737_v63 }
 0x911   : > { %8539 = vmatpush1.bf16.msra.mxu1 %v9806_v57  ;;  %v7753_v57 = vld [vmem:[%s14209_s19 + $0x1a8] sm:$0xff] }
 0x912   : > { %8540 = vmatprep.subr.bf16.mxu1 %v9815_v20  ;;  %v9745_v40 = vcombine.high %v7749_v51, %v7753_v57  ;;  %v9744_v20 = vcombine.low %v7749_v51, %v7753_v57 }
 0x915   : > { %8541 = vmatpush1.bf16.msra.mxu1 %v9814_v25  ;;  %v7769_v25 = vld [vmem:[%s14209_s19 + $0x228] sm:$0xff] }
 0x916   : > { %8551 = vmatprep.subr.bf16.mxu1 %v9697_v5  ;;  %v9761_v31 = vcombine.high %v7765_v60, %v7769_v25  ;;  %v9760_v5 = vcombine.low %v7765_v60, %v7769_v25 }
 0x9ab   : > { %v7689_v47 = vpop.f32.mrb[20].mxu1 }
 0x9ac   : > { %v7690_v15 = vadd.f32 %v7689_v47, %v7488_v48  ;;  %v7691_v17 = vpop.f32.mrb[21].mxu1  ;;  %v7785_v48 = vld [vmem:[%s14209_s19 + $0x2a8] sm:$0xff] }
 0x9ad   : > { %v7692_v19 = vadd.f32 %v7691_v17, %v7492_v38  ;;  %v7693_v23 = vpop.f32.mrb[22].mxu1  ;;  %v9768_v38 = vcombine.low %v7773_v37, %v7777_v4  ;;  %v9777_v47 = vcombine.high %v7781_v10, %v7785_v48  ;;  %v7793_v17 = vld [vmem:[%s14209_s19 + $0x2e8] sm:$0xff] }
 0x9ae   : > { %v7696_v43 = vmax.f32 %v7690_v15, 0.0  ;;  %v7694_v24 = vpop.f32.mrb[23].mxu1  ;;  %v7789_v15 = vld [vmem:[%s14209_s19 + $0x2c8] sm:$0xff] }
 0x9af   : > { %v7697_v26 = vmax.f32 %v7692_v19, 0.0  ;;  %v9776_v19 = vcombine.low %v7781_v10, %v7785_v48  ;;  %v9785_v23 = vcombine.high %v7789_v15, %v7793_v17  ;;  %v7801_v24 = vld [vmem:[%s14209_s19 + $0x328] sm:$0xff]  ;;  %v7750_v48 = vld [vmem:[%s14209_s19 + $0x190] sm:$0xff] }
 0x9b0   : > { %v13964_v1 = vpack.c.bf16 %v7696_v43, %v7696_v43  ;;  %v7797_v43 = vld [vmem:[%s14209_s19 + $0x308] sm:$0xff] }
 0x9b1   : > { %v13962_v0 = vpack.c.bf16 %v7697_v26, %v7697_v26  ;;  %v9784_v26 = vcombine.low %v7789_v15, %v7793_v17  ;;  %v9793_v36 = vcombine.high %v7797_v43, %v7801_v24  ;;  %v9792_v29 = vcombine.low %v7797_v43, %v7801_v24  ;;  %v7758_v17 = vld [vmem:[%s14209_s19 + $0x1d0] sm:$0xff] }
 0x9b2   : > { %v7766_v24 = vld [vmem:[%s14209_s19 + $0x210] sm:$0xff] }
 0x9b3   : > { %8542 = vmatprep.mubr.bf16.mxu1 %v13962_v0  ;;  %8665 = vmatprep.mubr.bf16.mxu0 %v13962_v0 }
 0x9b4   : > { %8543 = vmatmul.mubr.bf16.vlgmr.msra.gmra.mrb[24].mxu1 %v13964_v1  ;;  %8666 = vmatmul.mubr.bf16.vlgmr.msra.gmra.mrb[32].mxu0 %v13964_v1 }
 0x9b5   : > { %8552 = vmatpush1.bf16.msra.mxu1 %v9696_v9  ;;  %8583 = vmatprep.mubr.bf16.mxu1 %v13962_v0  ;;  %v9769_v9 = vcombine.high %v7773_v37, %v7777_v4  ;;  %v7742_v4 = vld [vmem:[%s14209_s19 + $0x150] sm:$0xff] }
 0x9b6   : > { %8553 = vmatprep.subr.bf16.mxu1 %v9705_v27  ;;  %v7809_v27 = vld [vmem:[%s14209_s19 + $0x368] sm:$0xff] }
 0x9b7   : > { %v9801_v62 = vcombine.high %v7805_v14, %v7809_v27  ;;  %v9800_v35 = vcombine.low %v7805_v14, %v7809_v27  ;;  %v7774_v27 = vld [vmem:[%s14209_s19 + $0x250] sm:$0xff] }
 0x9b9   : > { %8554 = vmatpush1.bf16.msra.mxu1 %v9704_v6  ;;  %v7813_v6 = vld [vmem:[%s14209_s19 + $0x388] sm:$0xff] }
 0x9ba   : > { %8555 = vmatprep.subr.bf16.mxu1 %v9713_v22  ;;  %v7817_v22 = vld [vmem:[%s14209_s19 + $0x3a8] sm:$0xff] }
 0x9bb   : > { %v9809_v41 = vcombine.high %v7813_v6, %v7817_v22  ;;  %v9808_v45 = vcombine.low %v7813_v6, %v7817_v22  ;;  %v7782_v22 = vld [vmem:[%s14209_s19 + $0x290] sm:$0xff] }
 0x9bd   : > { %8556 = vmatpush1.bf16.msra.mxu1 %v9712_v18  ;;  %v7821_v18 = vld [vmem:[%s14209_s19 + $0x3c8] sm:$0xff] }
 0x9be   : > { %8557 = vmatprep.subr.bf16.mxu1 %v9721_v21  ;;  %v7825_v21 = vld [vmem:[%s14209_s19 + $0x3e8] sm:$0xff] }
 0x9bf   : > { %v9817_v63 = vcombine.high %v7821_v18, %v7825_v21  ;;  %v9816_v52 = vcombine.low %v7821_v18, %v7825_v21  ;;  %v7790_v21 = vld [vmem:[%s14209_s19 + $0x2d0] sm:$0xff] }
 0x9c1   : > { %8558 = vmatpush1.bf16.msra.mxu1 %v9720_v49  ;;  %v7702_v49 = vld [vmem:[%s14209_s19 + $0x10] sm:$0xff] }
 0x9c2   : > { %8559 = vmatprep.subr.bf16.mxu1 %v9729_v50  ;;  %v7706_v50 = vld [vmem:[%s14209_s19 + $0x30] sm:$0xff] }
 0x9c3   : > { %v9699_v53 = vcombine.high %v7702_v49, %v7706_v50  ;;  %v9698_v51 = vcombine.low %v7702_v49, %v7706_v50  ;;  %v7798_v50 = vld [vmem:[%s14209_s19 + $0x310] sm:$0xff] }
 0x9c5   : > { %8560 = vmatpush1.bf16.msra.mxu1 %v9728_v54  ;;  %v7710_v54 = vld [vmem:[%s14209_s19 + $0x50] sm:$0xff] }
 0x9c6   : > { %8561 = vmatprep.subr.bf16.mxu1 %v9737_v55  ;;  %v7714_v55 = vld [vmem:[%s14209_s19 + $0x70] sm:$0xff] }
 0x9c7   : > { %v9707_v57 = vcombine.high %v7710_v54, %v7714_v55  ;;  %v9706_v42 = vcombine.low %v7710_v54, %v7714_v55  ;;  %v7806_v55 = vld [vmem:[%s14209_s19 + $0x350] sm:$0xff] }
 0x9c9   : > { %8562 = vmatpush1.bf16.msra.mxu1 %v9736_v58  ;;  %v7718_v58 = vld [vmem:[%s14209_s19 + $0x90] sm:$0xff] }
 0x9ca   : > { %8563 = vmatprep.subr.bf16.mxu1 %v9745_v40  ;;  %v7722_v40 = vld [vmem:[%s14209_s19 + $0xb0] sm:$0xff] }
 0x9cb   : > { %v9715_v8 = vcombine.high %v7718_v58, %v7722_v40  ;;  %v9714_v60 = vcombine.low %v7718_v58, %v7722_v40  ;;  %v7814_v40 = vld [vmem:[%s14209_s19 + $0x390] sm:$0xff] }
 0x9cd   : > { %8564 = vmatpush1.bf16.msra.mxu1 %v9744_v20  ;;  %v7726_v20 = vld [vmem:[%s14209_s19 + $0xd0] sm:$0xff] }
 0x9ce   : > { %8565 = vmatprep.subr.bf16.mxu1 %v9753_v59  ;;  %v7730_v59 = vld [vmem:[%s14209_s19 + $0xf0] sm:$0xff] }
 0x9cf   : > { %v9723_v25 = vcombine.high %v7726_v20, %v7730_v59 }
 0x9d1   : > { %8566 = vmatpush1.bf16.msra.mxu1 %v9752_v3  ;;  %v7734_v3 = vld [vmem:[%s14209_s19 + $0x110] sm:$0xff] }
 0x9d2   : > { %8567 = vmatprep.subr.bf16.mxu1 %v9761_v31  ;;  %v9722_v31 = vcombine.low %v7726_v20, %v7730_v59  ;;  %v7822_v59 = vld [vmem:[%s14209_s19 + $0x3d0] sm:$0xff] }
 0x9d5   : > { %8568 = vmatpush1.bf16.msra.mxu1 %v9760_v5  ;;  %v7746_v5 = vld [vmem:[%s14209_s19 + $0x170] sm:$0xff] }
 0x9d6   : > { %8569 = vmatprep.subr.bf16.mxu1 %v9769_v9  ;;  %v9739_v10 = vcombine.high %v7742_v4, %v7746_v5 }
 0x9d9   : > { %8570 = vmatpush1.bf16.msra.mxu1 %v9768_v38  ;;  %v7754_v38 = vld [vmem:[%s14209_s19 + $0x1b0] sm:$0xff] }
 0x9da   : > { %8571 = vmatprep.subr.bf16.mxu1 %v9777_v47  ;;  %v9738_v47 = vcombine.low %v7742_v4, %v7746_v5  ;;  %v9747_v15 = vcombine.high %v7750_v48, %v7754_v38 }
 0x9dd   : > { %8572 = vmatpush1.bf16.msra.mxu1 %v9776_v19  ;;  %v7762_v19 = vld [vmem:[%s14209_s19 + $0x1f0] sm:$0xff] }
 0x9de   : > { %8573 = vmatprep.subr.bf16.mxu1 %v9785_v23  ;;  %v9746_v23 = vcombine.low %v7750_v48, %v7754_v38  ;;  %v9755_v43 = vcombine.high %v7758_v17, %v7762_v19 }
 0x9e1   : > { %8574 = vmatpush1.bf16.msra.mxu1 %v9784_v26  ;;  %v7770_v26 = vld [vmem:[%s14209_s19 + $0x230] sm:$0xff] }
 0x9e2   : > { %8575 = vmatprep.subr.bf16.mxu1 %v9793_v36  ;;  %v9754_v36 = vcombine.low %v7758_v17, %v7762_v19  ;;  %v9763_v14 = vcombine.high %v7766_v24, %v7770_v26 }
 0x9e5   : > { %8576 = vmatpush1.bf16.msra.mxu1 %v9792_v29  ;;  %v7778_v29 = vld [vmem:[%s14209_s19 + $0x270] sm:$0xff] }
 0x9e6   : > { %8577 = vmatprep.subr.bf16.mxu1 %v9801_v62  ;;  %v9762_v62 = vcombine.low %v7766_v24, %v7770_v26  ;;  %v9771_v6 = vcombine.high %v7774_v27, %v7778_v29 }
 0x9e9   : > { %8578 = vmatpush1.bf16.msra.mxu1 %v9800_v35  ;;  %v7786_v35 = vld [vmem:[%s14209_s19 + $0x2b0] sm:$0xff] }
 0x9ea   : > { %8579 = vmatprep.subr.bf16.mxu1 %v9809_v41  ;;  %v9770_v41 = vcombine.low %v7774_v27, %v7778_v29  ;;  %v9779_v18 = vcombine.high %v7782_v22, %v7786_v35 }
 0x9ed   : > { %8580 = vmatpush1.bf16.msra.mxu1 %v9808_v45  ;;  %v7794_v45 = vld [vmem:[%s14209_s19 + $0x2f0] sm:$0xff] }
 0x9ee   : > { %8581 = vmatprep.subr.bf16.mxu1 %v9817_v63  ;;  %v9778_v63 = vcombine.low %v7782_v22, %v7786_v35  ;;  %v9787_v49 = vcombine.high %v7790_v21, %v7794_v45 }
 0x9f1   : > { %8582 = vmatpush1.bf16.msra.mxu1 %v9816_v52  ;;  %v7802_v52 = vld [vmem:[%s14209_s19 + $0x330] sm:$0xff] }
 0x9f2   : > { %8592 = vmatprep.subr.bf16.mxu1 %v9699_v53  ;;  %v9786_v53 = vcombine.low %v7790_v21, %v7794_v45  ;;  %v9795_v54 = vcombine.high %v7798_v50, %v7802_v52 }
 0x9f4   : > { %8584 = vmatmul.mubr.bf16.vlgmr.msra.gmra.mrb[28].mxu1 %v13964_v1 }
 0x9f5   : > { %8593 = vmatpush1.bf16.msra.mxu1 %v9698_v51  ;;  %8624 = vmatprep.mubr.bf16.mxu1 %v13962_v0  ;;  %v7738_v0 = vld [vmem:[%s14209_s19 + $0x130] sm:$0xff] }
 0x9f6   : > { %8594 = vmatprep.subr.bf16.mxu1 %v9707_v57  ;;  %v9731_v37 = vcombine.high %v7734_v3, %v7738_v0  ;;  %v9730_v9 = vcombine.low %v7734_v3, %v7738_v0  ;;  %v7810_v51 = vld [vmem:[%s14209_s19 + $0x370] sm:$0xff]  ;;  %v9794_v57 = vcombine.low %v7798_v50, %v7802_v52 }
 0x9f7   : > { %v9803_v58 = vcombine.high %v7806_v55, %v7810_v51 }
 0x9f9   : > { %8595 = vmatpush1.bf16.msra.mxu1 %v9706_v42  ;;  %v7818_v42 = vld [vmem:[%s14209_s19 + $0x3b0] sm:$0xff] }
 0x9fa   : > { %8596 = vmatprep.subr.bf16.mxu1 %v9715_v8  ;;  %v9802_v8 = vcombine.low %v7806_v55, %v7810_v51  ;;  %v9811_v20 = vcombine.high %v7814_v40, %v7818_v42 }
 0x9fd   : > { %8597 = vmatpush1.bf16.msra.mxu1 %v9714_v60  ;;  %v7826_v60 = vld [vmem:[%s14209_s19 + $0x3f0] sm:$0xff] }
 0x9fe   : > { %8598 = vmatprep.subr.bf16.mxu1 %v9723_v25  ;;  %v9810_v25 = vcombine.low %v7814_v40, %v7818_v42  ;;  %v9819_v3 = vcombine.high %v7822_v59, %v7826_v60  ;;  %v9818_v0 = vcombine.low %v7822_v59, %v7826_v60 }
 0xa01   : > { %8599 = vmatpush1.bf16.msra.mxu1 %v9722_v31  ;;  %v7828_v31 = vld [vmem:[%s14210_s20] sm:$0xff] }
 0xa02   : > { %8600 = vmatprep.subr.bf16.mxu1 %v9731_v37  ;;  %v7833_v37 = vrot.slane %v7828_v31, %v11093_v44  ;;  %v7857_v4 = vrot.slane %v7828_v31, %v12726_v16  ;;  %v7837_v5 = vrot.slane %v7828_v31, %v11099_v46  ;;  %v7845_v29 = vrot.slane %v7828_v31, %v12305_v2 }
 0xa03   : > { %v7853_v2 = vrot.slane %v7828_v31, %v12595_v7 }
 0xa05   : > { %8601 = vmatpush1.bf16.msra.mxu1 %v9730_v9  ;;  %v7861_v9 = vrot.slane %v7828_v31, %v12598_v39 }
 0xa06   : > { %8602 = vmatprep.subr.bf16.mxu1 %v9739_v10 }
 0xa09   : > { %8603 = vmatpush1.bf16.msra.mxu1 %v9738_v47 }
 0xa0a   : > { %8604 = vmatprep.subr.bf16.mxu1 %v9747_v15 }
 0xa0d   : > { %8605 = vmatpush1.bf16.msra.mxu1 %v9746_v23 }
 0xa0e   : > { %8606 = vmatprep.subr.bf16.mxu1 %v9755_v43 }
 0xa11   : > { %8607 = vmatpush1.bf16.msra.mxu1 %v9754_v36 }
 0xa12   : > { %8608 = vmatprep.subr.bf16.mxu1 %v9763_v14 }
 0xa15   : > { %8609 = vmatpush1.bf16.msra.mxu1 %v9762_v62 }
 0xa16   : > { %8610 = vmatprep.subr.bf16.mxu1 %v9771_v6 }
 0xa19   : > { %8611 = vmatpush1.bf16.msra.mxu1 %v9770_v41 }
 0xa1a   : > { %8612 = vmatprep.subr.bf16.mxu1 %v9779_v18 }
 0xa1d   : > { %8613 = vmatpush1.bf16.msra.mxu1 %v9778_v63 }
 0xa1e   : > { %8614 = vmatprep.subr.bf16.mxu1 %v9787_v49 }
 0xa21   : > { %8615 = vmatpush1.bf16.msra.mxu1 %v9786_v53 }
 0xa22   : > { %8616 = vmatprep.subr.bf16.mxu1 %v9795_v54 }
 0xa25   : > { %8617 = vmatpush1.bf16.msra.mxu1 %v9794_v57 }
 0xa26   : > { %8618 = vmatprep.subr.bf16.mxu1 %v9803_v58 }
 0xa29   : > { %8619 = vmatpush1.bf16.msra.mxu1 %v9802_v8 }
 0xa2a   : > { %8620 = vmatprep.subr.bf16.mxu1 %v9811_v20 }
 0xa2d   : > { %8621 = vmatpush1.bf16.msra.mxu1 %v9810_v25 }
 0xa2e   : > { %8622 = vmatprep.subr.bf16.mxu1 %v9819_v3 }
 0xa31   : > { %8623 = vmatpush1.bf16.msra.mxu1 %v9818_v0 }
 0xa34   : > { %8625 = vmatmul.mubr.bf16.vlgmr.msra.gmra.mrb[32].mxu1 %v13964_v1 }
 0xa87   : > { %v8544_v10 = vpop.f32.mrb[24].mxu1  ;;  %v8667_v48 = vpop.f32.mrb[32].mxu0 }
 0xa88   : > { %v8545_v38 = vadd.f32 %v8544_v10, %v7833_v37  ;;  %v8668_v47 = vadd.f32 %v8667_v48, %v7857_v4  ;;  %v8546_v15 = vpop.f32.mrb[25].mxu1  ;;  %v8669_v17 = vpop.f32.mrb[33].mxu0 }
 0xa89   : > { %v8547_v1 = vadd.f32 %v8546_v15, %v7837_v5  ;;  %v8670_v19 = vadd.f32 %v8669_v17, %v7861_v9  ;;  %v8548_v23 = vpop.f32.mrb[26].mxu1  ;;  %v8671_v43 = vpop.f32.mrb[34].mxu0 }
 0xa8a   : > { %v8674_v24 = vadd.f32 %v8545_v38, %v13304_v28  ;;  %v8680_v44 = vadd.f32 %v8668_v47, %v13721_v61  ;;  %v8549_v16 = vpop.f32.mrb[27].mxu1  ;;  %v8672_v26 = vpop.f32.mrb[35].mxu0  ;;  %v7841_v61 = vrot.slane %v7828_v31, %v12403_v56  ;;  %v7849_v56 = vrot.slane %v7828_v31, %v12586_v30 }
 0xa8b   : > { %v8675_v46 = vadd.f32 %v8547_v1, %v13306_v32  ;;  %v8681_v39 = vadd.f32 %v8670_v19, %v13614_v12 }
 0xa8c   : > { %v8682_v36 = vmax.f32 %v8674_v24, 0.0  ;;  %v8688_v14 = vmax.f32 %v8680_v44, 0.0 }
 0xa8d   : > { %v8683_v28 = vmax.f32 %v8675_v46, 0.0  ;;  %v8689_v27 = vmax.f32 %v8681_v39, 0.0 }
 0xa8e   : > { %8690 = vst [vmem:[%s14167_s5] sm:$0xff] %v8682_v36  ;;  %8696 = vst [vmem:[%s14167_s5 + $0x30] sm:$0xff] %v8688_v14 }
 0xa8f   : > { %8691 = vst [vmem:[%s14167_s5 + $0x8] sm:$0xff] %v8683_v28  ;;  %8697 = vst [vmem:[%s14167_s5 + $0x38] sm:$0xff] %v8689_v27 }
 0xac7   : > { %v8585_v62 = vpop.f32.mrb[28].mxu1 }
 0xac8   : > { %v8586_v6 = vadd.f32 %v8585_v62, %v7841_v61  ;;  %v8587_v22 = vpop.f32.mrb[29].mxu1 }
 0xac9   : > { %v8588_v32 = vadd.f32 %v8587_v22, %v7845_v29  ;;  %v8589_v35 = vpop.f32.mrb[30].mxu1 }
 0xaca   : > { %v8676_v12 = vadd.f32 %v8586_v6, %v13411_v34  ;;  %v8590_v41 = vpop.f32.mrb[31].mxu1 }
 0xacb   : > { %v8677_v18 = vadd.f32 %v8588_v32, %v13416_v33 }
 0xacc   : > { %v8684_v21 = vmax.f32 %v8676_v12, 0.0 }
 0xacd   : > { %v8685_v45 = vmax.f32 %v8677_v18, 0.0 }
 0xace   : > { %8692 = vst [vmem:[%s14167_s5 + $0x10] sm:$0xff] %v8684_v21 }
 0xacf   : > { %8693 = vst [vmem:[%s14167_s5 + $0x18] sm:$0xff] %v8685_v45 }
 0xb07   : > { %v8626_v63 = vpop.f32.mrb[32].mxu1 }
 0xb08   : > { %v8627_v49 = vadd.f32 %v8626_v63, %v7849_v56  ;;  %v8628_v50 = vpop.f32.mrb[33].mxu1 }
 0xb09   : > { %v8629_v52 = vadd.f32 %v8628_v50, %v7853_v2  ;;  %v8630_v53 = vpop.f32.mrb[34].mxu1 }
 0xb0a   : > { %v8678_v34 = vadd.f32 %v8627_v49, %v13609_v11  ;;  %v8631_v54 = vpop.f32.mrb[35].mxu1 }
 0xb0b   : > { %v8679_v33 = vadd.f32 %v8629_v52, %v13616_v13 }
 0xb0c   : > { %v8686_v55 = vmax.f32 %v8678_v34, 0.0 }
 0xb0d   : > { %v8687_v51 = vmax.f32 %v8679_v33, 0.0 }
 0xb0e   : > { %8694 = vst [vmem:[%s14167_s5 + $0x20] sm:$0xff] %v8686_v55 }
 0xb0f   : > { %8695 = vst [vmem:[%s14167_s5 + $0x28] sm:$0xff] %v8687_v51 }
 0xb10 PF: > { %s31_s2 = sadd.s32 1, %s10550_s2  }
 0xb11   : > { %p28_p4 = scmp.ge.s32.totalorder %s31_s2, 4  }
 0xb13   :  { %30 = sbr.rel (!%p28_p4) target bundleno = 7 (0x7), region = 134 }

</bundles_post_ra>
